<compile_context>
chip_gen: v6e
topology: v6e:2x2x1
jax: 0.10.0
libtpu: 0.0.40
codegen_flags: <defaults>
</compile_context>

<pallas_src>
import functools

import jax
import jax.numpy as jnp
from jax.experimental import pallas as pl
from jax.experimental.pallas import tpu as pltpu


def _round_up(n, m):
    return ((n + m - 1) // m) * m


# ----------------------------- in-kernel math helpers -----------------------------

def _erf_f32(x):
    # Rational float32 erf approximation built from plain VPU ops (no native erf in Mosaic).
    # TODO(synk): switch to jax.lax.erf if/when Mosaic gains a native erf lowering.
    x = jnp.clip(x, -4.0, 4.0)
    x2 = x * x
    p = jnp.float32(-2.72614225801306e-10)
    for c in (2.77068142495902e-08, -2.10102402082508e-06, -5.69250639462346e-05,
              -7.34990630326855e-04, -2.95459980854025e-03, -1.60960333262415e-02):
        p = p * x2 + jnp.float32(c)
    p = p * x
    q = jnp.float32(-1.45660718464996e-05)
    for c in (-2.13374055278905e-04, -1.68282697438203e-03,
              -7.37332916720468e-03, -1.42647390514189e-02):
        q = q * x2 + jnp.float32(c)
    return p / q


def _gelu_exact(x):
    # nn.GELU() default == exact (erf-based) GELU.
    return jnp.float32(0.5) * x * (jnp.float32(1.0) +
                                   _erf_f32(x * jnp.float32(0.7071067811865476)))


# ------------------------------ in-kernel layout helpers ------------------------------

def _rebuild_image(patch_ref, img_ref, *, C, NPR, P, W):
    """torchvision.make_grid(patches, nrow=NPR, padding=0) into a flat per-channel image.

    patch_ref: (NP, C*P*P)  patch n = gy*NPR+gx, column m = c*P*P + py*P + px
    img_ref:   (C, >=H*W)   img_ref[c, i*W + j]; only lanes [0, H*W) are written
                            (the zero tail past H*W stays zero forever).
    """
    PP = P * P
    for gy in range(NPR):
        rows = [patch_ref[pl.ds(gy * NPR + gx, 1), pl.ds(0, C * PP)]
                for gx in range(NPR)]                                  # NPR x (1, C*PP)
        for py in range(P):
            chan_rows = []
            for c in range(C):
                base = c * PP + py * P
                pieces = [r[:, base:base + P] for r in rows]           # NPR x (1, P)
                chan_rows.append(jnp.concatenate(pieces, axis=1))      # (1, W)
            img_row = jnp.concatenate(chan_rows, axis=0)               # (C, W)
            img_ref[pl.ds(0, C), pl.ds((gy * P + py) * W, W)] = img_row


def _build_cols(img_ref, cols_ref, *, C, P, W, S):
    """im2col in the padded spatial layout s = y*W + x (garbage at x >= H-P+1, nulled by
    zero rows of w1).  cols row r = c*P*P + dy*P + dx is a contiguous slice of the flat image."""
    PP = P * P
    for c in range(C):
        for dy in range(P):
            for dx in range(P):
                r = c * PP + dy * P + dx
                cols_ref[pl.ds(r, 1), pl.ds(0, S)] = \
                    img_ref[pl.ds(c, 1), pl.ds(dy * W + dx, S)]


# --------------------------------- fused Pallas kernel ---------------------------------

def _vit_alta_kernel(patches0_ref, w1_ref, b1_ref, w2_ref, b2_ref,
                     gamma_ref, beta_ref, wh_ref, bh_ref,
                     out_ref,
                     patch_ref, img_ref, cols_ref,
                     *, C, NPR, P, W, S, HWIMG, D):
    b = pl.program_id(0)
    last = pl.num_programs(0) - 1

    @pl.when(b == 0)
    def _init():
        img_ref[...] = jnp.zeros_like(img_ref)      # zero tail protects the padded im2col reads
        cols_ref[...] = jnp.zeros_like(cols_ref)    # lanes >= S stay zero (hit zero w1 rows)
        out_ref[...] = jnp.zeros_like(out_ref)
        patch_ref[...] = patches0_ref[...]          # patches of x[0]
        _rebuild_image(patch_ref, img_ref, C=C, NPR=NPR, P=P, W=W)   # initial image = x[0]

    # ---------------- PatchSelfConv block b (sample 0 only) ----------------
    _build_cols(img_ref, cols_ref, C=C, P=P, W=W, S=S)
    w = patch_ref[...]                                                   # conv weights = own patches
    hid = jnp.dot(w, cols_ref[...], preferred_element_type=jnp.float32)  # (NP, SPAD) conv as matmul
    z = jnp.dot(hid, w1_ref[...], preferred_element_type=jnp.float32) + b1_ref[...]
    z = _gelu_exact(z)
    o = jnp.dot(z, w2_ref[...], preferred_element_type=jnp.float32) + b2_ref[...]  # (NP, C*P*P)
    patch_ref[...] = o                                                   # next block's conv weights
    _rebuild_image(patch_ref, img_ref, C=C, NPR=NPR, P=P, W=W)           # make_grid -> next image

    # ---------------- LayerNorm + Linear head on the final image ----------------
    @pl.when(b == last)
    def _final():
        xv = img_ref[pl.ds(0, C), pl.ds(0, HWIMG)]                       # (C, H*W) == flatten order
        inv_d = jnp.float32(1.0 / D)
        mean = jnp.sum(xv) * inv_d
        xc = xv - mean
        var = jnp.sum(xc * xc) * inv_d
        xn = xc * jax.lax.rsqrt(var + jnp.float32(1e-5))
        xn = xn * gamma_ref[...] + beta_ref[...]
        acc = bh_ref[...]                                                # (1, MPAD), lane-dense
        for c in range(C):
            acc = acc + jnp.dot(xn[c:c + 1, :], wh_ref[c],
                                preferred_element_type=jnp.float32)
        out_ref[...] = acc


# ------------------------------ wrapper (single pallas_call) ------------------------------

@functools.partial(jax.jit, static_argnames=("npr", "num_classes"))
def vit_alta_forward(x, w1_all, b1_all, w2_all, b2_all, gamma, beta, wh, bh,
                     *, npr, num_classes):
    B, C, H, Wd = x.shape
    P = H // npr
    NP = npr * npr
    PP = P * P
    CPP = C * PP
    Hh = H - P + 1
    S = Wd * Hh                      # padded im2col width (valid + garbage-x columns)
    NB, SPAD, CF = w1_all.shape
    HWIMG = H * Wd
    D = C * HWIMG
    MPAD = wh.shape[-1]
    IMG_LANES = _round_up(max(HWIMG, (P - 1) * Wd + (P - 1) + S), 128)

    # One-time preprocessing: patches of sample 0 (make_grid(out_patch[0]) bug => B=1 encoder).
    patches0 = (x[0].reshape(C, npr, P, npr, P)
                     .transpose(1, 3, 0, 2, 4)
                     .reshape(NP, CPP))

    flops = NB * 2 * (NP * CPP * SPAD + NP * SPAD * CF + NP * CF * CPP) + 2 * D * MPAD
    bytes_accessed = 4 * (patches0.size + w1_all.size + b1_all.size + w2_all.size +
                          b2_all.size + gamma.size + beta.size + wh.size + bh.size + MPAD)

    kernel = functools.partial(_vit_alta_kernel, C=C, NPR=npr, P=P, W=Wd, S=S,
                               HWIMG=HWIMG, D=D)

    out = pl.pallas_call(
        kernel,
        out_shape=jax.ShapeDtypeStruct((1, MPAD), jnp.float32),
        grid_spec=pltpu.PrefetchScalarGridSpec(
            num_scalar_prefetch=0,
            grid=(NB,),
            in_specs=[
                pl.BlockSpec((NP, CPP), lambda b: (0, 0)),               # patches of x[0]
                pl.BlockSpec((None, SPAD, CF), lambda b: (b, 0, 0)),     # per-block w1 (streamed)
                pl.BlockSpec((None, 1, CF), lambda b: (b, 0, 0)),        # per-block b1
                pl.BlockSpec((None, CF, CPP), lambda b: (b, 0, 0)),      # per-block w2 (block-diag)
                pl.BlockSpec((None, 1, CPP), lambda b: (b, 0, 0)),       # per-block b2
                pl.BlockSpec((C, HWIMG), lambda b: (0, 0)),              # LayerNorm gamma
                pl.BlockSpec((C, HWIMG), lambda b: (0, 0)),              # LayerNorm beta
                pl.BlockSpec((C, HWIMG, MPAD), lambda b: (0, 0, 0)),     # head weight (lane-padded)
                pl.BlockSpec((1, MPAD), lambda b: (0, 0)),               # head bias
            ],
            out_specs=pl.BlockSpec((1, MPAD), lambda b: (0, 0)),
            scratch_shapes=[
                pltpu.VMEM((NP, CPP), jnp.float32),        # carried patch tensor / conv weights
                pltpu.VMEM((C, IMG_LANES), jnp.float32),   # carried flat image (zero tail)
                pltpu.VMEM((CPP, SPAD), jnp.float32),      # im2col buffer
            ],
        ),
        compiler_params=pltpu.CompilerParams(
            dimension_semantics=("arbitrary",),            # serial dependent block chain
            vmem_limit_bytes=32 * 1024 * 1024,
        ),
        cost_estimate=pl.CostEstimate(flops=flops, transcendentals=0,
                                      bytes_accessed=bytes_accessed),
    )(patches0, w1_all, b1_all, w2_all, b2_all, gamma, beta, wh, bh)

    logits = out[:, :num_classes]
    return jnp.broadcast_to(logits, (B, num_classes))


# --------------------------- parameter preparation (once) ---------------------------

def prepare_block_params(w1, b1, w2, b2, *, hh, width, spad):
    """Per-channel FFN params -> fused kernel layout.
    w1: (C, hh*hh, F)  b1: (C, 1, F)  w2: (C, F, PP)  b2: (C, 1, PP)
    Returns w1k (spad, C*F) with zero rows at padded/garbage spatial positions,
            b1k (1, C*F), w2k (C*F, C*PP) block-diagonal, b2k (1, C*PP)."""
    C, HWT, F = w1.shape
    PP = w2.shape[-1]
    w1cat = jnp.transpose(w1, (1, 0, 2)).reshape(HWT, C * F)     # row = y*hh + x
    w1cat = w1cat.reshape(hh, hh, C * F)
    w1k = jnp.zeros((hh, width, C * F), jnp.float32).at[:, :hh, :].set(w1cat)
    w1k = w1k.reshape(hh * width, C * F)                         # row = y*width + x
    w1k = jnp.pad(w1k, ((0, spad - hh * width), (0, 0)))
    b1k = b1.reshape(1, C * F)
    w2k = jnp.zeros((C * F, C * PP), jnp.float32)
    for c in range(C):
        w2k = w2k.at[c * F:(c + 1) * F, c * PP:(c + 1) * PP].set(w2[c])
    b2k = b2.reshape(1, C * PP)
    return w1k, b1k, w2k, b2k


def prepare_head_params(gamma, beta, w, b, *, C, hw, num_classes):
    """gamma/beta: (C*hw,), w: (C*hw, M), b: (M,) -> kernel layouts (head output lane-padded)."""
    mpad = _round_up(max(num_classes, 1), 128)
    wh = jnp.pad(w, ((0, 0), (0, mpad - num_classes))).reshape(C, hw, mpad)
    bh = jnp.pad(b.reshape(1, -1), ((0, 0), (0, mpad - num_classes)))
    return gamma.reshape(C, hw), beta.reshape(C, hw), wh, bh


# -------------------------------------- main --------------------------------------

if __name__ == "__main__":
    # Small, self-consistent shapes. in_channels must be 3 (reference forward hard-codes 3 FFNs).
    B, C, IMG = 2, 3, 16
    NPR = 4
    P = IMG // NPR               # 4
    NP = NPR * NPR               # 16
    PP = P * P                   # 16
    HH = IMG - P + 1             # 13
    HWT = HH * HH                # 169
    S = IMG * HH                 # 208 (padded im2col width)
    SPAD = _round_up(S, 128)     # 256
    FFN = 128
    NUM_BLOCKS = 2
    NUM_CLASSES = 10
    HWIMG = IMG * IMG            # 256
    D = C * HWIMG                # 768

    key = jax.random.PRNGKey(0)
    k_x, k_head, *k_blocks = jax.random.split(key, 2 + NUM_BLOCKS)

    x = jax.random.normal(k_x, (B, C, IMG, IMG), jnp.float32)

    w1s, b1s, w2s, b2s = [], [], [], []
    for kb in k_blocks:
        k1, k2, k3, k4 = jax.random.split(kb, 4)
        w1 = jax.random.normal(k1, (C, HWT, FFN), jnp.float32) / jnp.sqrt(HWT)
        b1 = 0.01 * jax.random.normal(k2, (C, 1, FFN), jnp.float32)
        w2 = jax.random.normal(k3, (C, FFN, PP), jnp.float32) / jnp.sqrt(FFN)
        b2 = 0.01 * jax.random.normal(k4, (C, 1, PP), jnp.float32)
        a, bb, cc, dd = prepare_block_params(w1, b1, w2, b2, hh=HH, width=IMG, spad=SPAD)
        w1s.append(a), b1s.append(bb), w2s.append(cc), b2s.append(dd)
    w1_all = jnp.stack(w1s)          # (NB, SPAD, C*FFN)
    b1_all = jnp.stack(b1s)          # (NB, 1, C*FFN)
    w2_all = jnp.stack(w2s)          # (NB, C*FFN, C*PP)
    b2_all = jnp.stack(b2s)          # (NB, 1, C*PP)

    gamma, beta, wh, bh = prepare_head_params(
        jnp.ones((D,), jnp.float32),                 # LayerNorm default init
        jnp.zeros((D,), jnp.float32),
        jax.random.normal(k_head, (D, NUM_CLASSES), jnp.float32) / jnp.sqrt(D),
        jnp.zeros((NUM_CLASSES,), jnp.float32),
        C=C, hw=HWIMG, num_classes=NUM_CLASSES)

    logits = vit_alta_forward(x, w1_all, b1_all, w2_all, b2_all, gamma, beta, wh, bh,
                              npr=NPR, num_classes=NUM_CLASSES)
    jax.block_until_ready(logits)
    assert logits.shape == (B, NUM_CLASSES) and logits.dtype == jnp.float32
    assert bool(jnp.all(jnp.isfinite(logits)))
    print("KERNEL_OK")
</pallas_src>

<mosaic_0001>
module attributes {stable_mosaic.version = 11 : i64} {
  func.func @_vit_alta_kernel(%arg0: i32, %arg1: memref<16x48xf32, #tpu.memory_space<vmem>>, %arg2: memref<1x256x384xf32, #tpu.memory_space<vmem>>, %arg3: memref<1x1x384xf32, #tpu.memory_space<vmem>>, %arg4: memref<1x384x48xf32, #tpu.memory_space<vmem>>, %arg5: memref<1x1x48xf32, #tpu.memory_space<vmem>>, %arg6: memref<3x256xf32, #tpu.memory_space<vmem>>, %arg7: memref<3x256xf32, #tpu.memory_space<vmem>>, %arg8: memref<3x256x128xf32, #tpu.memory_space<vmem>>, %arg9: memref<1x128xf32, #tpu.memory_space<vmem>>, %arg10: memref<1x128xf32, #tpu.memory_space<vmem>>, %arg11: memref<16x48xf32, #tpu.memory_space<vmem>>, %arg12: memref<3x384xf32, #tpu.memory_space<vmem>>, %arg13: memref<48x256xf32, #tpu.memory_space<vmem>>) attributes {dimension_semantics = [#tpu.dimension_semantics<arbitrary>], iteration_bounds = array<i64: 2>, scalar_prefetch = 0 : i64, scratch_operands = 3 : i64, tpu.core_type = #tpu.core_type<tc>, window_params = [{pipeline_mode = #tpu.pipeline_mode<synchronous>, transform_indices = @transform_0, window_bounds = array<i64: 16, 48>}, {transform_indices = @transform_1, window_bounds = array<i64: 1, 256, 384>}, {transform_indices = @transform_2, window_bounds = array<i64: 1, 1, 384>}, {transform_indices = @transform_3, window_bounds = array<i64: 1, 384, 48>}, {transform_indices = @transform_4, window_bounds = array<i64: 1, 1, 48>}, {pipeline_mode = #tpu.pipeline_mode<synchronous>, transform_indices = @transform_5, window_bounds = array<i64: 3, 256>}, {pipeline_mode = #tpu.pipeline_mode<synchronous>, transform_indices = @transform_6, window_bounds = array<i64: 3, 256>}, {pipeline_mode = #tpu.pipeline_mode<synchronous>, transform_indices = @transform_7, window_bounds = array<i64: 3, 256, 128>}, {pipeline_mode = #tpu.pipeline_mode<synchronous>, transform_indices = @transform_8, window_bounds = array<i64: 1, 128>}, {pipeline_mode = #tpu.pipeline_mode<synchronous>, transform_indices = @transform_9, window_bounds = array<i64: 1, 128>}]} {
    %c0_i32 = arith.constant 0 : i32
    %0 = arith.cmpi eq, %arg0, %c0_i32 : i32
    %1 = arith.extui %0 : i1 to i32
    %c0_i32_0 = arith.constant 0 : i32
    %2 = arith.cmpi ne, %1, %c0_i32_0 : i32
    scf.if %2 {
      %cst_231 = arith.constant 0.000000e+00 : f32
      %454 = vector.broadcast %cst_231 : f32 to vector<3x384xf32>
      %c0_232 = arith.constant 0 : index
      %c0_233 = arith.constant 0 : index
      %455 = vector.load %arg12[%c0_232, %c0_233] : memref<3x384xf32, #tpu.memory_space<vmem>>, vector<3x384xf32>
      tpu.vector_store %arg12[%c0_232, %c0_233], %454 {strides = array<i32>} : memref<3x384xf32, #tpu.memory_space<vmem>>, vector<3x384xf32>,
      %cst_234 = arith.constant 0.000000e+00 : f32
      %456 = vector.broadcast %cst_234 : f32 to vector<48x256xf32>
      %c0_235 = arith.constant 0 : index
      %c0_236 = arith.constant 0 : index
      %457 = vector.load %arg13[%c0_235, %c0_236] : memref<48x256xf32, #tpu.memory_space<vmem>>, vector<48x256xf32>
      tpu.vector_store %arg13[%c0_235, %c0_236], %456 {strides = array<i32>} : memref<48x256xf32, #tpu.memory_space<vmem>>, vector<48x256xf32>,
      %cst_237 = arith.constant 0.000000e+00 : f32
      %458 = vector.broadcast %cst_237 : f32 to vector<1x128xf32>
      %c0_238 = arith.constant 0 : index
      %c0_239 = arith.constant 0 : index
      %459 = vector.load %arg10[%c0_238, %c0_239] : memref<1x128xf32, #tpu.memory_space<vmem>>, vector<1x128xf32>
      tpu.vector_store %arg10[%c0_238, %c0_239], %458 {strides = array<i32>} : memref<1x128xf32, #tpu.memory_space<vmem>>, vector<1x128xf32>,
      %c0_240 = arith.constant 0 : index
      %c0_241 = arith.constant 0 : index
      %460 = vector.load %arg1[%c0_240, %c0_241] : memref<16x48xf32, #tpu.memory_space<vmem>>, vector<16x48xf32>
      %c0_242 = arith.constant 0 : index
      %c0_243 = arith.constant 0 : index
      %461 = vector.load %arg11[%c0_242, %c0_243] : memref<16x48xf32, #tpu.memory_space<vmem>>, vector<16x48xf32>
      tpu.vector_store %arg11[%c0_242, %c0_243], %460 {strides = array<i32>} : memref<16x48xf32, #tpu.memory_space<vmem>>, vector<16x48xf32>,
      %c0_244 = arith.constant 0 : index
      %c0_245 = arith.constant 0 : index
      %462 = vector.load %arg11[%c0_244, %c0_245] : memref<16x48xf32, #tpu.memory_space<vmem>>, vector<1x48xf32>
      %c1_246 = arith.constant 1 : index
      %c0_247 = arith.constant 0 : index
      %463 = vector.load %arg11[%c1_246, %c0_247] : memref<16x48xf32, #tpu.memory_space<vmem>>, vector<1x48xf32>
      %c2_248 = arith.constant 2 : index
      %c0_249 = arith.constant 0 : index
      %464 = vector.load %arg11[%c2_248, %c0_249] : memref<16x48xf32, #tpu.memory_space<vmem>>, vector<1x48xf32>
      %c3_250 = arith.constant 3 : index
      %c0_251 = arith.constant 0 : index
      %465 = vector.load %arg11[%c3_250, %c0_251] : memref<16x48xf32, #tpu.memory_space<vmem>>, vector<1x48xf32>
      %466 = vector.extract_strided_slice %462 {offsets = [0, 0], sizes = [1, 4], strides = [1, 1]} : vector<1x48xf32> to vector<1x4xf32>
      %467 = vector.extract_strided_slice %463 {offsets = [0, 0], sizes = [1, 4], strides = [1, 1]} : vector<1x48xf32> to vector<1x4xf32>
      %468 = vector.extract_strided_slice %464 {offsets = [0, 0], sizes = [1, 4], strides = [1, 1]} : vector<1x48xf32> to vector<1x4xf32>
      %469 = vector.extract_strided_slice %465 {offsets = [0, 0], sizes = [1, 4], strides = [1, 1]} : vector<1x48xf32> to vector<1x4xf32>
      %470 = tpu.concatenate %466, %467, %468, %469 in 1 : vector<1x4xf32>, vector<1x4xf32>, vector<1x4xf32>, vector<1x4xf32> -> vector<1x16xf32>
      %471 = vector.extract_strided_slice %462 {offsets = [0, 16], sizes = [1, 4], strides = [1, 1]} : vector<1x48xf32> to vector<1x4xf32>
      %472 = vector.extract_strided_slice %463 {offsets = [0, 16], sizes = [1, 4], strides = [1, 1]} : vector<1x48xf32> to vector<1x4xf32>
      %473 = vector.extract_strided_slice %464 {offsets = [0, 16], sizes = [1, 4], strides = [1, 1]} : vector<1x48xf32> to vector<1x4xf32>
      %474 = vector.extract_strided_slice %465 {offsets = [0, 16], sizes = [1, 4], strides = [1, 1]} : vector<1x48xf32> to vector<1x4xf32>
      %475 = tpu.concatenate %471, %472, %473, %474 in 1 : vector<1x4xf32>, vector<1x4xf32>, vector<1x4xf32>, vector<1x4xf32> -> vector<1x16xf32>
      %476 = vector.extract_strided_slice %462 {offsets = [0, 32], sizes = [1, 4], strides = [1, 1]} : vector<1x48xf32> to vector<1x4xf32>
      %477 = vector.extract_strided_slice %463 {offsets = [0, 32], sizes = [1, 4], strides = [1, 1]} : vector<1x48xf32> to vector<1x4xf32>
      %478 = vector.extract_strided_slice %464 {offsets = [0, 32], sizes = [1, 4], strides = [1, 1]} : vector<1x48xf32> to vector<1x4xf32>
      %479 = vector.extract_strided_slice %465 {offsets = [0, 32], sizes = [1, 4], strides = [1, 1]} : vector<1x48xf32> to vector<1x4xf32>
      %480 = tpu.concatenate %476, %477, %478, %479 in 1 : vector<1x4xf32>, vector<1x4xf32>, vector<1x4xf32>, vector<1x4xf32> -> vector<1x16xf32>
      %481 = tpu.concatenate %470, %475, %480 in 0 : vector<1x16xf32>, vector<1x16xf32>, vector<1x16xf32> -> vector<3x16xf32>
      %c0_252 = arith.constant 0 : index
      %c0_253 = arith.constant 0 : index
      %482 = vector.load %arg12[%c0_252, %c0_253] : memref<3x384xf32, #tpu.memory_space<vmem>>, vector<3x16xf32>
      tpu.vector_store %arg12[%c0_252, %c0_253], %481 {strides = array<i32>} : memref<3x384xf32, #tpu.memory_space<vmem>>, vector<3x16xf32>,
      %483 = vector.extract_strided_slice %462 {offsets = [0, 4], sizes = [1, 4], strides = [1, 1]} : vector<1x48xf32> to vector<1x4xf32>
      %484 = vector.extract_strided_slice %463 {offsets = [0, 4], sizes = [1, 4], strides = [1, 1]} : vector<1x48xf32> to vector<1x4xf32>
      %485 = vector.extract_strided_slice %464 {offsets = [0, 4], sizes = [1, 4], strides = [1, 1]} : vector<1x48xf32> to vector<1x4xf32>
      %486 = vector.extract_strided_slice %465 {offsets = [0, 4], sizes = [1, 4], strides = [1, 1]} : vector<1x48xf32> to vector<1x4xf32>
      %487 = tpu.concatenate %483, %484, %485, %486 in 1 : vector<1x4xf32>, vector<1x4xf32>, vector<1x4xf32>, vector<1x4xf32> -> vector<1x16xf32>
      %488 = vector.extract_strided_slice %462 {offsets = [0, 20], sizes = [1, 4], strides = [1, 1]} : vector<1x48xf32> to vector<1x4xf32>
      %489 = vector.extract_strided_slice %463 {offsets = [0, 20], sizes = [1, 4], strides = [1, 1]} : vector<1x48xf32> to vector<1x4xf32>
      %490 = vector.extract_strided_slice %464 {offsets = [0, 20], sizes = [1, 4], strides = [1, 1]} : vector<1x48xf32> to vector<1x4xf32>
      %491 = vector.extract_strided_slice %465 {offsets = [0, 20], sizes = [1, 4], strides = [1, 1]} : vector<1x48xf32> to vector<1x4xf32>
      %492 = tpu.concatenate %488, %489, %490, %491 in 1 : vector<1x4xf32>, vector<1x4xf32>, vector<1x4xf32>, vector<1x4xf32> -> vector<1x16xf32>
      %493 = vector.extract_strided_slice %462 {offsets = [0, 36], sizes = [1, 4], strides = [1, 1]} : vector<1x48xf32> to vector<1x4xf32>
      %494 = vector.extract_strided_slice %463 {offsets = [0, 36], sizes = [1, 4], strides = [1, 1]} : vector<1x48xf32> to vector<1x4xf32>
      %495 = vector.extract_strided_slice %464 {offsets = [0, 36], sizes = [1, 4], strides = [1, 1]} : vector<1x48xf32> to vector<1x4xf32>
      %496 = vector.extract_strided_slice %465 {offsets = [0, 36], sizes = [1, 4], strides = [1, 1]} : vector<1x48xf32> to vector<1x4xf32>
      %497 = tpu.concatenate %493, %494, %495, %496 in 1 : vector<1x4xf32>, vector<1x4xf32>, vector<1x4xf32>, vector<1x4xf32> -> vector<1x16xf32>
      %498 = tpu.concatenate %487, %492, %497 in 0 : vector<1x16xf32>, vector<1x16xf32>, vector<1x16xf32> -> vector<3x16xf32>
      %c0_254 = arith.constant 0 : index
      %c16_255 = arith.constant 16 : index
      %499 = vector.load %arg12[%c0_254, %c16_255] : memref<3x384xf32, #tpu.memory_space<vmem>>, vector<3x16xf32>
      tpu.vector_store %arg12[%c0_254, %c16_255], %498 {strides = array<i32>} : memref<3x384xf32, #tpu.memory_space<vmem>>, vector<3x16xf32>,
      %500 = vector.extract_strided_slice %462 {offsets = [0, 8], sizes = [1, 4], strides = [1, 1]} : vector<1x48xf32> to vector<1x4xf32>
      %501 = vector.extract_strided_slice %463 {offsets = [0, 8], sizes = [1, 4], strides = [1, 1]} : vector<1x48xf32> to vector<1x4xf32>
      %502 = vector.extract_strided_slice %464 {offsets = [0, 8], sizes = [1, 4], strides = [1, 1]} : vector<1x48xf32> to vector<1x4xf32>
      %503 = vector.extract_strided_slice %465 {offsets = [0, 8], sizes = [1, 4], strides = [1, 1]} : vector<1x48xf32> to vector<1x4xf32>
      %504 = tpu.concatenate %500, %501, %502, %503 in 1 : vector<1x4xf32>, vector<1x4xf32>, vector<1x4xf32>, vector<1x4xf32> -> vector<1x16xf32>
      %505 = vector.extract_strided_slice %462 {offsets = [0, 24], sizes = [1, 4], strides = [1, 1]} : vector<1x48xf32> to vector<1x4xf32>
      %506 = vector.extract_strided_slice %463 {offsets = [0, 24], sizes = [1, 4], strides = [1, 1]} : vector<1x48xf32> to vector<1x4xf32>
      %507 = vector.extract_strided_slice %464 {offsets = [0, 24], sizes = [1, 4], strides = [1, 1]} : vector<1x48xf32> to vector<1x4xf32>
      %508 = vector.extract_strided_slice %465 {offsets = [0, 24], sizes = [1, 4], strides = [1, 1]} : vector<1x48xf32> to vector<1x4xf32>
      %509 = tpu.concatenate %505, %506, %507, %508 in 1 : vector<1x4xf32>, vector<1x4xf32>, vector<1x4xf32>, vector<1x4xf32> -> vector<1x16xf32>
      %510 = vector.extract_strided_slice %462 {offsets = [0, 40], sizes = [1, 4], strides = [1, 1]} : vector<1x48xf32> to vector<1x4xf32>
      %511 = vector.extract_strided_slice %463 {offsets = [0, 40], sizes = [1, 4], strides = [1, 1]} : vector<1x48xf32> to vector<1x4xf32>
      %512 = vector.extract_strided_slice %464 {offsets = [0, 40], sizes = [1, 4], strides = [1, 1]} : vector<1x48xf32> to vector<1x4xf32>
      %513 = vector.extract_strided_slice %465 {offsets = [0, 40], sizes = [1, 4], strides = [1, 1]} : vector<1x48xf32> to vector<1x4xf32>
      %514 = tpu.concatenate %510, %511, %512, %513 in 1 : vector<1x4xf32>, vector<1x4xf32>, vector<1x4xf32>, vector<1x4xf32> -> vector<1x16xf32>
      %515 = tpu.concatenate %504, %509, %514 in 0 : vector<1x16xf32>, vector<1x16xf32>, vector<1x16xf32> -> vector<3x16xf32>
      %c0_256 = arith.constant 0 : index
      %c32_257 = arith.constant 32 : index
      %516 = vector.load %arg12[%c0_256, %c32_257] : memref<3x384xf32, #tpu.memory_space<vmem>>, vector<3x16xf32>
      tpu.vector_store %arg12[%c0_256, %c32_257], %515 {strides = array<i32>} : memref<3x384xf32, #tpu.memory_space<vmem>>, vector<3x16xf32>,
      %517 = vector.extract_strided_slice %462 {offsets = [0, 12], sizes = [1, 4], strides = [1, 1]} : vector<1x48xf32> to vector<1x4xf32>
      %518 = vector.extract_strided_slice %463 {offsets = [0, 12], sizes = [1, 4], strides = [1, 1]} : vector<1x48xf32> to vector<1x4xf32>
      %519 = vector.extract_strided_slice %464 {offsets = [0, 12], sizes = [1, 4], strides = [1, 1]} : vector<1x48xf32> to vector<1x4xf32>
      %520 = vector.extract_strided_slice %465 {offsets = [0, 12], sizes = [1, 4], strides = [1, 1]} : vector<1x48xf32> to vector<1x4xf32>
      %521 = tpu.concatenate %517, %518, %519, %520 in 1 : vector<1x4xf32>, vector<1x4xf32>, vector<1x4xf32>, vector<1x4xf32> -> vector<1x16xf32>
      %522 = vector.extract_strided_slice %462 {offsets = [0, 28], sizes = [1, 4], strides = [1, 1]} : vector<1x48xf32> to vector<1x4xf32>
      %523 = vector.extract_strided_slice %463 {offsets = [0, 28], sizes = [1, 4], strides = [1, 1]} : vector<1x48xf32> to vector<1x4xf32>
      %524 = vector.extract_strided_slice %464 {offsets = [0, 28], sizes = [1, 4], strides = [1, 1]} : vector<1x48xf32> to vector<1x4xf32>
      %525 = vector.extract_strided_slice %465 {offsets = [0, 28], sizes = [1, 4], strides = [1, 1]} : vector<1x48xf32> to vector<1x4xf32>
      %526 = tpu.concatenate %522, %523, %524, %525 in 1 : vector<1x4xf32>, vector<1x4xf32>, vector<1x4xf32>, vector<1x4xf32> -> vector<1x16xf32>
      %527 = vector.extract_strided_slice %462 {offsets = [0, 44], sizes = [1, 4], strides = [1, 1]} : vector<1x48xf32> to vector<1x4xf32>
      %528 = vector.extract_strided_slice %463 {offsets = [0, 44], sizes = [1, 4], strides = [1, 1]} : vector<1x48xf32> to vector<1x4xf32>
      %529 = vector.extract_strided_slice %464 {offsets = [0, 44], sizes = [1, 4], strides = [1, 1]} : vector<1x48xf32> to vector<1x4xf32>
      %530 = vector.extract_strided_slice %465 {offsets = [0, 44], sizes = [1, 4], strides = [1, 1]} : vector<1x48xf32> to vector<1x4xf32>
      %531 = tpu.concatenate %527, %528, %529, %530 in 1 : vector<1x4xf32>, vector<1x4xf32>, vector<1x4xf32>, vector<1x4xf32> -> vector<1x16xf32>
      %532 = tpu.concatenate %521, %526, %531 in 0 : vector<1x16xf32>, vector<1x16xf32>, vector<1x16xf32> -> vector<3x16xf32>
      %c0_258 = arith.constant 0 : index
      %c48_259 = arith.constant 48 : index
      %533 = vector.load %arg12[%c0_258, %c48_259] : memref<3x384xf32, #tpu.memory_space<vmem>>, vector<3x16xf32>
      tpu.vector_store %arg12[%c0_258, %c48_259], %532 {strides = array<i32>} : memref<3x384xf32, #tpu.memory_space<vmem>>, vector<3x16xf32>,
      %c4_260 = arith.constant 4 : index
      %c0_261 = arith.constant 0 : index
      %534 = vector.load %arg11[%c4_260, %c0_261] : memref<16x48xf32, #tpu.memory_space<vmem>>, vector<1x48xf32>
      %c5_262 = arith.constant 5 : index
      %c0_263 = arith.constant 0 : index
      %535 = vector.load %arg11[%c5_262, %c0_263] : memref<16x48xf32, #tpu.memory_space<vmem>>, vector<1x48xf32>
      %c6_264 = arith.constant 6 : index
      %c0_265 = arith.constant 0 : index
      %536 = vector.load %arg11[%c6_264, %c0_265] : memref<16x48xf32, #tpu.memory_space<vmem>>, vector<1x48xf32>
      %c7_266 = arith.constant 7 : index
      %c0_267 = arith.constant 0 : index
      %537 = vector.load %arg11[%c7_266, %c0_267] : memref<16x48xf32, #tpu.memory_space<vmem>>, vector<1x48xf32>
      %538 = vector.extract_strided_slice %534 {offsets = [0, 0], sizes = [1, 4], strides = [1, 1]} : vector<1x48xf32> to vector<1x4xf32>
      %539 = vector.extract_strided_slice %535 {offsets = [0, 0], sizes = [1, 4], strides = [1, 1]} : vector<1x48xf32> to vector<1x4xf32>
      %540 = vector.extract_strided_slice %536 {offsets = [0, 0], sizes = [1, 4], strides = [1, 1]} : vector<1x48xf32> to vector<1x4xf32>
      %541 = vector.extract_strided_slice %537 {offsets = [0, 0], sizes = [1, 4], strides = [1, 1]} : vector<1x48xf32> to vector<1x4xf32>
      %542 = tpu.concatenate %538, %539, %540, %541 in 1 : vector<1x4xf32>, vector<1x4xf32>, vector<1x4xf32>, vector<1x4xf32> -> vector<1x16xf32>
      %543 = vector.extract_strided_slice %534 {offsets = [0, 16], sizes = [1, 4], strides = [1, 1]} : vector<1x48xf32> to vector<1x4xf32>
      %544 = vector.extract_strided_slice %535 {offsets = [0, 16], sizes = [1, 4], strides = [1, 1]} : vector<1x48xf32> to vector<1x4xf32>
      %545 = vector.extract_strided_slice %536 {offsets = [0, 16], sizes = [1, 4], strides = [1, 1]} : vector<1x48xf32> to vector<1x4xf32>
      %546 = vector.extract_strided_slice %537 {offsets = [0, 16], sizes = [1, 4], strides = [1, 1]} : vector<1x48xf32> to vector<1x4xf32>
      %547 = tpu.concatenate %543, %544, %545, %546 in 1 : vector<1x4xf32>, vector<1x4xf32>, vector<1x4xf32>, vector<1x4xf32> -> vector<1x16xf32>
      %548 = vector.extract_strided_slice %534 {offsets = [0, 32], sizes = [1, 4], strides = [1, 1]} : vector<1x48xf32> to vector<1x4xf32>
      %549 = vector.extract_strided_slice %535 {offsets = [0, 32], sizes = [1, 4], strides = [1, 1]} : vector<1x48xf32> to vector<1x4xf32>
      %550 = vector.extract_strided_slice %536 {offsets = [0, 32], sizes = [1, 4], strides = [1, 1]} : vector<1x48xf32> to vector<1x4xf32>
      %551 = vector.extract_strided_slice %537 {offsets = [0, 32], sizes = [1, 4], strides = [1, 1]} : vector<1x48xf32> to vector<1x4xf32>
      %552 = tpu.concatenate %548, %549, %550, %551 in 1 : vector<1x4xf32>, vector<1x4xf32>, vector<1x4xf32>, vector<1x4xf32> -> vector<1x16xf32>
      %553 = tpu.concatenate %542, %547, %552 in 0 : vector<1x16xf32>, vector<1x16xf32>, vector<1x16xf32> -> vector<3x16xf32>
      %c0_268 = arith.constant 0 : index
      %c64_269 = arith.constant 64 : index
      %554 = vector.load %arg12[%c0_268, %c64_269] : memref<3x384xf32, #tpu.memory_space<vmem>>, vector<3x16xf32>
      tpu.vector_store %arg12[%c0_268, %c64_269], %553 {strides = array<i32>} : memref<3x384xf32, #tpu.memory_space<vmem>>, vector<3x16xf32>,
      %555 = vector.extract_strided_slice %534 {offsets = [0, 4], sizes = [1, 4], strides = [1, 1]} : vector<1x48xf32> to vector<1x4xf32>
      %556 = vector.extract_strided_slice %535 {offsets = [0, 4], sizes = [1, 4], strides = [1, 1]} : vector<1x48xf32> to vector<1x4xf32>
      %557 = vector.extract_strided_slice %536 {offsets = [0, 4], sizes = [1, 4], strides = [1, 1]} : vector<1x48xf32> to vector<1x4xf32>
      %558 = vector.extract_strided_slice %537 {offsets = [0, 4], sizes = [1, 4], strides = [1, 1]} : vector<1x48xf32> to vector<1x4xf32>
      %559 = tpu.concatenate %555, %556, %557, %558 in 1 : vector<1x4xf32>, vector<1x4xf32>, vector<1x4xf32>, vector<1x4xf32> -> vector<1x16xf32>
      %560 = vector.extract_strided_slice %534 {offsets = [0, 20], sizes = [1, 4], strides = [1, 1]} : vector<1x48xf32> to vector<1x4xf32>
      %561 = vector.extract_strided_slice %535 {offsets = [0, 20], sizes = [1, 4], strides = [1, 1]} : vector<1x48xf32> to vector<1x4xf32>
      %562 = vector.extract_strided_slice %536 {offsets = [0, 20], sizes = [1, 4], strides = [1, 1]} : vector<1x48xf32> to vector<1x4xf32>
      %563 = vector.extract_strided_slice %537 {offsets = [0, 20], sizes = [1, 4], strides = [1, 1]} : vector<1x48xf32> to vector<1x4xf32>
      %564 = tpu.concatenate %560, %561, %562, %563 in 1 : vector<1x4xf32>, vector<1x4xf32>, vector<1x4xf32>, vector<1x4xf32> -> vector<1x16xf32>
      %565 = vector.extract_strided_slice %534 {offsets = [0, 36], sizes = [1, 4], strides = [1, 1]} : vector<1x48xf32> to vector<1x4xf32>
      %566 = vector.extract_strided_slice %535 {offsets = [0, 36], sizes = [1, 4], strides = [1, 1]} : vector<1x48xf32> to vector<1x4xf32>
      %567 = vector.extract_strided_slice %536 {offsets = [0, 36], sizes = [1, 4], strides = [1, 1]} : vector<1x48xf32> to vector<1x4xf32>
      %568 = vector.extract_strided_slice %537 {offsets = [0, 36], sizes = [1, 4], strides = [1, 1]} : vector<1x48xf32> to vector<1x4xf32>
      %569 = tpu.concatenate %565, %566, %567, %568 in 1 : vector<1x4xf32>, vector<1x4xf32>, vector<1x4xf32>, vector<1x4xf32> -> vector<1x16xf32>
      %570 = tpu.concatenate %559, %564, %569 in 0 : vector<1x16xf32>, vector<1x16xf32>, vector<1x16xf32> -> vector<3x16xf32>
      %c0_270 = arith.constant 0 : index
      %c80_271 = arith.constant 80 : index
      %571 = vector.load %arg12[%c0_270, %c80_271] : memref<3x384xf32, #tpu.memory_space<vmem>>, vector<3x16xf32>
      tpu.vector_store %arg12[%c0_270, %c80_271], %570 {strides = array<i32>} : memref<3x384xf32, #tpu.memory_space<vmem>>, vector<3x16xf32>,
      %572 = vector.extract_strided_slice %534 {offsets = [0, 8], sizes = [1, 4], strides = [1, 1]} : vector<1x48xf32> to vector<1x4xf32>
      %573 = vector.extract_strided_slice %535 {offsets = [0, 8], sizes = [1, 4], strides = [1, 1]} : vector<1x48xf32> to vector<1x4xf32>
      %574 = vector.extract_strided_slice %536 {offsets = [0, 8], sizes = [1, 4], strides = [1, 1]} : vector<1x48xf32> to vector<1x4xf32>
      %575 = vector.extract_strided_slice %537 {offsets = [0, 8], sizes = [1, 4], strides = [1, 1]} : vector<1x48xf32> to vector<1x4xf32>
      %576 = tpu.concatenate %572, %573, %574, %575 in 1 : vector<1x4xf32>, vector<1x4xf32>, vector<1x4xf32>, vector<1x4xf32> -> vector<1x16xf32>
      %577 = vector.extract_strided_slice %534 {offsets = [0, 24], sizes = [1, 4], strides = [1, 1]} : vector<1x48xf32> to vector<1x4xf32>
      %578 = vector.extract_strided_slice %535 {offsets = [0, 24], sizes = [1, 4], strides = [1, 1]} : vector<1x48xf32> to vector<1x4xf32>
      %579 = vector.extract_strided_slice %536 {offsets = [0, 24], sizes = [1, 4], strides = [1, 1]} : vector<1x48xf32> to vector<1x4xf32>
      %580 = vector.extract_strided_slice %537 {offsets = [0, 24], sizes = [1, 4], strides = [1, 1]} : vector<1x48xf32> to vector<1x4xf32>
      %581 = tpu.concatenate %577, %578, %579, %580 in 1 : vector<1x4xf32>, vector<1x4xf32>, vector<1x4xf32>, vector<1x4xf32> -> vector<1x16xf32>
      %582 = vector.extract_strided_slice %534 {offsets = [0, 40], sizes = [1, 4], strides = [1, 1]} : vector<1x48xf32> to vector<1x4xf32>
      %583 = vector.extract_strided_slice %535 {offsets = [0, 40], sizes = [1, 4], strides = [1, 1]} : vector<1x48xf32> to vector<1x4xf32>
      %584 = vector.extract_strided_slice %536 {offsets = [0, 40], sizes = [1, 4], strides = [1, 1]} : vector<1x48xf32> to vector<1x4xf32>
      %585 = vector.extract_strided_slice %537 {offsets = [0, 40], sizes = [1, 4], strides = [1, 1]} : vector<1x48xf32> to vector<1x4xf32>
      %586 = tpu.concatenate %582, %583, %584, %585 in 1 : vector<1x4xf32>, vector<1x4xf32>, vector<1x4xf32>, vector<1x4xf32> -> vector<1x16xf32>
      %587 = tpu.concatenate %576, %581, %586 in 0 : vector<1x16xf32>, vector<1x16xf32>, vector<1x16xf32> -> vector<3x16xf32>
      %c0_272 = arith.constant 0 : index
      %c96_273 = arith.constant 96 : index
      %588 = vector.load %arg12[%c0_272, %c96_273] : memref<3x384xf32, #tpu.memory_space<vmem>>, vector<3x16xf32>
      tpu.vector_store %arg12[%c0_272, %c96_273], %587 {strides = array<i32>} : memref<3x384xf32, #tpu.memory_space<vmem>>, vector<3x16xf32>,
      %589 = vector.extract_strided_slice %534 {offsets = [0, 12], sizes = [1, 4], strides = [1, 1]} : vector<1x48xf32> to vector<1x4xf32>
      %590 = vector.extract_strided_slice %535 {offsets = [0, 12], sizes = [1, 4], strides = [1, 1]} : vector<1x48xf32> to vector<1x4xf32>
      %591 = vector.extract_strided_slice %536 {offsets = [0, 12], sizes = [1, 4], strides = [1, 1]} : vector<1x48xf32> to vector<1x4xf32>
      %592 = vector.extract_strided_slice %537 {offsets = [0, 12], sizes = [1, 4], strides = [1, 1]} : vector<1x48xf32> to vector<1x4xf32>
      %593 = tpu.concatenate %589, %590, %591, %592 in 1 : vector<1x4xf32>, vector<1x4xf32>, vector<1x4xf32>, vector<1x4xf32> -> vector<1x16xf32>
      %594 = vector.extract_strided_slice %534 {offsets = [0, 28], sizes = [1, 4], strides = [1, 1]} : vector<1x48xf32> to vector<1x4xf32>
      %595 = vector.extract_strided_slice %535 {offsets = [0, 28], sizes = [1, 4], strides = [1, 1]} : vector<1x48xf32> to vector<1x4xf32>
      %596 = vector.extract_strided_slice %536 {offsets = [0, 28], sizes = [1, 4], strides = [1, 1]} : vector<1x48xf32> to vector<1x4xf32>
      %597 = vector.extract_strided_slice %537 {offsets = [0, 28], sizes = [1, 4], strides = [1, 1]} : vector<1x48xf32> to vector<1x4xf32>
      %598 = tpu.concatenate %594, %595, %596, %597 in 1 : vector<1x4xf32>, vector<1x4xf32>, vector<1x4xf32>, vector<1x4xf32> -> vector<1x16xf32>
      %599 = vector.extract_strided_slice %534 {offsets = [0, 44], sizes = [1, 4], strides = [1, 1]} : vector<1x48xf32> to vector<1x4xf32>
      %600 = vector.extract_strided_slice %535 {offsets = [0, 44], sizes = [1, 4], strides = [1, 1]} : vector<1x48xf32> to vector<1x4xf32>
      %601 = vector.extract_strided_slice %536 {offsets = [0, 44], sizes = [1, 4], strides = [1, 1]} : vector<1x48xf32> to vector<1x4xf32>
      %602 = vector.extract_strided_slice %537 {offsets = [0, 44], sizes = [1, 4], strides = [1, 1]} : vector<1x48xf32> to vector<1x4xf32>
      %603 = tpu.concatenate %599, %600, %601, %602 in 1 : vector<1x4xf32>, vector<1x4xf32>, vector<1x4xf32>, vector<1x4xf32> -> vector<1x16xf32>
      %604 = tpu.concatenate %593, %598, %603 in 0 : vector<1x16xf32>, vector<1x16xf32>, vector<1x16xf32> -> vector<3x16xf32>
      %c0_274 = arith.constant 0 : index
      %c112_275 = arith.constant 112 : index
      %605 = vector.load %arg12[%c0_274, %c112_275] : memref<3x384xf32, #tpu.memory_space<vmem>>, vector<3x16xf32>
      tpu.vector_store %arg12[%c0_274, %c112_275], %604 {strides = array<i32>} : memref<3x384xf32, #tpu.memory_space<vmem>>, vector<3x16xf32>,
      %c8_276 = arith.constant 8 : index
      %c0_277 = arith.constant 0 : index
      %606 = vector.load %arg11[%c8_276, %c0_277] : memref<16x48xf32, #tpu.memory_space<vmem>>, vector<1x48xf32>
      %c9_278 = arith.constant 9 : index
      %c0_279 = arith.constant 0 : index
      %607 = vector.load %arg11[%c9_278, %c0_279] : memref<16x48xf32, #tpu.memory_space<vmem>>, vector<1x48xf32>
      %c10_280 = arith.constant 10 : index
      %c0_281 = arith.constant 0 : index
      %608 = vector.load %arg11[%c10_280, %c0_281] : memref<16x48xf32, #tpu.memory_space<vmem>>, vector<1x48xf32>
      %c11_282 = arith.constant 11 : index
      %c0_283 = arith.constant 0 : index
      %609 = vector.load %arg11[%c11_282, %c0_283] : memref<16x48xf32, #tpu.memory_space<vmem>>, vector<1x48xf32>
      %610 = vector.extract_strided_slice %606 {offsets = [0, 0], sizes = [1, 4], strides = [1, 1]} : vector<1x48xf32> to vector<1x4xf32>
      %611 = vector.extract_strided_slice %607 {offsets = [0, 0], sizes = [1, 4], strides = [1, 1]} : vector<1x48xf32> to vector<1x4xf32>
      %612 = vector.extract_strided_slice %608 {offsets = [0, 0], sizes = [1, 4], strides = [1, 1]} : vector<1x48xf32> to vector<1x4xf32>
      %613 = vector.extract_strided_slice %609 {offsets = [0, 0], sizes = [1, 4], strides = [1, 1]} : vector<1x48xf32> to vector<1x4xf32>
      %614 = tpu.concatenate %610, %611, %612, %613 in 1 : vector<1x4xf32>, vector<1x4xf32>, vector<1x4xf32>, vector<1x4xf32> -> vector<1x16xf32>
      %615 = vector.extract_strided_slice %606 {offsets = [0, 16], sizes = [1, 4], strides = [1, 1]} : vector<1x48xf32> to vector<1x4xf32>
      %616 = vector.extract_strided_slice %607 {offsets = [0, 16], sizes = [1, 4], strides = [1, 1]} : vector<1x48xf32> to vector<1x4xf32>
      %617 = vector.extract_strided_slice %608 {offsets = [0, 16], sizes = [1, 4], strides = [1, 1]} : vector<1x48xf32> to vector<1x4xf32>
      %618 = vector.extract_strided_slice %609 {offsets = [0, 16], sizes = [1, 4], strides = [1, 1]} : vector<1x48xf32> to vector<1x4xf32>
      %619 = tpu.concatenate %615, %616, %617, %618 in 1 : vector<1x4xf32>, vector<1x4xf32>, vector<1x4xf32>, vector<1x4xf32> -> vector<1x16xf32>
      %620 = vector.extract_strided_slice %606 {offsets = [0, 32], sizes = [1, 4], strides = [1, 1]} : vector<1x48xf32> to vector<1x4xf32>
      %621 = vector.extract_strided_slice %607 {offsets = [0, 32], sizes = [1, 4], strides = [1, 1]} : vector<1x48xf32> to vector<1x4xf32>
      %622 = vector.extract_strided_slice %608 {offsets = [0, 32], sizes = [1, 4], strides = [1, 1]} : vector<1x48xf32> to vector<1x4xf32>
      %623 = vector.extract_strided_slice %609 {offsets = [0, 32], sizes = [1, 4], strides = [1, 1]} : vector<1x48xf32> to vector<1x4xf32>
      %624 = tpu.concatenate %620, %621, %622, %623 in 1 : vector<1x4xf32>, vector<1x4xf32>, vector<1x4xf32>, vector<1x4xf32> -> vector<1x16xf32>
      %625 = tpu.concatenate %614, %619, %624 in 0 : vector<1x16xf32>, vector<1x16xf32>, vector<1x16xf32> -> vector<3x16xf32>
      %c0_284 = arith.constant 0 : index
      %c128_285 = arith.constant 128 : index
      %626 = vector.load %arg12[%c0_284, %c128_285] : memref<3x384xf32, #tpu.memory_space<vmem>>, vector<3x16xf32>
      tpu.vector_store %arg12[%c0_284, %c128_285], %625 {strides = array<i32>} : memref<3x384xf32, #tpu.memory_space<vmem>>, vector<3x16xf32>,
      %627 = vector.extract_strided_slice %606 {offsets = [0, 4], sizes = [1, 4], strides = [1, 1]} : vector<1x48xf32> to vector<1x4xf32>
      %628 = vector.extract_strided_slice %607 {offsets = [0, 4], sizes = [1, 4], strides = [1, 1]} : vector<1x48xf32> to vector<1x4xf32>
      %629 = vector.extract_strided_slice %608 {offsets = [0, 4], sizes = [1, 4], strides = [1, 1]} : vector<1x48xf32> to vector<1x4xf32>
      %630 = vector.extract_strided_slice %609 {offsets = [0, 4], sizes = [1, 4], strides = [1, 1]} : vector<1x48xf32> to vector<1x4xf32>
      %631 = tpu.concatenate %627, %628, %629, %630 in 1 : vector<1x4xf32>, vector<1x4xf32>, vector<1x4xf32>, vector<1x4xf32> -> vector<1x16xf32>
      %632 = vector.extract_strided_slice %606 {offsets = [0, 20], sizes = [1, 4], strides = [1, 1]} : vector<1x48xf32> to vector<1x4xf32>
      %633 = vector.extract_strided_slice %607 {offsets = [0, 20], sizes = [1, 4], strides = [1, 1]} : vector<1x48xf32> to vector<1x4xf32>
      %634 = vector.extract_strided_slice %608 {offsets = [0, 20], sizes = [1, 4], strides = [1, 1]} : vector<1x48xf32> to vector<1x4xf32>
      %635 = vector.extract_strided_slice %609 {offsets = [0, 20], sizes = [1, 4], strides = [1, 1]} : vector<1x48xf32> to vector<1x4xf32>
      %636 = tpu.concatenate %632, %633, %634, %635 in 1 : vector<1x4xf32>, vector<1x4xf32>, vector<1x4xf32>, vector<1x4xf32> -> vector<1x16xf32>
      %637 = vector.extract_strided_slice %606 {offsets = [0, 36], sizes = [1, 4], strides = [1, 1]} : vector<1x48xf32> to vector<1x4xf32>
      %638 = vector.extract_strided_slice %607 {offsets = [0, 36], sizes = [1, 4], strides = [1, 1]} : vector<1x48xf32> to vector<1x4xf32>
      %639 = vector.extract_strided_slice %608 {offsets = [0, 36], sizes = [1, 4], strides = [1, 1]} : vector<1x48xf32> to vector<1x4xf32>
      %640 = vector.extract_strided_slice %609 {offsets = [0, 36], sizes = [1, 4], strides = [1, 1]} : vector<1x48xf32> to vector<1x4xf32>
      %641 = tpu.concatenate %637, %638, %639, %640 in 1 : vector<1x4xf32>, vector<1x4xf32>, vector<1x4xf32>, vector<1x4xf32> -> vector<1x16xf32>
      %642 = tpu.concatenate %631, %636, %641 in 0 : vector<1x16xf32>, vector<1x16xf32>, vector<1x16xf32> -> vector<3x16xf32>
      %c0_286 = arith.constant 0 : index
      %c144_287 = arith.constant 144 : index
      %643 = vector.load %arg12[%c0_286, %c144_287] : memref<3x384xf32, #tpu.memory_space<vmem>>, vector<3x16xf32>
      tpu.vector_store %arg12[%c0_286, %c144_287], %642 {strides = array<i32>} : memref<3x384xf32, #tpu.memory_space<vmem>>, vector<3x16xf32>,
      %644 = vector.extract_strided_slice %606 {offsets = [0, 8], sizes = [1, 4], strides = [1, 1]} : vector<1x48xf32> to vector<1x4xf32>
      %645 = vector.extract_strided_slice %607 {offsets = [0, 8], sizes = [1, 4], strides = [1, 1]} : vector<1x48xf32> to vector<1x4xf32>
      %646 = vector.extract_strided_slice %608 {offsets = [0, 8], sizes = [1, 4], strides = [1, 1]} : vector<1x48xf32> to vector<1x4xf32>
      %647 = vector.extract_strided_slice %609 {offsets = [0, 8], sizes = [1, 4], strides = [1, 1]} : vector<1x48xf32> to vector<1x4xf32>
      %648 = tpu.concatenate %644, %645, %646, %647 in 1 : vector<1x4xf32>, vector<1x4xf32>, vector<1x4xf32>, vector<1x4xf32> -> vector<1x16xf32>
      %649 = vector.extract_strided_slice %606 {offsets = [0, 24], sizes = [1, 4], strides = [1, 1]} : vector<1x48xf32> to vector<1x4xf32>
      %650 = vector.extract_strided_slice %607 {offsets = [0, 24], sizes = [1, 4], strides = [1, 1]} : vector<1x48xf32> to vector<1x4xf32>
      %651 = vector.extract_strided_slice %608 {offsets = [0, 24], sizes = [1, 4], strides = [1, 1]} : vector<1x48xf32> to vector<1x4xf32>
      %652 = vector.extract_strided_slice %609 {offsets = [0, 24], sizes = [1, 4], strides = [1, 1]} : vector<1x48xf32> to vector<1x4xf32>
      %653 = tpu.concatenate %649, %650, %651, %652 in 1 : vector<1x4xf32>, vector<1x4xf32>, vector<1x4xf32>, vector<1x4xf32> -> vector<1x16xf32>
      %654 = vector.extract_strided_slice %606 {offsets = [0, 40], sizes = [1, 4], strides = [1, 1]} : vector<1x48xf32> to vector<1x4xf32>
      %655 = vector.extract_strided_slice %607 {offsets = [0, 40], sizes = [1, 4], strides = [1, 1]} : vector<1x48xf32> to vector<1x4xf32>
      %656 = vector.extract_strided_slice %608 {offsets = [0, 40], sizes = [1, 4], strides = [1, 1]} : vector<1x48xf32> to vector<1x4xf32>
      %657 = vector.extract_strided_slice %609 {offsets = [0, 40], sizes = [1, 4], strides = [1, 1]} : vector<1x48xf32> to vector<1x4xf32>
      %658 = tpu.concatenate %654, %655, %656, %657 in 1 : vector<1x4xf32>, vector<1x4xf32>, vector<1x4xf32>, vector<1x4xf32> -> vector<1x16xf32>
      %659 = tpu.concatenate %648, %653, %658 in 0 : vector<1x16xf32>, vector<1x16xf32>, vector<1x16xf32> -> vector<3x16xf32>
      %c0_288 = arith.constant 0 : index
      %c160_289 = arith.constant 160 : index
      %660 = vector.load %arg12[%c0_288, %c160_289] : memref<3x384xf32, #tpu.memory_space<vmem>>, vector<3x16xf32>
      tpu.vector_store %arg12[%c0_288, %c160_289], %659 {strides = array<i32>} : memref<3x384xf32, #tpu.memory_space<vmem>>, vector<3x16xf32>,
      %661 = vector.extract_strided_slice %606 {offsets = [0, 12], sizes = [1, 4], strides = [1, 1]} : vector<1x48xf32> to vector<1x4xf32>
      %662 = vector.extract_strided_slice %607 {offsets = [0, 12], sizes = [1, 4], strides = [1, 1]} : vector<1x48xf32> to vector<1x4xf32>
      %663 = vector.extract_strided_slice %608 {offsets = [0, 12], sizes = [1, 4], strides = [1, 1]} : vector<1x48xf32> to vector<1x4xf32>
      %664 = vector.extract_strided_slice %609 {offsets = [0, 12], sizes = [1, 4], strides = [1, 1]} : vector<1x48xf32> to vector<1x4xf32>
      %665 = tpu.concatenate %661, %662, %663, %664 in 1 : vector<1x4xf32>, vector<1x4xf32>, vector<1x4xf32>, vector<1x4xf32> -> vector<1x16xf32>
      %666 = vector.extract_strided_slice %606 {offsets = [0, 28], sizes = [1, 4], strides = [1, 1]} : vector<1x48xf32> to vector<1x4xf32>
      %667 = vector.extract_strided_slice %607 {offsets = [0, 28], sizes = [1, 4], strides = [1, 1]} : vector<1x48xf32> to vector<1x4xf32>
      %668 = vector.extract_strided_slice %608 {offsets = [0, 28], sizes = [1, 4], strides = [1, 1]} : vector<1x48xf32> to vector<1x4xf32>
      %669 = vector.extract_strided_slice %609 {offsets = [0, 28], sizes = [1, 4], strides = [1, 1]} : vector<1x48xf32> to vector<1x4xf32>
      %670 = tpu.concatenate %666, %667, %668, %669 in 1 : vector<1x4xf32>, vector<1x4xf32>, vector<1x4xf32>, vector<1x4xf32> -> vector<1x16xf32>
      %671 = vector.extract_strided_slice %606 {offsets = [0, 44], sizes = [1, 4], strides = [1, 1]} : vector<1x48xf32> to vector<1x4xf32>
      %672 = vector.extract_strided_slice %607 {offsets = [0, 44], sizes = [1, 4], strides = [1, 1]} : vector<1x48xf32> to vector<1x4xf32>
      %673 = vector.extract_strided_slice %608 {offsets = [0, 44], sizes = [1, 4], strides = [1, 1]} : vector<1x48xf32> to vector<1x4xf32>
      %674 = vector.extract_strided_slice %609 {offsets = [0, 44], sizes = [1, 4], strides = [1, 1]} : vector<1x48xf32> to vector<1x4xf32>
      %675 = tpu.concatenate %671, %672, %673, %674 in 1 : vector<1x4xf32>, vector<1x4xf32>, vector<1x4xf32>, vector<1x4xf32> -> vector<1x16xf32>
      %676 = tpu.concatenate %665, %670, %675 in 0 : vector<1x16xf32>, vector<1x16xf32>, vector<1x16xf32> -> vector<3x16xf32>
      %c0_290 = arith.constant 0 : index
      %c176_291 = arith.constant 176 : index
      %677 = vector.load %arg12[%c0_290, %c176_291] : memref<3x384xf32, #tpu.memory_space<vmem>>, vector<3x16xf32>
      tpu.vector_store %arg12[%c0_290, %c176_291], %676 {strides = array<i32>} : memref<3x384xf32, #tpu.memory_space<vmem>>, vector<3x16xf32>,
      %c12_292 = arith.constant 12 : index
      %c0_293 = arith.constant 0 : index
      %678 = vector.load %arg11[%c12_292, %c0_293] : memref<16x48xf32, #tpu.memory_space<vmem>>, vector<1x48xf32>
      %c13_294 = arith.constant 13 : index
      %c0_295 = arith.constant 0 : index
      %679 = vector.load %arg11[%c13_294, %c0_295] : memref<16x48xf32, #tpu.memory_space<vmem>>, vector<1x48xf32>
      %c14_296 = arith.constant 14 : index
      %c0_297 = arith.constant 0 : index
      %680 = vector.load %arg11[%c14_296, %c0_297] : memref<16x48xf32, #tpu.memory_space<vmem>>, vector<1x48xf32>
      %c15_298 = arith.constant 15 : index
      %c0_299 = arith.constant 0 : index
      %681 = vector.load %arg11[%c15_298, %c0_299] : memref<16x48xf32, #tpu.memory_space<vmem>>, vector<1x48xf32>
      %682 = vector.extract_strided_slice %678 {offsets = [0, 0], sizes = [1, 4], strides = [1, 1]} : vector<1x48xf32> to vector<1x4xf32>
      %683 = vector.extract_strided_slice %679 {offsets = [0, 0], sizes = [1, 4], strides = [1, 1]} : vector<1x48xf32> to vector<1x4xf32>
      %684 = vector.extract_strided_slice %680 {offsets = [0, 0], sizes = [1, 4], strides = [1, 1]} : vector<1x48xf32> to vector<1x4xf32>
      %685 = vector.extract_strided_slice %681 {offsets = [0, 0], sizes = [1, 4], strides = [1, 1]} : vector<1x48xf32> to vector<1x4xf32>
      %686 = tpu.concatenate %682, %683, %684, %685 in 1 : vector<1x4xf32>, vector<1x4xf32>, vector<1x4xf32>, vector<1x4xf32> -> vector<1x16xf32>
      %687 = vector.extract_strided_slice %678 {offsets = [0, 16], sizes = [1, 4], strides = [1, 1]} : vector<1x48xf32> to vector<1x4xf32>
      %688 = vector.extract_strided_slice %679 {offsets = [0, 16], sizes = [1, 4], strides = [1, 1]} : vector<1x48xf32> to vector<1x4xf32>
      %689 = vector.extract_strided_slice %680 {offsets = [0, 16], sizes = [1, 4], strides = [1, 1]} : vector<1x48xf32> to vector<1x4xf32>
      %690 = vector.extract_strided_slice %681 {offsets = [0, 16], sizes = [1, 4], strides = [1, 1]} : vector<1x48xf32> to vector<1x4xf32>
      %691 = tpu.concatenate %687, %688, %689, %690 in 1 : vector<1x4xf32>, vector<1x4xf32>, vector<1x4xf32>, vector<1x4xf32> -> vector<1x16xf32>
      %692 = vector.extract_strided_slice %678 {offsets = [0, 32], sizes = [1, 4], strides = [1, 1]} : vector<1x48xf32> to vector<1x4xf32>
      %693 = vector.extract_strided_slice %679 {offsets = [0, 32], sizes = [1, 4], strides = [1, 1]} : vector<1x48xf32> to vector<1x4xf32>
      %694 = vector.extract_strided_slice %680 {offsets = [0, 32], sizes = [1, 4], strides = [1, 1]} : vector<1x48xf32> to vector<1x4xf32>
      %695 = vector.extract_strided_slice %681 {offsets = [0, 32], sizes = [1, 4], strides = [1, 1]} : vector<1x48xf32> to vector<1x4xf32>
      %696 = tpu.concatenate %692, %693, %694, %695 in 1 : vector<1x4xf32>, vector<1x4xf32>, vector<1x4xf32>, vector<1x4xf32> -> vector<1x16xf32>
      %697 = tpu.concatenate %686, %691, %696 in 0 : vector<1x16xf32>, vector<1x16xf32>, vector<1x16xf32> -> vector<3x16xf32>
      %c0_300 = arith.constant 0 : index
      %c192_301 = arith.constant 192 : index
      %698 = vector.load %arg12[%c0_300, %c192_301] : memref<3x384xf32, #tpu.memory_space<vmem>>, vector<3x16xf32>
      tpu.vector_store %arg12[%c0_300, %c192_301], %697 {strides = array<i32>} : memref<3x384xf32, #tpu.memory_space<vmem>>, vector<3x16xf32>,
      %699 = vector.extract_strided_slice %678 {offsets = [0, 4], sizes = [1, 4], strides = [1, 1]} : vector<1x48xf32> to vector<1x4xf32>
      %700 = vector.extract_strided_slice %679 {offsets = [0, 4], sizes = [1, 4], strides = [1, 1]} : vector<1x48xf32> to vector<1x4xf32>
      %701 = vector.extract_strided_slice %680 {offsets = [0, 4], sizes = [1, 4], strides = [1, 1]} : vector<1x48xf32> to vector<1x4xf32>
      %702 = vector.extract_strided_slice %681 {offsets = [0, 4], sizes = [1, 4], strides = [1, 1]} : vector<1x48xf32> to vector<1x4xf32>
      %703 = tpu.concatenate %699, %700, %701, %702 in 1 : vector<1x4xf32>, vector<1x4xf32>, vector<1x4xf32>, vector<1x4xf32> -> vector<1x16xf32>
      %704 = vector.extract_strided_slice %678 {offsets = [0, 20], sizes = [1, 4], strides = [1, 1]} : vector<1x48xf32> to vector<1x4xf32>
      %705 = vector.extract_strided_slice %679 {offsets = [0, 20], sizes = [1, 4], strides = [1, 1]} : vector<1x48xf32> to vector<1x4xf32>
      %706 = vector.extract_strided_slice %680 {offsets = [0, 20], sizes = [1, 4], strides = [1, 1]} : vector<1x48xf32> to vector<1x4xf32>
      %707 = vector.extract_strided_slice %681 {offsets = [0, 20], sizes = [1, 4], strides = [1, 1]} : vector<1x48xf32> to vector<1x4xf32>
      %708 = tpu.concatenate %704, %705, %706, %707 in 1 : vector<1x4xf32>, vector<1x4xf32>, vector<1x4xf32>, vector<1x4xf32> -> vector<1x16xf32>
      %709 = vector.extract_strided_slice %678 {offsets = [0, 36], sizes = [1, 4], strides = [1, 1]} : vector<1x48xf32> to vector<1x4xf32>
      %710 = vector.extract_strided_slice %679 {offsets = [0, 36], sizes = [1, 4], strides = [1, 1]} : vector<1x48xf32> to vector<1x4xf32>
      %711 = vector.extract_strided_slice %680 {offsets = [0, 36], sizes = [1, 4], strides = [1, 1]} : vector<1x48xf32> to vector<1x4xf32>
      %712 = vector.extract_strided_slice %681 {offsets = [0, 36], sizes = [1, 4], strides = [1, 1]} : vector<1x48xf32> to vector<1x4xf32>
      %713 = tpu.concatenate %709, %710, %711, %712 in 1 : vector<1x4xf32>, vector<1x4xf32>, vector<1x4xf32>, vector<1x4xf32> -> vector<1x16xf32>
      %714 = tpu.concatenate %703, %708, %713 in 0 : vector<1x16xf32>, vector<1x16xf32>, vector<1x16xf32> -> vector<3x16xf32>
      %c0_302 = arith.constant 0 : index
      %c208_303 = arith.constant 208 : index
      %715 = vector.load %arg12[%c0_302, %c208_303] : memref<3x384xf32, #tpu.memory_space<vmem>>, vector<3x16xf32>
      tpu.vector_store %arg12[%c0_302, %c208_303], %714 {strides = array<i32>} : memref<3x384xf32, #tpu.memory_space<vmem>>, vector<3x16xf32>,
      %716 = vector.extract_strided_slice %678 {offsets = [0, 8], sizes = [1, 4], strides = [1, 1]} : vector<1x48xf32> to vector<1x4xf32>
      %717 = vector.extract_strided_slice %679 {offsets = [0, 8], sizes = [1, 4], strides = [1, 1]} : vector<1x48xf32> to vector<1x4xf32>
      %718 = vector.extract_strided_slice %680 {offsets = [0, 8], sizes = [1, 4], strides = [1, 1]} : vector<1x48xf32> to vector<1x4xf32>
      %719 = vector.extract_strided_slice %681 {offsets = [0, 8], sizes = [1, 4], strides = [1, 1]} : vector<1x48xf32> to vector<1x4xf32>
      %720 = tpu.concatenate %716, %717, %718, %719 in 1 : vector<1x4xf32>, vector<1x4xf32>, vector<1x4xf32>, vector<1x4xf32> -> vector<1x16xf32>
      %721 = vector.extract_strided_slice %678 {offsets = [0, 24], sizes = [1, 4], strides = [1, 1]} : vector<1x48xf32> to vector<1x4xf32>
      %722 = vector.extract_strided_slice %679 {offsets = [0, 24], sizes = [1, 4], strides = [1, 1]} : vector<1x48xf32> to vector<1x4xf32>
      %723 = vector.extract_strided_slice %680 {offsets = [0, 24], sizes = [1, 4], strides = [1, 1]} : vector<1x48xf32> to vector<1x4xf32>
      %724 = vector.extract_strided_slice %681 {offsets = [0, 24], sizes = [1, 4], strides = [1, 1]} : vector<1x48xf32> to vector<1x4xf32>
      %725 = tpu.concatenate %721, %722, %723, %724 in 1 : vector<1x4xf32>, vector<1x4xf32>, vector<1x4xf32>, vector<1x4xf32> -> vector<1x16xf32>
      %726 = vector.extract_strided_slice %678 {offsets = [0, 40], sizes = [1, 4], strides = [1, 1]} : vector<1x48xf32> to vector<1x4xf32>
      %727 = vector.extract_strided_slice %679 {offsets = [0, 40], sizes = [1, 4], strides = [1, 1]} : vector<1x48xf32> to vector<1x4xf32>
      %728 = vector.extract_strided_slice %680 {offsets = [0, 40], sizes = [1, 4], strides = [1, 1]} : vector<1x48xf32> to vector<1x4xf32>
      %729 = vector.extract_strided_slice %681 {offsets = [0, 40], sizes = [1, 4], strides = [1, 1]} : vector<1x48xf32> to vector<1x4xf32>
      %730 = tpu.concatenate %726, %727, %728, %729 in 1 : vector<1x4xf32>, vector<1x4xf32>, vector<1x4xf32>, vector<1x4xf32> -> vector<1x16xf32>
      %731 = tpu.concatenate %720, %725, %730 in 0 : vector<1x16xf32>, vector<1x16xf32>, vector<1x16xf32> -> vector<3x16xf32>
      %c0_304 = arith.constant 0 : index
      %c224_305 = arith.constant 224 : index
      %732 = vector.load %arg12[%c0_304, %c224_305] : memref<3x384xf32, #tpu.memory_space<vmem>>, vector<3x16xf32>
      tpu.vector_store %arg12[%c0_304, %c224_305], %731 {strides = array<i32>} : memref<3x384xf32, #tpu.memory_space<vmem>>, vector<3x16xf32>,
      %733 = vector.extract_strided_slice %678 {offsets = [0, 12], sizes = [1, 4], strides = [1, 1]} : vector<1x48xf32> to vector<1x4xf32>
      %734 = vector.extract_strided_slice %679 {offsets = [0, 12], sizes = [1, 4], strides = [1, 1]} : vector<1x48xf32> to vector<1x4xf32>
      %735 = vector.extract_strided_slice %680 {offsets = [0, 12], sizes = [1, 4], strides = [1, 1]} : vector<1x48xf32> to vector<1x4xf32>
      %736 = vector.extract_strided_slice %681 {offsets = [0, 12], sizes = [1, 4], strides = [1, 1]} : vector<1x48xf32> to vector<1x4xf32>
      %737 = tpu.concatenate %733, %734, %735, %736 in 1 : vector<1x4xf32>, vector<1x4xf32>, vector<1x4xf32>, vector<1x4xf32> -> vector<1x16xf32>
      %738 = vector.extract_strided_slice %678 {offsets = [0, 28], sizes = [1, 4], strides = [1, 1]} : vector<1x48xf32> to vector<1x4xf32>
      %739 = vector.extract_strided_slice %679 {offsets = [0, 28], sizes = [1, 4], strides = [1, 1]} : vector<1x48xf32> to vector<1x4xf32>
      %740 = vector.extract_strided_slice %680 {offsets = [0, 28], sizes = [1, 4], strides = [1, 1]} : vector<1x48xf32> to vector<1x4xf32>
      %741 = vector.extract_strided_slice %681 {offsets = [0, 28], sizes = [1, 4], strides = [1, 1]} : vector<1x48xf32> to vector<1x4xf32>
      %742 = tpu.concatenate %738, %739, %740, %741 in 1 : vector<1x4xf32>, vector<1x4xf32>, vector<1x4xf32>, vector<1x4xf32> -> vector<1x16xf32>
      %743 = vector.extract_strided_slice %678 {offsets = [0, 44], sizes = [1, 4], strides = [1, 1]} : vector<1x48xf32> to vector<1x4xf32>
      %744 = vector.extract_strided_slice %679 {offsets = [0, 44], sizes = [1, 4], strides = [1, 1]} : vector<1x48xf32> to vector<1x4xf32>
      %745 = vector.extract_strided_slice %680 {offsets = [0, 44], sizes = [1, 4], strides = [1, 1]} : vector<1x48xf32> to vector<1x4xf32>
      %746 = vector.extract_strided_slice %681 {offsets = [0, 44], sizes = [1, 4], strides = [1, 1]} : vector<1x48xf32> to vector<1x4xf32>
      %747 = tpu.concatenate %743, %744, %745, %746 in 1 : vector<1x4xf32>, vector<1x4xf32>, vector<1x4xf32>, vector<1x4xf32> -> vector<1x16xf32>
      %748 = tpu.concatenate %737, %742, %747 in 0 : vector<1x16xf32>, vector<1x16xf32>, vector<1x16xf32> -> vector<3x16xf32>
      %c0_306 = arith.constant 0 : index
      %c240_307 = arith.constant 240 : index
      %749 = vector.load %arg12[%c0_306, %c240_307] : memref<3x384xf32, #tpu.memory_space<vmem>>, vector<3x16xf32>
      tpu.vector_store %arg12[%c0_306, %c240_307], %748 {strides = array<i32>} : memref<3x384xf32, #tpu.memory_space<vmem>>, vector<3x16xf32>,
    } else {
    }
    %c0 = arith.constant 0 : index
    %c0_1 = arith.constant 0 : index
    %3 = vector.load %arg12[%c0, %c0_1] : memref<3x384xf32, #tpu.memory_space<vmem>>, vector<1x208xf32>
    %c0_2 = arith.constant 0 : index
    %c0_3 = arith.constant 0 : index
    %4 = vector.load %arg13[%c0_2, %c0_3] : memref<48x256xf32, #tpu.memory_space<vmem>>, vector<1x208xf32>
    tpu.vector_store %arg13[%c0_2, %c0_3], %3 {strides = array<i32>} : memref<48x256xf32, #tpu.memory_space<vmem>>, vector<1x208xf32>,
    %c0_4 = arith.constant 0 : index
    %c1 = arith.constant 1 : index
    %5 = vector.load %arg12[%c0_4, %c1] : memref<3x384xf32, #tpu.memory_space<vmem>>, vector<1x208xf32>
    %c1_5 = arith.constant 1 : index
    %c0_6 = arith.constant 0 : index
    %6 = vector.load %arg13[%c1_5, %c0_6] : memref<48x256xf32, #tpu.memory_space<vmem>>, vector<1x208xf32>
    tpu.vector_store %arg13[%c1_5, %c0_6], %5 {strides = array<i32>} : memref<48x256xf32, #tpu.memory_space<vmem>>, vector<1x208xf32>,
    %c0_7 = arith.constant 0 : index
    %c2 = arith.constant 2 : index
    %7 = vector.load %arg12[%c0_7, %c2] : memref<3x384xf32, #tpu.memory_space<vmem>>, vector<1x208xf32>
    %c2_8 = arith.constant 2 : index
    %c0_9 = arith.constant 0 : index
    %8 = vector.load %arg13[%c2_8, %c0_9] : memref<48x256xf32, #tpu.memory_space<vmem>>, vector<1x208xf32>
    tpu.vector_store %arg13[%c2_8, %c0_9], %7 {strides = array<i32>} : memref<48x256xf32, #tpu.memory_space<vmem>>, vector<1x208xf32>,
    %c0_10 = arith.constant 0 : index
    %c3 = arith.constant 3 : index
    %9 = vector.load %arg12[%c0_10, %c3] : memref<3x384xf32, #tpu.memory_space<vmem>>, vector<1x208xf32>
    %c3_11 = arith.constant 3 : index
    %c0_12 = arith.constant 0 : index
    %10 = vector.load %arg13[%c3_11, %c0_12] : memref<48x256xf32, #tpu.memory_space<vmem>>, vector<1x208xf32>
    tpu.vector_store %arg13[%c3_11, %c0_12], %9 {strides = array<i32>} : memref<48x256xf32, #tpu.memory_space<vmem>>, vector<1x208xf32>,
    %c0_13 = arith.constant 0 : index
    %c16 = arith.constant 16 : index
    %11 = vector.load %arg12[%c0_13, %c16] : memref<3x384xf32, #tpu.memory_space<vmem>>, vector<1x208xf32>
    %c4 = arith.constant 4 : index
    %c0_14 = arith.constant 0 : index
    %12 = vector.load %arg13[%c4, %c0_14] : memref<48x256xf32, #tpu.memory_space<vmem>>, vector<1x208xf32>
    tpu.vector_store %arg13[%c4, %c0_14], %11 {strides = array<i32>} : memref<48x256xf32, #tpu.memory_space<vmem>>, vector<1x208xf32>,
    %c0_15 = arith.constant 0 : index
    %c17 = arith.constant 17 : index
    %13 = vector.load %arg12[%c0_15, %c17] : memref<3x384xf32, #tpu.memory_space<vmem>>, vector<1x208xf32>
    %c5 = arith.constant 5 : index
    %c0_16 = arith.constant 0 : index
    %14 = vector.load %arg13[%c5, %c0_16] : memref<48x256xf32, #tpu.memory_space<vmem>>, vector<1x208xf32>
    tpu.vector_store %arg13[%c5, %c0_16], %13 {strides = array<i32>} : memref<48x256xf32, #tpu.memory_space<vmem>>, vector<1x208xf32>,
    %c0_17 = arith.constant 0 : index
    %c18 = arith.constant 18 : index
    %15 = vector.load %arg12[%c0_17, %c18] : memref<3x384xf32, #tpu.memory_space<vmem>>, vector<1x208xf32>
    %c6 = arith.constant 6 : index
    %c0_18 = arith.constant 0 : index
    %16 = vector.load %arg13[%c6, %c0_18] : memref<48x256xf32, #tpu.memory_space<vmem>>, vector<1x208xf32>
    tpu.vector_store %arg13[%c6, %c0_18], %15 {strides = array<i32>} : memref<48x256xf32, #tpu.memory_space<vmem>>, vector<1x208xf32>,
    %c0_19 = arith.constant 0 : index
    %c19 = arith.constant 19 : index
    %17 = vector.load %arg12[%c0_19, %c19] : memref<3x384xf32, #tpu.memory_space<vmem>>, vector<1x208xf32>
    %c7 = arith.constant 7 : index
    %c0_20 = arith.constant 0 : index
    %18 = vector.load %arg13[%c7, %c0_20] : memref<48x256xf32, #tpu.memory_space<vmem>>, vector<1x208xf32>
    tpu.vector_store %arg13[%c7, %c0_20], %17 {strides = array<i32>} : memref<48x256xf32, #tpu.memory_space<vmem>>, vector<1x208xf32>,
    %c0_21 = arith.constant 0 : index
    %c32 = arith.constant 32 : index
    %19 = vector.load %arg12[%c0_21, %c32] : memref<3x384xf32, #tpu.memory_space<vmem>>, vector<1x208xf32>
    %c8 = arith.constant 8 : index
    %c0_22 = arith.constant 0 : index
    %20 = vector.load %arg13[%c8, %c0_22] : memref<48x256xf32, #tpu.memory_space<vmem>>, vector<1x208xf32>
    tpu.vector_store %arg13[%c8, %c0_22], %19 {strides = array<i32>} : memref<48x256xf32, #tpu.memory_space<vmem>>, vector<1x208xf32>,
    %c0_23 = arith.constant 0 : index
    %c33 = arith.constant 33 : index
    %21 = vector.load %arg12[%c0_23, %c33] : memref<3x384xf32, #tpu.memory_space<vmem>>, vector<1x208xf32>
    %c9 = arith.constant 9 : index
    %c0_24 = arith.constant 0 : index
    %22 = vector.load %arg13[%c9, %c0_24] : memref<48x256xf32, #tpu.memory_space<vmem>>, vector<1x208xf32>
    tpu.vector_store %arg13[%c9, %c0_24], %21 {strides = array<i32>} : memref<48x256xf32, #tpu.memory_space<vmem>>, vector<1x208xf32>,
    %c0_25 = arith.constant 0 : index
    %c34 = arith.constant 34 : index
    %23 = vector.load %arg12[%c0_25, %c34] : memref<3x384xf32, #tpu.memory_space<vmem>>, vector<1x208xf32>
    %c10 = arith.constant 10 : index
    %c0_26 = arith.constant 0 : index
    %24 = vector.load %arg13[%c10, %c0_26] : memref<48x256xf32, #tpu.memory_space<vmem>>, vector<1x208xf32>
    tpu.vector_store %arg13[%c10, %c0_26], %23 {strides = array<i32>} : memref<48x256xf32, #tpu.memory_space<vmem>>, vector<1x208xf32>,
    %c0_27 = arith.constant 0 : index
    %c35 = arith.constant 35 : index
    %25 = vector.load %arg12[%c0_27, %c35] : memref<3x384xf32, #tpu.memory_space<vmem>>, vector<1x208xf32>
    %c11 = arith.constant 11 : index
    %c0_28 = arith.constant 0 : index
    %26 = vector.load %arg13[%c11, %c0_28] : memref<48x256xf32, #tpu.memory_space<vmem>>, vector<1x208xf32>
    tpu.vector_store %arg13[%c11, %c0_28], %25 {strides = array<i32>} : memref<48x256xf32, #tpu.memory_space<vmem>>, vector<1x208xf32>,
    %c0_29 = arith.constant 0 : index
    %c48 = arith.constant 48 : index
    %27 = vector.load %arg12[%c0_29, %c48] : memref<3x384xf32, #tpu.memory_space<vmem>>, vector<1x208xf32>
    %c12 = arith.constant 12 : index
    %c0_30 = arith.constant 0 : index
    %28 = vector.load %arg13[%c12, %c0_30] : memref<48x256xf32, #tpu.memory_space<vmem>>, vector<1x208xf32>
    tpu.vector_store %arg13[%c12, %c0_30], %27 {strides = array<i32>} : memref<48x256xf32, #tpu.memory_space<vmem>>, vector<1x208xf32>,
    %c0_31 = arith.constant 0 : index
    %c49 = arith.constant 49 : index
    %29 = vector.load %arg12[%c0_31, %c49] : memref<3x384xf32, #tpu.memory_space<vmem>>, vector<1x208xf32>
    %c13 = arith.constant 13 : index
    %c0_32 = arith.constant 0 : index
    %30 = vector.load %arg13[%c13, %c0_32] : memref<48x256xf32, #tpu.memory_space<vmem>>, vector<1x208xf32>
    tpu.vector_store %arg13[%c13, %c0_32], %29 {strides = array<i32>} : memref<48x256xf32, #tpu.memory_space<vmem>>, vector<1x208xf32>,
    %c0_33 = arith.constant 0 : index
    %c50 = arith.constant 50 : index
    %31 = vector.load %arg12[%c0_33, %c50] : memref<3x384xf32, #tpu.memory_space<vmem>>, vector<1x208xf32>
    %c14 = arith.constant 14 : index
    %c0_34 = arith.constant 0 : index
    %32 = vector.load %arg13[%c14, %c0_34] : memref<48x256xf32, #tpu.memory_space<vmem>>, vector<1x208xf32>
    tpu.vector_store %arg13[%c14, %c0_34], %31 {strides = array<i32>} : memref<48x256xf32, #tpu.memory_space<vmem>>, vector<1x208xf32>,
    %c0_35 = arith.constant 0 : index
    %c51 = arith.constant 51 : index
    %33 = vector.load %arg12[%c0_35, %c51] : memref<3x384xf32, #tpu.memory_space<vmem>>, vector<1x208xf32>
    %c15 = arith.constant 15 : index
    %c0_36 = arith.constant 0 : index
    %34 = vector.load %arg13[%c15, %c0_36] : memref<48x256xf32, #tpu.memory_space<vmem>>, vector<1x208xf32>
    tpu.vector_store %arg13[%c15, %c0_36], %33 {strides = array<i32>} : memref<48x256xf32, #tpu.memory_space<vmem>>, vector<1x208xf32>,
    %c1_37 = arith.constant 1 : index
    %c0_38 = arith.constant 0 : index
    %35 = vector.load %arg12[%c1_37, %c0_38] : memref<3x384xf32, #tpu.memory_space<vmem>>, vector<1x208xf32>
    %c16_39 = arith.constant 16 : index
    %c0_40 = arith.constant 0 : index
    %36 = vector.load %arg13[%c16_39, %c0_40] : memref<48x256xf32, #tpu.memory_space<vmem>>, vector<1x208xf32>
    tpu.vector_store %arg13[%c16_39, %c0_40], %35 {strides = array<i32>} : memref<48x256xf32, #tpu.memory_space<vmem>>, vector<1x208xf32>,
    %c1_41 = arith.constant 1 : index
    %c1_42 = arith.constant 1 : index
    %37 = vector.load %arg12[%c1_41, %c1_42] : memref<3x384xf32, #tpu.memory_space<vmem>>, vector<1x208xf32>
    %c17_43 = arith.constant 17 : index
    %c0_44 = arith.constant 0 : index
    %38 = vector.load %arg13[%c17_43, %c0_44] : memref<48x256xf32, #tpu.memory_space<vmem>>, vector<1x208xf32>
    tpu.vector_store %arg13[%c17_43, %c0_44], %37 {strides = array<i32>} : memref<48x256xf32, #tpu.memory_space<vmem>>, vector<1x208xf32>,
    %c1_45 = arith.constant 1 : index
    %c2_46 = arith.constant 2 : index
    %39 = vector.load %arg12[%c1_45, %c2_46] : memref<3x384xf32, #tpu.memory_space<vmem>>, vector<1x208xf32>
    %c18_47 = arith.constant 18 : index
    %c0_48 = arith.constant 0 : index
    %40 = vector.load %arg13[%c18_47, %c0_48] : memref<48x256xf32, #tpu.memory_space<vmem>>, vector<1x208xf32>
    tpu.vector_store %arg13[%c18_47, %c0_48], %39 {strides = array<i32>} : memref<48x256xf32, #tpu.memory_space<vmem>>, vector<1x208xf32>,
    %c1_49 = arith.constant 1 : index
    %c3_50 = arith.constant 3 : index
    %41 = vector.load %arg12[%c1_49, %c3_50] : memref<3x384xf32, #tpu.memory_space<vmem>>, vector<1x208xf32>
    %c19_51 = arith.constant 19 : index
    %c0_52 = arith.constant 0 : index
    %42 = vector.load %arg13[%c19_51, %c0_52] : memref<48x256xf32, #tpu.memory_space<vmem>>, vector<1x208xf32>
    tpu.vector_store %arg13[%c19_51, %c0_52], %41 {strides = array<i32>} : memref<48x256xf32, #tpu.memory_space<vmem>>, vector<1x208xf32>,
    %c1_53 = arith.constant 1 : index
    %c16_54 = arith.constant 16 : index
    %43 = vector.load %arg12[%c1_53, %c16_54] : memref<3x384xf32, #tpu.memory_space<vmem>>, vector<1x208xf32>
    %c20 = arith.constant 20 : index
    %c0_55 = arith.constant 0 : index
    %44 = vector.load %arg13[%c20, %c0_55] : memref<48x256xf32, #tpu.memory_space<vmem>>, vector<1x208xf32>
    tpu.vector_store %arg13[%c20, %c0_55], %43 {strides = array<i32>} : memref<48x256xf32, #tpu.memory_space<vmem>>, vector<1x208xf32>,
    %c1_56 = arith.constant 1 : index
    %c17_57 = arith.constant 17 : index
    %45 = vector.load %arg12[%c1_56, %c17_57] : memref<3x384xf32, #tpu.memory_space<vmem>>, vector<1x208xf32>
    %c21 = arith.constant 21 : index
    %c0_58 = arith.constant 0 : index
    %46 = vector.load %arg13[%c21, %c0_58] : memref<48x256xf32, #tpu.memory_space<vmem>>, vector<1x208xf32>
    tpu.vector_store %arg13[%c21, %c0_58], %45 {strides = array<i32>} : memref<48x256xf32, #tpu.memory_space<vmem>>, vector<1x208xf32>,
    %c1_59 = arith.constant 1 : index
    %c18_60 = arith.constant 18 : index
    %47 = vector.load %arg12[%c1_59, %c18_60] : memref<3x384xf32, #tpu.memory_space<vmem>>, vector<1x208xf32>
    %c22 = arith.constant 22 : index
    %c0_61 = arith.constant 0 : index
    %48 = vector.load %arg13[%c22, %c0_61] : memref<48x256xf32, #tpu.memory_space<vmem>>, vector<1x208xf32>
    tpu.vector_store %arg13[%c22, %c0_61], %47 {strides = array<i32>} : memref<48x256xf32, #tpu.memory_space<vmem>>, vector<1x208xf32>,
    %c1_62 = arith.constant 1 : index
    %c19_63 = arith.constant 19 : index
    %49 = vector.load %arg12[%c1_62, %c19_63] : memref<3x384xf32, #tpu.memory_space<vmem>>, vector<1x208xf32>
    %c23 = arith.constant 23 : index
    %c0_64 = arith.constant 0 : index
    %50 = vector.load %arg13[%c23, %c0_64] : memref<48x256xf32, #tpu.memory_space<vmem>>, vector<1x208xf32>
    tpu.vector_store %arg13[%c23, %c0_64], %49 {strides = array<i32>} : memref<48x256xf32, #tpu.memory_space<vmem>>, vector<1x208xf32>,
    %c1_65 = arith.constant 1 : index
    %c32_66 = arith.constant 32 : index
    %51 = vector.load %arg12[%c1_65, %c32_66] : memref<3x384xf32, #tpu.memory_space<vmem>>, vector<1x208xf32>
    %c24 = arith.constant 24 : index
    %c0_67 = arith.constant 0 : index
    %52 = vector.load %arg13[%c24, %c0_67] : memref<48x256xf32, #tpu.memory_space<vmem>>, vector<1x208xf32>
    tpu.vector_store %arg13[%c24, %c0_67], %51 {strides = array<i32>} : memref<48x256xf32, #tpu.memory_space<vmem>>, vector<1x208xf32>,
    %c1_68 = arith.constant 1 : index
    %c33_69 = arith.constant 33 : index
    %53 = vector.load %arg12[%c1_68, %c33_69] : memref<3x384xf32, #tpu.memory_space<vmem>>, vector<1x208xf32>
    %c25 = arith.constant 25 : index
    %c0_70 = arith.constant 0 : index
    %54 = vector.load %arg13[%c25, %c0_70] : memref<48x256xf32, #tpu.memory_space<vmem>>, vector<1x208xf32>
    tpu.vector_store %arg13[%c25, %c0_70], %53 {strides = array<i32>} : memref<48x256xf32, #tpu.memory_space<vmem>>, vector<1x208xf32>,
    %c1_71 = arith.constant 1 : index
    %c34_72 = arith.constant 34 : index
    %55 = vector.load %arg12[%c1_71, %c34_72] : memref<3x384xf32, #tpu.memory_space<vmem>>, vector<1x208xf32>
    %c26 = arith.constant 26 : index
    %c0_73 = arith.constant 0 : index
    %56 = vector.load %arg13[%c26, %c0_73] : memref<48x256xf32, #tpu.memory_space<vmem>>, vector<1x208xf32>
    tpu.vector_store %arg13[%c26, %c0_73], %55 {strides = array<i32>} : memref<48x256xf32, #tpu.memory_space<vmem>>, vector<1x208xf32>,
    %c1_74 = arith.constant 1 : index
    %c35_75 = arith.constant 35 : index
    %57 = vector.load %arg12[%c1_74, %c35_75] : memref<3x384xf32, #tpu.memory_space<vmem>>, vector<1x208xf32>
    %c27 = arith.constant 27 : index
    %c0_76 = arith.constant 0 : index
    %58 = vector.load %arg13[%c27, %c0_76] : memref<48x256xf32, #tpu.memory_space<vmem>>, vector<1x208xf32>
    tpu.vector_store %arg13[%c27, %c0_76], %57 {strides = array<i32>} : memref<48x256xf32, #tpu.memory_space<vmem>>, vector<1x208xf32>,
    %c1_77 = arith.constant 1 : index
    %c48_78 = arith.constant 48 : index
    %59 = vector.load %arg12[%c1_77, %c48_78] : memref<3x384xf32, #tpu.memory_space<vmem>>, vector<1x208xf32>
    %c28 = arith.constant 28 : index
    %c0_79 = arith.constant 0 : index
    %60 = vector.load %arg13[%c28, %c0_79] : memref<48x256xf32, #tpu.memory_space<vmem>>, vector<1x208xf32>
    tpu.vector_store %arg13[%c28, %c0_79], %59 {strides = array<i32>} : memref<48x256xf32, #tpu.memory_space<vmem>>, vector<1x208xf32>,
    %c1_80 = arith.constant 1 : index
    %c49_81 = arith.constant 49 : index
    %61 = vector.load %arg12[%c1_80, %c49_81] : memref<3x384xf32, #tpu.memory_space<vmem>>, vector<1x208xf32>
    %c29 = arith.constant 29 : index
    %c0_82 = arith.constant 0 : index
    %62 = vector.load %arg13[%c29, %c0_82] : memref<48x256xf32, #tpu.memory_space<vmem>>, vector<1x208xf32>
    tpu.vector_store %arg13[%c29, %c0_82], %61 {strides = array<i32>} : memref<48x256xf32, #tpu.memory_space<vmem>>, vector<1x208xf32>,
    %c1_83 = arith.constant 1 : index
    %c50_84 = arith.constant 50 : index
    %63 = vector.load %arg12[%c1_83, %c50_84] : memref<3x384xf32, #tpu.memory_space<vmem>>, vector<1x208xf32>
    %c30 = arith.constant 30 : index
    %c0_85 = arith.constant 0 : index
    %64 = vector.load %arg13[%c30, %c0_85] : memref<48x256xf32, #tpu.memory_space<vmem>>, vector<1x208xf32>
    tpu.vector_store %arg13[%c30, %c0_85], %63 {strides = array<i32>} : memref<48x256xf32, #tpu.memory_space<vmem>>, vector<1x208xf32>,
    %c1_86 = arith.constant 1 : index
    %c51_87 = arith.constant 51 : index
    %65 = vector.load %arg12[%c1_86, %c51_87] : memref<3x384xf32, #tpu.memory_space<vmem>>, vector<1x208xf32>
    %c31 = arith.constant 31 : index
    %c0_88 = arith.constant 0 : index
    %66 = vector.load %arg13[%c31, %c0_88] : memref<48x256xf32, #tpu.memory_space<vmem>>, vector<1x208xf32>
    tpu.vector_store %arg13[%c31, %c0_88], %65 {strides = array<i32>} : memref<48x256xf32, #tpu.memory_space<vmem>>, vector<1x208xf32>,
    %c2_89 = arith.constant 2 : index
    %c0_90 = arith.constant 0 : index
    %67 = vector.load %arg12[%c2_89, %c0_90] : memref<3x384xf32, #tpu.memory_space<vmem>>, vector<1x208xf32>
    %c32_91 = arith.constant 32 : index
    %c0_92 = arith.constant 0 : index
    %68 = vector.load %arg13[%c32_91, %c0_92] : memref<48x256xf32, #tpu.memory_space<vmem>>, vector<1x208xf32>
    tpu.vector_store %arg13[%c32_91, %c0_92], %67 {strides = array<i32>} : memref<48x256xf32, #tpu.memory_space<vmem>>, vector<1x208xf32>,
    %c2_93 = arith.constant 2 : index
    %c1_94 = arith.constant 1 : index
    %69 = vector.load %arg12[%c2_93, %c1_94] : memref<3x384xf32, #tpu.memory_space<vmem>>, vector<1x208xf32>
    %c33_95 = arith.constant 33 : index
    %c0_96 = arith.constant 0 : index
    %70 = vector.load %arg13[%c33_95, %c0_96] : memref<48x256xf32, #tpu.memory_space<vmem>>, vector<1x208xf32>
    tpu.vector_store %arg13[%c33_95, %c0_96], %69 {strides = array<i32>} : memref<48x256xf32, #tpu.memory_space<vmem>>, vector<1x208xf32>,
    %c2_97 = arith.constant 2 : index
    %c2_98 = arith.constant 2 : index
    %71 = vector.load %arg12[%c2_97, %c2_98] : memref<3x384xf32, #tpu.memory_space<vmem>>, vector<1x208xf32>
    %c34_99 = arith.constant 34 : index
    %c0_100 = arith.constant 0 : index
    %72 = vector.load %arg13[%c34_99, %c0_100] : memref<48x256xf32, #tpu.memory_space<vmem>>, vector<1x208xf32>
    tpu.vector_store %arg13[%c34_99, %c0_100], %71 {strides = array<i32>} : memref<48x256xf32, #tpu.memory_space<vmem>>, vector<1x208xf32>,
    %c2_101 = arith.constant 2 : index
    %c3_102 = arith.constant 3 : index
    %73 = vector.load %arg12[%c2_101, %c3_102] : memref<3x384xf32, #tpu.memory_space<vmem>>, vector<1x208xf32>
    %c35_103 = arith.constant 35 : index
    %c0_104 = arith.constant 0 : index
    %74 = vector.load %arg13[%c35_103, %c0_104] : memref<48x256xf32, #tpu.memory_space<vmem>>, vector<1x208xf32>
    tpu.vector_store %arg13[%c35_103, %c0_104], %73 {strides = array<i32>} : memref<48x256xf32, #tpu.memory_space<vmem>>, vector<1x208xf32>,
    %c2_105 = arith.constant 2 : index
    %c16_106 = arith.constant 16 : index
    %75 = vector.load %arg12[%c2_105, %c16_106] : memref<3x384xf32, #tpu.memory_space<vmem>>, vector<1x208xf32>
    %c36 = arith.constant 36 : index
    %c0_107 = arith.constant 0 : index
    %76 = vector.load %arg13[%c36, %c0_107] : memref<48x256xf32, #tpu.memory_space<vmem>>, vector<1x208xf32>
    tpu.vector_store %arg13[%c36, %c0_107], %75 {strides = array<i32>} : memref<48x256xf32, #tpu.memory_space<vmem>>, vector<1x208xf32>,
    %c2_108 = arith.constant 2 : index
    %c17_109 = arith.constant 17 : index
    %77 = vector.load %arg12[%c2_108, %c17_109] : memref<3x384xf32, #tpu.memory_space<vmem>>, vector<1x208xf32>
    %c37 = arith.constant 37 : index
    %c0_110 = arith.constant 0 : index
    %78 = vector.load %arg13[%c37, %c0_110] : memref<48x256xf32, #tpu.memory_space<vmem>>, vector<1x208xf32>
    tpu.vector_store %arg13[%c37, %c0_110], %77 {strides = array<i32>} : memref<48x256xf32, #tpu.memory_space<vmem>>, vector<1x208xf32>,
    %c2_111 = arith.constant 2 : index
    %c18_112 = arith.constant 18 : index
    %79 = vector.load %arg12[%c2_111, %c18_112] : memref<3x384xf32, #tpu.memory_space<vmem>>, vector<1x208xf32>
    %c38 = arith.constant 38 : index
    %c0_113 = arith.constant 0 : index
    %80 = vector.load %arg13[%c38, %c0_113] : memref<48x256xf32, #tpu.memory_space<vmem>>, vector<1x208xf32>
    tpu.vector_store %arg13[%c38, %c0_113], %79 {strides = array<i32>} : memref<48x256xf32, #tpu.memory_space<vmem>>, vector<1x208xf32>,
    %c2_114 = arith.constant 2 : index
    %c19_115 = arith.constant 19 : index
    %81 = vector.load %arg12[%c2_114, %c19_115] : memref<3x384xf32, #tpu.memory_space<vmem>>, vector<1x208xf32>
    %c39 = arith.constant 39 : index
    %c0_116 = arith.constant 0 : index
    %82 = vector.load %arg13[%c39, %c0_116] : memref<48x256xf32, #tpu.memory_space<vmem>>, vector<1x208xf32>
    tpu.vector_store %arg13[%c39, %c0_116], %81 {strides = array<i32>} : memref<48x256xf32, #tpu.memory_space<vmem>>, vector<1x208xf32>,
    %c2_117 = arith.constant 2 : index
    %c32_118 = arith.constant 32 : index
    %83 = vector.load %arg12[%c2_117, %c32_118] : memref<3x384xf32, #tpu.memory_space<vmem>>, vector<1x208xf32>
    %c40 = arith.constant 40 : index
    %c0_119 = arith.constant 0 : index
    %84 = vector.load %arg13[%c40, %c0_119] : memref<48x256xf32, #tpu.memory_space<vmem>>, vector<1x208xf32>
    tpu.vector_store %arg13[%c40, %c0_119], %83 {strides = array<i32>} : memref<48x256xf32, #tpu.memory_space<vmem>>, vector<1x208xf32>,
    %c2_120 = arith.constant 2 : index
    %c33_121 = arith.constant 33 : index
    %85 = vector.load %arg12[%c2_120, %c33_121] : memref<3x384xf32, #tpu.memory_space<vmem>>, vector<1x208xf32>
    %c41 = arith.constant 41 : index
    %c0_122 = arith.constant 0 : index
    %86 = vector.load %arg13[%c41, %c0_122] : memref<48x256xf32, #tpu.memory_space<vmem>>, vector<1x208xf32>
    tpu.vector_store %arg13[%c41, %c0_122], %85 {strides = array<i32>} : memref<48x256xf32, #tpu.memory_space<vmem>>, vector<1x208xf32>,
    %c2_123 = arith.constant 2 : index
    %c34_124 = arith.constant 34 : index
    %87 = vector.load %arg12[%c2_123, %c34_124] : memref<3x384xf32, #tpu.memory_space<vmem>>, vector<1x208xf32>
    %c42 = arith.constant 42 : index
    %c0_125 = arith.constant 0 : index
    %88 = vector.load %arg13[%c42, %c0_125] : memref<48x256xf32, #tpu.memory_space<vmem>>, vector<1x208xf32>
    tpu.vector_store %arg13[%c42, %c0_125], %87 {strides = array<i32>} : memref<48x256xf32, #tpu.memory_space<vmem>>, vector<1x208xf32>,
    %c2_126 = arith.constant 2 : index
    %c35_127 = arith.constant 35 : index
    %89 = vector.load %arg12[%c2_126, %c35_127] : memref<3x384xf32, #tpu.memory_space<vmem>>, vector<1x208xf32>
    %c43 = arith.constant 43 : index
    %c0_128 = arith.constant 0 : index
    %90 = vector.load %arg13[%c43, %c0_128] : memref<48x256xf32, #tpu.memory_space<vmem>>, vector<1x208xf32>
    tpu.vector_store %arg13[%c43, %c0_128], %89 {strides = array<i32>} : memref<48x256xf32, #tpu.memory_space<vmem>>, vector<1x208xf32>,
    %c2_129 = arith.constant 2 : index
    %c48_130 = arith.constant 48 : index
    %91 = vector.load %arg12[%c2_129, %c48_130] : memref<3x384xf32, #tpu.memory_space<vmem>>, vector<1x208xf32>
    %c44 = arith.constant 44 : index
    %c0_131 = arith.constant 0 : index
    %92 = vector.load %arg13[%c44, %c0_131] : memref<48x256xf32, #tpu.memory_space<vmem>>, vector<1x208xf32>
    tpu.vector_store %arg13[%c44, %c0_131], %91 {strides = array<i32>} : memref<48x256xf32, #tpu.memory_space<vmem>>, vector<1x208xf32>,
    %c2_132 = arith.constant 2 : index
    %c49_133 = arith.constant 49 : index
    %93 = vector.load %arg12[%c2_132, %c49_133] : memref<3x384xf32, #tpu.memory_space<vmem>>, vector<1x208xf32>
    %c45 = arith.constant 45 : index
    %c0_134 = arith.constant 0 : index
    %94 = vector.load %arg13[%c45, %c0_134] : memref<48x256xf32, #tpu.memory_space<vmem>>, vector<1x208xf32>
    tpu.vector_store %arg13[%c45, %c0_134], %93 {strides = array<i32>} : memref<48x256xf32, #tpu.memory_space<vmem>>, vector<1x208xf32>,
    %c2_135 = arith.constant 2 : index
    %c50_136 = arith.constant 50 : index
    %95 = vector.load %arg12[%c2_135, %c50_136] : memref<3x384xf32, #tpu.memory_space<vmem>>, vector<1x208xf32>
    %c46 = arith.constant 46 : index
    %c0_137 = arith.constant 0 : index
    %96 = vector.load %arg13[%c46, %c0_137] : memref<48x256xf32, #tpu.memory_space<vmem>>, vector<1x208xf32>
    tpu.vector_store %arg13[%c46, %c0_137], %95 {strides = array<i32>} : memref<48x256xf32, #tpu.memory_space<vmem>>, vector<1x208xf32>,
    %c2_138 = arith.constant 2 : index
    %c51_139 = arith.constant 51 : index
    %97 = vector.load %arg12[%c2_138, %c51_139] : memref<3x384xf32, #tpu.memory_space<vmem>>, vector<1x208xf32>
    %c47 = arith.constant 47 : index
    %c0_140 = arith.constant 0 : index
    %98 = vector.load %arg13[%c47, %c0_140] : memref<48x256xf32, #tpu.memory_space<vmem>>, vector<1x208xf32>
    tpu.vector_store %arg13[%c47, %c0_140], %97 {strides = array<i32>} : memref<48x256xf32, #tpu.memory_space<vmem>>, vector<1x208xf32>,
    %c0_141 = arith.constant 0 : index
    %c0_142 = arith.constant 0 : index
    %99 = vector.load %arg11[%c0_141, %c0_142] : memref<16x48xf32, #tpu.memory_space<vmem>>, vector<16x48xf32>
    %c0_143 = arith.constant 0 : index
    %c0_144 = arith.constant 0 : index
    %100 = vector.load %arg13[%c0_143, %c0_144] : memref<48x256xf32, #tpu.memory_space<vmem>>, vector<48x256xf32>
    %cst = arith.constant dense<0.000000e+00> : vector<16x256xf32>
    %101 = tpu.matmul %99, %100, %cst {dimension_numbers = #tpu.dot_dimension_numbers<[1], [0], [0], [1], [0, 0, 1, 1], [], []>} : vector<16x48xf32>, vector<48x256xf32>, vector<16x256xf32> -> vector<16x256xf32>
    %c0_145 = arith.constant 0 : index
    %c0_146 = arith.constant 0 : index
    %c0_147 = arith.constant 0 : index
    %102 = vector.load %arg2[%c0_145, %c0_146, %c0_147] : memref<1x256x384xf32, #tpu.memory_space<vmem>>, vector<1x256x384xf32>
    %103 = vector.shape_cast %102 : vector<1x256x384xf32> to vector<256x384xf32>
    %cst_148 = arith.constant dense<0.000000e+00> : vector<16x384xf32>
    %104 = tpu.matmul %101, %103, %cst_148 {dimension_numbers = #tpu.dot_dimension_numbers<[1], [0], [0], [1], [0, 0, 1, 1], [], []>} : vector<16x256xf32>, vector<256x384xf32>, vector<16x384xf32> -> vector<16x384xf32>
    %c0_149 = arith.constant 0 : index
    %c0_150 = arith.constant 0 : index
    %c0_151 = arith.constant 0 : index
    %105 = vector.load %arg3[%c0_149, %c0_150, %c0_151] : memref<1x1x384xf32, #tpu.memory_space<vmem>>, vector<1x1x384xf32>
    %106 = vector.shape_cast %105 : vector<1x1x384xf32> to vector<1x384xf32>
    %107 = vector.broadcast %106 : vector<1x384xf32> to vector<16x384xf32>
    %108 = arith.addf %104, %107 : vector<16x384xf32>
    %cst_152 = arith.constant 5.000000e-01 : f32
    %109 = vector.broadcast %cst_152 : f32 to vector<16x384xf32>
    %110 = arith.mulf %109, %108 : vector<16x384xf32>
    %cst_153 = arith.constant 0.707106769 : f32
    %111 = vector.broadcast %cst_153 : f32 to vector<16x384xf32>
    %112 = arith.mulf %108, %111 : vector<16x384xf32>
    %cst_154 = arith.constant -4.000000e+00 : f32
    %cst_155 = arith.constant 4.000000e+00 : f32
    %113 = vector.broadcast %cst_154 : f32 to vector<16x384xf32>
    %114 = arith.maximumf %113, %112 : vector<16x384xf32>
    %115 = vector.broadcast %cst_155 : f32 to vector<16x384xf32>
    %116 = arith.minimumf %115, %114 : vector<16x384xf32>
    %117 = arith.mulf %116, %116 : vector<16x384xf32>
    %cst_156 = arith.constant -2.72614237E-10 : f32
    %118 = vector.broadcast %cst_156 : f32 to vector<16x384xf32>
    %119 = arith.mulf %118, %117 : vector<16x384xf32>
    %cst_157 = arith.constant 2.77068146E-8 : f32
    %120 = vector.broadcast %cst_157 : f32 to vector<16x384xf32>
    %121 = arith.addf %119, %120 : vector<16x384xf32>
    %122 = arith.mulf %121, %117 : vector<16x384xf32>
    %cst_158 = arith.constant -2.10102394E-6 : f32
    %123 = vector.broadcast %cst_158 : f32 to vector<16x384xf32>
    %124 = arith.addf %122, %123 : vector<16x384xf32>
    %125 = arith.mulf %124, %117 : vector<16x384xf32>
    %cst_159 = arith.constant -5.69250624E-5 : f32
    %126 = vector.broadcast %cst_159 : f32 to vector<16x384xf32>
    %127 = arith.addf %125, %126 : vector<16x384xf32>
    %128 = arith.mulf %127, %117 : vector<16x384xf32>
    %cst_160 = arith.constant -7.34990637E-4 : f32
    %129 = vector.broadcast %cst_160 : f32 to vector<16x384xf32>
    %130 = arith.addf %128, %129 : vector<16x384xf32>
    %131 = arith.mulf %130, %117 : vector<16x384xf32>
    %cst_161 = arith.constant -2.954600e-03 : f32
    %132 = vector.broadcast %cst_161 : f32 to vector<16x384xf32>
    %133 = arith.addf %131, %132 : vector<16x384xf32>
    %134 = arith.mulf %133, %117 : vector<16x384xf32>
    %cst_162 = arith.constant -0.0160960332 : f32
    %135 = vector.broadcast %cst_162 : f32 to vector<16x384xf32>
    %136 = arith.addf %134, %135 : vector<16x384xf32>
    %137 = arith.mulf %136, %116 : vector<16x384xf32>
    %cst_163 = arith.constant -1.45660715E-5 : f32
    %138 = vector.broadcast %cst_163 : f32 to vector<16x384xf32>
    %139 = arith.mulf %138, %117 : vector<16x384xf32>
    %cst_164 = arith.constant -2.13374049E-4 : f32
    %140 = vector.broadcast %cst_164 : f32 to vector<16x384xf32>
    %141 = arith.addf %139, %140 : vector<16x384xf32>
    %142 = arith.mulf %141, %117 : vector<16x384xf32>
    %cst_165 = arith.constant -0.00168282702 : f32
    %143 = vector.broadcast %cst_165 : f32 to vector<16x384xf32>
    %144 = arith.addf %142, %143 : vector<16x384xf32>
    %145 = arith.mulf %144, %117 : vector<16x384xf32>
    %cst_166 = arith.constant -0.00737332925 : f32
    %146 = vector.broadcast %cst_166 : f32 to vector<16x384xf32>
    %147 = arith.addf %145, %146 : vector<16x384xf32>
    %148 = arith.mulf %147, %117 : vector<16x384xf32>
    %cst_167 = arith.constant -0.0142647391 : f32
    %149 = vector.broadcast %cst_167 : f32 to vector<16x384xf32>
    %150 = arith.addf %148, %149 : vector<16x384xf32>
    %151 = arith.divf %137, %150 : vector<16x384xf32>
    %cst_168 = arith.constant 1.000000e+00 : f32
    %152 = vector.broadcast %cst_168 : f32 to vector<16x384xf32>
    %153 = arith.addf %152, %151 : vector<16x384xf32>
    %154 = arith.mulf %110, %153 : vector<16x384xf32>
    %c0_169 = arith.constant 0 : index
    %c0_170 = arith.constant 0 : index
    %c0_171 = arith.constant 0 : index
    %155 = vector.load %arg4[%c0_169, %c0_170, %c0_171] : memref<1x384x48xf32, #tpu.memory_space<vmem>>, vector<1x384x48xf32>
    %156 = vector.shape_cast %155 : vector<1x384x48xf32> to vector<384x48xf32>
    %cst_172 = arith.constant dense<0.000000e+00> : vector<16x48xf32>
    %157 = tpu.matmul %154, %156, %cst_172 {dimension_numbers = #tpu.dot_dimension_numbers<[1], [0], [0], [1], [0, 0, 1, 1], [], []>} : vector<16x384xf32>, vector<384x48xf32>, vector<16x48xf32> -> vector<16x48xf32>
    %c0_173 = arith.constant 0 : index
    %c0_174 = arith.constant 0 : index
    %c0_175 = arith.constant 0 : index
    %158 = vector.load %arg5[%c0_173, %c0_174, %c0_175] : memref<1x1x48xf32, #tpu.memory_space<vmem>>, vector<1x1x48xf32>
    %159 = vector.shape_cast %158 : vector<1x1x48xf32> to vector<1x48xf32>
    %160 = vector.broadcast %159 : vector<1x48xf32> to vector<16x48xf32>
    %161 = arith.addf %157, %160 : vector<16x48xf32>
    %c0_176 = arith.constant 0 : index
    %c0_177 = arith.constant 0 : index
    %162 = vector.load %arg11[%c0_176, %c0_177] : memref<16x48xf32, #tpu.memory_space<vmem>>, vector<16x48xf32>
    tpu.vector_store %arg11[%c0_176, %c0_177], %161 {strides = array<i32>} : memref<16x48xf32, #tpu.memory_space<vmem>>, vector<16x48xf32>,
    %c0_178 = arith.constant 0 : index
    %c0_179 = arith.constant 0 : index
    %163 = vector.load %arg11[%c0_178, %c0_179] : memref<16x48xf32, #tpu.memory_space<vmem>>, vector<1x48xf32>
    %c1_180 = arith.constant 1 : index
    %c0_181 = arith.constant 0 : index
    %164 = vector.load %arg11[%c1_180, %c0_181] : memref<16x48xf32, #tpu.memory_space<vmem>>, vector<1x48xf32>
    %c2_182 = arith.constant 2 : index
    %c0_183 = arith.constant 0 : index
    %165 = vector.load %arg11[%c2_182, %c0_183] : memref<16x48xf32, #tpu.memory_space<vmem>>, vector<1x48xf32>
    %c3_184 = arith.constant 3 : index
    %c0_185 = arith.constant 0 : index
    %166 = vector.load %arg11[%c3_184, %c0_185] : memref<16x48xf32, #tpu.memory_space<vmem>>, vector<1x48xf32>
    %167 = vector.extract_strided_slice %163 {offsets = [0, 0], sizes = [1, 4], strides = [1, 1]} : vector<1x48xf32> to vector<1x4xf32>
    %168 = vector.extract_strided_slice %164 {offsets = [0, 0], sizes = [1, 4], strides = [1, 1]} : vector<1x48xf32> to vector<1x4xf32>
    %169 = vector.extract_strided_slice %165 {offsets = [0, 0], sizes = [1, 4], strides = [1, 1]} : vector<1x48xf32> to vector<1x4xf32>
    %170 = vector.extract_strided_slice %166 {offsets = [0, 0], sizes = [1, 4], strides = [1, 1]} : vector<1x48xf32> to vector<1x4xf32>
    %171 = tpu.concatenate %167, %168, %169, %170 in 1 : vector<1x4xf32>, vector<1x4xf32>, vector<1x4xf32>, vector<1x4xf32> -> vector<1x16xf32>
    %172 = vector.extract_strided_slice %163 {offsets = [0, 16], sizes = [1, 4], strides = [1, 1]} : vector<1x48xf32> to vector<1x4xf32>
    %173 = vector.extract_strided_slice %164 {offsets = [0, 16], sizes = [1, 4], strides = [1, 1]} : vector<1x48xf32> to vector<1x4xf32>
    %174 = vector.extract_strided_slice %165 {offsets = [0, 16], sizes = [1, 4], strides = [1, 1]} : vector<1x48xf32> to vector<1x4xf32>
    %175 = vector.extract_strided_slice %166 {offsets = [0, 16], sizes = [1, 4], strides = [1, 1]} : vector<1x48xf32> to vector<1x4xf32>
    %176 = tpu.concatenate %172, %173, %174, %175 in 1 : vector<1x4xf32>, vector<1x4xf32>, vector<1x4xf32>, vector<1x4xf32> -> vector<1x16xf32>
    %177 = vector.extract_strided_slice %163 {offsets = [0, 32], sizes = [1, 4], strides = [1, 1]} : vector<1x48xf32> to vector<1x4xf32>
    %178 = vector.extract_strided_slice %164 {offsets = [0, 32], sizes = [1, 4], strides = [1, 1]} : vector<1x48xf32> to vector<1x4xf32>
    %179 = vector.extract_strided_slice %165 {offsets = [0, 32], sizes = [1, 4], strides = [1, 1]} : vector<1x48xf32> to vector<1x4xf32>
    %180 = vector.extract_strided_slice %166 {offsets = [0, 32], sizes = [1, 4], strides = [1, 1]} : vector<1x48xf32> to vector<1x4xf32>
    %181 = tpu.concatenate %177, %178, %179, %180 in 1 : vector<1x4xf32>, vector<1x4xf32>, vector<1x4xf32>, vector<1x4xf32> -> vector<1x16xf32>
    %182 = tpu.concatenate %171, %176, %181 in 0 : vector<1x16xf32>, vector<1x16xf32>, vector<1x16xf32> -> vector<3x16xf32>
    %c0_186 = arith.constant 0 : index
    %c0_187 = arith.constant 0 : index
    %183 = vector.load %arg12[%c0_186, %c0_187] : memref<3x384xf32, #tpu.memory_space<vmem>>, vector<3x16xf32>
    tpu.vector_store %arg12[%c0_186, %c0_187], %182 {strides = array<i32>} : memref<3x384xf32, #tpu.memory_space<vmem>>, vector<3x16xf32>,
    %184 = vector.extract_strided_slice %163 {offsets = [0, 4], sizes = [1, 4], strides = [1, 1]} : vector<1x48xf32> to vector<1x4xf32>
    %185 = vector.extract_strided_slice %164 {offsets = [0, 4], sizes = [1, 4], strides = [1, 1]} : vector<1x48xf32> to vector<1x4xf32>
    %186 = vector.extract_strided_slice %165 {offsets = [0, 4], sizes = [1, 4], strides = [1, 1]} : vector<1x48xf32> to vector<1x4xf32>
    %187 = vector.extract_strided_slice %166 {offsets = [0, 4], sizes = [1, 4], strides = [1, 1]} : vector<1x48xf32> to vector<1x4xf32>
    %188 = tpu.concatenate %184, %185, %186, %187 in 1 : vector<1x4xf32>, vector<1x4xf32>, vector<1x4xf32>, vector<1x4xf32> -> vector<1x16xf32>
    %189 = vector.extract_strided_slice %163 {offsets = [0, 20], sizes = [1, 4], strides = [1, 1]} : vector<1x48xf32> to vector<1x4xf32>
    %190 = vector.extract_strided_slice %164 {offsets = [0, 20], sizes = [1, 4], strides = [1, 1]} : vector<1x48xf32> to vector<1x4xf32>
    %191 = vector.extract_strided_slice %165 {offsets = [0, 20], sizes = [1, 4], strides = [1, 1]} : vector<1x48xf32> to vector<1x4xf32>
    %192 = vector.extract_strided_slice %166 {offsets = [0, 20], sizes = [1, 4], strides = [1, 1]} : vector<1x48xf32> to vector<1x4xf32>
    %193 = tpu.concatenate %189, %190, %191, %192 in 1 : vector<1x4xf32>, vector<1x4xf32>, vector<1x4xf32>, vector<1x4xf32> -> vector<1x16xf32>
    %194 = vector.extract_strided_slice %163 {offsets = [0, 36], sizes = [1, 4], strides = [1, 1]} : vector<1x48xf32> to vector<1x4xf32>
    %195 = vector.extract_strided_slice %164 {offsets = [0, 36], sizes = [1, 4], strides = [1, 1]} : vector<1x48xf32> to vector<1x4xf32>
    %196 = vector.extract_strided_slice %165 {offsets = [0, 36], sizes = [1, 4], strides = [1, 1]} : vector<1x48xf32> to vector<1x4xf32>
    %197 = vector.extract_strided_slice %166 {offsets = [0, 36], sizes = [1, 4], strides = [1, 1]} : vector<1x48xf32> to vector<1x4xf32>
    %198 = tpu.concatenate %194, %195, %196, %197 in 1 : vector<1x4xf32>, vector<1x4xf32>, vector<1x4xf32>, vector<1x4xf32> -> vector<1x16xf32>
    %199 = tpu.concatenate %188, %193, %198 in 0 : vector<1x16xf32>, vector<1x16xf32>, vector<1x16xf32> -> vector<3x16xf32>
    %c0_188 = arith.constant 0 : index
    %c16_189 = arith.constant 16 : index
    %200 = vector.load %arg12[%c0_188, %c16_189] : memref<3x384xf32, #tpu.memory_space<vmem>>, vector<3x16xf32>
    tpu.vector_store %arg12[%c0_188, %c16_189], %199 {strides = array<i32>} : memref<3x384xf32, #tpu.memory_space<vmem>>, vector<3x16xf32>,
    %201 = vector.extract_strided_slice %163 {offsets = [0, 8], sizes = [1, 4], strides = [1, 1]} : vector<1x48xf32> to vector<1x4xf32>
    %202 = vector.extract_strided_slice %164 {offsets = [0, 8], sizes = [1, 4], strides = [1, 1]} : vector<1x48xf32> to vector<1x4xf32>
    %203 = vector.extract_strided_slice %165 {offsets = [0, 8], sizes = [1, 4], strides = [1, 1]} : vector<1x48xf32> to vector<1x4xf32>
    %204 = vector.extract_strided_slice %166 {offsets = [0, 8], sizes = [1, 4], strides = [1, 1]} : vector<1x48xf32> to vector<1x4xf32>
    %205 = tpu.concatenate %201, %202, %203, %204 in 1 : vector<1x4xf32>, vector<1x4xf32>, vector<1x4xf32>, vector<1x4xf32> -> vector<1x16xf32>
    %206 = vector.extract_strided_slice %163 {offsets = [0, 24], sizes = [1, 4], strides = [1, 1]} : vector<1x48xf32> to vector<1x4xf32>
    %207 = vector.extract_strided_slice %164 {offsets = [0, 24], sizes = [1, 4], strides = [1, 1]} : vector<1x48xf32> to vector<1x4xf32>
    %208 = vector.extract_strided_slice %165 {offsets = [0, 24], sizes = [1, 4], strides = [1, 1]} : vector<1x48xf32> to vector<1x4xf32>
    %209 = vector.extract_strided_slice %166 {offsets = [0, 24], sizes = [1, 4], strides = [1, 1]} : vector<1x48xf32> to vector<1x4xf32>
    %210 = tpu.concatenate %206, %207, %208, %209 in 1 : vector<1x4xf32>, vector<1x4xf32>, vector<1x4xf32>, vector<1x4xf32> -> vector<1x16xf32>
    %211 = vector.extract_strided_slice %163 {offsets = [0, 40], sizes = [1, 4], strides = [1, 1]} : vector<1x48xf32> to vector<1x4xf32>
    %212 = vector.extract_strided_slice %164 {offsets = [0, 40], sizes = [1, 4], strides = [1, 1]} : vector<1x48xf32> to vector<1x4xf32>
    %213 = vector.extract_strided_slice %165 {offsets = [0, 40], sizes = [1, 4], strides = [1, 1]} : vector<1x48xf32> to vector<1x4xf32>
    %214 = vector.extract_strided_slice %166 {offsets = [0, 40], sizes = [1, 4], strides = [1, 1]} : vector<1x48xf32> to vector<1x4xf32>
    %215 = tpu.concatenate %211, %212, %213, %214 in 1 : vector<1x4xf32>, vector<1x4xf32>, vector<1x4xf32>, vector<1x4xf32> -> vector<1x16xf32>
    %216 = tpu.concatenate %205, %210, %215 in 0 : vector<1x16xf32>, vector<1x16xf32>, vector<1x16xf32> -> vector<3x16xf32>
    %c0_190 = arith.constant 0 : index
    %c32_191 = arith.constant 32 : index
    %217 = vector.load %arg12[%c0_190, %c32_191] : memref<3x384xf32, #tpu.memory_space<vmem>>, vector<3x16xf32>
    tpu.vector_store %arg12[%c0_190, %c32_191], %216 {strides = array<i32>} : memref<3x384xf32, #tpu.memory_space<vmem>>, vector<3x16xf32>,
    %218 = vector.extract_strided_slice %163 {offsets = [0, 12], sizes = [1, 4], strides = [1, 1]} : vector<1x48xf32> to vector<1x4xf32>
    %219 = vector.extract_strided_slice %164 {offsets = [0, 12], sizes = [1, 4], strides = [1, 1]} : vector<1x48xf32> to vector<1x4xf32>
    %220 = vector.extract_strided_slice %165 {offsets = [0, 12], sizes = [1, 4], strides = [1, 1]} : vector<1x48xf32> to vector<1x4xf32>
    %221 = vector.extract_strided_slice %166 {offsets = [0, 12], sizes = [1, 4], strides = [1, 1]} : vector<1x48xf32> to vector<1x4xf32>
    %222 = tpu.concatenate %218, %219, %220, %221 in 1 : vector<1x4xf32>, vector<1x4xf32>, vector<1x4xf32>, vector<1x4xf32> -> vector<1x16xf32>
    %223 = vector.extract_strided_slice %163 {offsets = [0, 28], sizes = [1, 4], strides = [1, 1]} : vector<1x48xf32> to vector<1x4xf32>
    %224 = vector.extract_strided_slice %164 {offsets = [0, 28], sizes = [1, 4], strides = [1, 1]} : vector<1x48xf32> to vector<1x4xf32>
    %225 = vector.extract_strided_slice %165 {offsets = [0, 28], sizes = [1, 4], strides = [1, 1]} : vector<1x48xf32> to vector<1x4xf32>
    %226 = vector.extract_strided_slice %166 {offsets = [0, 28], sizes = [1, 4], strides = [1, 1]} : vector<1x48xf32> to vector<1x4xf32>
    %227 = tpu.concatenate %223, %224, %225, %226 in 1 : vector<1x4xf32>, vector<1x4xf32>, vector<1x4xf32>, vector<1x4xf32> -> vector<1x16xf32>
    %228 = vector.extract_strided_slice %163 {offsets = [0, 44], sizes = [1, 4], strides = [1, 1]} : vector<1x48xf32> to vector<1x4xf32>
    %229 = vector.extract_strided_slice %164 {offsets = [0, 44], sizes = [1, 4], strides = [1, 1]} : vector<1x48xf32> to vector<1x4xf32>
    %230 = vector.extract_strided_slice %165 {offsets = [0, 44], sizes = [1, 4], strides = [1, 1]} : vector<1x48xf32> to vector<1x4xf32>
    %231 = vector.extract_strided_slice %166 {offsets = [0, 44], sizes = [1, 4], strides = [1, 1]} : vector<1x48xf32> to vector<1x4xf32>
    %232 = tpu.concatenate %228, %229, %230, %231 in 1 : vector<1x4xf32>, vector<1x4xf32>, vector<1x4xf32>, vector<1x4xf32> -> vector<1x16xf32>
    %233 = tpu.concatenate %222, %227, %232 in 0 : vector<1x16xf32>, vector<1x16xf32>, vector<1x16xf32> -> vector<3x16xf32>
    %c0_192 = arith.constant 0 : index
    %c48_193 = arith.constant 48 : index
    %234 = vector.load %arg12[%c0_192, %c48_193] : memref<3x384xf32, #tpu.memory_space<vmem>>, vector<3x16xf32>
    tpu.vector_store %arg12[%c0_192, %c48_193], %233 {strides = array<i32>} : memref<3x384xf32, #tpu.memory_space<vmem>>, vector<3x16xf32>,
    %c4_194 = arith.constant 4 : index
    %c0_195 = arith.constant 0 : index
    %235 = vector.load %arg11[%c4_194, %c0_195] : memref<16x48xf32, #tpu.memory_space<vmem>>, vector<1x48xf32>
    %c5_196 = arith.constant 5 : index
    %c0_197 = arith.constant 0 : index
    %236 = vector.load %arg11[%c5_196, %c0_197] : memref<16x48xf32, #tpu.memory_space<vmem>>, vector<1x48xf32>
    %c6_198 = arith.constant 6 : index
    %c0_199 = arith.constant 0 : index
    %237 = vector.load %arg11[%c6_198, %c0_199] : memref<16x48xf32, #tpu.memory_space<vmem>>, vector<1x48xf32>
    %c7_200 = arith.constant 7 : index
    %c0_201 = arith.constant 0 : index
    %238 = vector.load %arg11[%c7_200, %c0_201] : memref<16x48xf32, #tpu.memory_space<vmem>>, vector<1x48xf32>
    %239 = vector.extract_strided_slice %235 {offsets = [0, 0], sizes = [1, 4], strides = [1, 1]} : vector<1x48xf32> to vector<1x4xf32>
    %240 = vector.extract_strided_slice %236 {offsets = [0, 0], sizes = [1, 4], strides = [1, 1]} : vector<1x48xf32> to vector<1x4xf32>
    %241 = vector.extract_strided_slice %237 {offsets = [0, 0], sizes = [1, 4], strides = [1, 1]} : vector<1x48xf32> to vector<1x4xf32>
    %242 = vector.extract_strided_slice %238 {offsets = [0, 0], sizes = [1, 4], strides = [1, 1]} : vector<1x48xf32> to vector<1x4xf32>
    %243 = tpu.concatenate %239, %240, %241, %242 in 1 : vector<1x4xf32>, vector<1x4xf32>, vector<1x4xf32>, vector<1x4xf32> -> vector<1x16xf32>
    %244 = vector.extract_strided_slice %235 {offsets = [0, 16], sizes = [1, 4], strides = [1, 1]} : vector<1x48xf32> to vector<1x4xf32>
    %245 = vector.extract_strided_slice %236 {offsets = [0, 16], sizes = [1, 4], strides = [1, 1]} : vector<1x48xf32> to vector<1x4xf32>
    %246 = vector.extract_strided_slice %237 {offsets = [0, 16], sizes = [1, 4], strides = [1, 1]} : vector<1x48xf32> to vector<1x4xf32>
    %247 = vector.extract_strided_slice %238 {offsets = [0, 16], sizes = [1, 4], strides = [1, 1]} : vector<1x48xf32> to vector<1x4xf32>
    %248 = tpu.concatenate %244, %245, %246, %247 in 1 : vector<1x4xf32>, vector<1x4xf32>, vector<1x4xf32>, vector<1x4xf32> -> vector<1x16xf32>
    %249 = vector.extract_strided_slice %235 {offsets = [0, 32], sizes = [1, 4], strides = [1, 1]} : vector<1x48xf32> to vector<1x4xf32>
    %250 = vector.extract_strided_slice %236 {offsets = [0, 32], sizes = [1, 4], strides = [1, 1]} : vector<1x48xf32> to vector<1x4xf32>
    %251 = vector.extract_strided_slice %237 {offsets = [0, 32], sizes = [1, 4], strides = [1, 1]} : vector<1x48xf32> to vector<1x4xf32>
    %252 = vector.extract_strided_slice %238 {offsets = [0, 32], sizes = [1, 4], strides = [1, 1]} : vector<1x48xf32> to vector<1x4xf32>
    %253 = tpu.concatenate %249, %250, %251, %252 in 1 : vector<1x4xf32>, vector<1x4xf32>, vector<1x4xf32>, vector<1x4xf32> -> vector<1x16xf32>
    %254 = tpu.concatenate %243, %248, %253 in 0 : vector<1x16xf32>, vector<1x16xf32>, vector<1x16xf32> -> vector<3x16xf32>
    %c0_202 = arith.constant 0 : index
    %c64 = arith.constant 64 : index
    %255 = vector.load %arg12[%c0_202, %c64] : memref<3x384xf32, #tpu.memory_space<vmem>>, vector<3x16xf32>
    tpu.vector_store %arg12[%c0_202, %c64], %254 {strides = array<i32>} : memref<3x384xf32, #tpu.memory_space<vmem>>, vector<3x16xf32>,
    %256 = vector.extract_strided_slice %235 {offsets = [0, 4], sizes = [1, 4], strides = [1, 1]} : vector<1x48xf32> to vector<1x4xf32>
    %257 = vector.extract_strided_slice %236 {offsets = [0, 4], sizes = [1, 4], strides = [1, 1]} : vector<1x48xf32> to vector<1x4xf32>
    %258 = vector.extract_strided_slice %237 {offsets = [0, 4], sizes = [1, 4], strides = [1, 1]} : vector<1x48xf32> to vector<1x4xf32>
    %259 = vector.extract_strided_slice %238 {offsets = [0, 4], sizes = [1, 4], strides = [1, 1]} : vector<1x48xf32> to vector<1x4xf32>
    %260 = tpu.concatenate %256, %257, %258, %259 in 1 : vector<1x4xf32>, vector<1x4xf32>, vector<1x4xf32>, vector<1x4xf32> -> vector<1x16xf32>
    %261 = vector.extract_strided_slice %235 {offsets = [0, 20], sizes = [1, 4], strides = [1, 1]} : vector<1x48xf32> to vector<1x4xf32>
    %262 = vector.extract_strided_slice %236 {offsets = [0, 20], sizes = [1, 4], strides = [1, 1]} : vector<1x48xf32> to vector<1x4xf32>
    %263 = vector.extract_strided_slice %237 {offsets = [0, 20], sizes = [1, 4], strides = [1, 1]} : vector<1x48xf32> to vector<1x4xf32>
    %264 = vector.extract_strided_slice %238 {offsets = [0, 20], sizes = [1, 4], strides = [1, 1]} : vector<1x48xf32> to vector<1x4xf32>
    %265 = tpu.concatenate %261, %262, %263, %264 in 1 : vector<1x4xf32>, vector<1x4xf32>, vector<1x4xf32>, vector<1x4xf32> -> vector<1x16xf32>
    %266 = vector.extract_strided_slice %235 {offsets = [0, 36], sizes = [1, 4], strides = [1, 1]} : vector<1x48xf32> to vector<1x4xf32>
    %267 = vector.extract_strided_slice %236 {offsets = [0, 36], sizes = [1, 4], strides = [1, 1]} : vector<1x48xf32> to vector<1x4xf32>
    %268 = vector.extract_strided_slice %237 {offsets = [0, 36], sizes = [1, 4], strides = [1, 1]} : vector<1x48xf32> to vector<1x4xf32>
    %269 = vector.extract_strided_slice %238 {offsets = [0, 36], sizes = [1, 4], strides = [1, 1]} : vector<1x48xf32> to vector<1x4xf32>
    %270 = tpu.concatenate %266, %267, %268, %269 in 1 : vector<1x4xf32>, vector<1x4xf32>, vector<1x4xf32>, vector<1x4xf32> -> vector<1x16xf32>
    %271 = tpu.concatenate %260, %265, %270 in 0 : vector<1x16xf32>, vector<1x16xf32>, vector<1x16xf32> -> vector<3x16xf32>
    %c0_203 = arith.constant 0 : index
    %c80 = arith.constant 80 : index
    %272 = vector.load %arg12[%c0_203, %c80] : memref<3x384xf32, #tpu.memory_space<vmem>>, vector<3x16xf32>
    tpu.vector_store %arg12[%c0_203, %c80], %271 {strides = array<i32>} : memref<3x384xf32, #tpu.memory_space<vmem>>, vector<3x16xf32>,
    %273 = vector.extract_strided_slice %235 {offsets = [0, 8], sizes = [1, 4], strides = [1, 1]} : vector<1x48xf32> to vector<1x4xf32>
    %274 = vector.extract_strided_slice %236 {offsets = [0, 8], sizes = [1, 4], strides = [1, 1]} : vector<1x48xf32> to vector<1x4xf32>
    %275 = vector.extract_strided_slice %237 {offsets = [0, 8], sizes = [1, 4], strides = [1, 1]} : vector<1x48xf32> to vector<1x4xf32>
    %276 = vector.extract_strided_slice %238 {offsets = [0, 8], sizes = [1, 4], strides = [1, 1]} : vector<1x48xf32> to vector<1x4xf32>
    %277 = tpu.concatenate %273, %274, %275, %276 in 1 : vector<1x4xf32>, vector<1x4xf32>, vector<1x4xf32>, vector<1x4xf32> -> vector<1x16xf32>
    %278 = vector.extract_strided_slice %235 {offsets = [0, 24], sizes = [1, 4], strides = [1, 1]} : vector<1x48xf32> to vector<1x4xf32>
    %279 = vector.extract_strided_slice %236 {offsets = [0, 24], sizes = [1, 4], strides = [1, 1]} : vector<1x48xf32> to vector<1x4xf32>
    %280 = vector.extract_strided_slice %237 {offsets = [0, 24], sizes = [1, 4], strides = [1, 1]} : vector<1x48xf32> to vector<1x4xf32>
    %281 = vector.extract_strided_slice %238 {offsets = [0, 24], sizes = [1, 4], strides = [1, 1]} : vector<1x48xf32> to vector<1x4xf32>
    %282 = tpu.concatenate %278, %279, %280, %281 in 1 : vector<1x4xf32>, vector<1x4xf32>, vector<1x4xf32>, vector<1x4xf32> -> vector<1x16xf32>
    %283 = vector.extract_strided_slice %235 {offsets = [0, 40], sizes = [1, 4], strides = [1, 1]} : vector<1x48xf32> to vector<1x4xf32>
    %284 = vector.extract_strided_slice %236 {offsets = [0, 40], sizes = [1, 4], strides = [1, 1]} : vector<1x48xf32> to vector<1x4xf32>
    %285 = vector.extract_strided_slice %237 {offsets = [0, 40], sizes = [1, 4], strides = [1, 1]} : vector<1x48xf32> to vector<1x4xf32>
    %286 = vector.extract_strided_slice %238 {offsets = [0, 40], sizes = [1, 4], strides = [1, 1]} : vector<1x48xf32> to vector<1x4xf32>
    %287 = tpu.concatenate %283, %284, %285, %286 in 1 : vector<1x4xf32>, vector<1x4xf32>, vector<1x4xf32>, vector<1x4xf32> -> vector<1x16xf32>
    %288 = tpu.concatenate %277, %282, %287 in 0 : vector<1x16xf32>, vector<1x16xf32>, vector<1x16xf32> -> vector<3x16xf32>
    %c0_204 = arith.constant 0 : index
    %c96 = arith.constant 96 : index
    %289 = vector.load %arg12[%c0_204, %c96] : memref<3x384xf32, #tpu.memory_space<vmem>>, vector<3x16xf32>
    tpu.vector_store %arg12[%c0_204, %c96], %288 {strides = array<i32>} : memref<3x384xf32, #tpu.memory_space<vmem>>, vector<3x16xf32>,
    %290 = vector.extract_strided_slice %235 {offsets = [0, 12], sizes = [1, 4], strides = [1, 1]} : vector<1x48xf32> to vector<1x4xf32>
    %291 = vector.extract_strided_slice %236 {offsets = [0, 12], sizes = [1, 4], strides = [1, 1]} : vector<1x48xf32> to vector<1x4xf32>
    %292 = vector.extract_strided_slice %237 {offsets = [0, 12], sizes = [1, 4], strides = [1, 1]} : vector<1x48xf32> to vector<1x4xf32>
    %293 = vector.extract_strided_slice %238 {offsets = [0, 12], sizes = [1, 4], strides = [1, 1]} : vector<1x48xf32> to vector<1x4xf32>
    %294 = tpu.concatenate %290, %291, %292, %293 in 1 : vector<1x4xf32>, vector<1x4xf32>, vector<1x4xf32>, vector<1x4xf32> -> vector<1x16xf32>
    %295 = vector.extract_strided_slice %235 {offsets = [0, 28], sizes = [1, 4], strides = [1, 1]} : vector<1x48xf32> to vector<1x4xf32>
    %296 = vector.extract_strided_slice %236 {offsets = [0, 28], sizes = [1, 4], strides = [1, 1]} : vector<1x48xf32> to vector<1x4xf32>
    %297 = vector.extract_strided_slice %237 {offsets = [0, 28], sizes = [1, 4], strides = [1, 1]} : vector<1x48xf32> to vector<1x4xf32>
    %298 = vector.extract_strided_slice %238 {offsets = [0, 28], sizes = [1, 4], strides = [1, 1]} : vector<1x48xf32> to vector<1x4xf32>
    %299 = tpu.concatenate %295, %296, %297, %298 in 1 : vector<1x4xf32>, vector<1x4xf32>, vector<1x4xf32>, vector<1x4xf32> -> vector<1x16xf32>
    %300 = vector.extract_strided_slice %235 {offsets = [0, 44], sizes = [1, 4], strides = [1, 1]} : vector<1x48xf32> to vector<1x4xf32>
    %301 = vector.extract_strided_slice %236 {offsets = [0, 44], sizes = [1, 4], strides = [1, 1]} : vector<1x48xf32> to vector<1x4xf32>
    %302 = vector.extract_strided_slice %237 {offsets = [0, 44], sizes = [1, 4], strides = [1, 1]} : vector<1x48xf32> to vector<1x4xf32>
    %303 = vector.extract_strided_slice %238 {offsets = [0, 44], sizes = [1, 4], strides = [1, 1]} : vector<1x48xf32> to vector<1x4xf32>
    %304 = tpu.concatenate %300, %301, %302, %303 in 1 : vector<1x4xf32>, vector<1x4xf32>, vector<1x4xf32>, vector<1x4xf32> -> vector<1x16xf32>
    %305 = tpu.concatenate %294, %299, %304 in 0 : vector<1x16xf32>, vector<1x16xf32>, vector<1x16xf32> -> vector<3x16xf32>
    %c0_205 = arith.constant 0 : index
    %c112 = arith.constant 112 : index
    %306 = vector.load %arg12[%c0_205, %c112] : memref<3x384xf32, #tpu.memory_space<vmem>>, vector<3x16xf32>
    tpu.vector_store %arg12[%c0_205, %c112], %305 {strides = array<i32>} : memref<3x384xf32, #tpu.memory_space<vmem>>, vector<3x16xf32>,
    %c8_206 = arith.constant 8 : index
    %c0_207 = arith.constant 0 : index
    %307 = vector.load %arg11[%c8_206, %c0_207] : memref<16x48xf32, #tpu.memory_space<vmem>>, vector<1x48xf32>
    %c9_208 = arith.constant 9 : index
    %c0_209 = arith.constant 0 : index
    %308 = vector.load %arg11[%c9_208, %c0_209] : memref<16x48xf32, #tpu.memory_space<vmem>>, vector<1x48xf32>
    %c10_210 = arith.constant 10 : index
    %c0_211 = arith.constant 0 : index
    %309 = vector.load %arg11[%c10_210, %c0_211] : memref<16x48xf32, #tpu.memory_space<vmem>>, vector<1x48xf32>
    %c11_212 = arith.constant 11 : index
    %c0_213 = arith.constant 0 : index
    %310 = vector.load %arg11[%c11_212, %c0_213] : memref<16x48xf32, #tpu.memory_space<vmem>>, vector<1x48xf32>
    %311 = vector.extract_strided_slice %307 {offsets = [0, 0], sizes = [1, 4], strides = [1, 1]} : vector<1x48xf32> to vector<1x4xf32>
    %312 = vector.extract_strided_slice %308 {offsets = [0, 0], sizes = [1, 4], strides = [1, 1]} : vector<1x48xf32> to vector<1x4xf32>
    %313 = vector.extract_strided_slice %309 {offsets = [0, 0], sizes = [1, 4], strides = [1, 1]} : vector<1x48xf32> to vector<1x4xf32>
    %314 = vector.extract_strided_slice %310 {offsets = [0, 0], sizes = [1, 4], strides = [1, 1]} : vector<1x48xf32> to vector<1x4xf32>
    %315 = tpu.concatenate %311, %312, %313, %314 in 1 : vector<1x4xf32>, vector<1x4xf32>, vector<1x4xf32>, vector<1x4xf32> -> vector<1x16xf32>
    %316 = vector.extract_strided_slice %307 {offsets = [0, 16], sizes = [1, 4], strides = [1, 1]} : vector<1x48xf32> to vector<1x4xf32>
    %317 = vector.extract_strided_slice %308 {offsets = [0, 16], sizes = [1, 4], strides = [1, 1]} : vector<1x48xf32> to vector<1x4xf32>
    %318 = vector.extract_strided_slice %309 {offsets = [0, 16], sizes = [1, 4], strides = [1, 1]} : vector<1x48xf32> to vector<1x4xf32>
    %319 = vector.extract_strided_slice %310 {offsets = [0, 16], sizes = [1, 4], strides = [1, 1]} : vector<1x48xf32> to vector<1x4xf32>
    %320 = tpu.concatenate %316, %317, %318, %319 in 1 : vector<1x4xf32>, vector<1x4xf32>, vector<1x4xf32>, vector<1x4xf32> -> vector<1x16xf32>
    %321 = vector.extract_strided_slice %307 {offsets = [0, 32], sizes = [1, 4], strides = [1, 1]} : vector<1x48xf32> to vector<1x4xf32>
    %322 = vector.extract_strided_slice %308 {offsets = [0, 32], sizes = [1, 4], strides = [1, 1]} : vector<1x48xf32> to vector<1x4xf32>
    %323 = vector.extract_strided_slice %309 {offsets = [0, 32], sizes = [1, 4], strides = [1, 1]} : vector<1x48xf32> to vector<1x4xf32>
    %324 = vector.extract_strided_slice %310 {offsets = [0, 32], sizes = [1, 4], strides = [1, 1]} : vector<1x48xf32> to vector<1x4xf32>
    %325 = tpu.concatenate %321, %322, %323, %324 in 1 : vector<1x4xf32>, vector<1x4xf32>, vector<1x4xf32>, vector<1x4xf32> -> vector<1x16xf32>
    %326 = tpu.concatenate %315, %320, %325 in 0 : vector<1x16xf32>, vector<1x16xf32>, vector<1x16xf32> -> vector<3x16xf32>
    %c0_214 = arith.constant 0 : index
    %c128 = arith.constant 128 : index
    %327 = vector.load %arg12[%c0_214, %c128] : memref<3x384xf32, #tpu.memory_space<vmem>>, vector<3x16xf32>
    tpu.vector_store %arg12[%c0_214, %c128], %326 {strides = array<i32>} : memref<3x384xf32, #tpu.memory_space<vmem>>, vector<3x16xf32>,
    %328 = vector.extract_strided_slice %307 {offsets = [0, 4], sizes = [1, 4], strides = [1, 1]} : vector<1x48xf32> to vector<1x4xf32>
    %329 = vector.extract_strided_slice %308 {offsets = [0, 4], sizes = [1, 4], strides = [1, 1]} : vector<1x48xf32> to vector<1x4xf32>
    %330 = vector.extract_strided_slice %309 {offsets = [0, 4], sizes = [1, 4], strides = [1, 1]} : vector<1x48xf32> to vector<1x4xf32>
    %331 = vector.extract_strided_slice %310 {offsets = [0, 4], sizes = [1, 4], strides = [1, 1]} : vector<1x48xf32> to vector<1x4xf32>
    %332 = tpu.concatenate %328, %329, %330, %331 in 1 : vector<1x4xf32>, vector<1x4xf32>, vector<1x4xf32>, vector<1x4xf32> -> vector<1x16xf32>
    %333 = vector.extract_strided_slice %307 {offsets = [0, 20], sizes = [1, 4], strides = [1, 1]} : vector<1x48xf32> to vector<1x4xf32>
    %334 = vector.extract_strided_slice %308 {offsets = [0, 20], sizes = [1, 4], strides = [1, 1]} : vector<1x48xf32> to vector<1x4xf32>
    %335 = vector.extract_strided_slice %309 {offsets = [0, 20], sizes = [1, 4], strides = [1, 1]} : vector<1x48xf32> to vector<1x4xf32>
    %336 = vector.extract_strided_slice %310 {offsets = [0, 20], sizes = [1, 4], strides = [1, 1]} : vector<1x48xf32> to vector<1x4xf32>
    %337 = tpu.concatenate %333, %334, %335, %336 in 1 : vector<1x4xf32>, vector<1x4xf32>, vector<1x4xf32>, vector<1x4xf32> -> vector<1x16xf32>
    %338 = vector.extract_strided_slice %307 {offsets = [0, 36], sizes = [1, 4], strides = [1, 1]} : vector<1x48xf32> to vector<1x4xf32>
    %339 = vector.extract_strided_slice %308 {offsets = [0, 36], sizes = [1, 4], strides = [1, 1]} : vector<1x48xf32> to vector<1x4xf32>
    %340 = vector.extract_strided_slice %309 {offsets = [0, 36], sizes = [1, 4], strides = [1, 1]} : vector<1x48xf32> to vector<1x4xf32>
    %341 = vector.extract_strided_slice %310 {offsets = [0, 36], sizes = [1, 4], strides = [1, 1]} : vector<1x48xf32> to vector<1x4xf32>
    %342 = tpu.concatenate %338, %339, %340, %341 in 1 : vector<1x4xf32>, vector<1x4xf32>, vector<1x4xf32>, vector<1x4xf32> -> vector<1x16xf32>
    %343 = tpu.concatenate %332, %337, %342 in 0 : vector<1x16xf32>, vector<1x16xf32>, vector<1x16xf32> -> vector<3x16xf32>
    %c0_215 = arith.constant 0 : index
    %c144 = arith.constant 144 : index
    %344 = vector.load %arg12[%c0_215, %c144] : memref<3x384xf32, #tpu.memory_space<vmem>>, vector<3x16xf32>
    tpu.vector_store %arg12[%c0_215, %c144], %343 {strides = array<i32>} : memref<3x384xf32, #tpu.memory_space<vmem>>, vector<3x16xf32>,
    %345 = vector.extract_strided_slice %307 {offsets = [0, 8], sizes = [1, 4], strides = [1, 1]} : vector<1x48xf32> to vector<1x4xf32>
    %346 = vector.extract_strided_slice %308 {offsets = [0, 8], sizes = [1, 4], strides = [1, 1]} : vector<1x48xf32> to vector<1x4xf32>
    %347 = vector.extract_strided_slice %309 {offsets = [0, 8], sizes = [1, 4], strides = [1, 1]} : vector<1x48xf32> to vector<1x4xf32>
    %348 = vector.extract_strided_slice %310 {offsets = [0, 8], sizes = [1, 4], strides = [1, 1]} : vector<1x48xf32> to vector<1x4xf32>
    %349 = tpu.concatenate %345, %346, %347, %348 in 1 : vector<1x4xf32>, vector<1x4xf32>, vector<1x4xf32>, vector<1x4xf32> -> vector<1x16xf32>
    %350 = vector.extract_strided_slice %307 {offsets = [0, 24], sizes = [1, 4], strides = [1, 1]} : vector<1x48xf32> to vector<1x4xf32>
    %351 = vector.extract_strided_slice %308 {offsets = [0, 24], sizes = [1, 4], strides = [1, 1]} : vector<1x48xf32> to vector<1x4xf32>
    %352 = vector.extract_strided_slice %309 {offsets = [0, 24], sizes = [1, 4], strides = [1, 1]} : vector<1x48xf32> to vector<1x4xf32>
    %353 = vector.extract_strided_slice %310 {offsets = [0, 24], sizes = [1, 4], strides = [1, 1]} : vector<1x48xf32> to vector<1x4xf32>
    %354 = tpu.concatenate %350, %351, %352, %353 in 1 : vector<1x4xf32>, vector<1x4xf32>, vector<1x4xf32>, vector<1x4xf32> -> vector<1x16xf32>
    %355 = vector.extract_strided_slice %307 {offsets = [0, 40], sizes = [1, 4], strides = [1, 1]} : vector<1x48xf32> to vector<1x4xf32>
    %356 = vector.extract_strided_slice %308 {offsets = [0, 40], sizes = [1, 4], strides = [1, 1]} : vector<1x48xf32> to vector<1x4xf32>
    %357 = vector.extract_strided_slice %309 {offsets = [0, 40], sizes = [1, 4], strides = [1, 1]} : vector<1x48xf32> to vector<1x4xf32>
    %358 = vector.extract_strided_slice %310 {offsets = [0, 40], sizes = [1, 4], strides = [1, 1]} : vector<1x48xf32> to vector<1x4xf32>
    %359 = tpu.concatenate %355, %356, %357, %358 in 1 : vector<1x4xf32>, vector<1x4xf32>, vector<1x4xf32>, vector<1x4xf32> -> vector<1x16xf32>
    %360 = tpu.concatenate %349, %354, %359 in 0 : vector<1x16xf32>, vector<1x16xf32>, vector<1x16xf32> -> vector<3x16xf32>
    %c0_216 = arith.constant 0 : index
    %c160 = arith.constant 160 : index
    %361 = vector.load %arg12[%c0_216, %c160] : memref<3x384xf32, #tpu.memory_space<vmem>>, vector<3x16xf32>
    tpu.vector_store %arg12[%c0_216, %c160], %360 {strides = array<i32>} : memref<3x384xf32, #tpu.memory_space<vmem>>, vector<3x16xf32>,
    %362 = vector.extract_strided_slice %307 {offsets = [0, 12], sizes = [1, 4], strides = [1, 1]} : vector<1x48xf32> to vector<1x4xf32>
    %363 = vector.extract_strided_slice %308 {offsets = [0, 12], sizes = [1, 4], strides = [1, 1]} : vector<1x48xf32> to vector<1x4xf32>
    %364 = vector.extract_strided_slice %309 {offsets = [0, 12], sizes = [1, 4], strides = [1, 1]} : vector<1x48xf32> to vector<1x4xf32>
    %365 = vector.extract_strided_slice %310 {offsets = [0, 12], sizes = [1, 4], strides = [1, 1]} : vector<1x48xf32> to vector<1x4xf32>
    %366 = tpu.concatenate %362, %363, %364, %365 in 1 : vector<1x4xf32>, vector<1x4xf32>, vector<1x4xf32>, vector<1x4xf32> -> vector<1x16xf32>
    %367 = vector.extract_strided_slice %307 {offsets = [0, 28], sizes = [1, 4], strides = [1, 1]} : vector<1x48xf32> to vector<1x4xf32>
    %368 = vector.extract_strided_slice %308 {offsets = [0, 28], sizes = [1, 4], strides = [1, 1]} : vector<1x48xf32> to vector<1x4xf32>
    %369 = vector.extract_strided_slice %309 {offsets = [0, 28], sizes = [1, 4], strides = [1, 1]} : vector<1x48xf32> to vector<1x4xf32>
    %370 = vector.extract_strided_slice %310 {offsets = [0, 28], sizes = [1, 4], strides = [1, 1]} : vector<1x48xf32> to vector<1x4xf32>
    %371 = tpu.concatenate %367, %368, %369, %370 in 1 : vector<1x4xf32>, vector<1x4xf32>, vector<1x4xf32>, vector<1x4xf32> -> vector<1x16xf32>
    %372 = vector.extract_strided_slice %307 {offsets = [0, 44], sizes = [1, 4], strides = [1, 1]} : vector<1x48xf32> to vector<1x4xf32>
    %373 = vector.extract_strided_slice %308 {offsets = [0, 44], sizes = [1, 4], strides = [1, 1]} : vector<1x48xf32> to vector<1x4xf32>
    %374 = vector.extract_strided_slice %309 {offsets = [0, 44], sizes = [1, 4], strides = [1, 1]} : vector<1x48xf32> to vector<1x4xf32>
    %375 = vector.extract_strided_slice %310 {offsets = [0, 44], sizes = [1, 4], strides = [1, 1]} : vector<1x48xf32> to vector<1x4xf32>
    %376 = tpu.concatenate %372, %373, %374, %375 in 1 : vector<1x4xf32>, vector<1x4xf32>, vector<1x4xf32>, vector<1x4xf32> -> vector<1x16xf32>
    %377 = tpu.concatenate %366, %371, %376 in 0 : vector<1x16xf32>, vector<1x16xf32>, vector<1x16xf32> -> vector<3x16xf32>
    %c0_217 = arith.constant 0 : index
    %c176 = arith.constant 176 : index
    %378 = vector.load %arg12[%c0_217, %c176] : memref<3x384xf32, #tpu.memory_space<vmem>>, vector<3x16xf32>
    tpu.vector_store %arg12[%c0_217, %c176], %377 {strides = array<i32>} : memref<3x384xf32, #tpu.memory_space<vmem>>, vector<3x16xf32>,
    %c12_218 = arith.constant 12 : index
    %c0_219 = arith.constant 0 : index
    %379 = vector.load %arg11[%c12_218, %c0_219] : memref<16x48xf32, #tpu.memory_space<vmem>>, vector<1x48xf32>
    %c13_220 = arith.constant 13 : index
    %c0_221 = arith.constant 0 : index
    %380 = vector.load %arg11[%c13_220, %c0_221] : memref<16x48xf32, #tpu.memory_space<vmem>>, vector<1x48xf32>
    %c14_222 = arith.constant 14 : index
    %c0_223 = arith.constant 0 : index
    %381 = vector.load %arg11[%c14_222, %c0_223] : memref<16x48xf32, #tpu.memory_space<vmem>>, vector<1x48xf32>
    %c15_224 = arith.constant 15 : index
    %c0_225 = arith.constant 0 : index
    %382 = vector.load %arg11[%c15_224, %c0_225] : memref<16x48xf32, #tpu.memory_space<vmem>>, vector<1x48xf32>
    %383 = vector.extract_strided_slice %379 {offsets = [0, 0], sizes = [1, 4], strides = [1, 1]} : vector<1x48xf32> to vector<1x4xf32>
    %384 = vector.extract_strided_slice %380 {offsets = [0, 0], sizes = [1, 4], strides = [1, 1]} : vector<1x48xf32> to vector<1x4xf32>
    %385 = vector.extract_strided_slice %381 {offsets = [0, 0], sizes = [1, 4], strides = [1, 1]} : vector<1x48xf32> to vector<1x4xf32>
    %386 = vector.extract_strided_slice %382 {offsets = [0, 0], sizes = [1, 4], strides = [1, 1]} : vector<1x48xf32> to vector<1x4xf32>
    %387 = tpu.concatenate %383, %384, %385, %386 in 1 : vector<1x4xf32>, vector<1x4xf32>, vector<1x4xf32>, vector<1x4xf32> -> vector<1x16xf32>
    %388 = vector.extract_strided_slice %379 {offsets = [0, 16], sizes = [1, 4], strides = [1, 1]} : vector<1x48xf32> to vector<1x4xf32>
    %389 = vector.extract_strided_slice %380 {offsets = [0, 16], sizes = [1, 4], strides = [1, 1]} : vector<1x48xf32> to vector<1x4xf32>
    %390 = vector.extract_strided_slice %381 {offsets = [0, 16], sizes = [1, 4], strides = [1, 1]} : vector<1x48xf32> to vector<1x4xf32>
    %391 = vector.extract_strided_slice %382 {offsets = [0, 16], sizes = [1, 4], strides = [1, 1]} : vector<1x48xf32> to vector<1x4xf32>
    %392 = tpu.concatenate %388, %389, %390, %391 in 1 : vector<1x4xf32>, vector<1x4xf32>, vector<1x4xf32>, vector<1x4xf32> -> vector<1x16xf32>
    %393 = vector.extract_strided_slice %379 {offsets = [0, 32], sizes = [1, 4], strides = [1, 1]} : vector<1x48xf32> to vector<1x4xf32>
    %394 = vector.extract_strided_slice %380 {offsets = [0, 32], sizes = [1, 4], strides = [1, 1]} : vector<1x48xf32> to vector<1x4xf32>
    %395 = vector.extract_strided_slice %381 {offsets = [0, 32], sizes = [1, 4], strides = [1, 1]} : vector<1x48xf32> to vector<1x4xf32>
    %396 = vector.extract_strided_slice %382 {offsets = [0, 32], sizes = [1, 4], strides = [1, 1]} : vector<1x48xf32> to vector<1x4xf32>
    %397 = tpu.concatenate %393, %394, %395, %396 in 1 : vector<1x4xf32>, vector<1x4xf32>, vector<1x4xf32>, vector<1x4xf32> -> vector<1x16xf32>
    %398 = tpu.concatenate %387, %392, %397 in 0 : vector<1x16xf32>, vector<1x16xf32>, vector<1x16xf32> -> vector<3x16xf32>
    %c0_226 = arith.constant 0 : index
    %c192 = arith.constant 192 : index
    %399 = vector.load %arg12[%c0_226, %c192] : memref<3x384xf32, #tpu.memory_space<vmem>>, vector<3x16xf32>
    tpu.vector_store %arg12[%c0_226, %c192], %398 {strides = array<i32>} : memref<3x384xf32, #tpu.memory_space<vmem>>, vector<3x16xf32>,
    %400 = vector.extract_strided_slice %379 {offsets = [0, 4], sizes = [1, 4], strides = [1, 1]} : vector<1x48xf32> to vector<1x4xf32>
    %401 = vector.extract_strided_slice %380 {offsets = [0, 4], sizes = [1, 4], strides = [1, 1]} : vector<1x48xf32> to vector<1x4xf32>
    %402 = vector.extract_strided_slice %381 {offsets = [0, 4], sizes = [1, 4], strides = [1, 1]} : vector<1x48xf32> to vector<1x4xf32>
    %403 = vector.extract_strided_slice %382 {offsets = [0, 4], sizes = [1, 4], strides = [1, 1]} : vector<1x48xf32> to vector<1x4xf32>
    %404 = tpu.concatenate %400, %401, %402, %403 in 1 : vector<1x4xf32>, vector<1x4xf32>, vector<1x4xf32>, vector<1x4xf32> -> vector<1x16xf32>
    %405 = vector.extract_strided_slice %379 {offsets = [0, 20], sizes = [1, 4], strides = [1, 1]} : vector<1x48xf32> to vector<1x4xf32>
    %406 = vector.extract_strided_slice %380 {offsets = [0, 20], sizes = [1, 4], strides = [1, 1]} : vector<1x48xf32> to vector<1x4xf32>
    %407 = vector.extract_strided_slice %381 {offsets = [0, 20], sizes = [1, 4], strides = [1, 1]} : vector<1x48xf32> to vector<1x4xf32>
    %408 = vector.extract_strided_slice %382 {offsets = [0, 20], sizes = [1, 4], strides = [1, 1]} : vector<1x48xf32> to vector<1x4xf32>
    %409 = tpu.concatenate %405, %406, %407, %408 in 1 : vector<1x4xf32>, vector<1x4xf32>, vector<1x4xf32>, vector<1x4xf32> -> vector<1x16xf32>
    %410 = vector.extract_strided_slice %379 {offsets = [0, 36], sizes = [1, 4], strides = [1, 1]} : vector<1x48xf32> to vector<1x4xf32>
    %411 = vector.extract_strided_slice %380 {offsets = [0, 36], sizes = [1, 4], strides = [1, 1]} : vector<1x48xf32> to vector<1x4xf32>
    %412 = vector.extract_strided_slice %381 {offsets = [0, 36], sizes = [1, 4], strides = [1, 1]} : vector<1x48xf32> to vector<1x4xf32>
    %413 = vector.extract_strided_slice %382 {offsets = [0, 36], sizes = [1, 4], strides = [1, 1]} : vector<1x48xf32> to vector<1x4xf32>
    %414 = tpu.concatenate %410, %411, %412, %413 in 1 : vector<1x4xf32>, vector<1x4xf32>, vector<1x4xf32>, vector<1x4xf32> -> vector<1x16xf32>
    %415 = tpu.concatenate %404, %409, %414 in 0 : vector<1x16xf32>, vector<1x16xf32>, vector<1x16xf32> -> vector<3x16xf32>
    %c0_227 = arith.constant 0 : index
    %c208 = arith.constant 208 : index
    %416 = vector.load %arg12[%c0_227, %c208] : memref<3x384xf32, #tpu.memory_space<vmem>>, vector<3x16xf32>
    tpu.vector_store %arg12[%c0_227, %c208], %415 {strides = array<i32>} : memref<3x384xf32, #tpu.memory_space<vmem>>, vector<3x16xf32>,
    %417 = vector.extract_strided_slice %379 {offsets = [0, 8], sizes = [1, 4], strides = [1, 1]} : vector<1x48xf32> to vector<1x4xf32>
    %418 = vector.extract_strided_slice %380 {offsets = [0, 8], sizes = [1, 4], strides = [1, 1]} : vector<1x48xf32> to vector<1x4xf32>
    %419 = vector.extract_strided_slice %381 {offsets = [0, 8], sizes = [1, 4], strides = [1, 1]} : vector<1x48xf32> to vector<1x4xf32>
    %420 = vector.extract_strided_slice %382 {offsets = [0, 8], sizes = [1, 4], strides = [1, 1]} : vector<1x48xf32> to vector<1x4xf32>
    %421 = tpu.concatenate %417, %418, %419, %420 in 1 : vector<1x4xf32>, vector<1x4xf32>, vector<1x4xf32>, vector<1x4xf32> -> vector<1x16xf32>
    %422 = vector.extract_strided_slice %379 {offsets = [0, 24], sizes = [1, 4], strides = [1, 1]} : vector<1x48xf32> to vector<1x4xf32>
    %423 = vector.extract_strided_slice %380 {offsets = [0, 24], sizes = [1, 4], strides = [1, 1]} : vector<1x48xf32> to vector<1x4xf32>
    %424 = vector.extract_strided_slice %381 {offsets = [0, 24], sizes = [1, 4], strides = [1, 1]} : vector<1x48xf32> to vector<1x4xf32>
    %425 = vector.extract_strided_slice %382 {offsets = [0, 24], sizes = [1, 4], strides = [1, 1]} : vector<1x48xf32> to vector<1x4xf32>
    %426 = tpu.concatenate %422, %423, %424, %425 in 1 : vector<1x4xf32>, vector<1x4xf32>, vector<1x4xf32>, vector<1x4xf32> -> vector<1x16xf32>
    %427 = vector.extract_strided_slice %379 {offsets = [0, 40], sizes = [1, 4], strides = [1, 1]} : vector<1x48xf32> to vector<1x4xf32>
    %428 = vector.extract_strided_slice %380 {offsets = [0, 40], sizes = [1, 4], strides = [1, 1]} : vector<1x48xf32> to vector<1x4xf32>
    %429 = vector.extract_strided_slice %381 {offsets = [0, 40], sizes = [1, 4], strides = [1, 1]} : vector<1x48xf32> to vector<1x4xf32>
    %430 = vector.extract_strided_slice %382 {offsets = [0, 40], sizes = [1, 4], strides = [1, 1]} : vector<1x48xf32> to vector<1x4xf32>
    %431 = tpu.concatenate %427, %428, %429, %430 in 1 : vector<1x4xf32>, vector<1x4xf32>, vector<1x4xf32>, vector<1x4xf32> -> vector<1x16xf32>
    %432 = tpu.concatenate %421, %426, %431 in 0 : vector<1x16xf32>, vector<1x16xf32>, vector<1x16xf32> -> vector<3x16xf32>
    %c0_228 = arith.constant 0 : index
    %c224 = arith.constant 224 : index
    %433 = vector.load %arg12[%c0_228, %c224] : memref<3x384xf32, #tpu.memory_space<vmem>>, vector<3x16xf32>
    tpu.vector_store %arg12[%c0_228, %c224], %432 {strides = array<i32>} : memref<3x384xf32, #tpu.memory_space<vmem>>, vector<3x16xf32>,
    %434 = vector.extract_strided_slice %379 {offsets = [0, 12], sizes = [1, 4], strides = [1, 1]} : vector<1x48xf32> to vector<1x4xf32>
    %435 = vector.extract_strided_slice %380 {offsets = [0, 12], sizes = [1, 4], strides = [1, 1]} : vector<1x48xf32> to vector<1x4xf32>
    %436 = vector.extract_strided_slice %381 {offsets = [0, 12], sizes = [1, 4], strides = [1, 1]} : vector<1x48xf32> to vector<1x4xf32>
    %437 = vector.extract_strided_slice %382 {offsets = [0, 12], sizes = [1, 4], strides = [1, 1]} : vector<1x48xf32> to vector<1x4xf32>
    %438 = tpu.concatenate %434, %435, %436, %437 in 1 : vector<1x4xf32>, vector<1x4xf32>, vector<1x4xf32>, vector<1x4xf32> -> vector<1x16xf32>
    %439 = vector.extract_strided_slice %379 {offsets = [0, 28], sizes = [1, 4], strides = [1, 1]} : vector<1x48xf32> to vector<1x4xf32>
    %440 = vector.extract_strided_slice %380 {offsets = [0, 28], sizes = [1, 4], strides = [1, 1]} : vector<1x48xf32> to vector<1x4xf32>
    %441 = vector.extract_strided_slice %381 {offsets = [0, 28], sizes = [1, 4], strides = [1, 1]} : vector<1x48xf32> to vector<1x4xf32>
    %442 = vector.extract_strided_slice %382 {offsets = [0, 28], sizes = [1, 4], strides = [1, 1]} : vector<1x48xf32> to vector<1x4xf32>
    %443 = tpu.concatenate %439, %440, %441, %442 in 1 : vector<1x4xf32>, vector<1x4xf32>, vector<1x4xf32>, vector<1x4xf32> -> vector<1x16xf32>
    %444 = vector.extract_strided_slice %379 {offsets = [0, 44], sizes = [1, 4], strides = [1, 1]} : vector<1x48xf32> to vector<1x4xf32>
    %445 = vector.extract_strided_slice %380 {offsets = [0, 44], sizes = [1, 4], strides = [1, 1]} : vector<1x48xf32> to vector<1x4xf32>
    %446 = vector.extract_strided_slice %381 {offsets = [0, 44], sizes = [1, 4], strides = [1, 1]} : vector<1x48xf32> to vector<1x4xf32>
    %447 = vector.extract_strided_slice %382 {offsets = [0, 44], sizes = [1, 4], strides = [1, 1]} : vector<1x48xf32> to vector<1x4xf32>
    %448 = tpu.concatenate %444, %445, %446, %447 in 1 : vector<1x4xf32>, vector<1x4xf32>, vector<1x4xf32>, vector<1x4xf32> -> vector<1x16xf32>
    %449 = tpu.concatenate %438, %443, %448 in 0 : vector<1x16xf32>, vector<1x16xf32>, vector<1x16xf32> -> vector<3x16xf32>
    %c0_229 = arith.constant 0 : index
    %c240 = arith.constant 240 : index
    %450 = vector.load %arg12[%c0_229, %c240] : memref<3x384xf32, #tpu.memory_space<vmem>>, vector<3x16xf32>
    tpu.vector_store %arg12[%c0_229, %c240], %449 {strides = array<i32>} : memref<3x384xf32, #tpu.memory_space<vmem>>, vector<3x16xf32>,
    %c1_i32 = arith.constant 1 : i32
    %451 = arith.cmpi eq, %arg0, %c1_i32 : i32
    %452 = arith.extui %451 : i1 to i32
    %c0_i32_230 = arith.constant 0 : i32
    %453 = arith.cmpi ne, %452, %c0_i32_230 : i32
    scf.if %453 {
      %c0_231 = arith.constant 0 : index
      %c0_232 = arith.constant 0 : index
      %454 = vector.load %arg12[%c0_231, %c0_232] : memref<3x384xf32, #tpu.memory_space<vmem>>, vector<3x256xf32>
      %455 = vector.shape_cast %454 : vector<3x256xf32> to vector<1x3x256xf32>
      %cst_233 = arith.constant dense<0.000000e+00> : vector<1xf32>
      %456 = vector.multi_reduction <add>, %455, %cst_233 [1, 2] : vector<1x3x256xf32> to vector<1xf32>
      %457 = vector.shape_cast %456 : vector<1xf32> to vector<1x1x1xf32>
      %458 = vector.extract %457[0, 0, 0] : f32 from vector<1x1x1xf32>
      %cst_234 = arith.constant 0.00130208337 : f32
      %459 = arith.mulf %458, %cst_234 : f32
      %460 = vector.broadcast %459 : f32 to vector<3x256xf32>
      %461 = arith.subf %454, %460 : vector<3x256xf32>
      %462 = arith.mulf %461, %461 : vector<3x256xf32>
      %463 = vector.shape_cast %462 : vector<3x256xf32> to vector<1x3x256xf32>
      %cst_235 = arith.constant dense<0.000000e+00> : vector<1xf32>
      %464 = vector.multi_reduction <add>, %463, %cst_235 [1, 2] : vector<1x3x256xf32> to vector<1xf32>
      %465 = vector.shape_cast %464 : vector<1xf32> to vector<1x1x1xf32>
      %466 = vector.extract %465[0, 0, 0] : f32 from vector<1x1x1xf32>
      %cst_236 = arith.constant 0.00130208337 : f32
      %467 = arith.mulf %466, %cst_236 : f32
      %cst_237 = arith.constant 9.99999974E-6 : f32
      %468 = arith.addf %467, %cst_237 : f32
      %469 = math.rsqrt %468 : f32
      %470 = vector.broadcast %469 : f32 to vector<3x256xf32>
      %471 = arith.mulf %461, %470 : vector<3x256xf32>
      %c0_238 = arith.constant 0 : index
      %c0_239 = arith.constant 0 : index
      %472 = vector.load %arg6[%c0_238, %c0_239] : memref<3x256xf32, #tpu.memory_space<vmem>>, vector<3x256xf32>
      %473 = arith.mulf %471, %472 : vector<3x256xf32>
      %c0_240 = arith.constant 0 : index
      %c0_241 = arith.constant 0 : index
      %474 = vector.load %arg7[%c0_240, %c0_241] : memref<3x256xf32, #tpu.memory_space<vmem>>, vector<3x256xf32>
      %475 = arith.addf %473, %474 : vector<3x256xf32>
      %c0_242 = arith.constant 0 : index
      %c0_243 = arith.constant 0 : index
      %476 = vector.load %arg9[%c0_242, %c0_243] : memref<1x128xf32, #tpu.memory_space<vmem>>, vector<1x128xf32>
      %477 = vector.extract_strided_slice %475 {offsets = [0, 0], sizes = [1, 256], strides = [1, 1]} : vector<3x256xf32> to vector<1x256xf32>
      %c0_244 = arith.constant 0 : index
      %c0_245 = arith.constant 0 : index
      %c0_246 = arith.constant 0 : index
      %478 = vector.load %arg8[%c0_244, %c0_245, %c0_246] : memref<3x256x128xf32, #tpu.memory_space<vmem>>, vector<1x256x128xf32>
      %479 = vector.shape_cast %478 : vector<1x256x128xf32> to vector<256x128xf32>
      %cst_247 = arith.constant dense<0.000000e+00> : vector<1x128xf32>
      %480 = tpu.matmul %477, %479, %cst_247 {dimension_numbers = #tpu.dot_dimension_numbers<[1], [0], [0], [1], [0, 0, 1, 1], [], []>} : vector<1x256xf32>, vector<256x128xf32>, vector<1x128xf32> -> vector<1x128xf32>
      %481 = arith.addf %476, %480 : vector<1x128xf32>
      %482 = vector.extract_strided_slice %475 {offsets = [1, 0], sizes = [1, 256], strides = [1, 1]} : vector<3x256xf32> to vector<1x256xf32>
      %c1_248 = arith.constant 1 : index
      %c0_249 = arith.constant 0 : index
      %c0_250 = arith.constant 0 : index
      %483 = vector.load %arg8[%c1_248, %c0_249, %c0_250] : memref<3x256x128xf32, #tpu.memory_space<vmem>>, vector<1x256x128xf32>
      %484 = vector.shape_cast %483 : vector<1x256x128xf32> to vector<256x128xf32>
      %cst_251 = arith.constant dense<0.000000e+00> : vector<1x128xf32>
      %485 = tpu.matmul %482, %484, %cst_251 {dimension_numbers = #tpu.dot_dimension_numbers<[1], [0], [0], [1], [0, 0, 1, 1], [], []>} : vector<1x256xf32>, vector<256x128xf32>, vector<1x128xf32> -> vector<1x128xf32>
      %486 = arith.addf %481, %485 : vector<1x128xf32>
      %487 = vector.extract_strided_slice %475 {offsets = [2, 0], sizes = [1, 256], strides = [1, 1]} : vector<3x256xf32> to vector<1x256xf32>
      %c2_252 = arith.constant 2 : index
      %c0_253 = arith.constant 0 : index
      %c0_254 = arith.constant 0 : index
      %488 = vector.load %arg8[%c2_252, %c0_253, %c0_254] : memref<3x256x128xf32, #tpu.memory_space<vmem>>, vector<1x256x128xf32>
      %489 = vector.shape_cast %488 : vector<1x256x128xf32> to vector<256x128xf32>
      %cst_255 = arith.constant dense<0.000000e+00> : vector<1x128xf32>
      %490 = tpu.matmul %487, %489, %cst_255 {dimension_numbers = #tpu.dot_dimension_numbers<[1], [0], [0], [1], [0, 0, 1, 1], [], []>} : vector<1x256xf32>, vector<256x128xf32>, vector<1x128xf32> -> vector<1x128xf32>
      %491 = arith.addf %486, %490 : vector<1x128xf32>
      %c0_256 = arith.constant 0 : index
      %c0_257 = arith.constant 0 : index
      %492 = vector.load %arg10[%c0_256, %c0_257] : memref<1x128xf32, #tpu.memory_space<vmem>>, vector<1x128xf32>
      tpu.vector_store %arg10[%c0_256, %c0_257], %491 {strides = array<i32>} : memref<1x128xf32, #tpu.memory_space<vmem>>, vector<1x128xf32>,
    } else {
    }
    return
  }
  func.func @transform_0(%arg0: i32) -> (i32, i32) {
    %c0_i32 = arith.constant 0 : i32
    %c0_i32_0 = arith.constant 0 : i32
    %c0_i32_1 = arith.constant 0 : i32
    return %c0_i32, %c0_i32_0 : i32, i32
  }
  func.func @transform_1(%arg0: i32) -> (i32, i32, i32) {
    %c0_i32 = arith.constant 0 : i32
    %c0_i32_0 = arith.constant 0 : i32
    %c0_i32_1 = arith.constant 0 : i32
    return %arg0, %c0_i32, %c0_i32_0 : i32, i32, i32
  }
  func.func @transform_2(%arg0: i32) -> (i32, i32, i32) {
    %c0_i32 = arith.constant 0 : i32
    %c0_i32_0 = arith.constant 0 : i32
    %c0_i32_1 = arith.constant 0 : i32
    return %arg0, %c0_i32, %c0_i32_0 : i32, i32, i32
  }
  func.func @transform_3(%arg0: i32) -> (i32, i32, i32) {
    %c0_i32 = arith.constant 0 : i32
    %c0_i32_0 = arith.constant 0 : i32
    %c0_i32_1 = arith.constant 0 : i32
    return %arg0, %c0_i32, %c0_i32_0 : i32, i32, i32
  }
  func.func @transform_4(%arg0: i32) -> (i32, i32, i32) {
    %c0_i32 = arith.constant 0 : i32
    %c0_i32_0 = arith.constant 0 : i32
    %c0_i32_1 = arith.constant 0 : i32
    return %arg0, %c0_i32, %c0_i32_0 : i32, i32, i32
  }
  func.func @transform_5(%arg0: i32) -> (i32, i32) {
    %c0_i32 = arith.constant 0 : i32
    %c0_i32_0 = arith.constant 0 : i32
    %c0_i32_1 = arith.constant 0 : i32
    return %c0_i32, %c0_i32_0 : i32, i32
  }
  func.func @transform_6(%arg0: i32) -> (i32, i32) {
    %c0_i32 = arith.constant 0 : i32
    %c0_i32_0 = arith.constant 0 : i32
    %c0_i32_1 = arith.constant 0 : i32
    return %c0_i32, %c0_i32_0 : i32, i32
  }
  func.func @transform_7(%arg0: i32) -> (i32, i32, i32) {
    %c0_i32 = arith.constant 0 : i32
    %c0_i32_0 = arith.constant 0 : i32
    %c0_i32_1 = arith.constant 0 : i32
    %c0_i32_2 = arith.constant 0 : i32
    return %c0_i32, %c0_i32_0, %c0_i32_1 : i32, i32, i32
  }
  func.func @transform_8(%arg0: i32) -> (i32, i32) {
    %c0_i32 = arith.constant 0 : i32
    %c0_i32_0 = arith.constant 0 : i32
    %c0_i32_1 = arith.constant 0 : i32
    return %c0_i32, %c0_i32_0 : i32, i32
  }
  func.func @transform_9(%arg0: i32) -> (i32, i32) {
    %c0_i32 = arith.constant 0 : i32
    %c0_i32_0 = arith.constant 0 : i32
    %c0_i32_1 = arith.constant 0 : i32
    return %c0_i32, %c0_i32_0 : i32, i32
  }
}

</mosaic_0001>

<bundles_post_ra>
// kernel: squeeze.1
= control target key start
LH: loop header
LB: loop body
LE: loop exit
PB: predicated region body
PF: predicated region fallthrough
CT: control target
= control target key end

     0   :  { %vm3_vm0 = vcmask 31744   ;;  %s652_s12 = smov 124   ;;  %s654_s19 = smov 116   ;;  %s875_s0 = inlined_call_operand.vmem [shape: f32[1,3,16,16], index: 0, kind: input, shape index: {}]   ;;  %s876_s1 = inlined_call_operand.vmem [shape: f32[3,4,4,4,4], index: 1, kind: output, shape index: {}]  }
   0x1   :  { %v588_v0 = vld [vmem:[%s875_s0 + $0x10] sm:$0xff]   ;;  %v41_v1 = vld [vmem:[%s875_s0] sm:$0xff]   ;;  %v589_v2 = vld [vmem:[%s875_s0 + $0x18] sm:$0xff]  }
   0x2   :  { %60 = vrot.lane.b32.xlu1 %v588_v0, %s652_s12  ;;  %42 = vrot.lane.b32.xlu0 %v41_v1, %s652_s12  ;;  %v587_v3 = vld [vmem:[%s875_s0 + $0x8] sm:$0xff]   ;;  %4 = vst.msk [vmem:[#allocation0] ss:$8 sm:$0xf] %vm3_vm0, %v41_v1   ;;  %v590_v5 = vld [vmem:[%s875_s0 + $0x20] sm:$0xff]  }
   0x3   :  { %v591_v4 = vld [vmem:[%s875_s0 + $0x28] sm:$0xff]   ;;  %5 = vst.msk [vmem:[#allocation0] ss:$8 sm:$0xf0] %vm3_vm0, %v41_v1   ;;  %s653_s0 = smov 120  }
   0x4   :  { %24 = vst.msk [vmem:[#allocation0 + $0xc0] ss:$8 sm:$0xf] %vm3_vm0, %v589_v2   ;;  %26 = vst.msk [vmem:[#allocation0 + $0xc0] ss:$8 sm:$0xf0] %vm3_vm0, %v589_v2  }
   0x5   :  { %17 = vst.msk [vmem:[#allocation0 + $0x80] ss:$8 sm:$0xf] %vm3_vm0, %v588_v0   ;;  %19 = vst.msk [vmem:[#allocation0 + $0x80] ss:$8 sm:$0xf0] %vm3_vm0, %v588_v0  }
   0x6   :  { %10 = vst.msk [vmem:[#allocation0 + $0x40] ss:$8 sm:$0xf] %vm3_vm0, %v587_v3   ;;  %12 = vst.msk [vmem:[#allocation0 + $0x40] ss:$8 sm:$0xf0] %vm3_vm0, %v587_v3   ;;  %69 = vrot.lane.b32.xlu1 %v589_v2, %s652_s12  ;;  %51 = vrot.lane.b32.xlu0 %v587_v3, %s652_s12 }
   0x7   :  { %38 = vst.msk [vmem:[#allocation0 + $0x140] ss:$8 sm:$0xf] %vm3_vm0, %v591_v4   ;;  %40 = vst.msk [vmem:[#allocation0 + $0x140] ss:$8 sm:$0xf0] %vm3_vm0, %v591_v4  }
   0x8   :  { %31 = vst.msk [vmem:[#allocation0 + $0x100] ss:$8 sm:$0xf] %vm3_vm0, %v590_v5   ;;  %33 = vst.msk [vmem:[#allocation0 + $0x100] ss:$8 sm:$0xf0] %vm3_vm0, %v590_v5  }
   0xa   :  { %87 = vrot.lane.b32.xlu1 %v591_v4, %s652_s12  ;;  %78 = vrot.lane.b32.xlu0 %v590_v5, %s652_s12 }
   0xe   :  { %104 = vrot.lane.b32.xlu1 %v587_v3, %s653_s0  ;;  %95 = vrot.lane.b32.xlu0 %v41_v1, %s653_s0 }
  0x12   :  { %122 = vrot.lane.b32.xlu1 %v589_v2, %s653_s0  ;;  %113 = vrot.lane.b32.xlu0 %v588_v0, %s653_s0 }
  0x16   :  { %140 = vrot.lane.b32.xlu1 %v591_v4, %s653_s0  ;;  %131 = vrot.lane.b32.xlu0 %v590_v5, %s653_s0 }
  0x1a   :  { %157 = vrot.lane.b32.xlu1 %v587_v3, %s654_s19  ;;  %148 = vrot.lane.b32.xlu0 %v41_v1, %s654_s19 }
  0x1e   :  { %175 = vrot.lane.b32.xlu1 %v589_v2, %s654_s19  ;;  %166 = vrot.lane.b32.xlu0 %v588_v0, %s654_s19 }
  0x22   :  { %193 = vrot.lane.b32.xlu1 %v591_v4, %s654_s19  ;;  %184 = vrot.lane.b32.xlu0 %v590_v5, %s654_s19 }
  0x74   :  { %v61_v6 = vpop.permute.xlu1 %60   ;;  %v43_v7 = vpop.permute.xlu0 %42  }
  0x75   :  { %64 = vst.msk [vmem:[#allocation0 + $0x81] ss:$8 sm:$0xf] %vm3_vm0, %v61_v6   ;;  %66 = vst.msk [vmem:[#allocation0 + $0x81] ss:$8 sm:$0xf0] %vm3_vm0, %v61_v6  }
  0x76   :  { %46 = vst.msk [vmem:[#allocation0 + $0x1] ss:$8 sm:$0xf] %vm3_vm0, %v43_v7   ;;  %48 = vst.msk [vmem:[#allocation0 + $0x1] ss:$8 sm:$0xf0] %vm3_vm0, %v43_v7  }
  0x78   :  { %v70_v8 = vpop.permute.xlu1 %69   ;;  %v52_v9 = vpop.permute.xlu0 %51  }
  0x79   :  { %73 = vst.msk [vmem:[#allocation0 + $0xc1] ss:$8 sm:$0xf] %vm3_vm0, %v70_v8   ;;  %75 = vst.msk [vmem:[#allocation0 + $0xc1] ss:$8 sm:$0xf0] %vm3_vm0, %v70_v8  }
  0x7a   :  { %55 = vst.msk [vmem:[#allocation0 + $0x41] ss:$8 sm:$0xf] %vm3_vm0, %v52_v9   ;;  %57 = vst.msk [vmem:[#allocation0 + $0x41] ss:$8 sm:$0xf0] %vm3_vm0, %v52_v9  }
  0x7c   :  { %v88_v10 = vpop.permute.xlu1 %87   ;;  %v79_v11 = vpop.permute.xlu0 %78  }
  0x7d   :  { %91 = vst.msk [vmem:[#allocation0 + $0x141] ss:$8 sm:$0xf] %vm3_vm0, %v88_v10   ;;  %93 = vst.msk [vmem:[#allocation0 + $0x141] ss:$8 sm:$0xf0] %vm3_vm0, %v88_v10  }
  0x7e   :  { %82 = vst.msk [vmem:[#allocation0 + $0x101] ss:$8 sm:$0xf] %vm3_vm0, %v79_v11   ;;  %84 = vst.msk [vmem:[#allocation0 + $0x101] ss:$8 sm:$0xf0] %vm3_vm0, %v79_v11  }
  0x80   :  { %v105_v12 = vpop.permute.xlu1 %104   ;;  %v96_v13 = vpop.permute.xlu0 %95  }
  0x81   :  { %108 = vst.msk [vmem:[#allocation0 + $0x42] ss:$8 sm:$0xf] %vm3_vm0, %v105_v12   ;;  %110 = vst.msk [vmem:[#allocation0 + $0x42] ss:$8 sm:$0xf0] %vm3_vm0, %v105_v12  }
  0x82   :  { %99 = vst.msk [vmem:[#allocation0 + $0x2] ss:$8 sm:$0xf] %vm3_vm0, %v96_v13   ;;  %101 = vst.msk [vmem:[#allocation0 + $0x2] ss:$8 sm:$0xf0] %vm3_vm0, %v96_v13  }
  0x84   :  { %v123_v14 = vpop.permute.xlu1 %122   ;;  %v114_v15 = vpop.permute.xlu0 %113  }
  0x85   :  { %126 = vst.msk [vmem:[#allocation0 + $0xc2] ss:$8 sm:$0xf] %vm3_vm0, %v123_v14   ;;  %128 = vst.msk [vmem:[#allocation0 + $0xc2] ss:$8 sm:$0xf0] %vm3_vm0, %v123_v14  }
  0x86   :  { %117 = vst.msk [vmem:[#allocation0 + $0x82] ss:$8 sm:$0xf] %vm3_vm0, %v114_v15   ;;  %119 = vst.msk [vmem:[#allocation0 + $0x82] ss:$8 sm:$0xf0] %vm3_vm0, %v114_v15  }
  0x88   :  { %v141_v16 = vpop.permute.xlu1 %140   ;;  %v132_v17 = vpop.permute.xlu0 %131  }
  0x89   :  { %144 = vst.msk [vmem:[#allocation0 + $0x142] ss:$8 sm:$0xf] %vm3_vm0, %v141_v16   ;;  %146 = vst.msk [vmem:[#allocation0 + $0x142] ss:$8 sm:$0xf0] %vm3_vm0, %v141_v16  }
  0x8a   :  { %135 = vst.msk [vmem:[#allocation0 + $0x102] ss:$8 sm:$0xf] %vm3_vm0, %v132_v17   ;;  %137 = vst.msk [vmem:[#allocation0 + $0x102] ss:$8 sm:$0xf0] %vm3_vm0, %v132_v17  }
  0x8c   :  { %v158_v18 = vpop.permute.xlu1 %157   ;;  %v149_v19 = vpop.permute.xlu0 %148  }
  0x8d   :  { %161 = vst.msk [vmem:[#allocation0 + $0x43] ss:$8 sm:$0xf] %vm3_vm0, %v158_v18   ;;  %163 = vst.msk [vmem:[#allocation0 + $0x43] ss:$8 sm:$0xf0] %vm3_vm0, %v158_v18  }
  0x8e   :  { %152 = vst.msk [vmem:[#allocation0 + $0x3] ss:$8 sm:$0xf] %vm3_vm0, %v149_v19   ;;  %154 = vst.msk [vmem:[#allocation0 + $0x3] ss:$8 sm:$0xf0] %vm3_vm0, %v149_v19  }
  0x90   :  { %v176_v20 = vpop.permute.xlu1 %175   ;;  %v167_v21 = vpop.permute.xlu0 %166  }
  0x91   :  { %179 = vst.msk [vmem:[#allocation0 + $0xc3] ss:$8 sm:$0xf] %vm3_vm0, %v176_v20   ;;  %181 = vst.msk [vmem:[#allocation0 + $0xc3] ss:$8 sm:$0xf0] %vm3_vm0, %v176_v20  }
  0x92   :  { %170 = vst.msk [vmem:[#allocation0 + $0x83] ss:$8 sm:$0xf] %vm3_vm0, %v167_v21   ;;  %172 = vst.msk [vmem:[#allocation0 + $0x83] ss:$8 sm:$0xf0] %vm3_vm0, %v167_v21  }
  0x94   :  { %v257_v22 = vld [vmem:[#allocation0 + $0x40] sm:$0xf]  ;;  %v264_v23 = vld [vmem:[#allocation0 + $0x48] sm:$0xf]  ;;  %v271_v24 = vld [vmem:[#allocation0 + $0x50] sm:$0xf]  ;;  %v194_v25 = vpop.permute.xlu1 %193   ;;  %v185_v26 = vpop.permute.xlu0 %184  }
  0x95   :  { %609 = vst [vmem:[%s876_s1 + $0x20] sm:$0xf] %v257_v22  ;;  %610 = vst [vmem:[%s876_s1 + $0x24] sm:$0xf] %v264_v23  ;;  %v278_v27 = vld [vmem:[#allocation0 + $0x58] sm:$0xf] }
  0x96   :  { %611 = vst [vmem:[%s876_s1 + $0x28] sm:$0xf] %v271_v24  ;;  %v285_v28 = vld [vmem:[#allocation0 + $0x60] sm:$0xf]  ;;  %v292_v29 = vld [vmem:[#allocation0 + $0x68] sm:$0xf] }
  0x97   :  { %197 = vst.msk [vmem:[#allocation0 + $0x143] ss:$8 sm:$0xf] %vm3_vm0, %v194_v25   ;;  %199 = vst.msk [vmem:[#allocation0 + $0x143] ss:$8 sm:$0xf0] %vm3_vm0, %v194_v25  }
  0x98   :  { %188 = vst.msk [vmem:[#allocation0 + $0x103] ss:$8 sm:$0xf] %vm3_vm0, %v185_v26   ;;  %190 = vst.msk [vmem:[#allocation0 + $0x103] ss:$8 sm:$0xf0] %vm3_vm0, %v185_v26  }
  0x99   :  { %612 = vst [vmem:[%s876_s1 + $0x2c] sm:$0xf] %v278_v27  ;;  %613 = vst [vmem:[%s876_s1 + $0x30] sm:$0xf] %v285_v28  ;;  %v299_v30 = vld [vmem:[#allocation0 + $0x70] sm:$0xf] }
  0x9a   :  { %614 = vst [vmem:[%s876_s1 + $0x34] sm:$0xf] %v292_v29  ;;  %v306_v31 = vld [vmem:[#allocation0 + $0x78] sm:$0xf]  ;;  %v204_v32 = vld [vmem:[#allocation0] sm:$0xf] }
  0x9b   :  { %615 = vst [vmem:[%s876_s1 + $0x38] sm:$0xf] %v299_v30  ;;  %616 = vst [vmem:[%s876_s1 + $0x3c] sm:$0xf] %v306_v31  ;;  %v209_v33 = vld [vmem:[#allocation0 + $0x8] sm:$0xf] }
  0x9c   :  { %207 = vst [vmem:[%s876_s1] sm:$0xf] %v204_v32  ;;  %v215_v34 = vld [vmem:[#allocation0 + $0x10] sm:$0xf]  ;;  %v222_v35 = vld [vmem:[#allocation0 + $0x18] sm:$0xf] }
  0x9d   :  { %602 = vst [vmem:[%s876_s1 + $0x4] sm:$0xf] %v209_v33  ;;  %603 = vst [vmem:[%s876_s1 + $0x8] sm:$0xf] %v215_v34  ;;  %v229_v36 = vld [vmem:[#allocation0 + $0x20] sm:$0xf] }
  0x9e   :  { %604 = vst [vmem:[%s876_s1 + $0xc] sm:$0xf] %v222_v35  ;;  %v236_v37 = vld [vmem:[#allocation0 + $0x28] sm:$0xf]  ;;  %v243_v38 = vld [vmem:[#allocation0 + $0x30] sm:$0xf] }
  0x9f   :  { %605 = vst [vmem:[%s876_s1 + $0x10] sm:$0xf] %v229_v36  ;;  %606 = vst [vmem:[%s876_s1 + $0x14] sm:$0xf] %v236_v37  ;;  %v250_v39 = vld [vmem:[#allocation0 + $0x38] sm:$0xf] }
  0xa0   :  { %607 = vst [vmem:[%s876_s1 + $0x18] sm:$0xf] %v243_v38  ;;  %v369_v40 = vld [vmem:[#allocation0 + $0xc0] sm:$0xf]  ;;  %v376_v41 = vld [vmem:[#allocation0 + $0xc8] sm:$0xf] }
  0xa1   :  { %608 = vst [vmem:[%s876_s1 + $0x1c] sm:$0xf] %v250_v39  ;;  %625 = vst [vmem:[%s876_s1 + $0x60] sm:$0xf] %v369_v40  ;;  %v383_v42 = vld [vmem:[#allocation0 + $0xd0] sm:$0xf] }
  0xa2   :  { %626 = vst [vmem:[%s876_s1 + $0x64] sm:$0xf] %v376_v41  ;;  %v390_v43 = vld [vmem:[#allocation0 + $0xd8] sm:$0xf]  ;;  %v397_v44 = vld [vmem:[#allocation0 + $0xe0] sm:$0xf] }
  0xa3   :  { %627 = vst [vmem:[%s876_s1 + $0x68] sm:$0xf] %v383_v42  ;;  %628 = vst [vmem:[%s876_s1 + $0x6c] sm:$0xf] %v390_v43  ;;  %v404_v45 = vld [vmem:[#allocation0 + $0xe8] sm:$0xf] }
  0xa4   :  { %629 = vst [vmem:[%s876_s1 + $0x70] sm:$0xf] %v397_v44  ;;  %v411_v46 = vld [vmem:[#allocation0 + $0xf0] sm:$0xf]  ;;  %v418_v47 = vld [vmem:[#allocation0 + $0xf8] sm:$0xf] }
  0xa5   :  { %630 = vst [vmem:[%s876_s1 + $0x74] sm:$0xf] %v404_v45  ;;  %631 = vst [vmem:[%s876_s1 + $0x78] sm:$0xf] %v411_v46  ;;  %v313_v48 = vld [vmem:[#allocation0 + $0x80] sm:$0xf] }
  0xa6   :  { %632 = vst [vmem:[%s876_s1 + $0x7c] sm:$0xf] %v418_v47  ;;  %v320_v49 = vld [vmem:[#allocation0 + $0x88] sm:$0xf]  ;;  %v327_v50 = vld [vmem:[#allocation0 + $0x90] sm:$0xf] }
  0xa7   :  { %617 = vst [vmem:[%s876_s1 + $0x40] sm:$0xf] %v313_v48  ;;  %618 = vst [vmem:[%s876_s1 + $0x44] sm:$0xf] %v320_v49  ;;  %v334_v51 = vld [vmem:[#allocation0 + $0x98] sm:$0xf] }
  0xa8   :  { %619 = vst [vmem:[%s876_s1 + $0x48] sm:$0xf] %v327_v50  ;;  %v341_v52 = vld [vmem:[#allocation0 + $0xa0] sm:$0xf]  ;;  %v348_v53 = vld [vmem:[#allocation0 + $0xa8] sm:$0xf] }
  0xa9   :  { %620 = vst [vmem:[%s876_s1 + $0x4c] sm:$0xf] %v334_v51  ;;  %621 = vst [vmem:[%s876_s1 + $0x50] sm:$0xf] %v341_v52  ;;  %v355_v54 = vld [vmem:[#allocation0 + $0xb0] sm:$0xf] }
  0xaa   :  { %622 = vst [vmem:[%s876_s1 + $0x54] sm:$0xf] %v348_v53  ;;  %v362_v55 = vld [vmem:[#allocation0 + $0xb8] sm:$0xf]  ;;  %v481_v56 = vld [vmem:[#allocation0 + $0x140] sm:$0xf] }
  0xab   :  { %623 = vst [vmem:[%s876_s1 + $0x58] sm:$0xf] %v355_v54  ;;  %624 = vst [vmem:[%s876_s1 + $0x5c] sm:$0xf] %v362_v55  ;;  %v488_v57 = vld [vmem:[#allocation0 + $0x148] sm:$0xf] }
  0xac   :  { %641 = vst [vmem:[%s876_s1 + $0xa0] sm:$0xf] %v481_v56  ;;  %v495_v58 = vld [vmem:[#allocation0 + $0x150] sm:$0xf]  ;;  %v502_v59 = vld [vmem:[#allocation0 + $0x158] sm:$0xf] }
  0xad   :  { %642 = vst [vmem:[%s876_s1 + $0xa4] sm:$0xf] %v488_v57  ;;  %643 = vst [vmem:[%s876_s1 + $0xa8] sm:$0xf] %v495_v58  ;;  %v509_v60 = vld [vmem:[#allocation0 + $0x160] sm:$0xf] }
  0xae   :  { %644 = vst [vmem:[%s876_s1 + $0xac] sm:$0xf] %v502_v59  ;;  %v516_v61 = vld [vmem:[#allocation0 + $0x168] sm:$0xf]  ;;  %v523_v62 = vld [vmem:[#allocation0 + $0x170] sm:$0xf] }
  0xaf   :  { %645 = vst [vmem:[%s876_s1 + $0xb0] sm:$0xf] %v509_v60  ;;  %646 = vst [vmem:[%s876_s1 + $0xb4] sm:$0xf] %v516_v61  ;;  %v530_v63 = vld [vmem:[#allocation0 + $0x178] sm:$0xf] }
  0xb0   :  { %647 = vst [vmem:[%s876_s1 + $0xb8] sm:$0xf] %v523_v62  ;;  %v425_v0 = vld [vmem:[#allocation0 + $0x100] sm:$0xf]  ;;  %v432_v1 = vld [vmem:[#allocation0 + $0x108] sm:$0xf] }
  0xb1   :  { %648 = vst [vmem:[%s876_s1 + $0xbc] sm:$0xf] %v530_v63  ;;  %633 = vst [vmem:[%s876_s1 + $0x80] sm:$0xf] %v425_v0  ;;  %v439_v2 = vld [vmem:[#allocation0 + $0x110] sm:$0xf] }
  0xb2   :  { %634 = vst [vmem:[%s876_s1 + $0x84] sm:$0xf] %v432_v1  ;;  %v446_v3 = vld [vmem:[#allocation0 + $0x118] sm:$0xf]  ;;  %v453_v4 = vld [vmem:[#allocation0 + $0x120] sm:$0xf] }
  0xb3   :  { %635 = vst [vmem:[%s876_s1 + $0x88] sm:$0xf] %v439_v2  ;;  %636 = vst [vmem:[%s876_s1 + $0x8c] sm:$0xf] %v446_v3  ;;  %v460_v5 = vld [vmem:[#allocation0 + $0x128] sm:$0xf] }
  0xb4   :  { %637 = vst [vmem:[%s876_s1 + $0x90] sm:$0xf] %v453_v4  ;;  %v467_v6 = vld [vmem:[#allocation0 + $0x130] sm:$0xf]  ;;  %v474_v7 = vld [vmem:[#allocation0 + $0x138] sm:$0xf] }
  0xb5   :  { %638 = vst [vmem:[%s876_s1 + $0x94] sm:$0xf] %v460_v5  ;;  %639 = vst [vmem:[%s876_s1 + $0x98] sm:$0xf] %v467_v6 }
  0xb6   :  { %640 = vst [vmem:[%s876_s1 + $0x9c] sm:$0xf] %v474_v7 }

// kernel: vit_alta_forward.1
= control target key start
LH: loop header
LB: loop body
LE: loop exit
PB: predicated region body
PF: predicated region fallthrough
CT: control target
= control target key end

     0   :  { %14 = vsyncpa [#allocation6], 0  ;;  %s4437_s30 = smov 0   ;;  %s6562_s0 = inlined_call_operand.vmem [shape: f32[16,48], index: 0, kind: input, shape index: {}]   ;;  %s6563_s1 = inlined_call_operand.vmem [shape: f32[2,256,384], index: 1, kind: input, shape index: {}]   ;;  %s6564_s2 = inlined_call_operand.vmem [shape: f32[2,1,384], index: 2, kind: input, shape index: {}]   ;;  %s6565_s3 = inlined_call_operand.vmem [shape: f32[2,384,48], index: 3, kind: input, shape index: {}]   ;;  %s6566_s4 = inlined_call_operand.vmem [shape: f32[2,1,48], index: 4, kind: input, shape index: {}]   ;;  %s6567_s5 = inlined_call_operand.vmem [shape: f32[3,256], index: 5, kind: input, shape index: {}]   ;;  %s6568_s6 = inlined_call_operand.vmem [shape: f32[3,256], index: 6, kind: input, shape index: {}]   ;;  %s6569_s7 = inlined_call_operand.hbm [shape: f32[3,256,128], index: 7, kind: input, shape index: {}]   ;;  %s6570_s8 = inlined_call_operand.vmem [shape: f32[1,128], index: 8, kind: input, shape index: {}]   ;;  %s6571_s9 = inlined_call_operand.vmem [shape: f32[1,128], index: 9, kind: output, shape index: {}]  }
   0x1 LB: > { %s4443_s10 = sadd.s32 4294967295, %s4330_s30   ;;  %p3943_p0 = scmp.ge.s32.totalorder %s4330_s30, 1  ;;  %s4330_s30 = sphi %s4437_s30, %s20_s30  }
   0x2   : > { %p255_p1 = scmp.lt.s32.totalorder %s4330_s30, 3  ;;  %s4332_s11 = smov [#allocation5]  }
   0x3   : > { %s276_s12 = sshll.u32 %s4332_s11, 4  ;;  %p4214_p4 = scmp.eq.s32.totalorder %s4443_s10, 0  ;;  %s277_s12 = int_to_ptr.vmem [resolvable:$true] %s276_s12 }
   0x4   : > { %p4448_p3 = pnand %p3943_p0, %p255_p1  ;;  %s4305_s14 = scalar_lea.vmem %s277_s12, 12288 }
   0x5   : > { %p4306_p8 = scmp.ne.s32.totalorder %s277_s12, %s4305_s14  ;;  %p4313_p11 = scmp.lt.s32.totalorder %s277_s12, %s277_s12 }
   0x6   : > { %p4210_p5 = pneg %p4448_p3  ;;  %p4314_p12 = scmp.lt.s32.totalorder %s4305_s14, %s4305_s14 }
   0x8   : > { %p4211_p6 = pnand %p4214_p4, %p4210_p5  ;;  %p4315_p13 = por %p4314_p12, %p4313_p11 }
   0xa   : > { %p4296_p7 = pneg %p4211_p6 }
   0xc   : > { %p4308_p9 = pnand %p4306_p8, %p4296_p7 }
   0xe   : > { %p4309_p10 = pneg %p4308_p9 }
  0x10   : > { %p4316_p2 = pnand %p4315_p13, %p4309_p10 }
  0x12   : > { %4319 = shalt.err (!%p4316_p2)
}
  0x13   : > { %s4333_s15 = smov 128   ;;  %s4334_s16 = smov 8  }
  0x14   : > { %4213 = dma.hbm_to_vmem [thread:$0]  (!%p4211_p6), %s6569_s7, 12288, %s277_s12, [#allocation6], %s4333_s15, %s4333_s15, %s4334_s16  }
  0x15   : > { %324 = sbr.rel (%p4448_p3) target bundleno = 3428 (0xd64), region = 56 }
  0x1a   : > { %4325 = dma.done.wait (%p4214_p4), [#allocation6], 12288  }
  0x1b   : > { %4327 = vsyncadd (%p4214_p4), [#allocation6], 4294955008  ;;  %p367_p0 = scmp.lt.s32.totalorder %s4443_s10, 1  ;;  %p6593_p1 = scmp.ne.s32.totalorder %s4443_s10, 0 }
  0x1c   : > { %s4335_s18 = smov (!%p6593_p1), 12   ;;  %s4337_s21 = smov (!%p6593_p1), 8  }
  0x1d   : > { %s4468_s19 = scalar_select %p367_p0, %s4443_s10, 1 }
  0x1e   : > { %s4338_s22 = smov (!%p6593_p1), 112   ;;  %s4340_s25 = smov (!%p6593_p1), 120  }
  0x1f   : > { %s4197_s20 = smul.u32 768, %s4468_s19  ;;  %s4342_s29 = smov (!%p6593_p1), 124  }
  0x20   : > { %s4198_s24 = smul.u32 3, %s4468_s19  ;;  %s4343_s11 = smov (!%p6593_p1), 96  }
  0x21   : > { %s4479_s27 = scalar_lea.vmem %s6563_s1, %s4197_s20  ;;  %s4199_s28 = smul.u32 384, %s4468_s19 }
  0x22   : > { %s4485_s12 = scalar_lea.vmem %s6564_s2, %s4198_s24  ;;  %387 = sbr.rel (%p6593_p1) target bundleno = 1217 (0x4c1), region = 64 }
  0x23   : > { %s4490_s15 = scalar_lea.vmem %s6565_s3, %s4199_s28  ;;  %s4336_s20 = smov (!%p6593_p1), 4  }
  0x24   : > { %s4339_s24 = smov (!%p6593_p1), 116   ;;  %s4344_s13 = smov (!%p6593_p1), 100  }
  0x25   : > { %s4345_s14 = smov (!%p6593_p1), 104   ;;  %s4346_s16 = smov (!%p6593_p1), 108  }
  0x26   : > { %s4347_s17 = smov (!%p6593_p1), 92   ;;  %s6577_s26 = smov (!%p6593_p1), 88  }
  0x27   : > { %v403_v0 = vld [vmem:[%s6562_s0] sm:$0xff]  ;;  %vm405_vm0 = vcmask 392192   ;;  %v4341_v5 = vmov 0.0   ;;  %s4349_s28 = smov 84   ;;  %vm424_vm1 = vcmask 31744   ;;  %vm426_vm2 = vcmask 64512  }
  0x28   : > { %406 = vst.msk [vmem:[#allocation2] sm:$0xff] %vm405_vm0, %v403_v0  ;;  %388 = vst [vmem:[#allocation3] sm:$0x77] %v4341_v5  ;;  %vm428_vm3 = vcmask 97280   ;;  %vm467_vm4 = vcmask 1040384   ;;  %vm469_vm5 = vcmask 1041408  }
  0x29   : > { %389 = vst [vmem:[#allocation3 + $0x8] sm:$0x7] %v4341_v5  ;;  %390 = vst [vmem:[#allocation4] sm:$0xff] %v4341_v5  ;;  %vm471_vm6 = vcmask 124928   ;;  %s6572_s23 = smov 16   ;;  %vm527_vm7 = vcmask 256128  }
  0x2a   : > { %391 = vst [vmem:[#allocation4 + $0x8] sm:$0xff] %v4341_v5  ;;  %392 = vst [vmem:[#allocation4 + $0x10] sm:$0xff] %v4341_v5  ;;  %vm583_vm8 = vcmask 387328   ;;  %vm639_vm9 = vcmask 518528   ;;  %vm703_vm10 = vcmask 649728   ;;  %vm759_vm11 = vcmask 780928  }
  0x2b   : > { %393 = vst [vmem:[#allocation4 + $0x18] sm:$0xff] %v4341_v5  ;;  %394 = vst [vmem:[#allocation4 + $0x20] sm:$0xff] %v4341_v5  ;;  %vm815_vm12 = vcmask 912128   ;;  %vm871_vm13 = vcmask 1043328  }
  0x2c   : > { %395 = vst [vmem:[#allocation4 + $0x28] sm:$0xff] %v4341_v5  ;;  %396 = vst [vmem:[#allocation4 + $0x30] sm:$0xff] %v4341_v5 }
  0x2d   : > { %397 = vst [vmem:[#allocation4 + $0x38] sm:$0xff] %v4341_v5  ;;  %398 = vst [vmem:[#allocation4 + $0x40] sm:$0xff] %v4341_v5 }
  0x2e   : > { %399 = vst [vmem:[#allocation4 + $0x48] sm:$0xff] %v4341_v5  ;;  %400 = vst [vmem:[#allocation4 + $0x50] sm:$0xff] %v4341_v5 }
  0x2f   : > { %v4498_v1 = vld [vmem:[#allocation2 + $0x3] sm:$0x1]  ;;  %v4500_v2 = vld [vmem:[#allocation2 + $0x1] sm:$0x1]  ;;  %v4506_v3 = vld [vmem:[#allocation2 + $0x2] sm:$0x1] }
  0x30   : > { %421 = vrot.lane.b32.xlu1 %v4498_v1, %s4335_s18  ;;  %413 = vrot.lane.b32.xlu0 %v4500_v2, %s4336_s20  ;;  %v4508_v4 = vld [vmem:[#allocation2] sm:$0x1]  ;;  %401 = vst [vmem:[#allocation4 + $0x58] sm:$0xff] %v4341_v5  ;;  %402 = vst [vmem:[%s6571_s9] sm:$0x1] %v4341_v5  ;;  %v4593_v6 = vld [vmem:[#allocation2 + $0x6] sm:$0x1] }
  0x31   : > { %v4599_v7 = vld [vmem:[#allocation2 + $0x4] sm:$0x1]  ;;  %v4605_v8 = vld [vmem:[#allocation2 + $0x5] sm:$0x1]  ;;  %v4611_v9 = vld [vmem:[#allocation2 + $0x7] sm:$0x1] }
  0x34   : > { %417 = vrot.lane.b32.xlu0 %v4506_v3, %s4337_s21  ;;  %431 = vrot.lane.b32.xlu1 %v4508_v4, %s4338_s22 }
  0x38   : > { %434 = vrot.lane.b32.xlu0 %v4500_v2, %s4339_s24  ;;  %437 = vrot.lane.b32.xlu1 %v4506_v3, %s4340_s25 }
  0x3c   : > { %440 = vrot.lane.b32.xlu0 %v4498_v1, %s4342_s29  ;;  %446 = vrot.lane.b32.xlu1 %v4508_v4, %s4343_s11 }
  0x40   : > { %449 = vrot.lane.b32.xlu0 %v4500_v2, %s4344_s13  ;;  %452 = vrot.lane.b32.xlu1 %v4506_v3, %s4345_s14 }
  0x44   : > { %455 = vrot.lane.b32.xlu0 %v4498_v1, %s4346_s16  ;;  %473 = vrot.lane.b32.xlu1 %v4508_v4, %s4342_s29 }
  0x48   : > { %476 = vrot.lane.b32.xlu0 %v4506_v3, %s4336_s20  ;;  %479 = vrot.lane.b32.xlu1 %v4498_v1, %s4337_s21 }
  0x4c   : > { %485 = vrot.lane.b32.xlu0 %v4508_v4, %s4346_s16  ;;  %488 = vrot.lane.b32.xlu1 %v4500_v2, %s4338_s22 }
  0x50   : > { %491 = vrot.lane.b32.xlu0 %v4506_v3, %s4339_s24  ;;  %494 = vrot.lane.b32.xlu1 %v4498_v1, %s4340_s25 }
  0x54   : > { %500 = vrot.lane.b32.xlu0 %v4508_v4, %s4347_s17  ;;  %503 = vrot.lane.b32.xlu1 %v4500_v2, %s4343_s11 }
  0x58   : > { %506 = vrot.lane.b32.xlu0 %v4506_v3, %s4344_s13  ;;  %509 = vrot.lane.b32.xlu1 %v4498_v1, %s4345_s14 }
  0x5c   : > { %532 = vrot.lane.b32.xlu0 %v4500_v2, %s4342_s29  ;;  %529 = vrot.lane.b32.xlu1 %v4508_v4, %s4340_s25 }
  0x60   : > { %535 = vrot.lane.b32.xlu1 %v4498_v1, %s4336_s20  ;;  %541 = vrot.lane.b32.xlu0 %v4508_v4, %s4345_s14 }
  0x64   : > { %544 = vrot.lane.b32.xlu1 %v4500_v2, %s4346_s16  ;;  %547 = vrot.lane.b32.xlu0 %v4506_v3, %s4338_s22 }
  0x68   : > { %550 = vrot.lane.b32.xlu1 %v4498_v1, %s4339_s24  ;;  %556 = vrot.lane.b32.xlu0 %v4508_v4, %s6577_s26 }
  0x6c   : > { %559 = vrot.lane.b32.xlu1 %v4500_v2, %s4347_s17  ;;  %562 = vrot.lane.b32.xlu0 %v4506_v3, %s4343_s11 }
  0x70   : > { %565 = vrot.lane.b32.xlu1 %v4498_v1, %s4344_s13  ;;  %588 = vrot.lane.b32.xlu0 %v4500_v2, %s4340_s25 }
  0x74   : > { %585 = vrot.lane.b32.xlu1 %v4508_v4, %s4339_s24  ;;  %597 = vrot.lane.b32.xlu0 %v4508_v4, %s4344_s13 }
  0x78   : > { %591 = vrot.lane.b32.xlu1 %v4506_v3, %s4342_s29  ;;  %603 = vrot.lane.b32.xlu0 %v4506_v3, %s4346_s16 }
  0x7c   : > { %600 = vrot.lane.b32.xlu1 %v4500_v2, %s4345_s14  ;;  %612 = vrot.lane.b32.xlu0 %v4508_v4, %s4349_s28 }
  0x80   : > { %606 = vrot.lane.b32.xlu1 %v4498_v1, %s4338_s22  ;;  %618 = vrot.lane.b32.xlu0 %v4506_v3, %s4347_s17 }
  0x84   : > { %615 = vrot.lane.b32.xlu1 %v4500_v2, %s6577_s26  ;;  %650 = vrot.lane.b32.xlu0 %v4593_v6, %s4337_s21 }
  0x88   : > { %621 = vrot.lane.b32.xlu1 %v4498_v1, %s4343_s11  ;;  %661 = vrot.lane.b32.xlu0 %v4599_v7, %s4338_s22 }
  0x8c   : > { %646 = vrot.lane.b32.xlu1 %v4605_v8, %s4336_s20  ;;  %667 = vrot.lane.b32.xlu0 %v4593_v6, %s4340_s25 }
  0x90   : > { %654 = vrot.lane.b32.xlu1 %v4611_v9, %s4335_s18  ;;  %676 = vrot.lane.b32.xlu0 %v4599_v7, %s4343_s11 }
  0x94   : > { %664 = vrot.lane.b32.xlu1 %v4605_v8, %s4339_s24  ;;  %682 = vrot.lane.b32.xlu0 %v4593_v6, %s4345_s14 }
  0x98   : > { %670 = vrot.lane.b32.xlu1 %v4611_v9, %s4342_s29  ;;  %708 = vrot.lane.b32.xlu0 %v4593_v6, %s4336_s20 }
  0x9c   : > { %679 = vrot.lane.b32.xlu1 %v4605_v8, %s4344_s13  ;;  %717 = vrot.lane.b32.xlu0 %v4599_v7, %s4346_s16 }
  0xa0   : > { %685 = vrot.lane.b32.xlu1 %v4611_v9, %s4346_s16  ;;  %723 = vrot.lane.b32.xlu0 %v4593_v6, %s4339_s24 }
  0xa2   : > { %v422_v10 = vpop.permute.xlu1 %421  ;;  %v414_v11 = vpop.permute.xlu0 %413 }
  0xa3   : > { %v425_v20 = vsel %vm424_vm1, %v4508_v4, %v414_v11 }
  0xa4   : > { %705 = vrot.lane.b32.xlu1 %v4599_v7, %s4342_s29 }
  0xa6   : > { %v418_v12 = vpop.permute.xlu0 %417  ;;  %v432_v13 = vpop.permute.xlu1 %431 }
  0xa7   : > { %v427_v25 = vsel %vm426_vm2, %v425_v20, %v418_v12 }
  0xa8   : > { %711 = vrot.lane.b32.xlu1 %v4611_v9, %s4337_s21  ;;  %v429_v31 = vsel %vm428_vm3, %v427_v25, %v422_v10 }
  0xaa   : > { %v435_v14 = vpop.permute.xlu0 %434  ;;  %v438_v15 = vpop.permute.xlu1 %437 }
  0xab   : > { %v443_v16 = vsel %vm424_vm1, %v432_v13, %v435_v14 }
  0xac   : > { %720 = vrot.lane.b32.xlu1 %v4605_v8, %s4338_s22  ;;  %v444_v19 = vsel %vm426_vm2, %v443_v16, %v438_v15 }
  0xae   : > { %v441_v17 = vpop.permute.xlu0 %440  ;;  %v447_v18 = vpop.permute.xlu1 %446 }
  0xaf   : > { %v445_v21 = vsel %vm428_vm3, %v444_v19, %v441_v17 }
  0xb0   : > { %726 = vrot.lane.b32.xlu1 %v4611_v9, %s4340_s25  ;;  %v462_v26 = vrot.slane %v445_v21, 7 }
  0xb2   : > { %v450_v22 = vpop.permute.xlu0 %449  ;;  %v453_v23 = vpop.permute.xlu1 %452  ;;  %v468_v33 = vsel %vm467_vm4, %v429_v31, %v462_v26 }
  0xb3   : > { %v458_v24 = vsel %vm424_vm1, %v447_v18, %v450_v22 }
  0xb4   : > { %735 = vrot.lane.b32.xlu1 %v4605_v8, %s4343_s11  ;;  %v459_v27 = vsel %vm426_vm2, %v458_v24, %v453_v23 }
  0xb6   : > { %v456_v28 = vpop.permute.xlu0 %455  ;;  %v474_v29 = vpop.permute.xlu1 %473 }
  0xb7   : > { %v460_v30 = vsel %vm428_vm3, %v459_v27, %v456_v28  ;;  %v482_v46 = vsel %vm424_vm1, %v474_v29, %v4500_v2 }
  0xb8   : > { %v465_v32 = vrot.slane %v460_v30, 6  ;;  %741 = vrot.lane.b32.xlu1 %v4611_v9, %s4345_s14 }
  0xba   : > { %v477_v34 = vpop.permute.xlu0 %476  ;;  %v480_v35 = vpop.permute.xlu1 %479  ;;  %v470_v36 = vsel %vm469_vm5, %v468_v33, %v465_v32 }
  0xbb   : > { %472 = vst.msk [vmem:[#allocation3] sm:$0x7] %vm471_vm6, %v470_v36  ;;  %v483_v47 = vsel %vm426_vm2, %v482_v46, %v477_v34 }
  0xbc   : > { %761 = vrot.lane.b32.xlu1 %v4599_v7, %s4340_s25  ;;  %v484_v54 = vsel %vm428_vm3, %v483_v47, %v480_v35 }
  0xbe   : > { %v486_v37 = vpop.permute.xlu0 %485  ;;  %v489_v38 = vpop.permute.xlu1 %488 }
  0xbf   : > { %v497_v41 = vsel %vm424_vm1, %v486_v37, %v489_v38 }
  0xc0   : > { %767 = vrot.lane.b32.xlu1 %v4611_v9, %s4336_s20 }
  0xc2   : > { %v492_v39 = vpop.permute.xlu0 %491  ;;  %v495_v40 = vpop.permute.xlu1 %494 }
  0xc3   : > { %v498_v42 = vsel %vm426_vm2, %v497_v41, %v492_v39 }
  0xc4   : > { %776 = vrot.lane.b32.xlu1 %v4605_v8, %s4346_s16  ;;  %v499_v45 = vsel %vm428_vm3, %v498_v42, %v495_v40 }
  0xc5   : > { %v516_v48 = vrot.slane %v499_v45, 7 }
  0xc6   : > { %v501_v43 = vpop.permute.xlu0 %500  ;;  %v504_v44 = vpop.permute.xlu1 %503 }
  0xc7   : > { %v512_v49 = vsel %vm424_vm1, %v501_v43, %v504_v44  ;;  %v521_v58 = vsel %vm467_vm4, %v484_v54, %v516_v48 }
  0xc8   : > { %782 = vrot.lane.b32.xlu1 %v4611_v9, %s4339_s24 }
  0xca   : > { %v507_v50 = vpop.permute.xlu0 %506  ;;  %v510_v51 = vpop.permute.xlu1 %509 }
  0xcb   : > { %v513_v52 = vsel %vm426_vm2, %v512_v49, %v507_v50 }
  0xcc   : > { %v514_v53 = vsel %vm428_vm3, %v513_v52, %v510_v51  ;;  %791 = vrot.lane.b32.xlu1 %v4605_v8, %s4347_s17 }
  0xcd   : > { %v519_v55 = vrot.slane %v514_v53, 6 }
  0xce   : > { %v533_v56 = vpop.permute.xlu0 %532  ;;  %v530_v57 = vpop.permute.xlu1 %529 }
  0xcf   : > { %v522_v59 = vsel %vm469_vm5, %v521_v58, %v519_v55  ;;  %v538_v14 = vsel %vm424_vm1, %v530_v57, %v533_v56 }
  0xd0   : > { %524 = vrot.lane.b32.xlu0 %v522_v59, %s6572_s23  ;;  %797 = vrot.lane.b32.xlu1 %v4611_v9, %s4344_s13  ;;  %v539_v19 = vsel %vm426_vm2, %v538_v14, %v4506_v3  ;;  %s6573_s23 = smov 32  }
  0xd2   : > { %v536_v60 = vpop.permute.xlu1 %535  ;;  %v542_v61 = vpop.permute.xlu0 %541 }
  0xd3   : > { %v540_v21 = vsel %vm428_vm3, %v539_v19, %v536_v60 }
  0xd4   : > { %817 = vrot.lane.b32.xlu1 %v4599_v7, %s4339_s24 }
  0xd6   : > { %v545_v62 = vpop.permute.xlu1 %544  ;;  %v548_v63 = vpop.permute.xlu0 %547 }
  0xd7   : > { %v553_v0 = vsel %vm424_vm1, %v542_v61, %v545_v62 }
  0xd8   : > { %823 = vrot.lane.b32.xlu1 %v4593_v6, %s4342_s29  ;;  %v554_v5 = vsel %vm426_vm2, %v553_v0, %v548_v63 }
  0xda   : > { %v551_v2 = vpop.permute.xlu1 %550  ;;  %v557_v4 = vpop.permute.xlu0 %556 }
  0xdb   : > { %v555_v10 = vsel %vm428_vm3, %v554_v5, %v551_v2 }
  0xdc   : > { %832 = vrot.lane.b32.xlu1 %v4605_v8, %s4345_s14  ;;  %v572_v15 = vrot.slane %v555_v10, 7 }
  0xde   : > { %v560_v11 = vpop.permute.xlu1 %559  ;;  %v563_v12 = vpop.permute.xlu0 %562  ;;  %v577_v23 = vsel %vm467_vm4, %v540_v21, %v572_v15 }
  0xdf   : > { %v568_v13 = vsel %vm424_vm1, %v557_v4, %v560_v11 }
  0xe0   : > { %838 = vrot.lane.b32.xlu1 %v4611_v9, %s4338_s22  ;;  %v569_v16 = vsel %vm426_vm2, %v568_v13, %v563_v12 }
  0xe2   : > { %v566_v17 = vpop.permute.xlu1 %565  ;;  %v589_v18 = vpop.permute.xlu0 %588 }
  0xe3   : > { %v570_v20 = vsel %vm428_vm3, %v569_v16, %v566_v17 }
  0xe4   : > { %v575_v22 = vrot.slane %v570_v20, 6  ;;  %847 = vrot.lane.b32.xlu1 %v4605_v8, %s6577_s26 }
  0xe6   : > { %v586_v24 = vpop.permute.xlu1 %585  ;;  %v578_v25 = vsel %vm469_vm5, %v577_v23, %v575_v22  ;;  %v598_v26 = vpop.permute.xlu0 %597 }
  0xe7   : > { %580 = vrot.lane.b32.xlu0 %v578_v25, %s6573_s23  ;;  %v594_v38 = vsel %vm424_vm1, %v586_v24, %v589_v18  ;;  %s6574_s23 = smov 48  }
  0xe8   : > { %853 = vrot.lane.b32.xlu1 %v4611_v9, %s4343_s11 }
  0xea   : > { %v592_v3 = vpop.permute.xlu1 %591  ;;  %v604_v27 = vpop.permute.xlu0 %603 }
  0xeb   : > { %v595_v39 = vsel %vm426_vm2, %v594_v38, %v592_v3 }
  0xec   : > { %v596_v44 = vsel %vm428_vm3, %v595_v39, %v4498_v1 }
  0xee   : > { %v601_v28 = vpop.permute.xlu1 %600  ;;  %v613_v29 = vpop.permute.xlu0 %612 }
  0xef   : > { %v609_v30 = vsel %vm424_vm1, %v598_v26, %v601_v28 }
  0xf0   : > { %v610_v33 = vsel %vm426_vm2, %v609_v30, %v604_v27 }
  0xf2   : > { %v607_v31 = vpop.permute.xlu1 %606  ;;  %v619_v32 = vpop.permute.xlu0 %618 }
  0xf3   : > { %v611_v34 = vsel %vm428_vm3, %v610_v33, %v607_v31 }
  0xf4   : > { %v628_v40 = vrot.slane %v611_v34, 7 }
  0xf6   : > { %v616_v35 = vpop.permute.xlu1 %615  ;;  %v651_v37 = vpop.permute.xlu0 %650  ;;  %v633_v46 = vsel %vm467_vm4, %v596_v44, %v628_v40 }
  0xf7   : > { %v624_v36 = vsel %vm424_vm1, %v613_v29, %v616_v35 }
  0xf8   : > { %v625_v41 = vsel %vm426_vm2, %v624_v36, %v619_v32 }
  0xfa   : > { %v622_v42 = vpop.permute.xlu1 %621  ;;  %v662_v47 = vpop.permute.xlu0 %661 }
  0xfb   : > { %v626_v43 = vsel %vm428_vm3, %v625_v41, %v622_v42 }
  0xfc   : > { %v631_v45 = vrot.slane %v626_v43, 6 }
  0xfe   : > { %v647_v48 = vpop.permute.xlu1 %646  ;;  %v634_v49 = vsel %vm469_vm5, %v633_v46, %v631_v45  ;;  %v668_v51 = vpop.permute.xlu0 %667 }
  0xff   : > { %636 = vrot.lane.b32.xlu0 %v634_v49, %s6574_s23  ;;  %v657_v60 = vsel %vm424_vm1, %v4599_v7, %v647_v48  ;;  %s6575_s23 = smov 64  }
 0x100   : > { %v658_v0 = vsel %vm426_vm2, %v657_v60, %v651_v37 }
 0x102   : > { %v655_v50 = vpop.permute.xlu1 %654  ;;  %v677_v53 = vpop.permute.xlu0 %676 }
 0x103   : > { %v659_v4 = vsel %vm428_vm3, %v658_v0, %v655_v50 }
 0x106   : > { %v665_v52 = vpop.permute.xlu1 %664  ;;  %v683_v59 = vpop.permute.xlu0 %682 }
 0x107   : > { %v673_v54 = vsel %vm424_vm1, %v662_v47, %v665_v52 }
 0x108   : > { %v674_v56 = vsel %vm426_vm2, %v673_v54, %v668_v51 }
 0x10a   : > { %v671_v55 = vpop.permute.xlu1 %670  ;;  %v709_v12 = vpop.permute.xlu0 %708 }
 0x10b   : > { %v675_v1 = vsel %vm428_vm3, %v674_v56, %v671_v55 }
 0x10c   : > { %v692_v61 = vrot.slane %v675_v1, 7 }
 0x10e   : > { %v680_v57 = vpop.permute.xlu1 %679  ;;  %v697_v10 = vsel %vm467_vm4, %v659_v4, %v692_v61  ;;  %v718_v13 = vpop.permute.xlu0 %717 }
 0x10f   : > { %v688_v58 = vsel %vm424_vm1, %v677_v53, %v680_v57 }
 0x110   : > { %v689_v62 = vsel %vm426_vm2, %v688_v58, %v683_v59 }
 0x112   : > { %v686_v63 = vpop.permute.xlu1 %685  ;;  %v724_v14 = vpop.permute.xlu0 %723 }
 0x113   : > { %v690_v2 = vsel %vm428_vm3, %v689_v62, %v686_v63  ;;  %v404_v63 = vld [vmem:[%s6562_s0 + $0x8] sm:$0xff] }
 0x114   : > { %v695_v5 = vrot.slane %v690_v2, 6  ;;  %407 = vst.msk [vmem:[#allocation2 + $0x8] sm:$0xff] %vm405_vm0, %v404_v63 }
 0x116   : > { %v698_v11 = vsel %vm469_vm5, %v697_v10, %v695_v5  ;;  %v706_v18 = vpop.permute.xlu1 %705 }
 0x117   : > { %700 = vrot.lane.b32.xlu0 %v698_v11, %s6575_s23  ;;  %v714_v26 = vsel %vm424_vm1, %v706_v18, %v4605_v8  ;;  %s6576_s23 = smov 80  }
 0x118   : > { %v715_v28 = vsel %vm426_vm2, %v714_v26, %v709_v12 }
 0x11a   : > { %v712_v19 = vpop.permute.xlu1 %711 }
 0x11b   : > { %732 = vrot.lane.b32.xlu0 %v4599_v7, %s4347_s17  ;;  %v716_v33 = vsel %vm428_vm3, %v715_v28, %v712_v19  ;;  %v4787_v0 = vld [vmem:[#allocation2 + $0x9] sm:$0x1]  ;;  %v4793_v2 = vld [vmem:[#allocation2 + $0xb] sm:$0x1]  ;;  %v4929_v63 = vld [vmem:[#allocation2 + $0xc] sm:$0x1] }
 0x11c   : > { %878 = vrot.lane.b32.xlu1 %v4787_v0, %s4336_s20 }
 0x11e   : > { %v721_v20 = vpop.permute.xlu1 %720 }
 0x11f   : > { %738 = vrot.lane.b32.xlu0 %v4593_v6, %s4344_s13  ;;  %v729_v22 = vsel %vm424_vm1, %v718_v13, %v721_v20 }
 0x120   : > { %v730_v25 = vsel %vm426_vm2, %v729_v22, %v724_v14  ;;  %886 = vrot.lane.b32.xlu1 %v4793_v2, %s4335_s18 }
 0x122   : > { %v727_v21 = vpop.permute.xlu1 %726 }
 0x123   : > { %v731_v27 = vsel %vm428_vm3, %v730_v25, %v727_v21 }
 0x124   : > { %v748_v30 = vrot.slane %v731_v27, 7  ;;  %896 = vrot.lane.b32.xlu1 %v4787_v0, %s4339_s24 }
 0x126   : > { %v736_v24 = vpop.permute.xlu1 %735  ;;  %v753_v37 = vsel %vm467_vm4, %v716_v33, %v748_v30 }
 0x128   : > { %902 = vrot.lane.b32.xlu1 %v4793_v2, %s4342_s29 }
 0x12a   : > { %v742_v29 = vpop.permute.xlu1 %741 }
 0x12c   : > { %911 = vrot.lane.b32.xlu1 %v4787_v0, %s4344_s13 }
 0x12e   : > { %v762_v39 = vpop.permute.xlu1 %761 }
 0x130   : > { %917 = vrot.lane.b32.xlu1 %v4793_v2, %s4346_s16 }
 0x132   : > { %v768_v40 = vpop.permute.xlu1 %767 }
 0x136   : > { %v777_v42 = vpop.permute.xlu1 %776 }
 0x13a   : > { %v783_v44 = vpop.permute.xlu1 %782 }
 0x13e   : > { %v792_v48 = vpop.permute.xlu1 %791 }
 0x142   : > { %v525_v15 = vpop.permute.xlu0 %524  ;;  %v798_v53 = vpop.permute.xlu1 %797 }
 0x143   : > { %528 = vst.msk [vmem:[#allocation3] sm:$0x7] %vm527_vm7, %v525_v15 }
 0x159   : > { %v581_v16 = vpop.permute.xlu0 %580 }
 0x15a   : > { %584 = vst.msk [vmem:[#allocation3] sm:$0x7] %vm583_vm8, %v581_v16 }
 0x171   : > { %v637_v17 = vpop.permute.xlu0 %636 }
 0x172   : > { %640 = vst.msk [vmem:[#allocation3] sm:$0x7] %vm639_vm9, %v637_v17 }
 0x189   : > { %v701_v23 = vpop.permute.xlu0 %700 }
 0x18a   : > { %704 = vst.msk [vmem:[#allocation3] sm:$0x7] %vm703_vm10, %v701_v23 }
 0x18d   : > { %v733_v3 = vpop.permute.xlu0 %732 }
 0x18e   : > { %v744_v31 = vsel %vm424_vm1, %v733_v3, %v736_v24 }
 0x191   : > { %v739_v32 = vpop.permute.xlu0 %738 }
 0x192   : > { %v745_v34 = vsel %vm426_vm2, %v744_v31, %v739_v32  ;;  %v4883_v31 = vld [vmem:[#allocation2 + $0xe] sm:$0x1] }
 0x193   : > { %v746_v35 = vsel %vm428_vm3, %v745_v34, %v742_v29  ;;  %v4893_v34 = vld [vmem:[#allocation2 + $0xf] sm:$0x1] }
 0x194   : > { %v751_v36 = vrot.slane %v746_v35, 6 }
 0x196   : > { %v754_v38 = vsel %vm469_vm5, %v753_v37, %v751_v36 }
 0x197   : > { %756 = vrot.lane.b32.xlu0 %v754_v38, %s6576_s23  ;;  %s6594_s23 = smov 88  }
 0x19b   : > { %764 = vrot.lane.b32.xlu0 %v4605_v8, %s4342_s29 }
 0x19f   : > { %773 = vrot.lane.b32.xlu0 %v4599_v7, %s4345_s14 }
 0x1a3   : > { %779 = vrot.lane.b32.xlu0 %v4593_v6, %s4338_s22 }
 0x1a7   : > { %788 = vrot.lane.b32.xlu0 %v4599_v7, %s6577_s26  ;;  %s6595_s26 = smov 16  }
 0x1ab   : > { %794 = vrot.lane.b32.xlu0 %v4593_v6, %s4343_s11 }
 0x209   : > { %v757_v41 = vpop.permute.xlu0 %756 }
 0x20a   : > { %760 = vst.msk [vmem:[#allocation3] sm:$0x7] %vm759_vm11, %v757_v41 }
 0x20d   : > { %v765_v43 = vpop.permute.xlu0 %764 }
 0x20e   : > { %v770_v51 = vsel %vm424_vm1, %v762_v39, %v765_v43 }
 0x20f   : > { %v771_v54 = vsel %vm426_vm2, %v770_v51, %v4593_v6 }
 0x210   : > { %v772_v59 = vsel %vm428_vm3, %v771_v54, %v768_v40 }
 0x211   : > { %v774_v45 = vpop.permute.xlu0 %773 }
 0x212   : > { %v785_v47 = vsel %vm424_vm1, %v774_v45, %v777_v42 }
 0x215   : > { %v780_v46 = vpop.permute.xlu0 %779 }
 0x216   : > { %v786_v49 = vsel %vm426_vm2, %v785_v47, %v780_v46 }
 0x217   : > { %v787_v52 = vsel %vm428_vm3, %v786_v49, %v783_v44 }
 0x218   : > { %v804_v55 = vrot.slane %v787_v52, 7 }
 0x219   : > { %v789_v50 = vpop.permute.xlu0 %788 }
 0x21a   : > { %v800_v56 = vsel %vm424_vm1, %v789_v50, %v792_v48  ;;  %v809_v61 = vsel %vm467_vm4, %v772_v59, %v804_v55 }
 0x21d   : > { %v795_v1 = vpop.permute.xlu0 %794 }
 0x21e   : > { %v801_v57 = vsel %vm426_vm2, %v800_v56, %v795_v1 }
 0x21f   : > { %v802_v58 = vsel %vm428_vm3, %v801_v57, %v798_v53 }
 0x220   : > { %v807_v60 = vrot.slane %v802_v58, 6 }
 0x222   : > { %v810_v62 = vsel %vm469_vm5, %v809_v61, %v807_v60 }
 0x223   : > { %812 = vrot.lane.b32.xlu0 %v810_v62, %s4343_s11 }
 0x227   : > { %820 = vrot.lane.b32.xlu0 %v4605_v8, %s4340_s25  ;;  %v4809_v8 = vld [vmem:[#allocation2 + $0xa] sm:$0x1] }
 0x228   : > { %935 = vrot.lane.b32.xlu1 %v4809_v8, %s4336_s20 }
 0x22b   : > { %829 = vrot.lane.b32.xlu0 %v4599_v7, %s4344_s13 }
 0x22f   : > { %835 = vrot.lane.b32.xlu0 %v4593_v6, %s4346_s16 }
 0x233   : > { %844 = vrot.lane.b32.xlu0 %v4599_v7, %s4349_s28  ;;  %v4813_v7 = vld [vmem:[#allocation2 + $0x8] sm:$0x1] }
 0x234   : > { %944 = vrot.lane.b32.xlu1 %v4813_v7, %s4346_s16 }
 0x237   : > { %850 = vrot.lane.b32.xlu0 %v4593_v6, %s4347_s17  ;;  %v818_v6 = vpop.permute.xlu1 %817 }
 0x238   : > { %950 = vrot.lane.b32.xlu1 %v4809_v8, %s4339_s24 }
 0x23b   : > { %v824_v4 = vpop.permute.xlu1 %823 }
 0x23c   : > { %959 = vrot.lane.b32.xlu1 %v4813_v7, %s4347_s17 }
 0x23f   : > { %v833_v10 = vpop.permute.xlu1 %832 }
 0x240   : > { %965 = vrot.lane.b32.xlu1 %v4809_v8, %s4344_s13 }
 0x243   : > { %v839_v12 = vpop.permute.xlu1 %838 }
 0x247   : > { %v848_v16 = vpop.permute.xlu1 %847 }
 0x24b   : > { %v854_v21 = vpop.permute.xlu1 %853 }
 0x24f   : > { %v879_v32 = vpop.permute.xlu1 %878 }
 0x250   : > { %v889_v46 = vsel %vm424_vm1, %v4813_v7, %v879_v32 }
 0x253   : > { %v887_v33 = vpop.permute.xlu1 %886 }
 0x257   : > { %v897_v35 = vpop.permute.xlu1 %896 }
 0x25b   : > { %v903_v36 = vpop.permute.xlu1 %902 }
 0x25f   : > { %v912_v39 = vpop.permute.xlu1 %911 }
 0x263   : > { %v918_v41 = vpop.permute.xlu1 %917 }
 0x295   : > { %v813_v5 = vpop.permute.xlu0 %812 }
 0x296   : > { %816 = vst.msk [vmem:[#allocation3] sm:$0x7] %vm815_vm12, %v813_v5 }
 0x299   : > { %v821_v11 = vpop.permute.xlu0 %820 }
 0x29a   : > { %v826_v19 = vsel %vm424_vm1, %v818_v6, %v821_v11  ;;  %v936_v48 = vpop.permute.xlu1 %935 }
 0x29b   : > { %v827_v22 = vsel %vm426_vm2, %v826_v19, %v824_v4 }
 0x29c   : > { %v828_v27 = vsel %vm428_vm3, %v827_v22, %v4611_v9  ;;  %v4875_v9 = vld [vmem:[#allocation2 + $0xd] sm:$0x1] }
 0x29d   : > { %v830_v13 = vpop.permute.xlu0 %829 }
 0x29e   : > { %v841_v15 = vsel %vm424_vm1, %v830_v13, %v833_v10 }
 0x2a1   : > { %v836_v14 = vpop.permute.xlu0 %835 }
 0x2a2   : > { %v842_v17 = vsel %vm426_vm2, %v841_v15, %v836_v14 }
 0x2a3   : > { %v843_v20 = vsel %vm428_vm3, %v842_v17, %v839_v12 }
 0x2a4   : > { %v860_v23 = vrot.slane %v843_v20, 7 }
 0x2a5   : > { %v845_v18 = vpop.permute.xlu0 %844 }
 0x2a6   : > { %v856_v24 = vsel %vm424_vm1, %v845_v18, %v848_v16  ;;  %v865_v29 = vsel %vm467_vm4, %v828_v27, %v860_v23  ;;  %v945_v1 = vpop.permute.xlu1 %944 }
 0x2a9   : > { %v851_v25 = vpop.permute.xlu0 %850 }
 0x2aa   : > { %v857_v26 = vsel %vm426_vm2, %v856_v24, %v851_v25  ;;  %v951_v61 = vpop.permute.xlu1 %950 }
 0x2ab   : > { %v858_v3 = vsel %vm428_vm3, %v857_v26, %v854_v21 }
 0x2ac   : > { %v863_v28 = vrot.slane %v858_v3, 6 }
 0x2ae   : > { %v866_v30 = vsel %vm469_vm5, %v865_v29, %v863_v28  ;;  %v960_v6 = vpop.permute.xlu1 %959 }
 0x2af   : > { %868 = vrot.lane.b32.xlu0 %v866_v30, %s4338_s22 }
 0x2b2   : > { %v966_v14 = vpop.permute.xlu1 %965 }
 0x2b3   : > { %882 = vrot.lane.b32.xlu0 %v4809_v8, %s4337_s21 }
 0x2b7   : > { %893 = vrot.lane.b32.xlu0 %v4813_v7, %s4338_s22 }
 0x2bb   : > { %899 = vrot.lane.b32.xlu0 %v4809_v8, %s4340_s25 }
 0x2bf   : > { %908 = vrot.lane.b32.xlu0 %v4813_v7, %s4343_s11 }
 0x2c3   : > { %914 = vrot.lane.b32.xlu0 %v4809_v8, %s4345_s14 }
 0x2c7   : > { %932 = vrot.lane.b32.xlu0 %v4813_v7, %s4342_s29 }
 0x2cb   : > { %938 = vrot.lane.b32.xlu0 %v4793_v2, %s4337_s21 }
 0x2cf   : > { %947 = vrot.lane.b32.xlu0 %v4787_v0, %s4338_s22 }
 0x2d3   : > { %953 = vrot.lane.b32.xlu0 %v4793_v2, %s4340_s25 }
 0x2d7   : > { %962 = vrot.lane.b32.xlu0 %v4787_v0, %s4343_s11 }
 0x2db   : > { %968 = vrot.lane.b32.xlu0 %v4793_v2, %s4345_s14 }
 0x2df   : > { %987 = vrot.lane.b32.xlu0 %v4813_v7, %s4340_s25 }
 0x2e3   : > { %993 = vrot.lane.b32.xlu0 %v4793_v2, %s4336_s20 }
 0x2e7   : > { %1002 = vrot.lane.b32.xlu0 %v4787_v0, %s4346_s16 }
 0x2eb   : > { %1008 = vrot.lane.b32.xlu0 %v4793_v2, %s4339_s24 }
 0x2ef   : > { %1017 = vrot.lane.b32.xlu0 %v4787_v0, %s4347_s17 }
 0x2f3   : > { %1057 = vrot.lane.b32.xlu0 %v4787_v0, %s4345_s14 }
 0x2f7   : > { %1060 = vrot.lane.b32.xlu0 %v4809_v8, %s4346_s16 }
 0x2fb   : > { %1072 = vrot.lane.b32.xlu0 %v4787_v0, %s6594_s23 }
 0x2ff   : > { %1120 = vrot.lane.b32.xlu0 %v4875_v9, %s4339_s24 }
 0x303   : > { %1042 = vrot.lane.b32.xlu0 %v4813_v7, %s4339_s24 }
 0x307   : > { %1063 = vrot.lane.b32.xlu0 %v4793_v2, %s4338_s22 }
 0x30b   : > { %1123 = vrot.lane.b32.xlu0 %v4883_v31, %s4340_s25 }
 0x30f   : > { %1135 = vrot.lane.b32.xlu0 %v4875_v9, %s4344_s13 }
 0x313   : > { %1175 = vrot.lane.b32.xlu0 %v4875_v9, %s4338_s22 }
 0x317   : > { %1078 = vrot.lane.b32.xlu0 %v4793_v2, %s4343_s11 }
 0x31b   : > { %1126 = vrot.lane.b32.xlu0 %v4893_v34, %s4342_s29 }
 0x31f   : > { %1178 = vrot.lane.b32.xlu0 %v4883_v31, %s4339_s24 }
 0x321   : > { %v869_v37 = vpop.permute.xlu0 %868 }
 0x322   : > { %872 = vst.msk [vmem:[#allocation3] sm:$0x7] %vm871_vm13, %v869_v37 }
 0x323   : > { %1190 = vrot.lane.b32.xlu0 %v4875_v9, %s4343_s11 }
 0x325   : > { %v883_v38 = vpop.permute.xlu0 %882 }
 0x326   : > { %v890_v49 = vsel %vm426_vm2, %v889_v46, %v883_v38 }
 0x327   : > { %1230 = vrot.lane.b32.xlu0 %v4875_v9, %s4346_s16  ;;  %v891_v55 = vsel %vm428_vm3, %v890_v49, %v887_v33 }
 0x329   : > { %v894_v40 = vpop.permute.xlu0 %893 }
 0x32a   : > { %v905_v43 = vsel %vm424_vm1, %v894_v40, %v897_v35 }
 0x32b   : > { %1141 = vrot.lane.b32.xlu0 %v4893_v34, %s4346_s16 }
 0x32d   : > { %v900_v42 = vpop.permute.xlu0 %899 }
 0x32e   : > { %v906_v44 = vsel %vm426_vm2, %v905_v43, %v900_v42 }
 0x32f   : > { %1181 = vrot.lane.b32.xlu0 %v4893_v34, %s4340_s25  ;;  %v907_v47 = vsel %vm428_vm3, %v906_v44, %v903_v36 }
 0x330   : > { %v924_v50 = vrot.slane %v907_v47, 7 }
 0x331   : > { %v909_v45 = vpop.permute.xlu0 %908 }
 0x332   : > { %v920_v51 = vsel %vm424_vm1, %v909_v45, %v912_v39  ;;  %v929_v57 = vsel %vm467_vm4, %v891_v55, %v924_v50 }
 0x333   : > { %1233 = vrot.lane.b32.xlu0 %v4883_v31, %s4338_s22 }
 0x335   : > { %v915_v52 = vpop.permute.xlu0 %914 }
 0x336   : > { %v921_v53 = vsel %vm426_vm2, %v920_v51, %v915_v52 }
 0x337   : > { %v922_v54 = vsel %vm428_vm3, %v921_v53, %v918_v41  ;;  %1245 = vrot.lane.b32.xlu0 %v4875_v9, %s4347_s17 }
 0x338   : > { %v927_v56 = vrot.slane %v922_v54, 6 }
 0x339   : > { %v933_v58 = vpop.permute.xlu0 %932 }
 0x33a   : > { %v930_v59 = vsel %vm469_vm5, %v929_v57, %v927_v56  ;;  %v941_v15 = vsel %vm424_vm1, %v933_v58, %v4787_v0 }
 0x33b   : > { %1285 = vrot.lane.b32.xlu0 %v4875_v9, %s4345_s14  ;;  %931 = vst.msk [vmem:[#allocation3 + $0x4] sm:$0x7] %vm471_vm6, %v930_v59  ;;  %v942_v19 = vsel %vm426_vm2, %v941_v15, %v936_v48 }
 0x33d   : > { %v939_v60 = vpop.permute.xlu0 %938 }
 0x33e   : > { %v943_v21 = vsel %vm428_vm3, %v942_v19, %v939_v60 }
 0x33f   : > { %1163 = vrot.lane.b32.xlu0 %v4883_v31, %s4336_s20 }
 0x341   : > { %v948_v62 = vpop.permute.xlu0 %947 }
 0x342   : > { %v956_v4 = vsel %vm424_vm1, %v945_v1, %v948_v62 }
 0x343   : > { %1215 = vrot.lane.b32.xlu0 %v4929_v63, %s4340_s25  ;;  %v957_v10 = vsel %vm426_vm2, %v956_v4, %v951_v61 }
 0x345   : > { %v954_v5 = vpop.permute.xlu0 %953 }
 0x346   : > { %v958_v11 = vsel %vm428_vm3, %v957_v10, %v954_v5 }
 0x347   : > { %1236 = vrot.lane.b32.xlu0 %v4893_v34, %s4339_s24  ;;  %v975_v16 = vrot.slane %v958_v11, 7 }
 0x349   : > { %v963_v12 = vpop.permute.xlu0 %962  ;;  %v980_v23 = vsel %vm467_vm4, %v943_v21, %v975_v16 }
 0x34a   : > { %v971_v13 = vsel %vm424_vm1, %v960_v6, %v963_v12 }
 0x34b   : > { %1288 = vrot.lane.b32.xlu0 %v4883_v31, %s4346_s16  ;;  %v972_v17 = vsel %vm426_vm2, %v971_v13, %v966_v14 }
 0x34d   : > { %v969_v18 = vpop.permute.xlu0 %968 }
 0x34e   : > { %v973_v20 = vsel %vm428_vm3, %v972_v17, %v969_v18 }
 0x34f   : > { %v978_v22 = vrot.slane %v973_v20, 6  ;;  %1300 = vrot.lane.b32.xlu0 %v4875_v9, %s6594_s23 }
 0x351   : > { %v981_v24 = vsel %vm469_vm5, %v980_v23, %v978_v22 }
 0x352   : > { %983 = vrot.lane.b32.xlu1 %v981_v24, %s6595_s26 }
 0x353   : > { %1251 = vrot.lane.b32.xlu0 %v4893_v34, %s4344_s13 }
 0x356   : > { %990 = vrot.lane.b32.xlu1 %v4787_v0, %s4342_s29 }
 0x357   : > { %1273 = vrot.lane.b32.xlu0 %v4875_v9, %s4340_s25 }
 0x35a   : > { %999 = vrot.lane.b32.xlu1 %v4813_v7, %s4345_s14 }
 0x35b   : > { %1303 = vrot.lane.b32.xlu0 %v4883_v31, %s4347_s17 }
 0x35e   : > { %1005 = vrot.lane.b32.xlu1 %v4809_v8, %s4338_s22 }
 0x35f   : > { %1276 = vrot.lane.b32.xlu0 %v4883_v31, %s4342_s29 }
 0x362   : > { %1014 = vrot.lane.b32.xlu1 %v4813_v7, %s6594_s23 }
 0x366   : > { %1054 = vrot.lane.b32.xlu1 %v4813_v7, %s4344_s13 }
 0x36a   : > { %1020 = vrot.lane.b32.xlu1 %v4809_v8, %s4343_s11 }
 0x36e   : > { %1069 = vrot.lane.b32.xlu1 %v4813_v7, %s4349_s28  ;;  %v988_v7 = vpop.permute.xlu0 %987 }
 0x372   : > { %1117 = vrot.lane.b32.xlu1 %v4929_v63, %s4338_s22  ;;  %v994_v25 = vpop.permute.xlu0 %993 }
 0x376   : > { %1023 = vrot.lane.b32.xlu1 %v4793_v2, %s4344_s13 }
 0x37a   : > { %1045 = vrot.lane.b32.xlu1 %v4787_v0, %s4340_s25  ;;  %v1003_v0 = vpop.permute.xlu0 %1002 }
 0x37e   : > { %1075 = vrot.lane.b32.xlu1 %v4809_v8, %s4347_s17  ;;  %v1009_v26 = vpop.permute.xlu0 %1008 }
 0x382   : > { %1132 = vrot.lane.b32.xlu1 %v4929_v63, %s4343_s11  ;;  %v1018_v3 = vpop.permute.xlu0 %1017 }
 0x386   : > { %1172 = vrot.lane.b32.xlu1 %v4929_v63, %s4346_s16  ;;  %v1058_v27 = vpop.permute.xlu0 %1057 }
 0x38a   : > { %1048 = vrot.lane.b32.xlu1 %v4809_v8, %s4342_s29  ;;  %v1061_v28 = vpop.permute.xlu0 %1060 }
 0x38e   : > { %1102 = vrot.lane.b32.xlu1 %v4875_v9, %s4336_s20  ;;  %v1073_v29 = vpop.permute.xlu0 %1072 }
 0x392   : > { %1138 = vrot.lane.b32.xlu1 %v4883_v31, %s4345_s14  ;;  %v5012_v30 = vpop.permute.xlu0 %1120 }
 0x396   : > { %1187 = vrot.lane.b32.xlu1 %v4929_v63, %s4347_s17  ;;  %v1043_v32 = vpop.permute.xlu0 %1042 }
 0x39a   : > { %1227 = vrot.lane.b32.xlu1 %v4929_v63, %s4345_s14  ;;  %v1064_v35 = vpop.permute.xlu0 %1063 }
 0x39e   : > { %1106 = vrot.lane.b32.xlu1 %v4883_v31, %s4337_s21  ;;  %v5023_v38 = vpop.permute.xlu0 %1123 }
 0x3a2   : > { %1160 = vrot.lane.b32.xlu1 %v4929_v63, %s4342_s29  ;;  %v5029_v40 = vpop.permute.xlu0 %1135 }
 0x3a6   : > { %1193 = vrot.lane.b32.xlu1 %v4883_v31, %s4344_s13  ;;  %v5033_v43 = vpop.permute.xlu0 %1175 }
 0x3aa   : > { %1242 = vrot.lane.b32.xlu1 %v4929_v63, %s6594_s23  ;;  %v1079_v45 = vpop.permute.xlu0 %1078 }
 0x3ae   : > { %1282 = vrot.lane.b32.xlu1 %v4929_v63, %s4344_s13  ;;  %v1127_v51 = vpop.permute.xlu0 %1126 }
 0x3b2   : > { %1110 = vrot.lane.b32.xlu1 %v4893_v34, %s4335_s18  ;;  %v5045_v59 = vpop.permute.xlu0 %1178  ;;  %s6596_s18 = smov 32  }
 0x3b6   : > { %1196 = vrot.lane.b32.xlu1 %v4893_v34, %s4345_s14 }
 0x3ba   : > { %1218 = vrot.lane.b32.xlu1 %v4875_v9, %s4342_s29 }
 0x3be   : > { %1248 = vrot.lane.b32.xlu1 %v4883_v31, %s4343_s11 }
 0x3c2   : > { %1297 = vrot.lane.b32.xlu1 %v4929_v63, %s4349_s28 }
 0x3c4   : > { %v984_v33 = vpop.permute.xlu1 %983 }
 0x3c5   : > { %986 = vst.msk [vmem:[#allocation3 + $0x4] sm:$0x7] %vm527_vm7, %v984_v33 }
 0x3c6   : > { %1166 = vrot.lane.b32.xlu1 %v4893_v34, %s4337_s21  ;;  %s6598_s21 = smov 64  }
 0x3c8   : > { %v991_v36 = vpop.permute.xlu1 %990 }
 0x3c9   : > { %v996_v49 = vsel %vm424_vm1, %v988_v7, %v991_v36 }
 0x3ca   : > { %1270 = vrot.lane.b32.xlu1 %v4929_v63, %s4339_s24  ;;  %v997_v53 = vsel %vm426_vm2, %v996_v49, %v4809_v8  ;;  %v1191_v8 = vpop.permute.xlu0 %1190  ;;  %s6599_s24 = smov 80  }
 0x3cb   : > { %v998_v58 = vsel %vm428_vm3, %v997_v53, %v994_v25 }
 0x3cc   : > { %v1000_v37 = vpop.permute.xlu1 %999 }
 0x3cd   : > { %v1011_v46 = vsel %vm424_vm1, %v1000_v37, %v1003_v0 }
 0x3ce   : > { %1291 = vrot.lane.b32.xlu1 %v4893_v34, %s4338_s22  ;;  %v5051_v11 = vpop.permute.xlu0 %1230 }
 0x3d0   : > { %v1006_v39 = vpop.permute.xlu1 %1005 }
 0x3d1   : > { %v1012_v48 = vsel %vm426_vm2, %v1011_v46, %v1006_v39 }
 0x3d2   : > { %1221 = vrot.lane.b32.xlu1 %v4893_v34, %s4336_s20  ;;  %v1013_v50 = vsel %vm428_vm3, %v1012_v48, %v1009_v26  ;;  %v1142_v19 = vpop.permute.xlu0 %1141  ;;  %s6597_s20 = smov 48  }
 0x3d3   : > { %v1030_v54 = vrot.slane %v1013_v50, 7 }
 0x3d4   : > { %v1015_v41 = vpop.permute.xlu1 %1014 }
 0x3d5   : > { %v1026_v55 = vsel %vm424_vm1, %v1015_v41, %v1018_v3  ;;  %v1035_v61 = vsel %vm467_vm4, %v998_v58, %v1030_v54 }
 0x3d6   : > { %1306 = vrot.lane.b32.xlu1 %v4893_v34, %s4343_s11  ;;  %v1182_v26 = vpop.permute.xlu0 %1181 }
 0x3d8   : > { %v1055_v42 = vpop.permute.xlu1 %1054 }
 0x3d9   : > { %v1066_v5 = vsel %vm424_vm1, %v1055_v42, %v1058_v27 }
 0x3da   : > { %v1067_v12 = vsel %vm426_vm2, %v1066_v5, %v1061_v28  ;;  %v1234_v27 = vpop.permute.xlu0 %1233 }
 0x3db   : > { %v1068_v16 = vsel %vm428_vm3, %v1067_v12, %v1064_v35 }
 0x3dc   : > { %v1021_v44 = vpop.permute.xlu1 %1020  ;;  %v1085_v21 = vrot.slane %v1068_v16, 7 }
 0x3dd   : > { %v1027_v56 = vsel %vm426_vm2, %v1026_v55, %v1021_v44 }
 0x3e0   : > { %v1070_v47 = vpop.permute.xlu1 %1069 }
 0x3e1   : > { %v1081_v13 = vsel %vm424_vm1, %v1070_v47, %v1073_v29 }
 0x3e4   : > { %v1118_v52 = vpop.permute.xlu1 %1117 }
 0x3e8   : > { %v1024_v1 = vpop.permute.xlu1 %1023 }
 0x3e9   : > { %v1028_v57 = vsel %vm428_vm3, %v1027_v56, %v1024_v1 }
 0x3ea   : > { %v1033_v60 = vrot.slane %v1028_v57, 6 }
 0x3ec   : > { %v1046_v62 = vpop.permute.xlu1 %1045  ;;  %v1036_v6 = vsel %vm469_vm5, %v1035_v61, %v1033_v60 }
 0x3ed   : > { %1038 = vrot.lane.b32.xlu0 %v1036_v6, %s6596_s18  ;;  %v1051_v18 = vsel %vm424_vm1, %v1043_v32, %v1046_v62  ;;  %v1246_v32 = vpop.permute.xlu0 %1245 }
 0x3f0   : > { %v1076_v4 = vpop.permute.xlu1 %1075 }
 0x3f1   : > { %v1082_v14 = vsel %vm426_vm2, %v1081_v13, %v1076_v4  ;;  %v1286_v35 = vpop.permute.xlu0 %1285 }
 0x3f2   : > { %v1083_v17 = vsel %vm428_vm3, %v1082_v14, %v1079_v45 }
 0x3f3   : > { %v1088_v23 = vrot.slane %v1083_v17, 6 }
 0x3f4   : > { %v1133_v10 = vpop.permute.xlu1 %1132 }
 0x3f5   : > { %v1164_v39 = vpop.permute.xlu0 %1163  ;;  %v1144_v44 = vsel %vm424_vm1, %v1133_v10, %v5029_v40 }
 0x3f8   : > { %v1173_v15 = vpop.permute.xlu1 %1172 }
 0x3f9   : > { %v1216_v46 = vpop.permute.xlu0 %1215 }
 0x3fc   : > { %v1049_v20 = vpop.permute.xlu1 %1048 }
 0x3fd   : > { %v1052_v22 = vsel %vm426_vm2, %v1051_v18, %v1049_v20  ;;  %v1237_v55 = vpop.permute.xlu0 %1236 }
 0x3fe   : > { %v1053_v24 = vsel %vm428_vm3, %v1052_v22, %v4793_v2  ;;  %v1129_v2 = vsel %vm424_vm1, %v1118_v52, %v5012_v30 }
 0x3ff   : > { %v1090_v7 = vsel %vm467_vm4, %v1053_v24, %v1085_v21  ;;  %v1130_v42 = vsel %vm426_vm2, %v1129_v2, %v5023_v38 }
 0x400   : > { %v1103_v25 = vpop.permute.xlu1 %1102  ;;  %v1091_v0 = vsel %vm469_vm5, %v1090_v7, %v1088_v23  ;;  %v1131_v48 = vsel %vm428_vm3, %v1130_v42, %v1127_v51 }
 0x401   : > { %1093 = vrot.lane.b32.xlu1 %v1091_v0, %s6597_s20  ;;  %v1113_v50 = vsel %vm424_vm1, %v4929_v63, %v1103_v25  ;;  %v1148_v53 = vrot.slane %v1131_v48, 7  ;;  %v1289_v1 = vpop.permute.xlu0 %1288  ;;  %v1184_v63 = vsel %vm424_vm1, %v1173_v15, %v5033_v43 }
 0x402   : > { %v1185_v61 = vsel %vm426_vm2, %v1184_v63, %v5045_v59 }
 0x403   : > { %v1186_v5 = vsel %vm428_vm3, %v1185_v61, %v1182_v26 }
 0x404   : > { %v1139_v3 = vpop.permute.xlu1 %1138  ;;  %v1203_v14 = vrot.slane %v1186_v5, 7 }
 0x405   : > { %v1145_v45 = vsel %vm426_vm2, %v1144_v44, %v1139_v3  ;;  %v1301_v58 = vpop.permute.xlu0 %1300 }
 0x406   : > { %v1146_v49 = vsel %vm428_vm3, %v1145_v45, %v1142_v19 }
 0x407   : > { %v1151_v54 = vrot.slane %v1146_v49, 6 }
 0x408   : > { %v1188_v28 = vpop.permute.xlu1 %1187 }
 0x409   : > { %v1199_v62 = vsel %vm424_vm1, %v1188_v28, %v1191_v8  ;;  %v1252_v6 = vpop.permute.xlu0 %1251 }
 0x40c   : > { %v1228_v29 = vpop.permute.xlu1 %1227 }
 0x40d   : > { %v1274_v17 = vpop.permute.xlu0 %1273  ;;  %v1239_v18 = vsel %vm424_vm1, %v1228_v29, %v5051_v11 }
 0x40e   : > { %v1240_v20 = vsel %vm426_vm2, %v1239_v18, %v1234_v27 }
 0x40f   : > { %v1241_v25 = vsel %vm428_vm3, %v1240_v20, %v1237_v55 }
 0x410   : > { %v1107_v33 = vpop.permute.xlu1 %1106  ;;  %v1258_v3 = vrot.slane %v1241_v25, 7 }
 0x411   : > { %v1114_v30 = vsel %vm426_vm2, %v1113_v50, %v1107_v33  ;;  %v1304_v24 = vpop.permute.xlu0 %1303 }
 0x414   : > { %v1161_v36 = vpop.permute.xlu1 %1160 }
 0x415   : > { %v1169_v10 = vsel %vm424_vm1, %v1161_v36, %v4875_v9  ;;  %v1277_v27 = vpop.permute.xlu0 %1276 }
 0x416   : > { %v1170_v43 = vsel %vm426_vm2, %v1169_v10, %v1164_v39 }
 0x418   : > { %v1194_v37 = vpop.permute.xlu1 %1193 }
 0x419   : > { %v1200_v12 = vsel %vm426_vm2, %v1199_v62, %v1194_v37 }
 0x41c   : > { %v1243_v41 = vpop.permute.xlu1 %1242 }
 0x41d   : > { %v1254_v21 = vsel %vm424_vm1, %v1243_v41, %v1246_v32 }
 0x420   : > { %v1283_v47 = vpop.permute.xlu1 %1282 }
 0x421   : > { %v1294_v23 = vsel %vm424_vm1, %v1283_v47, %v1286_v35 }
 0x422   : > { %v1295_v26 = vsel %vm426_vm2, %v1294_v23, %v1289_v1 }
 0x424   : > { %v1111_v52 = vpop.permute.xlu1 %1110 }
 0x425   : > { %v1115_v38 = vsel %vm428_vm3, %v1114_v30, %v1111_v52 }
 0x426   : > { %v1153_v40 = vsel %vm467_vm4, %v1115_v38, %v1148_v53 }
 0x427   : > { %v1154_v56 = vsel %vm469_vm5, %v1153_v40, %v1151_v54 }
 0x428   : > { %1156 = vrot.lane.b32.xlu0 %v1154_v56, %s6598_s21  ;;  %v1197_v51 = vpop.permute.xlu1 %1196 }
 0x429   : > { %v1201_v13 = vsel %vm428_vm3, %v1200_v12, %v1197_v51 }
 0x42a   : > { %v1206_v16 = vrot.slane %v1201_v13, 6 }
 0x42c   : > { %v1219_v57 = vpop.permute.xlu1 %1218 }
 0x42d   : > { %v1224_v0 = vsel %vm424_vm1, %v1216_v46, %v1219_v57 }
 0x42e   : > { %v1225_v32 = vsel %vm426_vm2, %v1224_v0, %v4883_v31 }
 0x430   : > { %v1249_v60 = vpop.permute.xlu1 %1248 }
 0x431   : > { %v1255_v22 = vsel %vm426_vm2, %v1254_v21, %v1249_v60 }
 0x432   : > { %v1256_v11 = vsel %vm428_vm3, %v1255_v22, %v1252_v6 }
 0x433   : > { %v1261_v35 = vrot.slane %v1256_v11, 6 }
 0x434   : > { %v1298_v4 = vpop.permute.xlu1 %1297 }
 0x435   : > { %v1309_v36 = vsel %vm424_vm1, %v1298_v4, %v1301_v58 }
 0x436   : > { %v1310_v44 = vsel %vm426_vm2, %v1309_v36, %v1304_v24 }
 0x438   : > { %v1167_v15 = vpop.permute.xlu1 %1166 }
 0x439   : > { %v1171_v59 = vsel %vm428_vm3, %v1170_v43, %v1167_v15 }
 0x43a   : > { %v1208_v8 = vsel %vm467_vm4, %v1171_v59, %v1203_v14 }
 0x43b   : > { %v1209_v19 = vsel %vm469_vm5, %v1208_v8, %v1206_v16 }
 0x43c   : > { %1211 = vrot.lane.b32.xlu1 %v1209_v19, %s6599_s24  ;;  %v1271_v9 = vpop.permute.xlu1 %1270 }
 0x43d   : > { %v1279_v28 = vsel %vm424_vm1, %v1271_v9, %v1274_v17 }
 0x43e   : > { %v1280_v2 = vsel %vm426_vm2, %v1279_v28, %v1277_v27 }
 0x43f   : > { %v1281_v46 = vsel %vm428_vm3, %v1280_v2, %v4893_v34 }
 0x440   : > { %v1292_v7 = vpop.permute.xlu1 %1291 }
 0x441   : > { %v1296_v29 = vsel %vm428_vm3, %v1295_v26, %v1292_v7 }
 0x442   : > { %v1313_v41 = vrot.slane %v1296_v29, 7 }
 0x444   : > { %v1222_v33 = vpop.permute.xlu1 %1221  ;;  %v1318_v48 = vsel %vm467_vm4, %v1281_v46, %v1313_v41 }
 0x445   : > { %v1226_v37 = vsel %vm428_vm3, %v1225_v32, %v1222_v33 }
 0x446   : > { %v1263_v39 = vsel %vm467_vm4, %v1226_v37, %v1258_v3 }
 0x447   : > { %v1264_v42 = vsel %vm469_vm5, %v1263_v39, %v1261_v35 }
 0x448   : > { %1266 = vrot.lane.b32.xlu0 %v1264_v42, %s4343_s11  ;;  %v1307_v45 = vpop.permute.xlu1 %1306 }
 0x449   : > { %v1311_v31 = vsel %vm428_vm3, %v1310_v44, %v1307_v45 }
 0x44a   : > { %v1316_v47 = vrot.slane %v1311_v31, 6 }
 0x44c   : > { %v1319_v49 = vsel %vm469_vm5, %v1318_v48, %v1316_v47 }
 0x44d   : > { %1321 = vrot.lane.b32.xlu1 %v1319_v49, %s4338_s22 }
 0x45f   : > { %v1039_v50 = vpop.permute.xlu0 %1038 }
 0x460   : > { %1041 = vst.msk [vmem:[#allocation3 + $0x4] sm:$0x7] %vm583_vm8, %v1039_v50 }
 0x473   : > { %v1094_v53 = vpop.permute.xlu1 %1093 }
 0x474   : > { %1096 = vst.msk [vmem:[#allocation3 + $0x4] sm:$0x7] %vm639_vm9, %v1094_v53 }
 0x49a   : > { %v1157_v30 = vpop.permute.xlu0 %1156 }
 0x49b   : > { %1159 = vst.msk [vmem:[#allocation3 + $0x4] sm:$0x7] %vm703_vm10, %v1157_v30 }
 0x4ae   : > { %v1212_v52 = vpop.permute.xlu1 %1211 }
 0x4af   : > { %1214 = vst.msk [vmem:[#allocation3 + $0x4] sm:$0x7] %vm759_vm11, %v1212_v52 }
 0x4ba   : > { %v1267_v34 = vpop.permute.xlu0 %1266 }
 0x4bb   : > { %1269 = vst.msk [vmem:[#allocation3 + $0x4] sm:$0x7] %vm815_vm12, %v1267_v34 }
 0x4bf   : > { %v1322_v54 = vpop.permute.xlu1 %1321 }
 0x4c0   : > { %1324 = vst.msk [vmem:[#allocation3 + $0x4] sm:$0x7] %vm871_vm13, %v1322_v54 }
 0x4c1 PF: > { %s4355_s22 = smov 94   ;;  %s4356_s25 = smov 96   ;;  %v1326_v5 = vlaneseq  ;;  %v4370_v42 = vmov 0.0   ;;  %v1951_v44 = vld [vmem:[%s4479_s27 + $0x170] sm:$0xff]  ;;  %v1950_v45 = vld [vmem:[%s4479_s27 + $0x168] sm:$0xff]  ;;  %v1948_v31 = vld [vmem:[%s4479_s27 + $0x158] sm:$0xff] }
 0x4c2   : > { %s4357_s29 = smov 93   ;;  %s4358_s11 = smov 95   ;;  %1892 = vmatprep.mubr.f32.mxu0 %v4370_v42  ;;  %2018 = vmatprep.subr.mxu1 %v1951_v44  ;;  %v1947_v46 = vld [vmem:[%s4479_s27 + $0x150] sm:$0xff]  ;;  %v1945_v47 = vld [vmem:[%s4479_s27 + $0x140] sm:$0xff]  ;;  %v1944_v48 = vld [vmem:[%s4479_s27 + $0x138] sm:$0xff]  ;;  %vm1436_vm15 = vcmask 769024  }
 0x4c3   : > { %s4359_s13 = smov 79   ;;  %s4360_s14 = smov 80   ;;  %vm5144_vm14 = vcmp.lt.s32.totalorder %v1326_v5, 208  ;;  %2019 = vmatpush1.msra.mxu1 %v1950_v45  ;;  %v1942_v49 = vld [vmem:[%s4479_s27 + $0x128] sm:$0xff]  ;;  %v1941_v50 = vld [vmem:[%s4479_s27 + $0x120] sm:$0xff]  ;;  %v1939_v53 = vld [vmem:[%s4479_s27 + $0x110] sm:$0xff] }
 0x4c4   : > { %s4361_s16 = smov 77   ;;  %s4362_s17 = smov 78   ;;  %2020 = vmatprep.subr.mxu1 %v1948_v31  ;;  %v1938_v30 = vld [vmem:[%s4479_s27 + $0x108] sm:$0xff]  ;;  %v1936_v52 = vld [vmem:[%s4479_s27 + $0xf8] sm:$0xff]  ;;  %v1935_v34 = vld [vmem:[%s4479_s27 + $0xf0] sm:$0xff]  ;;  %vm1414_vm0 = vcmask 785408  }
 0x4c5   : > { %s4363_s28 = smov 126   ;;  %s4364_s23 = smov 127   ;;  %2021 = vmatpush1.msra.mxu1 %v1947_v46  ;;  %v1933_v54 = vld [vmem:[%s4479_s27 + $0xe0] sm:$0xff]  ;;  %vm1447_vm1 = vcmask 760832   ;;  %vm1425_vm2 = vcmask 777216   ;;  %vm1469_vm3 = vcmask 646144  }
 0x4c6   : > { %s4365_s26 = smov 112   ;;  %s4366_s18 = smov 125   ;;  %2022 = vmatprep.subr.mxu1 %v1945_v47  ;;  %vm1458_vm4 = vcmask 654336   ;;  %vm1491_vm5 = vcmask 629760   ;;  %vm1480_vm6 = vcmask 637952   ;;  %v1990_v44 = vld [vmem:[%s4479_s27 + $0x2a8] sm:$0xff] }
 0x4c7   : > { %v1747_v38 = vld [vmem:[#allocation3 + $0x2] ss:$4 sm:$0x3]  ;;  %s4367_s20 = smov 110   ;;  %s4368_s21 = smov 111   ;;  %2023 = vmatpush1.msra.mxu1 %v1944_v48  ;;  %vm1348_vm7 = vcmask 1031168  }
 0x4c8   : > { %1749 = vrot.lane.b32.xlu1 %v1747_v38, %s4355_s22  ;;  %v1727_v55 = vld [vmem:[#allocation3 + $0x2] ss:$4 sm:$0x3]  ;;  %v1572_v10 = vld [vmem:[#allocation3 + $0x1] ss:$4 sm:$0x3]  ;;  %2024 = vmatprep.subr.mxu1 %v1942_v49 }
 0x4c9   : > { %1729 = vrot.lane.b32.xlu0 %v1727_v55, %s4356_s25  ;;  %v1757_v40 = vld [vmem:[#allocation3 + $0x2] ss:$4 sm:$0x3]  ;;  %s4369_s24 = smov 109   ;;  %2025 = vmatpush1.msra.mxu1 %v1941_v50  ;;  %v1932_v38 = vld [vmem:[%s4479_s27 + $0xd8] sm:$0xff]  ;;  %v1930_v55 = vld [vmem:[%s4479_s27 + $0xc8] sm:$0xff] }
 0x4ca   : > { %v1737_v56 = vld [vmem:[#allocation3 + $0x2] ss:$4 sm:$0x3]  ;;  %v1592_v43 = vld [vmem:[#allocation3 + $0x1] ss:$4 sm:$0x3]  ;;  %2026 = vmatprep.subr.mxu1 %v1939_v53 }
 0x4cb   : > { %v1777_v51 = vld [vmem:[#allocation3 + $0x2] ss:$4 sm:$0x7]  ;;  %v1582_v15 = vld [vmem:[#allocation3 + $0x1] ss:$4 sm:$0x3]  ;;  %2027 = vmatpush1.msra.mxu1 %v1938_v30 }
 0x4cc   : > { %1759 = vrot.lane.b32.xlu1 %v1757_v40, %s4357_s29  ;;  %v1767_v1 = vld [vmem:[#allocation3 + $0x2] ss:$4 sm:$0x3]  ;;  %v1612_v16 = vld [vmem:[#allocation3 + $0x1] ss:$4 sm:$0x3]  ;;  %2028 = vmatprep.subr.mxu1 %v1936_v52 }
 0x4cd   : > { %1739 = vrot.lane.b32.xlu0 %v1737_v56, %s4358_s11  ;;  %v1797_v57 = vld [vmem:[#allocation3 + $0x2] ss:$4 sm:$0x7]  ;;  %v1602_v59 = vld [vmem:[#allocation3 + $0x1] ss:$4 sm:$0x3]  ;;  %2029 = vmatpush1.msra.mxu1 %v1935_v34 }
 0x4ce   : > { %v1787_v58 = vld [vmem:[#allocation3 + $0x2] ss:$4 sm:$0x7]  ;;  %v1632_v17 = vld [vmem:[#allocation3 + $0x1] ss:$4 sm:$0x7]  ;;  %2030 = vmatprep.subr.mxu1 %v1933_v54 }
 0x4cf   : > { %v1667_v63 = vld [vmem:[#allocation3 + $0x2] ss:$4 sm:$0x3]  ;;  %v1622_v8 = vld [vmem:[#allocation3 + $0x1] ss:$4 sm:$0x7]  ;;  %2031 = vmatpush1.msra.mxu1 %v1932_v38 }
 0x4d0   : > { %1779 = vrot.lane.b32.xlu1 %v1777_v51, %s4359_s13  ;;  %v1657_v60 = vld [vmem:[#allocation3 + $0x2] ss:$4 sm:$0x3]  ;;  %v1502_v18 = vld [vmem:[#allocation3 + $0x1] ss:$4 sm:$0x3]  ;;  %2032 = vmatprep.subr.mxu1 %v1930_v55 }
 0x4d1   : > { %1769 = vrot.lane.b32.xlu0 %v1767_v1, %s4360_s14  ;;  %v1687_v61 = vld [vmem:[#allocation3 + $0x2] ss:$4 sm:$0x3]  ;;  %v1642_v19 = vld [vmem:[#allocation3 + $0x1] ss:$4 sm:$0x7] }
 0x4d2   : > { %v1677_v62 = vld [vmem:[#allocation3 + $0x2] ss:$4 sm:$0x3]  ;;  %v1522_v9 = vld [vmem:[#allocation3 + $0x1] ss:$4 sm:$0x3] }
 0x4d3   : > { %v1707_v6 = vld [vmem:[#allocation3 + $0x2] ss:$4 sm:$0x3]  ;;  %v1512_v20 = vld [vmem:[#allocation3 + $0x1] ss:$4 sm:$0x3] }
 0x4d4   : > { %1799 = vrot.lane.b32.xlu1 %v1797_v57, %s4361_s16  ;;  %v1697_v4 = vld [vmem:[#allocation3 + $0x2] ss:$4 sm:$0x3]  ;;  %v1498_v21 = vld [vmem:[#allocation3 + $0x1] ss:$4 sm:$0x3] }
 0x4d5   : > { %1789 = vrot.lane.b32.xlu0 %v1787_v58, %s4362_s17  ;;  %v1717_v12 = vld [vmem:[#allocation3 + $0x2] ss:$4 sm:$0x3]  ;;  %1500 = vst.msk [vmem:[#allocation4 + $0x20] ss:$8 sm:$0x3] %vm5144_vm14, %v1498_v21 }
 0x4d6   : > { %v1653_v14 = vld [vmem:[#allocation3 + $0x2] ss:$4 sm:$0x3]  ;;  %v1542_v22 = vld [vmem:[#allocation3 + $0x1] ss:$4 sm:$0x3] }
 0x4d7   : > { %1655 = vst.msk [vmem:[#allocation4 + $0x40] ss:$8 sm:$0x3] %vm5144_vm14, %v1653_v14  ;;  %v1532_v23 = vld [vmem:[#allocation3 + $0x1] ss:$4 sm:$0x3] }
 0x4d8   : > { %1669 = vrot.lane.b32.xlu1 %v1667_v63, %s4363_s28  ;;  %v1562_v24 = vld [vmem:[#allocation3 + $0x1] ss:$4 sm:$0x3]  ;;  %v1420_v25 = vld [vmem:[#allocation3] ss:$4 sm:$0x3] }
 0x4d9   : > { %1659 = vrot.lane.b32.xlu0 %v1657_v60, %s4364_s23  ;;  %v1552_v7 = vld [vmem:[#allocation3 + $0x1] ss:$4 sm:$0x3]  ;;  %v1409_v0 = vld [vmem:[#allocation3] ss:$4 sm:$0x3] }
 0x4da   : > { %v1442_v11 = vld [vmem:[#allocation3] ss:$4 sm:$0x3]  ;;  %v1929_v40 = vld [vmem:[%s4479_s27 + $0xc0] sm:$0xff]  ;;  %v1926_v51 = vld [vmem:[%s4479_s27 + $0xa8] sm:$0xff]  ;;  %vm1337_vm8 = vcmask 1039360  }
 0x4db   : > { %v1431_v26 = vld [vmem:[#allocation3] ss:$4 sm:$0x3]  ;;  %2033 = vmatpush1.msra.mxu1 %v1929_v40  ;;  %v1924_v1 = vld [vmem:[%s4479_s27 + $0x98] sm:$0xff]  ;;  %v1921_v58 = vld [vmem:[%s4479_s27 + $0x80] sm:$0xff]  ;;  %vm1370_vm9 = vcmask 916480  }
 0x4dc   : > { %1689 = vrot.lane.b32.xlu1 %v1687_v61, %s4365_s26  ;;  %v1464_v3 = vld [vmem:[#allocation3] ss:$4 sm:$0x7]  ;;  %v1918_v60 = vld [vmem:[%s4479_s27 + $0x68] sm:$0xff]  ;;  %v1989_v46 = vld [vmem:[%s4479_s27 + $0x2a0] sm:$0xff]  ;;  %vm1359_vm10 = vcmask 1022976  }
 0x4dd   : > { %1679 = vrot.lane.b32.xlu0 %v1677_v62, %s4366_s18  ;;  %v1453_v28 = vld [vmem:[#allocation3] ss:$4 sm:$0x3]  ;;  %v1920_v63 = vld [vmem:[%s4479_s27 + $0x78] sm:$0xff]  ;;  %v1917_v62 = vld [vmem:[%s4479_s27 + $0x60] sm:$0xff]  ;;  %vm1392_vm11 = vcmask 900096  }
 0x4de   : > { %v1486_v27 = vld [vmem:[#allocation3] ss:$4 sm:$0x7]  ;;  %v1914_v14 = vld [vmem:[%s4479_s27 + $0x48] sm:$0xff]  ;;  %vm1381_vm12 = vcmask 908288   ;;  %vm1403_vm13 = vcmask 891904  }
 0x4df   : > { %v1475_v29 = vld [vmem:[#allocation3] ss:$4 sm:$0x7]  ;;  %v1986_v53 = vld [vmem:[%s4479_s27 + $0x288] sm:$0xff]  ;;  %v1949_v13 = vld [vmem:[%s4479_s27 + $0x160] sm:$0xff]  ;;  %p3960_p2 = scmp.ne.s32.totalorder %s4443_s10, 1 }
 0x4e0   : > { %1709 = vrot.lane.b32.xlu1 %v1707_v6, %s4367_s20  ;;  %v1343_v32 = vld [vmem:[#allocation3] ss:$4 sm:$0x3]  ;;  %v1984_v52 = vld [vmem:[%s4479_s27 + $0x278] sm:$0xff] }
 0x4e1   : > { %1699 = vrot.lane.b32.xlu0 %v1697_v4, %s4368_s21  ;;  %v1332_v33 = vld [vmem:[#allocation3] ss:$4 sm:$0x3] }
 0x4e2   : > { %v1365_v35 = vld [vmem:[#allocation3] ss:$4 sm:$0x3] }
 0x4e3   : > { %v1354_v36 = vld [vmem:[#allocation3] ss:$4 sm:$0x3] }
 0x4e4   : > { %1574 = vrot.lane.b32.xlu1 %v1572_v10, %s4356_s25  ;;  %v1325_v37 = vld [vmem:[#allocation3] ss:$4 sm:$0x3] }
 0x4e5   : > { %1719 = vrot.lane.b32.xlu0 %v1717_v12, %s4369_s24  ;;  %1330 = vst.msk [vmem:[#allocation4] ss:$8 sm:$0x3] %vm5144_vm14, %v1325_v37  ;;  %v1387_v39 = vld [vmem:[#allocation3] ss:$4 sm:$0x3] }
 0x4e6   : > { %v1376_v2 = vld [vmem:[#allocation3] ss:$4 sm:$0x3]  ;;  %v1993_v37 = vld [vmem:[%s4479_s27 + $0x2c0] sm:$0xff] }
 0x4e7   : > { %v1398_v41 = vld [vmem:[#allocation3] ss:$4 sm:$0x3] }
 0x4e8   : > { %1594 = vrot.lane.b32.xlu1 %v1592_v43, %s4355_s22  ;;  %v1927_v56 = vld [vmem:[%s4479_s27 + $0xb0] sm:$0xff] }
 0x4e9   : > { %1584 = vrot.lane.b32.xlu0 %v1582_v15, %s4358_s11  ;;  %2034 = vmatprep.subr.mxu1 %v1927_v56  ;;  %v1923_v57 = vld [vmem:[%s4479_s27 + $0x90] sm:$0xff]  ;;  %v1912_v15 = vld [vmem:[%s4479_s27 + $0x38] sm:$0xff]  ;;  %v1981_v56 = vld [vmem:[%s4479_s27 + $0x260] sm:$0xff] }
 0x4ea   : > { %2035 = vmatpush1.msra.mxu1 %v1926_v51  ;;  %v1915_v10 = vld [vmem:[%s4479_s27 + $0x50] sm:$0xff] }
 0x4eb   : > { %2036 = vmatprep.subr.mxu1 %v1924_v1  ;;  %v1987_v49 = vld [vmem:[%s4479_s27 + $0x290] sm:$0xff]  ;;  %v1980_v1 = vld [vmem:[%s4479_s27 + $0x258] sm:$0xff] }
 0x4ec   : > { %1614 = vrot.lane.b32.xlu1 %v1612_v16, %s4360_s14  ;;  %2037 = vmatpush1.msra.mxu1 %v1923_v57  ;;  %v1983_v38 = vld [vmem:[%s4479_s27 + $0x270] sm:$0xff] }
 0x4ed   : > { %1604 = vrot.lane.b32.xlu0 %v1602_v59, %s4357_s29  ;;  %2038 = vmatprep.subr.mxu1 %v1921_v58  ;;  %v1978_v58 = vld [vmem:[%s4479_s27 + $0x248] sm:$0xff] }
 0x4ee   : > { %2039 = vmatpush1.msra.mxu1 %v1920_v63 }
 0x4ef   : > { %2040 = vmatprep.subr.mxu1 %v1918_v60 }
 0x4f0   : > { %1634 = vrot.lane.b32.xlu1 %v1632_v17, %s4362_s17  ;;  %2041 = vmatpush1.msra.mxu1 %v1917_v62  ;;  %v1911_v17 = vld [vmem:[%s4479_s27 + $0x30] sm:$0xff] }
 0x4f1   : > { %1624 = vrot.lane.b32.xlu0 %v1622_v8, %s4359_s13  ;;  %2042 = vmatprep.subr.mxu1 %v1915_v10 }
 0x4f2   : > { %2043 = vmatpush1.msra.mxu1 %v1914_v14 }
 0x4f3   : > { %2044 = vmatprep.subr.mxu1 %v1912_v15 }
 0x4f4   : > { %1504 = vrot.lane.b32.xlu1 %v1502_v18, %s4364_s23  ;;  %2045 = vmatpush1.msra.mxu1 %v1911_v17 }
 0x4f5   : > { %1644 = vrot.lane.b32.xlu0 %v1642_v19, %s4361_s16  ;;  %v1909_v19 = vld [vmem:[%s4479_s27 + $0x20] sm:$0xff] }
 0x4f6   : > { %2046 = vmatprep.subr.mxu1 %v1909_v19 }
 0x4f8   : > { %1524 = vrot.lane.b32.xlu1 %v1522_v9, %s4366_s18 }
 0x4f9   : > { %1514 = vrot.lane.b32.xlu0 %v1512_v20, %s4363_s28  ;;  %v1908_v20 = vld [vmem:[%s4479_s27 + $0x18] sm:$0xff] }
 0x4fa   : > { %2047 = vmatpush1.msra.mxu1 %v1908_v20 }
 0x4fc   : > { %1544 = vrot.lane.b32.xlu1 %v1542_v22, %s4368_s21  ;;  %v1906_v22 = vld [vmem:[%s4479_s27 + $0x8] sm:$0xff] }
 0x4fd   : > { %1534 = vrot.lane.b32.xlu0 %v1532_v23, %s4365_s26  ;;  %2048 = vmatprep.subr.mxu1 %v1906_v22 }
 0x500   : > { %1564 = vrot.lane.b32.xlu1 %v1562_v24, %s4369_s24 }
 0x501   : > { %1554 = vrot.lane.b32.xlu0 %v1552_v7, %s4367_s20  ;;  %v1905_v7 = vld [vmem:[%s4479_s27] sm:$0xff] }
 0x502   : > { %2049 = vmatpush1.msra.mxu1 %v1905_v7 }
 0x504   : > { %1422 = vrot.lane.b32.xlu1 %v1420_v25, %s4358_s11  ;;  %s4374_s11 = smov 116  }
 0x505   : > { %1411 = vrot.lane.b32.xlu0 %v1409_v0, %s4356_s25 }
 0x508   : > { %1444 = vrot.lane.b32.xlu1 %v1442_v11, %s4357_s29  ;;  %v1999_v11 = vld [vmem:[%s4479_s27 + $0x2f0] sm:$0xff]  ;;  %s4373_s29 = smov 12  }
 0x509   : > { %1433 = vrot.lane.b32.xlu0 %v1431_v26, %s4355_s22  ;;  %2050 = vmatprep.subr.mxu1 %v1999_v11  ;;  %s4371_s22 = smov 8  }
 0x50c   : > { %1466 = vrot.lane.b32.xlu1 %v1464_v3, %s4359_s13  ;;  %v1998_v3 = vld [vmem:[%s4479_s27 + $0x2e8] sm:$0xff]  ;;  %s4375_s13 = smov 120  }
 0x50d   : > { %1455 = vrot.lane.b32.xlu0 %v1453_v28, %s4360_s14  ;;  %2051 = vmatpush2.msra.mxu1 %v1998_v3 }
 0x510   : > { %1488 = vrot.lane.b32.xlu1 %v1486_v27, %s4361_s16  ;;  %v1996_v27 = vld [vmem:[%s4479_s27 + $0x2d8] sm:$0xff]  ;;  %s4376_s16 = smov 124  }
 0x511   : > { %1477 = vrot.lane.b32.xlu0 %v1475_v29, %s4362_s17  ;;  %2052 = vmatprep.subr.mxu1 %v1996_v27  ;;  %s4377_s17 = smov 100  }
 0x514   : > { %1345 = vrot.lane.b32.xlu1 %v1343_v32, %s4363_s28  ;;  %s4378_s28 = smov 104  }
 0x515   : > { %1334 = vrot.lane.b32.xlu0 %v1332_v33, %s4364_s23  ;;  %v1995_v33 = vld [vmem:[%s4479_s27 + $0x2d0] sm:$0xff]  ;;  %s4379_s23 = smov 108  }
 0x516   : > { %2053 = vmatpush2.msra.mxu1 %v1995_v33 }
 0x517   : > { %2054 = vmatprep.subr.mxu1 %v1993_v37 }
 0x518   : > { %1367 = vrot.lane.b32.xlu1 %v1365_v35, %s4365_s26 }
 0x519   : > { %1356 = vrot.lane.b32.xlu0 %v1354_v36, %s4366_s18  ;;  %s4380_s18 = smov 92  }
 0x51c   : > { %1389 = vrot.lane.b32.xlu1 %v1387_v39, %s4367_s20  ;;  %s4381_s20 = smov 88  }
 0x51d   : > { %1378 = vrot.lane.b32.xlu0 %v1376_v2, %s4368_s21  ;;  %v1992_v2 = vld [vmem:[%s4479_s27 + $0x2b8] sm:$0xff]  ;;  %s4382_s21 = smov 84  }
 0x51e   : > { %2055 = vmatpush2.msra.mxu1 %v1992_v2 }
 0x51f   : > { %2056 = vmatprep.subr.mxu1 %v1990_v44 }
 0x520   : > { %2057 = vmatpush2.msra.mxu1 %v1989_v46 }
 0x521   : > { %1400 = vrot.lane.b32.xlu0 %v1398_v41, %s4369_s24  ;;  %2058 = vmatprep.subr.mxu1 %v1987_v49  ;;  %s4383_s24 = smov 16  }
 0x522   : > { %2059 = vmatpush2.msra.mxu1 %v1986_v53 }
 0x523   : > { %2060 = vmatprep.subr.mxu1 %v1984_v52 }
 0x524   : > { %2061 = vmatpush2.msra.mxu1 %v1983_v38 }
 0x525   : > { %2062 = vmatprep.subr.mxu1 %v1981_v56 }
 0x526   : > { %2063 = vmatpush2.msra.mxu1 %v1980_v1 }
 0x527   : > { %2064 = vmatprep.subr.mxu1 %v1978_v58 }
 0x53a   : > { %v1750_v61 = vpop.permute.xlu1 %1749 }
 0x53b   : > { %v1751_v6 = vrot.slane %v1750_v61, 1  ;;  %v1730_v4 = vpop.permute.xlu0 %1729 }
 0x53c   : > { %v1731_v12 = vrot.slane %v1730_v4, 1 }
 0x53d   : > { %v1752_v43 = vsel %vm1436_vm15, %v1750_v61, %v1751_v6  ;;  %v1977_v6 = vld [vmem:[%s4479_s27 + $0x240] sm:$0xff] }
 0x53e   : > { %1755 = vst.msk [vmem:[#allocation4 + $0x52] ss:$8 sm:$0x3] %vm5144_vm14, %v1752_v43  ;;  %v1732_v16 = vsel %vm1414_vm0, %v1730_v4, %v1731_v12  ;;  %v1760_v59 = vpop.permute.xlu1 %1759  ;;  %v1975_v12 = vld [vmem:[%s4479_s27 + $0x230] sm:$0xff]  ;;  %v1974_v43 = vld [vmem:[%s4479_s27 + $0x228] sm:$0xff]  ;;  %2065 = vmatpush2.msra.mxu1 %v1977_v6 }
 0x53f   : > { %1735 = vst.msk [vmem:[#allocation4 + $0x50] ss:$8 sm:$0x3] %vm5144_vm14, %v1732_v16  ;;  %v1761_v8 = vrot.slane %v1760_v59, 1  ;;  %v1740_v18 = vpop.permute.xlu0 %1739  ;;  %v1972_v16 = vld [vmem:[%s4479_s27 + $0x218] sm:$0xff]  ;;  %2066 = vmatprep.subr.mxu1 %v1975_v12 }
 0x540   : > { %v1741_v9 = vrot.slane %v1740_v18, 1  ;;  %2067 = vmatpush2.msra.mxu1 %v1974_v43 }
 0x541   : > { %v1762_v21 = vsel %vm1447_vm1, %v1760_v59, %v1761_v8  ;;  %v1971_v8 = vld [vmem:[%s4479_s27 + $0x210] sm:$0xff]  ;;  %2068 = vmatprep.subr.mxu1 %v1972_v16 }
 0x542   : > { %1765 = vst.msk [vmem:[#allocation4 + $0x53] ss:$8 sm:$0x3] %vm5144_vm14, %v1762_v21  ;;  %v1742_v23 = vsel %vm1425_vm2, %v1740_v18, %v1741_v9  ;;  %v1780_v24 = vpop.permute.xlu1 %1779  ;;  %v1969_v9 = vld [vmem:[%s4479_s27 + $0x200] sm:$0xff]  ;;  %v1968_v21 = vld [vmem:[%s4479_s27 + $0x1f8] sm:$0xff]  ;;  %2069 = vmatpush2.msra.mxu1 %v1971_v8 }
 0x543   : > { %1745 = vst.msk [vmem:[#allocation4 + $0x51] ss:$8 sm:$0x3] %vm5144_vm14, %v1742_v23  ;;  %v1781_v25 = vrot.slane %v1780_v24, 1  ;;  %v1770_v0 = vpop.permute.xlu0 %1769  ;;  %v1966_v23 = vld [vmem:[%s4479_s27 + $0x1e8] sm:$0xff]  ;;  %2070 = vmatprep.subr.mxu1 %v1969_v9 }
 0x544   : > { %v1771_v26 = vrot.slane %v1770_v0, 1  ;;  %2071 = vmatpush2.msra.mxu1 %v1968_v21 }
 0x545   : > { %v1782_v28 = vsel %vm1469_vm3, %v1780_v24, %v1781_v25  ;;  %v1965_v25 = vld [vmem:[%s4479_s27 + $0x1e0] sm:$0xff]  ;;  %2072 = vmatprep.subr.mxu1 %v1966_v23 }
 0x546   : > { %1785 = vst.msk [vmem:[#allocation4 + $0x55] ss:$8 sm:$0x3] %vm5144_vm14, %v1782_v28  ;;  %v1772_v29 = vsel %vm1458_vm4, %v1770_v0, %v1771_v26  ;;  %v1800_v32 = vpop.permute.xlu1 %1799  ;;  %v1963_v26 = vld [vmem:[%s4479_s27 + $0x1d0] sm:$0xff]  ;;  %v1962_v28 = vld [vmem:[%s4479_s27 + $0x1c8] sm:$0xff]  ;;  %2073 = vmatpush2.msra.mxu1 %v1965_v25 }
 0x547   : > { %1775 = vst.msk [vmem:[#allocation4 + $0x54] ss:$8 sm:$0x3] %vm5144_vm14, %v1772_v29  ;;  %v1801_v35 = vrot.slane %v1800_v32, 1  ;;  %v1790_v36 = vpop.permute.xlu0 %1789  ;;  %v1960_v29 = vld [vmem:[%s4479_s27 + $0x1b8] sm:$0xff]  ;;  %2074 = vmatprep.subr.mxu1 %v1963_v26 }
 0x548   : > { %v1791_v39 = vrot.slane %v1790_v36, 1  ;;  %2075 = vmatpush2.msra.mxu1 %v1962_v28 }
 0x549   : > { %v1802_v41 = vsel %vm1491_vm5, %v1800_v32, %v1801_v35  ;;  %v1959_v35 = vld [vmem:[%s4479_s27 + $0x1b0] sm:$0xff]  ;;  %2076 = vmatprep.subr.mxu1 %v1960_v29 }
 0x54a   : > { %1805 = vst.msk [vmem:[#allocation4 + $0x57] ss:$8 sm:$0x3] %vm5144_vm14, %v1802_v41  ;;  %v1792_v45 = vsel %vm1480_vm6, %v1790_v36, %v1791_v39  ;;  %v1670_v31 = vpop.permute.xlu1 %1669  ;;  %2077 = vmatpush2.msra.mxu1 %v1959_v35 }
 0x54b   : > { %1795 = vst.msk [vmem:[#allocation4 + $0x56] ss:$8 sm:$0x3] %vm5144_vm14, %v1792_v45  ;;  %v1671_v47 = vrot.slane %v1670_v31, 1  ;;  %v1660_v48 = vpop.permute.xlu0 %1659 }
 0x54c   : > { %v1661_v50 = vrot.slane %v1660_v48, 1 }
 0x54d   : > { %v1672_v30 = vsel %vm1348_vm7, %v1670_v31, %v1671_v47 }
 0x54e   : > { %1675 = vst.msk [vmem:[#allocation4 + $0x42] ss:$8 sm:$0x3] %vm5144_vm14, %v1672_v30  ;;  %v1662_v34 = vsel %vm1337_vm8, %v1660_v48, %v1661_v50  ;;  %v1690_v54 = vpop.permute.xlu1 %1689 }
 0x54f   : > { %1665 = vst.msk [vmem:[#allocation4 + $0x41] ss:$8 sm:$0x3] %vm5144_vm14, %v1662_v34  ;;  %v1691_v55 = vrot.slane %v1690_v54, 1  ;;  %v1680_v40 = vpop.permute.xlu0 %1679 }
 0x550   : > { %v1681_v51 = vrot.slane %v1680_v40, 1 }
 0x551   : > { %v1692_v57 = vsel %vm1370_vm9, %v1690_v54, %v1691_v55 }
 0x552   : > { %1695 = vst.msk [vmem:[#allocation4 + $0x44] ss:$8 sm:$0x3] %vm5144_vm14, %v1692_v57  ;;  %v1682_v63 = vsel %vm1359_vm10, %v1680_v40, %v1681_v51  ;;  %v1710_v60 = vpop.permute.xlu1 %1709  ;;  %v1820_v61 = vld [vmem:[#allocation4 + $0x58] sm:$0xff]  ;;  %v1819_v62 = vld [vmem:[#allocation4 + $0x50] sm:$0xff] }
 0x553   : > { %1685 = vst.msk [vmem:[#allocation4 + $0x43] ss:$8 sm:$0x3] %vm5144_vm14, %v1682_v63  ;;  %v1711_v4 = vrot.slane %v1710_v60, 1  ;;  %v1700_v10 = vpop.permute.xlu0 %1699  ;;  %1848 = vmatprep.subr.mxu0 %v1820_v61 }
 0x554   : > { %v1701_v14 = vrot.slane %v1700_v10, 1  ;;  %1849 = vmatpush1.msra.mxu0 %v1819_v62 }
 0x555   : > { %v1712_v15 = vsel %vm1392_vm11, %v1710_v60, %v1711_v4 }
 0x556   : > { %1715 = vst.msk [vmem:[#allocation4 + $0x46] ss:$8 sm:$0x3] %vm5144_vm14, %v1712_v15  ;;  %v1702_v59 = vsel %vm1381_vm12, %v1700_v10, %v1701_v14  ;;  %v1575_v17 = vpop.permute.xlu1 %1574 }
 0x557   : > { %1705 = vst.msk [vmem:[#allocation4 + $0x45] ss:$8 sm:$0x3] %vm5144_vm14, %v1702_v59  ;;  %v1576_v18 = vrot.slane %v1575_v17, 1  ;;  %v1720_v19 = vpop.permute.xlu0 %1719 }
 0x558   : > { %v1721_v20 = vrot.slane %v1720_v19, 1 }
 0x559   : > { %v1577_v22 = vsel %vm1414_vm0, %v1575_v17, %v1576_v18 }
 0x55a   : > { %1580 = vst.msk [vmem:[#allocation4 + $0x30] ss:$8 sm:$0x3] %vm5144_vm14, %v1577_v22  ;;  %v1722_v24 = vsel %vm1403_vm13, %v1720_v19, %v1721_v20  ;;  %v1595_v7 = vpop.permute.xlu1 %1594 }
 0x55b   : > { %1725 = vst.msk [vmem:[#allocation4 + $0x47] ss:$8 sm:$0x3] %vm5144_vm14, %v1722_v24  ;;  %v1596_v0 = vrot.slane %v1595_v7, 1  ;;  %v1585_v11 = vpop.permute.xlu0 %1584 }
 0x55c   : > { %v1586_v3 = vrot.slane %v1585_v11, 1 }
 0x55d   : > { %v1597_v27 = vsel %vm1436_vm15, %v1595_v7, %v1596_v0 }
 0x55e   : > { %1600 = vst.msk [vmem:[#allocation4 + $0x32] ss:$8 sm:$0x3] %vm5144_vm14, %v1597_v27  ;;  %v1587_v32 = vsel %vm1425_vm2, %v1585_v11, %v1586_v3  ;;  %v1615_v33 = vpop.permute.xlu1 %1614 }
 0x55f   : > { %1590 = vst.msk [vmem:[#allocation4 + $0x31] ss:$8 sm:$0x3] %vm5144_vm14, %v1587_v32  ;;  %v1616_v36 = vrot.slane %v1615_v33, 1  ;;  %v1605_v37 = vpop.permute.xlu0 %1604 }
 0x560   : > { %v1606_v39 = vrot.slane %v1605_v37, 1 }
 0x561   : > { %v1617_v2 = vsel %vm1458_vm4, %v1615_v33, %v1616_v36 }
 0x562   : > { %1620 = vst.msk [vmem:[#allocation4 + $0x34] ss:$8 sm:$0x3] %vm5144_vm14, %v1617_v2  ;;  %v1607_v41 = vsel %vm1447_vm1, %v1605_v37, %v1606_v39  ;;  %v1635_v44 = vpop.permute.xlu1 %1634  ;;  %v1818_v45 = vld [vmem:[#allocation4 + $0x48] sm:$0xff]  ;;  %v1817_v31 = vld [vmem:[#allocation4 + $0x40] sm:$0xff] }
 0x563   : > { %1610 = vst.msk [vmem:[#allocation4 + $0x33] ss:$8 sm:$0x3] %vm5144_vm14, %v1607_v41  ;;  %v1636_v46 = vrot.slane %v1635_v44, 1  ;;  %v1625_v47 = vpop.permute.xlu0 %1624  ;;  %1850 = vmatprep.subr.mxu0 %v1818_v45 }
 0x564   : > { %v1626_v48 = vrot.slane %v1625_v47, 1  ;;  %1851 = vmatpush1.msra.mxu0 %v1817_v31 }
 0x565   : > { %v1637_v49 = vsel %vm1480_vm6, %v1635_v44, %v1636_v46 }
 0x566   : > { %1640 = vst.msk [vmem:[#allocation4 + $0x36] ss:$8 sm:$0x3] %vm5144_vm14, %v1637_v49  ;;  %v1627_v50 = vsel %vm1469_vm3, %v1625_v47, %v1626_v48  ;;  %v1505_v53 = vpop.permute.xlu1 %1504 }
 0x567   : > { %1630 = vst.msk [vmem:[#allocation4 + $0x35] ss:$8 sm:$0x3] %vm5144_vm14, %v1627_v50  ;;  %v1506_v30 = vrot.slane %v1505_v53, 1  ;;  %v1645_v52 = vpop.permute.xlu0 %1644 }
 0x568   : > { %v1646_v34 = vrot.slane %v1645_v52, 1 }
 0x569   : > { %v1507_v54 = vsel %vm1337_vm8, %v1505_v53, %v1506_v30 }
 0x56a   : > { %1510 = vst.msk [vmem:[#allocation4 + $0x21] ss:$8 sm:$0x3] %vm5144_vm14, %v1507_v54  ;;  %v1647_v38 = vsel %vm1491_vm5, %v1645_v52, %v1646_v34  ;;  %v1525_v55 = vpop.permute.xlu1 %1524 }
 0x56b   : > { %1650 = vst.msk [vmem:[#allocation4 + $0x37] ss:$8 sm:$0x3] %vm5144_vm14, %v1647_v38  ;;  %v1526_v40 = vrot.slane %v1525_v55, 1  ;;  %v1515_v56 = vpop.permute.xlu0 %1514 }
 0x56c   : > { %v1516_v51 = vrot.slane %v1515_v56, 1 }
 0x56d   : > { %v1527_v1 = vsel %vm1359_vm10, %v1525_v55, %v1526_v40 }
 0x56e   : > { %1530 = vst.msk [vmem:[#allocation4 + $0x23] ss:$8 sm:$0x3] %vm5144_vm14, %v1527_v1  ;;  %v1517_v57 = vsel %vm1348_vm7, %v1515_v56, %v1516_v51  ;;  %v1545_v58 = vpop.permute.xlu1 %1544 }
 0x56f   : > { %1520 = vst.msk [vmem:[#allocation4 + $0x22] ss:$8 sm:$0x3] %vm5144_vm14, %v1517_v57  ;;  %v1546_v63 = vrot.slane %v1545_v58, 1  ;;  %v1535_v60 = vpop.permute.xlu0 %1534 }
 0x570   : > { %v1536_v61 = vrot.slane %v1535_v60, 1 }
 0x571   : > { %v1547_v62 = vsel %vm1381_vm12, %v1545_v58, %v1546_v63 }
 0x572   : > { %1550 = vst.msk [vmem:[#allocation4 + $0x25] ss:$8 sm:$0x3] %vm5144_vm14, %v1547_v62  ;;  %v1537_v6 = vsel %vm1370_vm9, %v1535_v60, %v1536_v61  ;;  %v1565_v4 = vpop.permute.xlu1 %1564  ;;  %v1816_v10 = vld [vmem:[#allocation4 + $0x38] sm:$0xff]  ;;  %v1815_v12 = vld [vmem:[#allocation4 + $0x30] sm:$0xff]  ;;  %v1807_v60 = vld [vmem:[#allocation2] sm:$0xff] }
 0x573   : > { %1540 = vst.msk [vmem:[#allocation4 + $0x24] ss:$8 sm:$0x3] %vm5144_vm14, %v1537_v6  ;;  %v1566_v14 = vrot.slane %v1565_v4, 1  ;;  %v1555_v43 = vpop.permute.xlu0 %1554  ;;  %1852 = vmatprep.subr.mxu0 %v1816_v10  ;;  %v2000_v6 = vld [vmem:[%s4479_s27 + $0x2f8] sm:$0xff]  ;;  %v1997_v10 = vld [vmem:[%s4479_s27 + $0x2e0] sm:$0xff] }
 0x574   : > { %v1556_v15 = vrot.slane %v1555_v43, 1  ;;  %1853 = vmatpush1.msra.mxu0 %v1815_v12  ;;  %v1808_v12 = vld [vmem:[#allocation2 + $0x8] sm:$0xff] }
 0x575   : > { %v1567_v16 = vsel %vm1403_vm13, %v1565_v4, %v1566_v14  ;;  %v1952_v4 = vld [vmem:[%s4479_s27 + $0x178] sm:$0xff]  ;;  %v1994_v14 = vld [vmem:[%s4479_s27 + $0x2c8] sm:$0xff] }
 0x576   : > { %1570 = vst.msk [vmem:[#allocation4 + $0x27] ss:$8 sm:$0x3] %vm5144_vm14, %v1567_v16  ;;  %v1557_v59 = vsel %vm1392_vm11, %v1555_v43, %v1556_v15  ;;  %v1423_v17 = vpop.permute.xlu1 %1422  ;;  %v1946_v43 = vld [vmem:[%s4479_s27 + $0x148] sm:$0xff]  ;;  %v1991_v15 = vld [vmem:[%s4479_s27 + $0x2b0] sm:$0xff] }
 0x577   : > { %1560 = vst.msk [vmem:[#allocation4 + $0x26] ss:$8 sm:$0x3] %vm5144_vm14, %v1557_v59  ;;  %v1424_v8 = vrot.slane %v1423_v17, 1  ;;  %v1412_v18 = vpop.permute.xlu0 %1411  ;;  %v1943_v16 = vld [vmem:[%s4479_s27 + $0x130] sm:$0xff]  ;;  %v1988_v59 = vld [vmem:[%s4479_s27 + $0x298] sm:$0xff] }
 0x578   : > { %v1413_v19 = vrot.slane %v1412_v18, 1 }
 0x579   : > { %v1426_v9 = vsel %vm1425_vm2, %v1423_v17, %v1424_v8  ;;  %v1985_v17 = vld [vmem:[%s4479_s27 + $0x280] sm:$0xff]  ;;  %vm2616_vm2 = vcmask 1040384  }
 0x57a   : > { %1429 = vst.msk [vmem:[#allocation4 + $0x11] ss:$8 sm:$0x3] %vm5144_vm14, %v1426_v9  ;;  %v1415_v20 = vsel %vm1414_vm0, %v1412_v18, %v1413_v19  ;;  %v1445_v21 = vpop.permute.xlu1 %1444  ;;  %v1937_v8 = vld [vmem:[%s4479_s27 + $0x100] sm:$0xff]  ;;  %v1982_v18 = vld [vmem:[%s4479_s27 + $0x268] sm:$0xff]  ;;  %v1979_v9 = vld [vmem:[%s4479_s27 + $0x250] sm:$0xff] }
 0x57b   : > { %1418 = vst.msk [vmem:[#allocation4 + $0x10] ss:$8 sm:$0x3] %vm5144_vm14, %v1415_v20  ;;  %v1446_v22 = vrot.slane %v1445_v21, 1  ;;  %v1434_v23 = vpop.permute.xlu0 %1433  ;;  %v1934_v19 = vld [vmem:[%s4479_s27 + $0xe8] sm:$0xff]  ;;  %v1931_v20 = vld [vmem:[%s4479_s27 + $0xd0] sm:$0xff] }
 0x57c   : > { %v1435_v24 = vrot.slane %v1434_v23, 1  ;;  %vm2575_vm0 = vcmask 64512  }
 0x57d   : > { %v1448_v7 = vsel %vm1447_vm1, %v1445_v21, %v1446_v22  ;;  %v1976_v21 = vld [vmem:[%s4479_s27 + $0x238] sm:$0xff]  ;;  %vm2577_vm1 = vcmask 97280  }
 0x57e   : > { %1451 = vst.msk [vmem:[#allocation4 + $0x13] ss:$8 sm:$0x3] %vm5144_vm14, %v1448_v7  ;;  %v1437_v25 = vsel %vm1436_vm15, %v1434_v23, %v1435_v24  ;;  %v1467_v0 = vpop.permute.xlu1 %1466  ;;  %v1814_v11 = vld [vmem:[#allocation4 + $0x28] sm:$0xff]  ;;  %v1813_v26 = vld [vmem:[#allocation4 + $0x20] sm:$0xff]  ;;  %vm1821_vm15 = vcmask 392192  }
 0x57f   : > { %1440 = vst.msk [vmem:[#allocation4 + $0x12] ss:$8 sm:$0x3] %vm5144_vm14, %v1437_v25  ;;  %v1468_v3 = vrot.slane %v1467_v0, 1  ;;  %v1456_v28 = vpop.permute.xlu0 %1455  ;;  %1854 = vmatprep.subr.mxu0 %v1814_v11  ;;  %v1928_v22 = vld [vmem:[%s4479_s27 + $0xb8] sm:$0xff]  ;;  %v1973_v23 = vld [vmem:[%s4479_s27 + $0x220] sm:$0xff] }
 0x580   : > { %v1457_v27 = vrot.slane %v1456_v28, 1  ;;  %1855 = vmatpush1.msra.mxu0 %v1813_v26  ;;  %v1925_v24 = vld [vmem:[%s4479_s27 + $0xa0] sm:$0xff]  ;;  %v1970_v7 = vld [vmem:[%s4479_s27 + $0x208] sm:$0xff]  ;;  %v1919_v11 = vld [vmem:[%s4479_s27 + $0x70] sm:$0xff] }
 0x581   : > { %v1470_v29 = vsel %vm1469_vm3, %v1467_v0, %v1468_v3  ;;  %v1922_v25 = vld [vmem:[%s4479_s27 + $0x88] sm:$0xff]  ;;  %v1967_v0 = vld [vmem:[%s4479_s27 + $0x1f0] sm:$0xff]  ;;  %v1964_v26 = vld [vmem:[%s4479_s27 + $0x1d8] sm:$0xff]  ;;  %vm2618_vm3 = vcmask 1041408  }
 0x582   : > { %1473 = vst.msk [vmem:[#allocation4 + $0x15] ss:$8 sm:$0x3] %vm5144_vm14, %v1470_v29  ;;  %v1459_v32 = vsel %vm1458_vm4, %v1456_v28, %v1457_v27  ;;  %v1489_v33 = vpop.permute.xlu1 %1488  ;;  %v1916_v3 = vld [vmem:[%s4479_s27 + $0x58] sm:$0xff]  ;;  %v1961_v28 = vld [vmem:[%s4479_s27 + $0x1c0] sm:$0xff]  ;;  %vm2620_vm4 = vcmask 124928  }
 0x583   : > { %1462 = vst.msk [vmem:[#allocation4 + $0x14] ss:$8 sm:$0x3] %vm5144_vm14, %v1459_v32  ;;  %v1490_v35 = vrot.slane %v1489_v33, 1  ;;  %v1478_v36 = vpop.permute.xlu0 %1477  ;;  %v1913_v27 = vld [vmem:[%s4479_s27 + $0x40] sm:$0xff]  ;;  %v1958_v32 = vld [vmem:[%s4479_s27 + $0x1a8] sm:$0xff] }
 0x584   : > { %v1479_v37 = vrot.slane %v1478_v36, 1  ;;  %v1957_v29 = vld [vmem:[%s4479_s27 + $0x1a0] sm:$0xff] }
 0x585   : > { %v1492_v39 = vsel %vm1491_vm5, %v1489_v33, %v1490_v35  ;;  %2078 = vmatprep.subr.mxu1 %v1957_v29  ;;  %v1956_v33 = vld [vmem:[%s4479_s27 + $0x198] sm:$0xff]  ;;  %v1910_v35 = vld [vmem:[%s4479_s27 + $0x28] sm:$0xff]  ;;  %vm2676_vm5 = vcmask 256128  }
 0x586   : > { %1495 = vst.msk [vmem:[#allocation4 + $0x17] ss:$8 sm:$0x3] %vm5144_vm14, %v1492_v39  ;;  %v1481_v2 = vsel %vm1480_vm6, %v1478_v36, %v1479_v37  ;;  %v1346_v41 = vpop.permute.xlu1 %1345  ;;  %2079 = vmatpush2.msra.mxu1 %v1956_v33  ;;  %v1954_v36 = vld [vmem:[%s4479_s27 + $0x188] sm:$0xff]  ;;  %v1955_v37 = vld [vmem:[%s4479_s27 + $0x190] sm:$0xff]  ;;  %v1953_v39 = vld [vmem:[%s4479_s27 + $0x180] sm:$0xff] }
 0x587   : > { %1484 = vst.msk [vmem:[#allocation4 + $0x16] ss:$8 sm:$0x3] %vm5144_vm14, %v1481_v2  ;;  %v1335_v44 = vpop.permute.xlu0 %1334  ;;  %v1347_v45 = vrot.slane %v1346_v41, 1  ;;  %2080 = vmatprep.subr.mxu1 %v1954_v36  ;;  %v1907_v2 = vld [vmem:[%s4479_s27 + $0x10] sm:$0xff]  ;;  %vm2732_vm6 = vcmask 387328  }
 0x588   : > { %v1336_v31 = vrot.slane %v1335_v44, 1  ;;  %2081 = vmatpush2.msra.mxu1 %v1953_v39 }
 0x589   : > { %v1349_v46 = vsel %vm1348_vm7, %v1346_v41, %v1347_v45  ;;  %vm2788_vm7 = vcmask 518528  }
 0x58a   : > { %v1338_v47 = vsel %vm1337_vm8, %v1335_v44, %v1336_v31  ;;  %1352 = vst.msk [vmem:[#allocation4 + $0x2] ss:$8 sm:$0x3] %vm5144_vm14, %v1349_v46  ;;  %v1368_v48 = vpop.permute.xlu1 %1367  ;;  %v2381_v46 = vld [vmem:[%s4490_s15 + $0xf8] sm:$0xff]  ;;  %vm2852_vm8 = vcmask 649728  }
 0x58b   : > { %1341 = vst.msk [vmem:[#allocation4 + $0x1] ss:$8 sm:$0x3] %vm5144_vm14, %v1338_v47  ;;  %v1357_v49 = vpop.permute.xlu0 %1356  ;;  %v1369_v50 = vrot.slane %v1368_v48, 1  ;;  %v2365_v47 = vld [vmem:[%s4490_s15 + $0x78] sm:$0xff] }
 0x58c   : > { %v1358_v53 = vrot.slane %v1357_v49, 1 }
 0x58d   : > { %v1371_v30 = vsel %vm1370_vm9, %v1368_v48, %v1369_v50  ;;  %v2380_v48 = vld [vmem:[%s4490_s15 + $0xf0] sm:$0xff]  ;;  %v2379_v50 = vld [vmem:[%s4490_s15 + $0xe8] sm:$0xff]  ;;  %vm2908_vm9 = vcmask 780928  }
 0x58e   : > { %v1360_v52 = vsel %vm1359_vm10, %v1357_v49, %v1358_v53  ;;  %1374 = vst.msk [vmem:[#allocation4 + $0x4] ss:$8 sm:$0x3] %vm5144_vm14, %v1371_v30  ;;  %v1812_v34 = vld [vmem:[#allocation4 + $0x18] sm:$0xff]  ;;  %v1811_v54 = vld [vmem:[#allocation4 + $0x10] sm:$0xff]  ;;  %v1390_v38 = vpop.permute.xlu1 %1389  ;;  %vm2964_vm10 = vcmask 912128  }
 0x58f   : > { %1363 = vst.msk [vmem:[#allocation4 + $0x3] ss:$8 sm:$0x3] %vm5144_vm14, %v1360_v52  ;;  %v1379_v55 = vpop.permute.xlu0 %1378  ;;  %1856 = vmatprep.subr.mxu0 %v1812_v34  ;;  %v1391_v40 = vrot.slane %v1390_v38, 1  ;;  %v2364_v49 = vld [vmem:[%s4490_s15 + $0x70] sm:$0xff]  ;;  %v2363_v53 = vld [vmem:[%s4490_s15 + $0x68] sm:$0xff] }
 0x590   : > { %v1380_v56 = vrot.slane %v1379_v55, 1  ;;  %1857 = vmatpush1.msra.mxu0 %v1811_v54  ;;  %v2397_v30 = vld [vmem:[%s4490_s15 + $0x178] sm:$0xff]  ;;  %v2378_v52 = vld [vmem:[%s4490_s15 + $0xe0] sm:$0xff]  ;;  %v2396_v54 = vld [vmem:[%s4490_s15 + $0x170] sm:$0xff] }
 0x591   : > { %v1393_v51 = vsel %vm1392_vm11, %v1390_v38, %v1391_v40  ;;  %4162 = vmatprep.subr.mxu1 %v2397_v30  ;;  %v2362_v34 = vld [vmem:[%s4490_s15 + $0x60] sm:$0xff]  ;;  %v2377_v38 = vld [vmem:[%s4490_s15 + $0xd8] sm:$0xff]  ;;  %v2395_v40 = vld [vmem:[%s4490_s15 + $0x168] sm:$0xff]  ;;  %vm3020_vm11 = vcmask 1043328  }
 0x592   : > { %v1382_v1 = vsel %vm1381_vm12, %v1379_v55, %v1380_v56  ;;  %1396 = vst.msk [vmem:[#allocation4 + $0x6] ss:$8 sm:$0x3] %vm5144_vm14, %v1393_v51  ;;  %v2361_v55 = vld [vmem:[%s4490_s15 + $0x58] sm:$0xff]  ;;  %v2376_v56 = vld [vmem:[%s4490_s15 + $0xd0] sm:$0xff] }
 0x593   : > { %1385 = vst.msk [vmem:[#allocation4 + $0x5] ss:$8 sm:$0x3] %vm5144_vm14, %v1382_v1  ;;  %v1401_v57 = vpop.permute.xlu0 %1400  ;;  %v2360_v51 = vld [vmem:[%s4490_s15 + $0x50] sm:$0xff]  ;;  %v2394_v1 = vld [vmem:[%s4490_s15 + $0x160] sm:$0xff] }
 0x594   : > { %v1402_v58 = vrot.slane %v1401_v57, 1 }
 0x596   : > { %v1404_v63 = vsel %vm1403_vm13, %v1401_v57, %v1402_v58  ;;  %v2375_v57 = vld [vmem:[%s4490_s15 + $0xc8] sm:$0xff] }
 0x597   : > { %1407 = vst.msk [vmem:[#allocation4 + $0x7] ss:$8 sm:$0x3] %vm5144_vm14, %v1404_v63  ;;  %v2359_v58 = vld [vmem:[%s4490_s15 + $0x48] sm:$0xff]  ;;  %v2393_v63 = vld [vmem:[%s4490_s15 + $0x158] sm:$0xff]  ;;  %vm2573_vm14 = vcmask 31744  }
 0x59e   : > { %v1810_v61 = vld [vmem:[#allocation4 + $0x8] sm:$0xff]  ;;  %v1809_v62 = vld [vmem:[#allocation4] sm:$0xff] }
 0x59f   : > { %1858 = vmatprep.subr.mxu0 %v1810_v61  ;;  %v2358_v61 = vld [vmem:[%s4490_s15 + $0x40] sm:$0xff] }
 0x5a0   : > { %1859 = vmatpush1.msra.mxu0 %v1809_v62  ;;  %v2392_v62 = vld [vmem:[%s4490_s15 + $0x150] sm:$0xff] }
 0x5a1   : > { %3951 = vmatmul.mubr.msk.f32.vlgmr.msra.gmra.mxu0 %vm1821_vm15, %v1807_v60  ;;  %3963 = vmatprep.subr.mxu0 %v2000_v6  ;;  %v2374_v60 = vld [vmem:[%s4490_s15 + $0xc0] sm:$0xff]  ;;  %v2373_v6 = vld [vmem:[%s4490_s15 + $0xb8] sm:$0xff] }
 0x5a2   : > { %1898 = vmatprep.mubr.f32.mxu0 %v4370_v42  ;;  %3964 = vmatpush3.msra.mxu0 %v1952_v4  ;;  %v1940_v42 = vld [vmem:[%s4479_s27 + $0x118] sm:$0xff]  ;;  %s4384_s27 = smov 32  }
 0x5a3   : > { %3965 = vmatprep.subr.mxu0 %v1997_v10  ;;  %v2357_v4 = vld [vmem:[%s4490_s15 + $0x38] sm:$0xff]  ;;  %v2391_v10 = vld [vmem:[%s4490_s15 + $0x148] sm:$0xff] }
 0x5a4   : > { %3966 = vmatpush3.msra.mxu0 %v1949_v13  ;;  %v2372_v13 = vld [vmem:[%s4490_s15 + $0xb0] sm:$0xff] }
 0x5a5   : > { %3952 = vmatmul.mubr.msk.f32.gmra.mxu0 %vm1821_vm15, %v1808_v12  ;;  %3967 = vmatprep.subr.mxu0 %v1994_v14  ;;  %v2356_v12 = vld [vmem:[%s4490_s15 + $0x30] sm:$0xff]  ;;  %v2390_v14 = vld [vmem:[%s4490_s15 + $0x140] sm:$0xff] }
 0x5a6   : > { %3968 = vmatpush3.msra.mxu0 %v1946_v43  ;;  %v2371_v43 = vld [vmem:[%s4490_s15 + $0xa8] sm:$0xff] }
 0x5a7   : > { %3969 = vmatprep.subr.mxu0 %v1991_v15  ;;  %v2355_v15 = vld [vmem:[%s4490_s15 + $0x28] sm:$0xff] }
 0x5a8   : > { %3970 = vmatpush3.msra.mxu0 %v1943_v16  ;;  %v2389_v16 = vld [vmem:[%s4490_s15 + $0x138] sm:$0xff] }
 0x5a9   : > { %3971 = vmatprep.subr.mxu0 %v1988_v59  ;;  %v2370_v59 = vld [vmem:[%s4490_s15 + $0xa0] sm:$0xff] }
 0x5aa   : > { %3972 = vmatpush3.msra.mxu0 %v1940_v42  ;;  %v2354_v42 = vld [vmem:[%s4490_s15 + $0x20] sm:$0xff] }
 0x5ab   : > { %3973 = vmatprep.subr.mxu0 %v1985_v17  ;;  %v2388_v17 = vld [vmem:[%s4490_s15 + $0x130] sm:$0xff] }
 0x5ac   : > { %3974 = vmatpush3.msra.mxu0 %v1937_v8  ;;  %v2369_v8 = vld [vmem:[%s4490_s15 + $0x98] sm:$0xff] }
 0x5ad   : > { %3975 = vmatprep.subr.mxu0 %v1982_v18  ;;  %v2353_v18 = vld [vmem:[%s4490_s15 + $0x18] sm:$0xff] }
 0x5ae   : > { %3976 = vmatpush3.msra.mxu0 %v1934_v19  ;;  %v2387_v19 = vld [vmem:[%s4490_s15 + $0x128] sm:$0xff] }
 0x5af   : > { %3977 = vmatprep.subr.mxu0 %v1979_v9  ;;  %v2368_v9 = vld [vmem:[%s4490_s15 + $0x90] sm:$0xff] }
 0x5b0   : > { %3978 = vmatpush3.msra.mxu0 %v1931_v20  ;;  %v2352_v20 = vld [vmem:[%s4490_s15 + $0x10] sm:$0xff] }
 0x5b1   : > { %3979 = vmatprep.subr.mxu0 %v1976_v21  ;;  %v2386_v21 = vld [vmem:[%s4490_s15 + $0x120] sm:$0xff] }
 0x5b2   : > { %3980 = vmatpush3.msra.mxu0 %v1928_v22  ;;  %v2367_v22 = vld [vmem:[%s4490_s15 + $0x88] sm:$0xff] }
 0x5b3   : > { %3981 = vmatprep.subr.mxu0 %v1973_v23  ;;  %v2351_v23 = vld [vmem:[%s4490_s15 + $0x8] sm:$0xff] }
 0x5b4   : > { %3982 = vmatpush3.msra.mxu0 %v1925_v24  ;;  %v2385_v24 = vld [vmem:[%s4490_s15 + $0x118] sm:$0xff] }
 0x5b5   : > { %3983 = vmatprep.subr.mxu0 %v1970_v7  ;;  %v2366_v7 = vld [vmem:[%s4490_s15 + $0x80] sm:$0xff] }
 0x5b6   : > { %3984 = vmatpush3.msra.mxu0 %v1922_v25  ;;  %v2350_v25 = vld [vmem:[%s4490_s15] sm:$0xff] }
 0x5b7   : > { %3985 = vmatprep.subr.mxu0 %v1967_v0  ;;  %v2384_v0 = vld [vmem:[%s4490_s15 + $0x110] sm:$0xff] }
 0x5b8   : > { %3986 = vmatpush3.msra.mxu0 %v1919_v11  ;;  %v2383_v11 = vld [vmem:[%s4490_s15 + $0x108] sm:$0xff] }
 0x5b9   : > { %3987 = vmatprep.subr.mxu0 %v1964_v26  ;;  %v2382_v26 = vld [vmem:[%s4490_s15 + $0x100] sm:$0xff]  ;;  %s6603_s15 = scalar_lea.vmem %s6566_s4, %s4468_s19  ;;  %s4372_s19 = smov 4  }
 0x5ba   : > { %3988 = vmatpush3.msra.mxu0 %v1916_v3  ;;  %v5469_v3 = vshrl.u32 %v1326_v5, 7 }
 0x5bb   : > { %3989 = vmatprep.subr.mxu0 %v1961_v28 }
 0x5bc   : > { %3990 = vmatpush3.msra.mxu0 %v1913_v27  ;;  %6602 = vst [vmem:[#allocation8_spill] sm:$0xff] %v5469_v3  ;;  %v6581_v28 = vsub.s32 0, %v5469_v3  ;;  %v2001_v27 = vld [vmem:[%s4485_s12] sm:$0x7]  ;;  %v6580_v29 = vsub.s32 1, %v5469_v3  ;;  %v6579_v33 = vsub.s32 2, %v5469_v3 }
 0x5bd   : > { %3991 = vmatprep.subr.mxu0 %v1958_v32  ;;  %s4385_s12 = smov 48  }
 0x5be   : > { %3992 = vmatpush3.msra.mxu0 %v1910_v35  ;;  %v2006_v32 = vrot.slane %v2001_v27, %v6581_v28  ;;  %v2010_v35 = vrot.slane %v2001_v27, %v6580_v29  ;;  %v2014_v5 = vrot.slane %v2001_v27, %v6579_v33 }
 0x5bf   : > { %3993 = vmatprep.subr.mxu0 %v1955_v37 }
 0x5c0   : > { %3994 = vmatpush3.msra.mxu0 %v1907_v2 }
 0x5c1   : > { %4001 = vmatprep.subr.mxu0 %v2381_v46 }
 0x661   : > { %v1894_v41 = vpop.f32.mrf.mxu0 }
 0x663   : > { %v1896_v44 = vpop.f32.mrf.mxu0 }
 0x664   : > { %2082 = vmatprep.mubr.f32.mxu1 %v1896_v44  ;;  %2159 = vmatprep.mubr.f32.mxu0 %v1896_v44 }
 0x665   : > { %v1900_v45 = vpop.f32.mrf.mxu0  ;;  %2083 = vmatmul.mubr.f32.vlgmr.msra.gmra.mxu1 %v1894_v41  ;;  %2160 = vmatmul.mubr.f32.vlgmr.msra.gmra.mxu0 %v1894_v41 }
 0x666   : > { %4002 = vmatpush3.msra.mxu0 %v2365_v47  ;;  %4163 = vmatpush3.msra.mxu1 %v2397_v30 }
 0x667   : > { %v1902_v31 = vpop.f32.mrf.mxu0  ;;  %4003 = vmatprep.subr.mxu0 %v2380_v48  ;;  %4164 = vmatprep.subr.mxu1 %v2396_v54 }
 0x668   : > { %2088 = vmatprep.mubr.f32.mxu1 %v1902_v31  ;;  %2164 = vmatprep.mubr.f32.mxu0 %v1902_v31 }
 0x669   : > { %2089 = vmatmul.mubr.f32.gmra.mxu1 %v1900_v45  ;;  %2165 = vmatmul.mubr.f32.gmra.mxu0 %v1900_v45 }
 0x66a   : > { %4004 = vmatpush3.msra.mxu0 %v2364_v49  ;;  %4165 = vmatpush3.msra.mxu1 %v2396_v54 }
 0x66b   : > { %4005 = vmatprep.subr.mxu0 %v2379_v50  ;;  %4166 = vmatprep.subr.mxu1 %v2395_v40 }
 0x66c   : > { %4006 = vmatpush3.msra.mxu0 %v2363_v53  ;;  %4167 = vmatpush3.msra.mxu1 %v2395_v40 }
 0x66d   : > { %4007 = vmatprep.subr.mxu0 %v2378_v52  ;;  %4168 = vmatprep.subr.mxu1 %v2394_v1 }
 0x66e   : > { %4008 = vmatpush3.msra.mxu0 %v2362_v34  ;;  %4169 = vmatpush3.msra.mxu1 %v2394_v1 }
 0x66f   : > { %4009 = vmatprep.subr.mxu0 %v2377_v38  ;;  %4170 = vmatprep.subr.mxu1 %v2393_v63 }
 0x670   : > { %4010 = vmatpush3.msra.mxu0 %v2361_v55  ;;  %4171 = vmatpush3.msra.mxu1 %v2393_v63 }
 0x671   : > { %4011 = vmatprep.subr.mxu0 %v2376_v56  ;;  %4172 = vmatprep.subr.mxu1 %v2392_v62 }
 0x672   : > { %4012 = vmatpush3.msra.mxu0 %v2360_v51  ;;  %4173 = vmatpush3.msra.mxu1 %v2392_v62 }
 0x673   : > { %4013 = vmatprep.subr.mxu0 %v2375_v57  ;;  %4174 = vmatprep.subr.mxu1 %v2391_v10 }
 0x674   : > { %4014 = vmatpush3.msra.mxu0 %v2359_v58  ;;  %4175 = vmatpush3.msra.mxu1 %v2391_v10 }
 0x675   : > { %4015 = vmatprep.subr.mxu0 %v2374_v60  ;;  %4176 = vmatprep.subr.mxu1 %v2390_v14 }
 0x676   : > { %4016 = vmatpush3.msra.mxu0 %v2358_v61  ;;  %4177 = vmatpush3.msra.mxu1 %v2390_v14 }
 0x677   : > { %4017 = vmatprep.subr.mxu0 %v2373_v6  ;;  %4178 = vmatprep.subr.mxu1 %v2389_v16 }
 0x678   : > { %4018 = vmatpush3.msra.mxu0 %v2357_v4  ;;  %4179 = vmatpush3.msra.mxu1 %v2389_v16 }
 0x679   : > { %4019 = vmatprep.subr.mxu0 %v2372_v13  ;;  %4180 = vmatprep.subr.mxu1 %v2388_v17 }
 0x67a   : > { %4020 = vmatpush3.msra.mxu0 %v2356_v12  ;;  %4181 = vmatpush3.msra.mxu1 %v2388_v17 }
 0x67b   : > { %4021 = vmatprep.subr.mxu0 %v2371_v43  ;;  %4182 = vmatprep.subr.mxu1 %v2387_v19 }
 0x67c   : > { %4022 = vmatpush3.msra.mxu0 %v2355_v15  ;;  %4183 = vmatpush3.msra.mxu1 %v2387_v19 }
 0x67d   : > { %4023 = vmatprep.subr.mxu0 %v2370_v59  ;;  %4184 = vmatprep.subr.mxu1 %v2386_v21 }
 0x67e   : > { %4024 = vmatpush3.msra.mxu0 %v2354_v42  ;;  %4185 = vmatpush3.msra.mxu1 %v2386_v21 }
 0x67f   : > { %4025 = vmatprep.subr.mxu0 %v2369_v8  ;;  %4186 = vmatprep.subr.mxu1 %v2385_v24 }
 0x680   : > { %4026 = vmatpush3.msra.mxu0 %v2353_v18  ;;  %4187 = vmatpush3.msra.mxu1 %v2385_v24 }
 0x681   : > { %4027 = vmatprep.subr.mxu0 %v2368_v9  ;;  %4188 = vmatprep.subr.mxu1 %v2384_v0 }
 0x682   : > { %4028 = vmatpush3.msra.mxu0 %v2352_v20  ;;  %4189 = vmatpush3.msra.mxu1 %v2384_v0 }
 0x683   : > { %4029 = vmatprep.subr.mxu0 %v2367_v22  ;;  %4190 = vmatprep.subr.mxu1 %v2383_v11 }
 0x684   : > { %4030 = vmatpush3.msra.mxu0 %v2351_v23  ;;  %4191 = vmatpush3.msra.mxu1 %v2383_v11 }
 0x685   : > { %4031 = vmatprep.subr.mxu0 %v2366_v7  ;;  %4192 = vmatprep.subr.mxu1 %v2382_v26 }
 0x686   : > { %4032 = vmatpush3.msra.mxu0 %v2350_v25  ;;  %4193 = vmatpush3.msra.mxu1 %v2382_v26 }
 0x725   : > { %v2084_v36 = vpop.f32.mrf.mxu1  ;;  %v3995_v37 = vpop.f32.mrf.mxu0 }
 0x726   : > { %v5479_v39 = vadd.f32 %v2084_v36, %v2006_v32 }
 0x727   : > { %v2086_v2 = vpop.f32.mrf.mxu1  ;;  %v3996_v41 = vpop.f32.mrf.mxu0 }
 0x728   : > { %v2176_v44 = vmul.f32 0.70710677, %v5479_v39  ;;  %v5484_v45 = vadd.f32 %v2086_v2, %v2010_v35  ;;  %v3997_v31 = vadd.f32 %v3996_v41, %v3995_v37 }
 0x729   : > { %v2090_v46 = vpop.f32.mrf.mxu1  ;;  %v3998_v47 = vpop.f32.mrf.mxu0 }
 0x72a   : > { %v5486_v48 = vclamps-f32 %v2176_v44, 4.0  ;;  %v2177_v49 = vmul.f32 0.70710677, %v5484_v45  ;;  %v5489_v50 = vadd.f32 %v3997_v31, %v2014_v5  ;;  %v5491_v53 = vadd.f32 %v2090_v46, %v2006_v32 }
 0x72b   : > { %v2092_v30 = vpop.f32.mrf.mxu1  ;;  %v3999_v52 = vpop.f32.mrf.mxu0 }
 0x72c   : > { %v5495_v34 = vmul.f32 %v5486_v48, %v5486_v48  ;;  %v5497_v54 = vclamps-f32 %v2177_v49, 4.0  ;;  %v2178_v38 = vmul.f32 0.70710677, %v5489_v50  ;;  %v2179_v55 = vmul.f32 0.70710677, %v5491_v53 }
 0x72d   : > { %v5501_v40 = vadd.f32 %v2092_v30, %v2010_v35  ;;  %v4000_v56 = vadd.f32 %v3999_v52, %v3998_v47 }
 0x72e   : > { %v2200_v51 = vmul.f32 -2.7261424e-10, %v5495_v34  ;;  %v2278_v1 = vmul.f32 -1.45660715e-05, %v5495_v34  ;;  %v5507_v57 = vmul.f32 %v5497_v54, %v5497_v54  ;;  %v5509_v58 = vclamps-f32 %v2178_v38, 4.0 }
 0x72f   : > { %v5511_v63 = vclamps-f32 %v2179_v55, 4.0  ;;  %v2180_v60 = vmul.f32 0.70710677, %v5501_v40  ;;  %v5514_v61 = vadd.f32 %v4000_v56, %v2014_v5 }
 0x730   : > { %v2206_v62 = vadd.f32 2.7706815e-08, %v2200_v51  ;;  %v2284_v6 = vadd.f32 -0.00021337405, %v2278_v1  ;;  %v2201_v4 = vmul.f32 -2.7261424e-10, %v5507_v57  ;;  %v5519_v10 = vmul.f32 %v5509_v58, %v5509_v58 }
 0x731   : > { %v5523_v13 = vmul.f32 %v5511_v63, %v5511_v63  ;;  %v5525_v12 = vclamps-f32 %v2180_v60, 4.0  ;;  %v2181_v14 = vmul.f32 0.70710677, %v5514_v61  ;;  %v2279_v32 = vmul.f32 -1.45660715e-05, %v5507_v57 }
 0x732   : > { %v2212_v43 = vmul.f32 %v2206_v62, %v5495_v34  ;;  %v2290_v15 = vmul.f32 %v2284_v6, %v5495_v34  ;;  %v2207_v16 = vadd.f32 2.7706815e-08, %v2201_v4  ;;  %v2202_v59 = vmul.f32 -2.7261424e-10, %v5519_v10 }
 0x733   : > { %v5533_v42 = vmul.f32 %v5525_v12, %v5525_v12  ;;  %v5535_v17 = vclamps-f32 %v2181_v14, 4.0  ;;  %v2203_v9 = vmul.f32 -2.7261424e-10, %v5523_v13  ;;  %v2285_v47 = vadd.f32 -0.00021337405, %v2279_v32 }
 0x734   : > { %v2218_v8 = vadd.f32 -2.101024e-06, %v2212_v43  ;;  %v2296_v18 = vadd.f32 -0.001682827, %v2290_v15  ;;  %v2213_v19 = vmul.f32 %v2207_v16, %v5507_v57  ;;  %v2208_v7 = vadd.f32 2.7706815e-08, %v2202_v59 }
 0x735   : > { %v2204_v20 = vmul.f32 -2.7261424e-10, %v5533_v42  ;;  %v5542_v21 = vmul.f32 %v5535_v17, %v5535_v17  ;;  %v2209_v26 = vadd.f32 2.7706815e-08, %v2203_v9  ;;  %v2291_v62 = vmul.f32 %v2285_v47, %v5507_v57 }
 0x736   : > { %v2224_v22 = vmul.f32 %v2218_v8, %v5495_v34  ;;  %v2219_v23 = vadd.f32 -2.101024e-06, %v2213_v19  ;;  %v2302_v24 = vmul.f32 %v2296_v18, %v5495_v34  ;;  %v2214_v2 = vmul.f32 %v2208_v7, %v5519_v10 }
 0x737   : > { %v2205_v25 = vmul.f32 -2.7261424e-10, %v5542_v21  ;;  %v2283_v0 = vmul.f32 -1.45660715e-05, %v5542_v21  ;;  %v2210_v27 = vadd.f32 2.7706815e-08, %v2204_v20  ;;  %v2215_v46 = vmul.f32 %v2209_v26, %v5523_v13 }
 0x738   : > { %v2225_v11 = vmul.f32 %v2219_v23, %v5507_v57  ;;  %v2230_v35 = vadd.f32 -5.6925062e-05, %v2224_v22  ;;  %v2308_v5 = vadd.f32 -0.0073733293, %v2302_v24  ;;  %v2220_v56 = vadd.f32 -2.101024e-06, %v2214_v2 }
 0x739   : > { %v2211_v36 = vadd.f32 2.7706815e-08, %v2205_v25  ;;  %v2289_v37 = vadd.f32 -0.00021337405, %v2283_v0  ;;  %v2216_v30 = vmul.f32 %v2210_v27, %v5533_v42  ;;  %v2221_v60 = vadd.f32 -2.101024e-06, %v2215_v46 }
 0x73a   : > { %v2231_v31 = vadd.f32 -5.6925062e-05, %v2225_v11  ;;  %v2236_v49 = vmul.f32 %v2230_v35, %v5495_v34  ;;  %v2314_v55 = vmul.f32 %v2308_v5, %v5495_v34  ;;  %v2297_v43 = vadd.f32 -0.001682827, %v2291_v62 }
 0x73b   : > { %v2217_v41 = vmul.f32 %v2211_v36, %v5542_v21  ;;  %v2295_v44 = vmul.f32 %v2289_v37, %v5542_v21  ;;  %v2222_v4 = vadd.f32 -2.101024e-06, %v2216_v30  ;;  %v2226_v16 = vmul.f32 %v2220_v56, %v5519_v10 }
 0x73c   : > { %v2237_v1 = vmul.f32 %v2231_v31, %v5507_v57  ;;  %v2242_v6 = vadd.f32 -0.00073499064, %v2236_v49  ;;  %v2320_v15 = vadd.f32 -0.014264739, %v2314_v55  ;;  %v2227_v18 = vmul.f32 %v2221_v60, %v5523_v13 }
 0x73d   : > { %v2223_v52 = vadd.f32 -2.101024e-06, %v2217_v41  ;;  %v2301_v38 = vadd.f32 -0.001682827, %v2295_v44  ;;  %v2303_v19 = vmul.f32 %v2297_v43, %v5507_v57  ;;  %v2228_v20 = vmul.f32 %v2222_v4, %v5533_v42 }
 0x73e   : > { %v2243_v8 = vadd.f32 -0.00073499064, %v2237_v1  ;;  %v2248_v9 = vmul.f32 %v2242_v6, %v5495_v34  ;;  %4279 = vrcp.f32 %v2320_v15  ;;  %v2232_v24 = vadd.f32 -5.6925062e-05, %v2226_v16 }
 0x73f   : > { %v2229_v51 = vmul.f32 %v2223_v52, %v5542_v21  ;;  %v2307_v14 = vmul.f32 %v2301_v38, %v5542_v21  ;;  %v2309_v23 = vadd.f32 -0.0073733293, %v2303_v19  ;;  %v2233_v0 = vadd.f32 -5.6925062e-05, %v2227_v18 }
 0x740   : > { %v2249_v25 = vmul.f32 %v2243_v8, %v5507_v57  ;;  %v2280_v26 = vmul.f32 -1.45660715e-05, %v5519_v10  ;;  %v2254_v27 = vadd.f32 -0.0029546, %v2248_v9  ;;  %v2234_v32 = vadd.f32 -5.6925062e-05, %v2228_v20 }
 0x741   : > { %v2235_v59 = vadd.f32 -5.6925062e-05, %v2229_v51  ;;  %v2313_v22 = vadd.f32 -0.0073733293, %v2307_v14  ;;  %v2315_v11 = vmul.f32 %v2309_v23, %v5507_v57  ;;  %v2282_v36 = vmul.f32 -1.45660715e-05, %v5533_v42 }
 0x742   : > { %v2286_v5 = vadd.f32 -0.00021337405, %v2280_v26  ;;  %v2281_v2 = vmul.f32 -1.45660715e-05, %v5523_v13  ;;  %v2238_v41 = vmul.f32 %v2232_v24, %v5519_v10  ;;  %v2255_v46 = vadd.f32 -0.0029546, %v2249_v25 }
 0x743   : > { %v2241_v7 = vmul.f32 %v2235_v59, %v5542_v21  ;;  %v2319_v35 = vmul.f32 %v2313_v22, %v5542_v21  ;;  %v2321_v37 = vadd.f32 -0.014264739, %v2315_v11  ;;  %v2288_v31 = vadd.f32 -0.00021337405, %v2282_v36 }
 0x744   : > { %v2292_v47 = vmul.f32 %v2286_v5, %v5519_v10  ;;  %v2287_v49 = vadd.f32 -0.00021337405, %v2281_v2  ;;  %v2260_v30 = vmul.f32 %v2254_v27, %v5495_v34  ;;  %v2240_v52 = vmul.f32 %v2234_v32, %v5533_v42 }
 0x745   : > { %v2247_v44 = vadd.f32 -0.00073499064, %v2241_v7  ;;  %4281 = vrcp.f32 %v2321_v37  ;;  %v2325_v38 = vadd.f32 -0.014264739, %v2319_v35  ;;  %v2294_v55 = vmul.f32 %v2288_v31, %v5533_v42 }
 0x746   : > { %v2239_v56 = vmul.f32 %v2233_v0, %v5523_v13  ;;  %v2298_v51 = vadd.f32 -0.001682827, %v2292_v47  ;;  %v2293_v1 = vmul.f32 %v2287_v49, %v5523_v13  ;;  %v2261_v6 = vmul.f32 %v2255_v46, %v5507_v57 }
 0x747   : > { %v2253_v60 = vmul.f32 %v2247_v44, %v5542_v21  ;;  %v2300_v62 = vadd.f32 -0.001682827, %v2294_v55  ;;  %v2244_v4 = vadd.f32 -0.00073499064, %v2238_v41  ;;  %v2266_v34 = vadd.f32 -0.016096033, %v2260_v30 }
 0x748   : > { %v2304_v14 = vmul.f32 %v2298_v51, %v5519_v10  ;;  %v2299_v43 = vadd.f32 -0.001682827, %v2293_v1  ;;  %v2246_v15 = vadd.f32 -0.00073499064, %v2240_v52  ;;  %4283 = vrcp.f32 %v2325_v38 }
 0x749   : > { %v2306_v16 = vmul.f32 %v2300_v62, %v5533_v42  ;;  %v2245_v59 = vadd.f32 -0.00073499064, %v2239_v56  ;;  %v2259_v19 = vadd.f32 -0.0029546, %v2253_v60  ;;  %v2267_v22 = vadd.f32 -0.016096033, %v2261_v6 }
 0x74a   : > { %v2310_v8 = vadd.f32 -0.0073733293, %v2304_v14  ;;  %v2305_v18 = vmul.f32 %v2299_v43, %v5523_v13  ;;  %v2250_v23 = vmul.f32 %v2244_v4, %v5519_v10  ;;  %v2272_v7 = vmul.f32 %v5486_v48, %v2266_v34 }
 0x74b   : > { %v2312_v9 = vadd.f32 -0.0073733293, %v2306_v16  ;;  %v4280_v20 = vpop.eup %4279  ;;  %v2252_v25 = vmul.f32 %v2246_v15, %v5533_v42  ;;  %v2251_v11 = vmul.f32 %v2245_v59, %v5523_v13  ;;  %v2265_v35 = vmul.f32 %v2259_v19, %v5542_v21 }
 0x74c   : > { %v2316_v57 = vmul.f32 %v2310_v8, %v5519_v10  ;;  %v2311_v24 = vadd.f32 -0.0073733293, %v2305_v18  ;;  %v2327_v32 = vmul.f32 %v4280_v20, %v2272_v7  ;;  %v2273_v37 = vmul.f32 %v5497_v54, %v2267_v22 }
 0x74d   : > { %v2318_v0 = vmul.f32 %v2312_v9, %v5533_v42  ;;  %v2256_v5 = vadd.f32 -0.0029546, %v2250_v23  ;;  %v2258_v48 = vadd.f32 -0.0029546, %v2252_v25  ;;  %v2257_v44 = vadd.f32 -0.0029546, %v2251_v11 }
 0x74e   : > { %v2322_v26 = vadd.f32 -0.014264739, %v2316_v57  ;;  %v2317_v27 = vmul.f32 %v2311_v24, %v5523_v13  ;;  %v2338_v46 = vadd.f32 1.0, %v2327_v32  ;;  %v2271_v47 = vadd.f32 -0.016096033, %v2265_v35 }
 0x74f   : > { %v2324_v36 = vadd.f32 -0.014264739, %v2318_v0  ;;  %v2171_v49 = vmul.f32 0.5, %v5484_v45  ;;  %v2262_v30 = vmul.f32 %v2256_v5, %v5519_v10  ;;  %v2170_v21 = vmul.f32 0.5, %v5479_v39 }
 0x750   : > { %4285 = vrcp.f32 %v2322_v26  ;;  %v2323_v2 = vadd.f32 -0.014264739, %v2317_v27  ;;  %v2264_v54 = vmul.f32 %v2258_v48, %v5533_v42  ;;  %v2263_v55 = vmul.f32 %v2257_v44, %v5523_v13 }
 0x751   : > { %4287 = vrcp.f32 %v2324_v36  ;;  %v2344_v51 = vmul.f32 %v2338_v46, %v2170_v21  ;;  %v2277_v1 = vmul.f32 %v5535_v17, %v2271_v47  ;;  %v2268_v60 = vadd.f32 -0.016096033, %v2262_v30 }
 0x752   : > { %v4282_v41 = vpop.eup %4281  ;;  %4289 = vrcp.f32 %v2323_v2  ;;  %v2270_v62 = vadd.f32 -0.016096033, %v2264_v54  ;;  %v2269_v45 = vadd.f32 -0.016096033, %v2263_v55  ;;  %v2175_v15 = vmul.f32 0.5, %v5514_v61 }
 0x753   : > { %v2329_v31 = vmul.f32 %v4282_v41, %v2273_v37  ;;  %v2274_v10 = vmul.f32 %v5509_v58, %v2268_v60  ;;  %v2172_v16 = vmul.f32 0.5, %v5489_v50  ;;  %v2174_v18 = vmul.f32 0.5, %v5501_v40  ;;  %v3959_v40 = vld [vmem:[%s6603_s15] ss:$0 sm:$0xff]  ;;  %s4386_s15 = smov 64  }
 0x754   : > { %v2276_v39 = vmul.f32 %v5525_v12, %v2270_v62  ;;  %v2275_v43 = vmul.f32 %v5511_v63, %v2269_v45  ;;  %v2173_v12 = vmul.f32 0.5, %v5491_v53 }
 0x755   : > { %v2339_v52 = vadd.f32 1.0, %v2329_v31  ;;  %v4284_v38 = vpop.eup %4283 }
 0x756   : > { %v2337_v6 = vmul.f32 %v4284_v38, %v2277_v1 }
 0x757   : > { %v2345_v56 = vmul.f32 %v2339_v52, %v2171_v49 }
 0x758   : > { %v2343_v14 = vadd.f32 1.0, %v2337_v6 }
 0x759   : > { %2469 = vmatprep.mubr.f32.mxu0 %v2345_v56 }
 0x75a   : > { %2470 = vmatmul.mubr.f32.vlgmr.msra.gmra.mxu0 %v2344_v51  ;;  %v2349_v58 = vmul.f32 %v2343_v14, %v2175_v15 }
 0x75d   : > { %v4286_v4 = vpop.eup %4285 }
 0x75e   : > { %v4288_v42 = vpop.eup %4287  ;;  %v2331_v13 = vmul.f32 %v4286_v4, %v2274_v10 }
 0x75f   : > { %v4290_v34 = vpop.eup %4289  ;;  %v2335_v17 = vmul.f32 %v4288_v42, %v2276_v39 }
 0x760   : > { %v2340_v59 = vadd.f32 1.0, %v2331_v13  ;;  %v2333_v8 = vmul.f32 %v4290_v34, %v2275_v43 }
 0x761   : > { %v2342_v19 = vadd.f32 1.0, %v2335_v17 }
 0x762   : > { %v2346_v9 = vmul.f32 %v2340_v59, %v2172_v16  ;;  %v2341_v20 = vadd.f32 1.0, %v2333_v8 }
 0x763   : > { %v2348_v22 = vmul.f32 %v2342_v19, %v2174_v18 }
 0x764   : > { %4194 = vmatprep.mubr.f32.mxu1 %v2346_v9  ;;  %v2347_v63 = vmul.f32 %v2341_v20, %v2173_v12 }
 0x765   : > { %2474 = vmatprep.mubr.f32.mxu0 %v2348_v22  ;;  %4195 = vmatmul.mubr.f32.vlgmr.msra.gmra.mxu1 %v2349_v58 }
 0x766   : > { %2475 = vmatmul.mubr.f32.gmra.mxu0 %v2347_v63 }
 0x81a   : > { %v4033_v61 = vpop.f32.mrf.mxu0 }
 0x81c   : > { %v4034_v23 = vpop.f32.mrf.mxu0 }
 0x81d   : > { %v4035_v50 = vadd.f32 %v4034_v23, %v4033_v61 }
 0x81f   : > { %v2472_v57 = vadd.f32 %v4035_v50, %v3959_v40 }
 0x825   : > { %v4196_v24 = vpop.f32.mrf.mxu1 }
 0x826   : > { %v4036_v7 = vpop.f32.mrf.mxu0 }
 0x827   : > { %v2546_v53 = vpop.f32.mrf.mxu1 }
 0x828   : > { %v4037_v25 = vpop.f32.mrf.mxu0  ;;  %v2547_v0 = vadd.f32 %v2546_v53, %v2472_v57 }
 0x829   : > { %v4038_v11 = vadd.f32 %v4037_v25, %v4036_v7 }
 0x82a   : > { %2555 = vst.msk [vmem:[#allocation2] sm:$0xff] %vm1821_vm15, %v2547_v0 }
 0x82b   : > { %v2477_v26 = vadd.f32 %v4038_v11, %v3959_v40 }
 0x82d   : > { %v2552_v27 = vadd.f32 %v4196_v24, %v2477_v26 }
 0x82f   : > { %2556 = vst.msk [vmem:[#allocation2 + $0x8] sm:$0xff] %vm1821_vm15, %v2552_v27 }
 0x831   : > { %v5614_v32 = vld [vmem:[#allocation2 + $0x2] sm:$0x1]  ;;  %v5616_v35 = vld [vmem:[#allocation2 + $0x1] sm:$0x1]  ;;  %v5622_v36 = vld [vmem:[#allocation2 + $0x3] sm:$0x1] }
 0x832   : > { %2566 = vrot.lane.b32.xlu0 %v5614_v32, %s4371_s22  ;;  %2562 = vrot.lane.b32.xlu1 %v5616_v35, %s4372_s19  ;;  %6604 = vst [vmem:[#allocation9_spill] sm:$0xff] %v5622_v36  ;;  %v5624_v37 = vld [vmem:[#allocation2] sm:$0x1]  ;;  %v5706_v5 = vld [vmem:[#allocation2 + $0x6] sm:$0x1] }
 0x833   : > { %6605 = vst [vmem:[#allocation10_spill] sm:$0xff] %v5706_v5  ;;  %v5712_v2 = vld [vmem:[#allocation2 + $0x4] sm:$0x1]  ;;  %v5718_v41 = vld [vmem:[#allocation2 + $0x5] sm:$0x1] }
 0x834   : > { %6606 = vst [vmem:[#allocation11_spill] sm:$0xff] %v5712_v2  ;;  %6607 = vst [vmem:[#allocation12_spill] sm:$0xff] %v5718_v41  ;;  %v5724_v48 = vld [vmem:[#allocation2 + $0x7] sm:$0x1] }
 0x835   : > { %6608 = vst [vmem:[#allocation13_spill] sm:$0xff] %v5724_v48 }
 0x836   : > { %2570 = vrot.lane.b32.xlu1 %v5622_v36, %s4373_s29  ;;  %2580 = vrot.lane.b32.xlu0 %v5624_v37, %s4365_s26  ;;  %v5837_v61 = vld [vmem:[#allocation2 + $0xa] sm:$0x1]  ;;  %v5847_v40 = vld [vmem:[#allocation2 + $0x8] sm:$0x1] }
 0x837   : > { %6609 = vst [vmem:[#allocation14_spill] sm:$0xff] %v5837_v61 }
 0x83a   : > { %2583 = vrot.lane.b32.xlu1 %v5616_v35, %s4374_s11  ;;  %2586 = vrot.lane.b32.xlu0 %v5614_v32, %s4375_s13 }
 0x83e   : > { %2589 = vrot.lane.b32.xlu1 %v5622_v36, %s4376_s16  ;;  %2595 = vrot.lane.b32.xlu0 %v5624_v37, %s4356_s25 }
 0x842   : > { %2598 = vrot.lane.b32.xlu1 %v5616_v35, %s4377_s17  ;;  %2601 = vrot.lane.b32.xlu0 %v5614_v32, %s4378_s28 }
 0x846   : > { %2604 = vrot.lane.b32.xlu1 %v5622_v36, %s4379_s23  ;;  %2622 = vrot.lane.b32.xlu0 %v5624_v37, %s4376_s16 }
 0x84a   : > { %2625 = vrot.lane.b32.xlu1 %v5614_v32, %s4372_s19  ;;  %2628 = vrot.lane.b32.xlu0 %v5622_v36, %s4371_s22 }
 0x84e   : > { %2634 = vrot.lane.b32.xlu1 %v5624_v37, %s4379_s23  ;;  %2637 = vrot.lane.b32.xlu0 %v5616_v35, %s4365_s26 }
 0x852   : > { %2640 = vrot.lane.b32.xlu1 %v5614_v32, %s4374_s11  ;;  %2643 = vrot.lane.b32.xlu0 %v5622_v36, %s4375_s13 }
 0x856   : > { %2649 = vrot.lane.b32.xlu1 %v5624_v37, %s4380_s18  ;;  %2652 = vrot.lane.b32.xlu0 %v5616_v35, %s4356_s25 }
 0x85a   : > { %2655 = vrot.lane.b32.xlu1 %v5614_v32, %s4377_s17  ;;  %2658 = vrot.lane.b32.xlu0 %v5622_v36, %s4378_s28 }
 0x85e   : > { %2681 = vrot.lane.b32.xlu1 %v5616_v35, %s4376_s16  ;;  %2678 = vrot.lane.b32.xlu0 %v5624_v37, %s4375_s13 }
 0x862   : > { %2690 = vrot.lane.b32.xlu1 %v5624_v37, %s4378_s28  ;;  %2684 = vrot.lane.b32.xlu0 %v5622_v36, %s4372_s19 }
 0x866   : > { %2696 = vrot.lane.b32.xlu1 %v5614_v32, %s4365_s26  ;;  %2693 = vrot.lane.b32.xlu0 %v5616_v35, %s4379_s23 }
 0x86a   : > { %2705 = vrot.lane.b32.xlu1 %v5624_v37, %s4381_s20  ;;  %2699 = vrot.lane.b32.xlu0 %v5622_v36, %s4374_s11 }
 0x86e   : > { %2711 = vrot.lane.b32.xlu1 %v5614_v32, %s4356_s25  ;;  %2708 = vrot.lane.b32.xlu0 %v5616_v35, %s4380_s18 }
 0x872   : > { %2737 = vrot.lane.b32.xlu1 %v5616_v35, %s4375_s13  ;;  %2714 = vrot.lane.b32.xlu0 %v5622_v36, %s4377_s17 }
 0x876   : > { %2746 = vrot.lane.b32.xlu1 %v5624_v37, %s4377_s17  ;;  %2734 = vrot.lane.b32.xlu0 %v5624_v37, %s4374_s11 }
 0x87a   : > { %2752 = vrot.lane.b32.xlu1 %v5614_v32, %s4379_s23  ;;  %2740 = vrot.lane.b32.xlu0 %v5614_v32, %s4376_s16 }
 0x87e   : > { %2761 = vrot.lane.b32.xlu1 %v5624_v37, %s4382_s21  ;;  %2749 = vrot.lane.b32.xlu0 %v5616_v35, %s4378_s28 }
 0x882   : > { %2767 = vrot.lane.b32.xlu1 %v5614_v32, %s4380_s18  ;;  %2755 = vrot.lane.b32.xlu0 %v5622_v36, %s4365_s26 }
 0x886   : > { %2799 = vrot.lane.b32.xlu1 %v5706_v5, %s4371_s22  ;;  %2764 = vrot.lane.b32.xlu0 %v5616_v35, %s4381_s20 }
 0x88a   : > { %2810 = vrot.lane.b32.xlu1 %v5712_v2, %s4365_s26  ;;  %2770 = vrot.lane.b32.xlu0 %v5622_v36, %s4356_s25 }
 0x88e   : > { %2816 = vrot.lane.b32.xlu1 %v5706_v5, %s4375_s13  ;;  %2795 = vrot.lane.b32.xlu0 %v5718_v41, %s4372_s19 }
 0x892   : > { %2825 = vrot.lane.b32.xlu1 %v5712_v2, %s4356_s25  ;;  %2803 = vrot.lane.b32.xlu0 %v5724_v48, %s4373_s29 }
 0x896   : > { %2831 = vrot.lane.b32.xlu1 %v5706_v5, %s4378_s28  ;;  %2813 = vrot.lane.b32.xlu0 %v5718_v41, %s4374_s11 }
 0x89a   : > { %2857 = vrot.lane.b32.xlu1 %v5706_v5, %s4372_s19  ;;  %2819 = vrot.lane.b32.xlu0 %v5724_v48, %s4376_s16 }
 0x89e   : > { %2866 = vrot.lane.b32.xlu1 %v5712_v2, %s4379_s23  ;;  %2828 = vrot.lane.b32.xlu0 %v5718_v41, %s4377_s17 }
 0x8a2   : > { %2872 = vrot.lane.b32.xlu1 %v5706_v5, %s4374_s11  ;;  %2834 = vrot.lane.b32.xlu0 %v5724_v48, %s4379_s23 }
 0x8a4   : > { %v2567_v44 = vpop.permute.xlu0 %2566  ;;  %v2563_v31 = vpop.permute.xlu1 %2562 }
 0x8a5   : > { %v2574_v60 = vsel %vm2573_vm14, %v5624_v37, %v2563_v31  ;;  %v5891_v31 = vld [vmem:[#allocation2 + $0xb] sm:$0x1] }
 0x8a6   : > { %2881 = vrot.lane.b32.xlu1 %v5712_v2, %s4380_s18  ;;  %2854 = vrot.lane.b32.xlu0 %v5712_v2, %s4376_s16  ;;  %v2576_v4 = vsel %vm2575_vm0, %v2574_v60, %v2567_v44  ;;  %v5889_v44 = vld [vmem:[#allocation2 + $0x9] sm:$0x1]  ;;  %6611 = vst [vmem:[#allocation16_spill] sm:$0xff] %v5891_v31 }
 0x8a7   : > { %6610 = vst [vmem:[#allocation15_spill] sm:$0xff] %v5889_v44 }
 0x8a8   : > { %v2571_v46 = vpop.permute.xlu1 %2570  ;;  %v2581_v47 = vpop.permute.xlu0 %2580 }
 0x8a9   : > { %v2578_v14 = vsel %vm2577_vm1, %v2576_v4, %v2571_v46 }
 0x8aa   : > { %2887 = vrot.lane.b32.xlu1 %v5706_v5, %s4377_s17  ;;  %2860 = vrot.lane.b32.xlu0 %v5724_v48, %s4371_s22 }
 0x8ac   : > { %v2584_v49 = vpop.permute.xlu1 %2583  ;;  %v2587_v30 = vpop.permute.xlu0 %2586 }
 0x8ad   : > { %v2592_v52 = vsel %vm2573_vm14, %v2581_v47, %v2584_v49 }
 0x8ae   : > { %2913 = vrot.lane.b32.xlu1 %v5718_v41, %s4376_s16  ;;  %2869 = vrot.lane.b32.xlu0 %v5718_v41, %s4365_s26  ;;  %v2593_v38 = vsel %vm2575_vm0, %v2592_v52, %v2587_v30 }
 0x8b0   : > { %v2590_v21 = vpop.permute.xlu1 %2589  ;;  %v2596_v54 = vpop.permute.xlu0 %2595 }
 0x8b1   : > { %v2594_v55 = vsel %vm2577_vm1, %v2593_v38, %v2590_v21 }
 0x8b2   : > { %2922 = vrot.lane.b32.xlu1 %v5712_v2, %s4378_s28  ;;  %2875 = vrot.lane.b32.xlu0 %v5724_v48, %s4375_s13  ;;  %v2611_v62 = vrot.slane %v2594_v55, 7 }
 0x8b4   : > { %v2599_v56 = vpop.permute.xlu1 %2598  ;;  %v2602_v51 = vpop.permute.xlu0 %2601  ;;  %v2617_v43 = vsel %vm2616_vm2, %v2578_v14, %v2611_v62 }
 0x8b5   : > { %v2607_v1 = vsel %vm2573_vm14, %v2596_v54, %v2599_v56 }
 0x8b6   : > { %2928 = vrot.lane.b32.xlu1 %v5706_v5, %s4365_s26  ;;  %2884 = vrot.lane.b32.xlu0 %v5718_v41, %s4356_s25  ;;  %v2608_v6 = vsel %vm2575_vm0, %v2607_v1, %v2602_v51 }
 0x8b8   : > { %v2605_v45 = vpop.permute.xlu1 %2604  ;;  %v5773_v10 = vpop.permute.xlu0 %2622 }
 0x8b9   : > { %v2609_v39 = vsel %vm2577_vm1, %v2608_v6, %v2605_v45 }
 0x8ba   : > { %v2614_v42 = vrot.slane %v2609_v39, 6  ;;  %2937 = vrot.lane.b32.xlu1 %v5712_v2, %s4381_s20  ;;  %2890 = vrot.lane.b32.xlu0 %v5724_v48, %s4378_s28 }
 0x8bc   : > { %v2619_v13 = vsel %vm2618_vm3, %v2617_v43, %v2614_v42  ;;  %v5784_v34 = vpop.permute.xlu1 %2625  ;;  %v5786_v15 = vpop.permute.xlu0 %2628 }
 0x8bd   : > { %2621 = vst.msk [vmem:[#allocation3] sm:$0x7] %vm2620_vm4, %v2619_v13 }
 0x8be   : > { %2943 = vrot.lane.b32.xlu1 %v5706_v5, %s4356_s25  ;;  %2910 = vrot.lane.b32.xlu0 %v5712_v2, %s4375_s13 }
 0x8c0   : > { %v5793_v17 = vpop.permute.xlu1 %2634  ;;  %v5795_v16 = vpop.permute.xlu0 %2637 }
 0x8c2   : > { %2969 = vrot.lane.b32.xlu1 %v5718_v41, %s4375_s13  ;;  %2916 = vrot.lane.b32.xlu0 %v5724_v48, %s4372_s19 }
 0x8c4   : > { %v5801_v59 = vpop.permute.xlu1 %2640  ;;  %v5803_v8 = vpop.permute.xlu0 %2643 }
 0x8c6   : > { %2978 = vrot.lane.b32.xlu1 %v5712_v2, %s4377_s17  ;;  %2925 = vrot.lane.b32.xlu0 %v5718_v41, %s4379_s23 }
 0x8c8   : > { %v5809_v18 = vpop.permute.xlu1 %2649  ;;  %v5811_v58 = vpop.permute.xlu0 %2652 }
 0x8ca   : > { %2984 = vrot.lane.b32.xlu1 %v5706_v5, %s4379_s23  ;;  %2931 = vrot.lane.b32.xlu0 %v5724_v48, %s4374_s11 }
 0x8cc   : > { %v5817_v19 = vpop.permute.xlu1 %2655  ;;  %v5819_v12 = vpop.permute.xlu0 %2658 }
 0x8ce   : > { %2993 = vrot.lane.b32.xlu1 %v5712_v2, %s4382_s21  ;;  %2940 = vrot.lane.b32.xlu0 %v5718_v41, %s4380_s18 }
 0x8d0   : > { %v5825_v9 = vpop.permute.xlu1 %2681  ;;  %v5827_v20 = vpop.permute.xlu0 %2678 }
 0x8d2   : > { %2999 = vrot.lane.b32.xlu1 %v5706_v5, %s4380_s18  ;;  %2946 = vrot.lane.b32.xlu0 %v5724_v48, %s4377_s17 }
 0x8d4   : > { %v5833_v22 = vpop.permute.xlu1 %2690  ;;  %v5835_v63 = vpop.permute.xlu0 %2684 }
 0x8d6   : > { %2966 = vrot.lane.b32.xlu0 %v5712_v2, %s4374_s11  ;;  %3031 = vrot.lane.b32.xlu1 %v5837_v61, %s4371_s22 }
 0x8d8   : > { %v5843_v23 = vpop.permute.xlu1 %2696  ;;  %v5845_v50 = vpop.permute.xlu0 %2693 }
 0x8da   : > { %2972 = vrot.lane.b32.xlu0 %v5706_v5, %s4376_s16  ;;  %3042 = vrot.lane.b32.xlu1 %v5847_v40, %s4365_s26 }
 0x8dc   : > { %v5853_v57 = vpop.permute.xlu1 %2705  ;;  %v5855_v24 = vpop.permute.xlu0 %2699 }
 0x8de   : > { %2981 = vrot.lane.b32.xlu0 %v5718_v41, %s4378_s28  ;;  %3048 = vrot.lane.b32.xlu1 %v5837_v61, %s4375_s13 }
 0x8e0   : > { %v5861_v7 = vpop.permute.xlu1 %2711  ;;  %v5863_v53 = vpop.permute.xlu0 %2708 }
 0x8e2   : > { %2987 = vrot.lane.b32.xlu0 %v5724_v48, %s4365_s26  ;;  %3057 = vrot.lane.b32.xlu1 %v5847_v40, %s4356_s25 }
 0x8e4   : > { %v5869_v25 = vpop.permute.xlu1 %2737  ;;  %v5871_v0 = vpop.permute.xlu0 %2714 }
 0x8e6   : > { %2996 = vrot.lane.b32.xlu0 %v5718_v41, %s4381_s20  ;;  %3063 = vrot.lane.b32.xlu1 %v5837_v61, %s4378_s28  ;;  %v6059_v41 = vld [vmem:[#allocation2 + $0xf] sm:$0x1] }
 0x8e8   : > { %v5877_v11 = vpop.permute.xlu1 %2746  ;;  %v5879_v26 = vpop.permute.xlu0 %2734 }
 0x8ea   : > { %3002 = vrot.lane.b32.xlu0 %v5724_v48, %s4356_s25  ;;  %3081 = vrot.lane.b32.xlu1 %v5847_v40, %s4376_s16  ;;  %v5997_v48 = vld [vmem:[#allocation2 + $0xd] sm:$0x1] }
 0x8ec   : > { %v5885_v27 = vpop.permute.xlu1 %2752  ;;  %v5887_v37 = vpop.permute.xlu0 %2740 }
 0x8ee   : > { %3027 = vrot.lane.b32.xlu0 %v5889_v44, %s4372_s19  ;;  %3087 = vrot.lane.b32.xlu1 %v5891_v31, %s4371_s22 }
 0x8f0   : > { %v5897_v46 = vpop.permute.xlu1 %2761  ;;  %v5899_v47 = vpop.permute.xlu0 %2749 }
 0x8f2   : > { %3035 = vrot.lane.b32.xlu0 %v5891_v31, %s4373_s29  ;;  %3096 = vrot.lane.b32.xlu1 %v5889_v44, %s4365_s26 }
 0x8f4   : > { %v5905_v49 = vpop.permute.xlu1 %2767  ;;  %v5907_v30 = vpop.permute.xlu0 %2755 }
 0x8f6   : > { %3045 = vrot.lane.b32.xlu0 %v5889_v44, %s4374_s11  ;;  %3102 = vrot.lane.b32.xlu1 %v5891_v31, %s4375_s13 }
 0x8f8   : > { %v5913_v52 = vpop.permute.xlu1 %2799  ;;  %v5915_v21 = vpop.permute.xlu0 %2764 }
 0x8f9   : > { %6612 = vst [vmem:[#allocation17_spill] sm:$0xff] %v5913_v52 }
 0x8fa   : > { %3051 = vrot.lane.b32.xlu0 %v5891_v31, %s4376_s16  ;;  %3111 = vrot.lane.b32.xlu1 %v5889_v44, %s4356_s25 }
 0x8fc   : > { %v5921_v54 = vpop.permute.xlu1 %2810  ;;  %v5923_v38 = vpop.permute.xlu0 %2770 }
 0x8fe   : > { %3060 = vrot.lane.b32.xlu0 %v5889_v44, %s4377_s17  ;;  %3117 = vrot.lane.b32.xlu1 %v5891_v31, %s4378_s28 }
 0x900   : > { %v5929_v55 = vpop.permute.xlu1 %2816  ;;  %v5931_v56 = vpop.permute.xlu0 %2795 }
 0x902   : > { %3066 = vrot.lane.b32.xlu0 %v5891_v31, %s4379_s23  ;;  %3136 = vrot.lane.b32.xlu1 %v5847_v40, %s4375_s13 }
 0x904   : > { %v5937_v51 = vpop.permute.xlu1 %2825  ;;  %v5939_v1 = vpop.permute.xlu0 %2803 }
 0x905   : > { %6613 = vst [vmem:[#allocation18_spill] sm:$0xff] %v5939_v1 }
 0x906   : > { %3084 = vrot.lane.b32.xlu0 %v5837_v61, %s4372_s19  ;;  %3142 = vrot.lane.b32.xlu1 %v5891_v31, %s4372_s19 }
 0x908   : > { %v5945_v60 = vpop.permute.xlu1 %2831  ;;  %v5947_v62 = vpop.permute.xlu0 %2813 }
 0x90a   : > { %3093 = vrot.lane.b32.xlu0 %v5847_v40, %s4379_s23  ;;  %3151 = vrot.lane.b32.xlu1 %v5889_v44, %s4379_s23 }
 0x90c   : > { %v5953_v6 = vpop.permute.xlu1 %2857  ;;  %v5955_v45 = vpop.permute.xlu0 %2819 }
 0x90d   : > { %6614 = vst [vmem:[#allocation19_spill] sm:$0xff] %v5953_v6 }
 0x90e   : > { %3099 = vrot.lane.b32.xlu0 %v5837_v61, %s4374_s11  ;;  %3157 = vrot.lane.b32.xlu1 %v5891_v31, %s4374_s11 }
 0x910   : > { %v5961_v4 = vpop.permute.xlu1 %2866  ;;  %v5963_v39 = vpop.permute.xlu0 %2828 }
 0x911   : > { %6615 = vst [vmem:[#allocation20_spill] sm:$0xff] %v5961_v4 }
 0x912   : > { %3108 = vrot.lane.b32.xlu0 %v5847_v40, %s4380_s18  ;;  %3166 = vrot.lane.b32.xlu1 %v5889_v44, %s4380_s18 }
 0x914   : > { %v5969_v14 = vpop.permute.xlu1 %2872  ;;  %v5971_v42 = vpop.permute.xlu0 %2834 }
 0x915   : > { %6616 = vst [vmem:[#allocation21_spill] sm:$0xff] %v5969_v14  ;;  %6617 = vst [vmem:[#allocation22_spill] sm:$0xff] %v5971_v42 }
 0x916   : > { %3114 = vrot.lane.b32.xlu0 %v5837_v61, %s4377_s17  ;;  %3206 = vrot.lane.b32.xlu1 %v5889_v44, %s4378_s28 }
 0x918   : > { %v5977_v43 = vpop.permute.xlu1 %2881  ;;  %v5979_v13 = vpop.permute.xlu0 %2854 }
 0x919   : > { %6618 = vst [vmem:[#allocation23_spill] sm:$0xff] %v5977_v43  ;;  %6619 = vst [vmem:[#allocation24_spill] sm:$0xff] %v5979_v13  ;;  %v6041_v13 = vld [vmem:[#allocation2 + $0xc] sm:$0x1] }
 0x91a   : > { %3139 = vrot.lane.b32.xlu0 %v5889_v44, %s4376_s16  ;;  %3209 = vrot.lane.b32.xlu1 %v5837_v61, %s4379_s23 }
 0x91c   : > { %v5985_v33 = vpop.permute.xlu1 %2887  ;;  %v5987_v29 = vpop.permute.xlu0 %2860 }
 0x91d   : > { %6620 = vst [vmem:[#allocation25_spill] sm:$0xff] %v5985_v33  ;;  %6621 = vst [vmem:[#allocation26_spill] sm:$0xff] %v5987_v29  ;;  %v6023_v33 = vld [vmem:[#allocation2 + $0xe] sm:$0x1] }
 0x91e   : > { %3148 = vrot.lane.b32.xlu0 %v5847_v40, %s4378_s28  ;;  %3221 = vrot.lane.b32.xlu1 %v5889_v44, %s4381_s20 }
 0x920   : > { %v5993_v28 = vpop.permute.xlu1 %2913  ;;  %v5995_v3 = vpop.permute.xlu0 %2869 }
 0x921   : > { %6622 = vst [vmem:[#allocation27_spill] sm:$0xff] %v5993_v28  ;;  %6623 = vst [vmem:[#allocation28_spill] sm:$0xff] %v5995_v3 }
 0x922   : > { %3154 = vrot.lane.b32.xlu0 %v5837_v61, %s4365_s26  ;;  %3269 = vrot.lane.b32.xlu1 %v5997_v48, %s4374_s11 }
 0x924   : > { %v6003_v5 = vpop.permute.xlu1 %2922  ;;  %v6005_v29 = vpop.permute.xlu0 %2875 }
 0x925   : > { %6624 = vst [vmem:[#allocation29_spill] sm:$0xff] %v6003_v5  ;;  %6625 = vst [vmem:[#allocation30_spill] sm:$0xff] %v6005_v29 }
 0x926   : > { %3163 = vrot.lane.b32.xlu0 %v5847_v40, %s4381_s20  ;;  %3191 = vrot.lane.b32.xlu1 %v5847_v40, %s4374_s11 }
 0x928   : > { %v6011_v28 = vpop.permute.xlu1 %2928  ;;  %v6013_v6 = vpop.permute.xlu0 %2884 }
 0x929   : > { %6626 = vst [vmem:[#allocation31_spill] sm:$0xff] %v6011_v28  ;;  %6627 = vst [vmem:[#allocation32_spill] sm:$0xff] %v6013_v6 }
 0x92a   : > { %3203 = vrot.lane.b32.xlu0 %v5847_v40, %s4377_s17  ;;  %3212 = vrot.lane.b32.xlu1 %v5891_v31, %s4365_s26 }
 0x92c   : > { %v6019_v1 = vpop.permute.xlu1 %2937  ;;  %v6021_v5 = vpop.permute.xlu0 %2890 }
 0x92d   : > { %6628 = vst [vmem:[#allocation33_spill] sm:$0xff] %v6019_v1  ;;  %6629 = vst [vmem:[#allocation34_spill] sm:$0xff] %v6021_v5 }
 0x92e   : > { %3169 = vrot.lane.b32.xlu0 %v5837_v61, %s4356_s25  ;;  %3272 = vrot.lane.b32.xlu1 %v6023_v33, %s4375_s13 }
 0x930   : > { %v6029_v28 = vpop.permute.xlu1 %2943  ;;  %v6031_v29 = vpop.permute.xlu0 %2910 }
 0x931   : > { %6630 = vst [vmem:[#allocation35_spill] sm:$0xff] %v6029_v28  ;;  %6631 = vst [vmem:[#allocation36_spill] sm:$0xff] %v6031_v29 }
 0x932   : > { %3218 = vrot.lane.b32.xlu0 %v5847_v40, %s4382_s21  ;;  %3284 = vrot.lane.b32.xlu1 %v5997_v48, %s4377_s17 }
 0x934   : > { %v6037_v1 = vpop.permute.xlu1 %2969  ;;  %v6039_v5 = vpop.permute.xlu0 %2916 }
 0x935   : > { %6632 = vst [vmem:[#allocation37_spill] sm:$0xff] %v6037_v1  ;;  %6633 = vst [vmem:[#allocation38_spill] sm:$0xff] %v6039_v5 }
 0x936   : > { %3266 = vrot.lane.b32.xlu0 %v6041_v13, %s4365_s26  ;;  %3324 = vrot.lane.b32.xlu1 %v5997_v48, %s4365_s26 }
 0x938   : > { %v6047_v28 = vpop.permute.xlu1 %2978  ;;  %v6049_v29 = vpop.permute.xlu0 %2925 }
 0x939   : > { %6634 = vst [vmem:[#allocation39_spill] sm:$0xff] %v6047_v28  ;;  %6635 = vst [vmem:[#allocation40_spill] sm:$0xff] %v6049_v29 }
 0x93a   : > { %3172 = vrot.lane.b32.xlu0 %v5891_v31, %s4377_s17  ;;  %3227 = vrot.lane.b32.xlu1 %v5891_v31, %s4356_s25 }
 0x93c   : > { %v6055_v1 = vpop.permute.xlu1 %2984  ;;  %v6057_v5 = vpop.permute.xlu0 %2931 }
 0x93d   : > { %6636 = vst [vmem:[#allocation41_spill] sm:$0xff] %v6055_v1  ;;  %6637 = vst [vmem:[#allocation42_spill] sm:$0xff] %v6057_v5 }
 0x93e   : > { %3194 = vrot.lane.b32.xlu0 %v5889_v44, %s4375_s13  ;;  %3275 = vrot.lane.b32.xlu1 %v6059_v41, %s4376_s16 }
 0x940   : > { %v6065_v28 = vpop.permute.xlu1 %2993  ;;  %v6067_v29 = vpop.permute.xlu0 %2940 }
 0x941   : > { %6638 = vst [vmem:[#allocation43_spill] sm:$0xff] %v6065_v28  ;;  %6639 = vst [vmem:[#allocation44_spill] sm:$0xff] %v6067_v29 }
 0x942   : > { %3224 = vrot.lane.b32.xlu0 %v5837_v61, %s4380_s18  ;;  %3327 = vrot.lane.b32.xlu1 %v6023_v33, %s4374_s11 }
 0x944   : > { %v6073_v31 = vpop.permute.xlu1 %2999  ;;  %v6075_v1 = vpop.permute.xlu0 %2946 }
 0x945   : > { %6640 = vst [vmem:[#allocation45_spill] sm:$0xff] %v6073_v31  ;;  %6641 = vst [vmem:[#allocation46_spill] sm:$0xff] %v6075_v1 }
 0x946   : > { %3281 = vrot.lane.b32.xlu0 %v6041_v13, %s4356_s25  ;;  %3339 = vrot.lane.b32.xlu1 %v5997_v48, %s4356_s25 }
 0x948   : > { %v6081_v44 = vpop.permute.xlu0 %2966  ;;  %v3032_v28 = vpop.permute.xlu1 %3031 }
 0x949   : > { %6642 = vst [vmem:[#allocation47_spill] sm:$0xff] %v6081_v44 }
 0x94a   : > { %3321 = vrot.lane.b32.xlu0 %v6041_v13, %s4379_s23  ;;  %3379 = vrot.lane.b32.xlu1 %v5997_v48, %s4379_s23 }
 0x94c   : > { %v6087_v5 = vpop.permute.xlu0 %2972  ;;  %v3043_v31 = vpop.permute.xlu1 %3042 }
 0x94d   : > { %6643 = vst [vmem:[#allocation48_spill] sm:$0xff] %v6087_v5 }
 0x94e   : > { %3197 = vrot.lane.b32.xlu0 %v5837_v61, %s4376_s16  ;;  %3290 = vrot.lane.b32.xlu1 %v6059_v41, %s4379_s23 }
 0x950   : > { %v6093_v1 = vpop.permute.xlu0 %2981  ;;  %v3049_v29 = vpop.permute.xlu1 %3048 }
 0x951   : > { %6644 = vst [vmem:[#allocation49_spill] sm:$0xff] %v6093_v1 }
 0x952   : > { %3251 = vrot.lane.b32.xlu0 %v5997_v48, %s4372_s19  ;;  %3330 = vrot.lane.b32.xlu1 %v6059_v41, %s4375_s13 }
 0x954   : > { %v6099_v44 = vpop.permute.xlu0 %2987  ;;  %v3058_v14 = vpop.permute.xlu1 %3057 }
 0x955   : > { %6645 = vst [vmem:[#allocation50_spill] sm:$0xff] %v6099_v44 }
 0x956   : > { %3287 = vrot.lane.b32.xlu0 %v6023_v33, %s4378_s28  ;;  %3382 = vrot.lane.b32.xlu1 %v6023_v33, %s4365_s26 }
 0x958   : > { %v6105_v61 = vpop.permute.xlu0 %2996  ;;  %v3064_v5 = vpop.permute.xlu1 %3063 }
 0x959   : > { %6646 = vst [vmem:[#allocation51_spill] sm:$0xff] %v6105_v61 }
 0x95a   : > { %3336 = vrot.lane.b32.xlu0 %v6041_v13, %s4380_s18  ;;  %3394 = vrot.lane.b32.xlu1 %v5997_v48, %s4380_s18 }
 0x95c   : > { %v6111_v1 = vpop.permute.xlu0 %3002  ;;  %v6113_v52 = vpop.permute.xlu1 %3081 }
 0x95d   : > { %6647 = vst [vmem:[#allocation52_spill] sm:$0xff] %v6111_v1  ;;  %6648 = vst [vmem:[#allocation53_spill] sm:$0xff] %v6113_v52 }
 0x95e   : > { %3376 = vrot.lane.b32.xlu0 %v6041_v13, %s4378_s28  ;;  %3434 = vrot.lane.b32.xlu1 %v5997_v48, %s4378_s28 }
 0x960   : > { %v3028_v44 = vpop.permute.xlu0 %3027  ;;  %v6119_v36 = vpop.permute.xlu1 %3087 }
 0x961   : > { %6649 = vst [vmem:[#allocation54_spill] sm:$0xff] %v6119_v36 }
 0x962   : > { %3255 = vrot.lane.b32.xlu0 %v6023_v33, %s4371_s22  ;;  %3312 = vrot.lane.b32.xlu1 %v6023_v33, %s4372_s19 }
 0x964   : > { %v3036_v61 = vpop.permute.xlu0 %3035  ;;  %v6125_v43 = vpop.permute.xlu1 %3096 }
 0x965   : > { %6650 = vst [vmem:[#allocation55_spill] sm:$0xff] %v6125_v43 }
 0x966   : > { %3309 = vrot.lane.b32.xlu0 %v6041_v13, %s4376_s16  ;;  %3364 = vrot.lane.b32.xlu1 %v6041_v13, %s4375_s13 }
 0x968   : > { %v3046_v52 = vpop.permute.xlu0 %3045  ;;  %v6131_v1 = vpop.permute.xlu1 %3102 }
 0x969   : > { %6651 = vst [vmem:[#allocation56_spill] sm:$0xff] %v6131_v1  ;;  %v3054_v36 = vsel %vm2573_vm14, %v3043_v31, %v3046_v52  ;;  %v3038_v31 = vsel %vm2573_vm14, %v5847_v40, %v3028_v44 }
 0x96a   : > { %3342 = vrot.lane.b32.xlu0 %v6023_v33, %s4377_s17  ;;  %3385 = vrot.lane.b32.xlu1 %v6059_v41, %s4374_s11  ;;  %v3055_v43 = vsel %vm2575_vm0, %v3054_v36, %v3049_v29 }
 0x96c   : > { %v3052_v6 = vpop.permute.xlu0 %3051  ;;  %v6138_v4 = vpop.permute.xlu1 %3111 }
 0x96d   : > { %6652 = vst [vmem:[#allocation57_spill] sm:$0xff] %v6138_v4  ;;  %v3056_v1 = vsel %vm2577_vm1, %v3055_v43, %v3052_v6  ;;  %v3039_v6 = vsel %vm2575_vm0, %v3038_v31, %v3032_v28 }
 0x96e   : > { %3391 = vrot.lane.b32.xlu0 %v6041_v13, %s4381_s20  ;;  %3437 = vrot.lane.b32.xlu1 %v6023_v33, %s4379_s23  ;;  %v3073_v52 = vrot.slane %v3056_v1, 7  ;;  %v2661_v1 = vsel %vm2573_vm14, %v5809_v18, %v5811_v58  ;;  %v2702_v18 = vsel %vm2573_vm14, %v5833_v22, %v5845_v50  ;;  %v2631_v58 = vsel %vm2573_vm14, %v5773_v10, %v5616_v35 }
 0x96f   : > { %v2703_v35 = vsel %vm2575_vm0, %v2702_v18, %v5843_v23  ;;  %v2758_v10 = vsel %vm2573_vm14, %v5877_v11, %v5899_v47  ;;  %v2773_v47 = vsel %vm2573_vm14, %v5897_v46, %v5915_v21  ;;  %v2837_v46 = vsel %vm2573_vm14, %v5937_v51, %v5963_v39 }
 0x970   : > { %v3061_v3 = vpop.permute.xlu0 %3060  ;;  %v6146_v42 = vpop.permute.xlu1 %3117 }
 0x971   : > { %v3069_v2 = vsel %vm2573_vm14, %v3058_v14, %v3061_v3  ;;  %v3040_v3 = vsel %vm2577_vm1, %v3039_v6, %v3036_v61 }
 0x972   : > { %3431 = vrot.lane.b32.xlu0 %v6041_v13, %s4377_s17  ;;  %3449 = vrot.lane.b32.xlu1 %v5997_v48, %s4381_s20  ;;  %v3070_v29 = vsel %vm2575_vm0, %v3069_v2, %v3064_v5  ;;  %v3078_v40 = vsel %vm2616_vm2, %v3040_v3, %v3073_v52  ;;  %v2646_v5 = vsel %vm2573_vm14, %v5793_v17, %v5795_v16  ;;  %v6655_v3 = vld [vmem:[#allocation28_spill] sm:$0xff] }
 0x973   : > { %v2647_v61 = vsel %vm2575_vm0, %v2646_v5, %v5801_v59  ;;  %v2662_v17 = vsel %vm2575_vm0, %v2661_v1, %v5817_v19  ;;  %v2717_v19 = vsel %vm2573_vm14, %v5853_v57, %v5863_v53  ;;  %v2687_v53 = vsel %vm2573_vm14, %v5827_v20, %v5825_v9  ;;  %v6658_v1 = vld [vmem:[#allocation23_spill] sm:$0xff] }
 0x974   : > { %v3067_v4 = vpop.permute.xlu0 %3066  ;;  %v6156_v36 = vpop.permute.xlu1 %3136  ;;  %v2648_v16 = vsel %vm2577_vm1, %v2647_v61, %v5803_v8  ;;  %v2663_v31 = vsel %vm2577_vm1, %v2662_v17, %v5819_v12  ;;  %v2632_v8 = vsel %vm2575_vm0, %v2631_v58, %v5784_v34  ;;  %v2704_v34 = vsel %vm2577_vm1, %v2703_v35, %v5855_v24  ;;  %v6657_v61 = vld [vmem:[#allocation32_spill] sm:$0xff]  ;;  %v6660_v58 = vld [vmem:[#allocation17_spill] sm:$0xff] }
 0x975   : > { %v3071_v43 = vsel %vm2577_vm1, %v3070_v29, %v3067_v4  ;;  %v2665_v22 = vrot.slane %v2648_v16, 7  ;;  %v2668_v57 = vrot.slane %v2663_v31, 6  ;;  %v2718_v52 = vsel %vm2575_vm0, %v2717_v19, %v5861_v7 }
 0x976   : > { %v3076_v14 = vrot.slane %v3071_v43, 6  ;;  %3259 = vrot.lane.b32.xlu0 %v6059_v41, %s4373_s29  ;;  %3400 = vrot.lane.b32.xlu1 %v6059_v41, %s4377_s17  ;;  %v2633_v23 = vsel %vm2577_vm1, %v2632_v8, %v5786_v15  ;;  %v2719_v11 = vsel %vm2577_vm1, %v2718_v52, %v5871_v0  ;;  %v2759_v9 = vsel %vm2575_vm0, %v2758_v10, %v5885_v27  ;;  %v6661_v8 = vld [vmem:[#allocation21_spill] sm:$0xff]  ;;  %v6662_v10 = vld [vmem:[#allocation12_spill] sm:$0xff] }
 0x977   : > { %v2822_v15 = vsel %vm2573_vm14, %v5921_v54, %v5947_v62  ;;  %v2670_v20 = vsel %vm2616_vm2, %v2633_v23, %v2665_v22  ;;  %v2688_v24 = vsel %vm2575_vm0, %v2687_v53, %v5614_v32  ;;  %v2721_v7 = vrot.slane %v2704_v34, 7  ;;  %v6664_v34 = vld [vmem:[#allocation30_spill] sm:$0xff]  ;;  %v6665_v23 = vld [vmem:[#allocation25_spill] sm:$0xff] }
 0x978   : > { %v3079_v2 = vsel %vm2618_vm3, %v3078_v40, %v3076_v14  ;;  %v6170_v28 = vpop.permute.xlu0 %3084  ;;  %v6172_v44 = vpop.permute.xlu1 %3142  ;;  %v2760_v0 = vsel %vm2577_vm1, %v2759_v9, %v5907_v30  ;;  %v2689_v54 = vsel %vm2577_vm1, %v2688_v24, %v5835_v63  ;;  %v2724_v62 = vrot.slane %v2719_v11, 6  ;;  %v6656_v14 = vld [vmem:[#allocation20_spill] sm:$0xff]  ;;  %v6667_v9 = vld [vmem:[#allocation29_spill] sm:$0xff] }
 0x979   : > { %3080 = vst.msk [vmem:[#allocation3 + $0x4] sm:$0x7] %vm2620_vm4, %v3079_v2  ;;  %v2774_v29 = vsel %vm2575_vm0, %v2773_v47, %v5905_v49  ;;  %v2671_v32 = vsel %vm2618_vm3, %v2670_v20, %v2668_v57  ;;  %v2743_v30 = vsel %vm2573_vm14, %v5879_v26, %v5869_v25  ;;  %v2823_v39 = vsel %vm2575_vm0, %v2822_v15, %v5929_v55  ;;  %v6653_v26 = vld [vmem:[#allocation11_spill] sm:$0xff]  ;;  %v6654_v55 = vld [vmem:[#allocation22_spill] sm:$0xff]  ;;  %v6663_v57 = vld [vmem:[#allocation24_spill] sm:$0xff] }
 0x97a   : > { %3345 = vrot.lane.b32.xlu0 %v6059_v41, %s4378_s28  ;;  %3422 = vrot.lane.b32.xlu1 %v5997_v48, %s4375_s13  ;;  %v2775_v51 = vsel %vm2577_vm1, %v2774_v29, %v5923_v38  ;;  %v2744_v63 = vsel %vm2575_vm0, %v2743_v30, %v5887_v37  ;;  %v2777_v49 = vrot.slane %v2760_v0, 7  ;;  %v2824_v6 = vsel %vm2577_vm1, %v2823_v39, %v5955_v45  ;;  %v6666_v47 = vld [vmem:[#allocation40_spill] sm:$0xff]  ;;  %v6671_v29 = vld [vmem:[#allocation33_spill] sm:$0xff]  ;;  %v6672_v39 = vld [vmem:[#allocation19_spill] sm:$0xff] }
 0x97b   : > { %v2838_v25 = vsel %vm2575_vm0, %v2837_v46, %v5945_v60  ;;  %v2806_v38 = vsel %vm2573_vm14, %v6653_v26, %v5931_v56  ;;  %v2878_v40 = vsel %vm2573_vm14, %v6656_v14, %v6655_v3  ;;  %v2726_v2 = vsel %vm2616_vm2, %v2689_v54, %v2721_v7  ;;  %v6659_v56 = vld [vmem:[#allocation9_spill] sm:$0xff]  ;;  %v6668_v7 = vld [vmem:[#allocation18_spill] sm:$0xff] }
 0x97c   : > { %v6188_v4 = vpop.permute.xlu0 %3093  ;;  %v6190_v59 = vpop.permute.xlu1 %3151  ;;  %v2839_v43 = vsel %vm2577_vm1, %v2838_v25, %v6654_v55  ;;  %v2780_v45 = vrot.slane %v2775_v51, 6  ;;  %v2893_v60 = vsel %vm2573_vm14, %v6658_v1, %v6657_v61  ;;  %v2727_v17 = vsel %vm2618_vm3, %v2726_v2, %v2724_v62  ;;  %v6669_v46 = vld [vmem:[#allocation34_spill] sm:$0xff]  ;;  %v6670_v62 = vld [vmem:[#allocation44_spill] sm:$0xff]  ;;  %v6677_v1 = vld [vmem:[#allocation27_spill] sm:$0xff] }
 0x97d   : > { %v2745_v16 = vsel %vm2577_vm1, %v2744_v63, %v6659_v56  ;;  %v2841_v18 = vrot.slane %v2824_v6, 7  ;;  %v2807_v31 = vsel %vm2575_vm0, %v2806_v38, %v6660_v58  ;;  %v2844_v19 = vrot.slane %v2839_v43, 6  ;;  %v6673_v6 = vld [vmem:[#allocation31_spill] sm:$0xff]  ;;  %v6674_v38 = vld [vmem:[#allocation26_spill] sm:$0xff] }
 0x97e   : > { %3367 = vrot.lane.b32.xlu0 %v5997_v48, %s4376_s16  ;;  %3452 = vrot.lane.b32.xlu1 %v6023_v33, %s4380_s18  ;;  %v2879_v22 = vsel %vm2575_vm0, %v2878_v40, %v6661_v8  ;;  %v2782_v35 = vsel %vm2616_vm2, %v2745_v16, %v2777_v49  ;;  %v2863_v53 = vsel %vm2573_vm14, %v6663_v57, %v6662_v10  ;;  %v6675_v3 = vld [vmem:[#allocation42_spill] sm:$0xff]  ;;  %v6676_v40 = vld [vmem:[#allocation35_spill] sm:$0xff] }
 0x97f   : > { %v2880_v52 = vsel %vm2577_vm1, %v2879_v22, %v6664_v34  ;;  %v2894_v11 = vsel %vm2575_vm0, %v2893_v60, %v6665_v23  ;;  %v2934_v15 = vsel %vm2573_vm14, %v6667_v9, %v6666_v47  ;;  %v2808_v0 = vsel %vm2577_vm1, %v2807_v31, %v6668_v7  ;;  %v6678_v60 = vld [vmem:[#allocation36_spill] sm:$0xff]  ;;  %v6679_v56 = vld [vmem:[#allocation46_spill] sm:$0xff]  ;;  %v6681_v58 = vld [vmem:[#allocation39_spill] sm:$0xff] }
 0x980   : > { %v6214_v12 = vpop.permute.xlu0 %3099  ;;  %v6216_v50 = vpop.permute.xlu1 %3157  ;;  %v2895_v54 = vsel %vm2577_vm1, %v2894_v11, %v6669_v46  ;;  %v2783_v30 = vsel %vm2618_vm3, %v2782_v35, %v2780_v45  ;;  %v2846_v51 = vsel %vm2616_vm2, %v2808_v0, %v2841_v18  ;;  %v2864_v63 = vsel %vm2575_vm0, %v2863_v53, %v6672_v39  ;;  %v6680_v18 = vld [vmem:[#allocation49_spill] sm:$0xff]  ;;  %v6683_v22 = vld [vmem:[#allocation51_spill] sm:$0xff]  ;;  %v6686_v11 = vld [vmem:[#allocation10_spill] sm:$0xff] }
 0x981   : > { %v2897_v49 = vrot.slane %v2880_v52, 7  ;;  %v2935_v25 = vsel %vm2575_vm0, %v2934_v15, %v6673_v6  ;;  %v2847_v26 = vsel %vm2618_vm3, %v2846_v51, %v2844_v19  ;;  %v2865_v55 = vsel %vm2577_vm1, %v2864_v63, %v6674_v38  ;;  %v6682_v19 = vld [vmem:[#allocation55_spill] sm:$0xff]  ;;  %v6685_v53 = vld [vmem:[#allocation57_spill] sm:$0xff]  ;;  %v6688_v46 = vld [vmem:[#allocation50_spill] sm:$0xff] }
 0x982   : > { %3397 = vrot.lane.b32.xlu0 %v6023_v33, %s4356_s25  ;;  %3425 = vrot.lane.b32.xlu1 %v6023_v33, %s4376_s16  ;;  %v2900_v43 = vrot.slane %v2895_v54, 6  ;;  %v2936_v14 = vsel %vm2577_vm1, %v2935_v25, %v6675_v3  ;;  %v2990_v31 = vsel %vm2573_vm14, %v6681_v58, %v6680_v18  ;;  %v3105_v8 = vsel %vm2573_vm14, %v6188_v4, %v6682_v19  ;;  %v6684_v35 = vld [vmem:[#allocation43_spill] sm:$0xff]  ;;  %v6687_v9 = vld [vmem:[#allocation41_spill] sm:$0xff]  ;;  %v6692_v39 = vld [vmem:[#allocation52_spill] sm:$0xff] }
 0x983   : > { %v3005_v10 = vsel %vm2573_vm14, %v6684_v35, %v6683_v22  ;;  %v3106_v57 = vsel %vm2575_vm0, %v3105_v8, %v6214_v12  ;;  %v2953_v52 = vrot.slane %v2936_v14, 7  ;;  %v2902_v23 = vsel %vm2616_vm2, %v2865_v55, %v2897_v49  ;;  %v6693_v6 = vld [vmem:[#allocation37_spill] sm:$0xff]  ;;  %v6694_v25 = vld [vmem:[#allocation47_spill] sm:$0xff]  ;;  %v6697_v14 = vld [vmem:[#allocation48_spill] sm:$0xff] }
 0x984   : > { %v6249_v21 = vpop.permute.xlu0 %3108  ;;  %v6251_v27 = vpop.permute.xlu1 %3166  ;;  %v2991_v12 = vsel %vm2575_vm0, %v2990_v31, %v6687_v9  ;;  %v6695_v38 = vld [vmem:[#allocation15_spill] sm:$0xff]  ;;  %v6696_v55 = vld [vmem:[#allocation53_spill] sm:$0xff]  ;;  %v6699_v19 = vld [vmem:[#allocation54_spill] sm:$0xff] }
 0x985   : > { %v3120_v34 = vsel %vm2573_vm14, %v6249_v21, %v6685_v53  ;;  %v2903_v21 = vsel %vm2618_vm3, %v2902_v23, %v2900_v43  ;;  %v2992_v54 = vsel %vm2577_vm1, %v2991_v12, %v6688_v46  ;;  %v3090_v43 = vsel %vm2573_vm14, %v6696_v55, %v6695_v38  ;;  %v6698_v58 = vld [vmem:[#allocation13_spill] sm:$0xff] }
 0x986   : > { %3446 = vrot.lane.b32.xlu0 %v6041_v13, %s4382_s21  ;;  %2673 = vrot.lane.b32.xlu1 %v2671_v32, %s4383_s24  ;;  %v2949_v32 = vsel %vm2573_vm14, %v6671_v29, %v6670_v62  ;;  %v6689_v62 = vld [vmem:[#allocation45_spill] sm:$0xff] }
 0x987   : > { %v2950_v2 = vsel %vm2575_vm0, %v2949_v32, %v6676_v40  ;;  %v3006_v29 = vsel %vm2575_vm0, %v3005_v10, %v6689_v62  ;;  %v6700_v62 = vld [vmem:[#allocation14_spill] sm:$0xff] }
 0x988   : > { %v3115_v5 = vpop.permute.xlu0 %3114  ;;  %v6282_v37 = vpop.permute.xlu1 %3206  ;;  %v2951_v16 = vsel %vm2577_vm1, %v2950_v2, %v6679_v56  ;;  %v3007_v63 = vsel %vm2577_vm1, %v3006_v29, %v6692_v39  ;;  %v3009_v2 = vrot.slane %v2992_v54, 7 }
 0x989   : > { %v3121_v4 = vsel %vm2575_vm0, %v3120_v34, %v3115_v5  ;;  %v2956_v0 = vrot.slane %v2951_v16, 6  ;;  %v6690_v5 = vld [vmem:[#allocation56_spill] sm:$0xff]  ;;  %v3012_v56 = vrot.slane %v3007_v63, 6 }
 0x98a   : > { %3315 = vrot.lane.b32.xlu0 %v6059_v41, %s4371_s22  ;;  %2729 = vrot.lane.b32.xlu1 %v2727_v17, %s4384_s27  ;;  %v2919_v17 = vsel %vm2573_vm14, %v6678_v60, %v6677_v1  ;;  %v3107_v32 = vsel %vm2577_vm1, %v3106_v57, %v6690_v5  ;;  %v3122_v49 = vsel %vm2577_vm1, %v3121_v4, %v6146_v42 }
 0x98b   : > { %v2920_v47 = vsel %vm2575_vm0, %v2919_v17, %v6686_v11  ;;  %v3091_v42 = vsel %vm2575_vm0, %v3090_v43, %v6170_v28  ;;  %v3124_v1 = vrot.slane %v3107_v32, 7  ;;  %v3127_v16 = vrot.slane %v3122_v49, 6 }
 0x98c   : > { %v6309_v20 = vpop.permute.xlu0 %3139  ;;  %v6311_v24 = vpop.permute.xlu1 %3209  ;;  %v3092_v8 = vsel %vm2577_vm1, %v3091_v42, %v6699_v19 }
 0x98d   : > { %v3129_v10 = vsel %vm2616_vm2, %v3092_v8, %v3124_v1  ;;  %v3145_v9 = vsel %vm2573_vm14, %v6156_v36, %v6309_v20 }
 0x98e   : > { %3419 = vrot.lane.b32.xlu0 %v6041_v13, %s4374_s11  ;;  %2785 = vrot.lane.b32.xlu1 %v2783_v30, %s4385_s12  ;;  %v6691_v30 = vld [vmem:[#allocation38_spill] sm:$0xff]  ;;  %v3130_v53 = vsel %vm2618_vm3, %v3129_v10, %v3127_v16 }
 0x98f   : > { %v2921_v51 = vsel %vm2577_vm1, %v2920_v47, %v6691_v30 }
 0x990   : > { %v3149_v45 = vpop.permute.xlu0 %3148  ;;  %v6336_v61 = vpop.permute.xlu1 %3221  ;;  %v2958_v3 = vsel %vm2616_vm2, %v2921_v51, %v2953_v52 }
 0x991   : > { %v2959_v18 = vsel %vm2618_vm3, %v2958_v3, %v2956_v0  ;;  %v3160_v4 = vsel %vm2573_vm14, %v3149_v45, %v6190_v59  ;;  %v3146_v59 = vsel %vm2575_vm0, %v3145_v9, %v6700_v62 }
 0x992   : > { %3440 = vrot.lane.b32.xlu0 %v6059_v41, %s4365_s26  ;;  %2849 = vrot.lane.b32.xlu1 %v2847_v26, %s4386_s15  ;;  %v2975_v26 = vsel %vm2573_vm14, %v6694_v25, %v6693_v6 }
 0x993   : > { %v2976_v40 = vsel %vm2575_vm0, %v2975_v26, %v6697_v14 }
 0x994   : > { %v3155_v15 = vpop.permute.xlu0 %3154  ;;  %v3270_v7 = vpop.permute.xlu1 %3269  ;;  %v2977_v31 = vsel %vm2577_vm1, %v2976_v40, %v6698_v58 }
 0x995   : > { %v3014_v35 = vsel %vm2616_vm2, %v2977_v31, %v3009_v2  ;;  %v3161_v47 = vsel %vm2575_vm0, %v3160_v4, %v3155_v15 }
 0x996   : > { %3370 = vrot.lane.b32.xlu0 %v6059_v41, %s4372_s19  ;;  %2905 = vrot.lane.b32.xlu1 %v2903_v21, %s4360_s14  ;;  %v3015_v57 = vsel %vm2618_vm3, %v3014_v35, %v3012_v56  ;;  %v3162_v12 = vsel %vm2577_vm1, %v3161_v47, %v6216_v50  ;;  %v3147_v50 = vsel %vm2577_vm1, %v3146_v59, %v6172_v44  ;;  %v6701_v56 = vld [vmem:[#allocation16_spill] sm:$0xff] }
 0x997   : > { %v3179_v45 = vrot.slane %v3162_v12, 7 }
 0x998   : > { %v3164_v60 = vpop.permute.xlu0 %3163  ;;  %v3192_v17 = vpop.permute.xlu1 %3191 }
 0x999   : > { %v3175_v15 = vsel %vm2573_vm14, %v3164_v60, %v6251_v27 }
 0x99a   : > { %3455 = vrot.lane.b32.xlu0 %v6059_v41, %s4356_s25  ;;  %2961 = vrot.lane.b32.xlu1 %v2959_v18, %s4356_s25 }
 0x99c   : > { %v3204_v22 = vpop.permute.xlu0 %3203  ;;  %v3213_v28 = vpop.permute.xlu1 %3212 }
 0x99d   : > { %v3215_v49 = vsel %vm2573_vm14, %v3204_v22, %v6282_v37 }
 0x99e   : > { %3017 = vrot.lane.b32.xlu1 %v3015_v57, %s4365_s26  ;;  %3132 = vrot.lane.b32.xlu0 %v3130_v53, %s4383_s24  ;;  %v3216_v26 = vsel %vm2575_vm0, %v3215_v49, %v6311_v24 }
 0x99f   : > { %v3217_v14 = vsel %vm2577_vm1, %v3216_v26, %v3213_v28 }
 0x9a0   : > { %v3170_v34 = vpop.permute.xlu0 %3169  ;;  %v3273_v52 = vpop.permute.xlu1 %3272  ;;  %v3234_v1 = vrot.slane %v3217_v14, 7 }
 0x9a1   : > { %v3176_v29 = vsel %vm2575_vm0, %v3175_v15, %v3170_v34 }
 0x9a4   : > { %v3219_v23 = vpop.permute.xlu0 %3218  ;;  %v6409_v11 = vpop.permute.xlu1 %3284 }
 0x9a5   : > { %v3230_v44 = vsel %vm2573_vm14, %v3219_v23, %v6336_v61 }
 0x9a8   : > { %v3267_v21 = vpop.permute.xlu0 %3266  ;;  %v3325_v0 = vpop.permute.xlu1 %3324 }
 0x9a9   : > { %v3278_v46 = vsel %vm2573_vm14, %v3267_v21, %v3270_v7  ;;  %v3184_v7 = vsel %vm2616_vm2, %v3147_v50, %v3179_v45 }
 0x9aa   : > { %v3279_v54 = vsel %vm2575_vm0, %v3278_v46, %v3273_v52 }
 0x9ac   : > { %v3173_v5 = vpop.permute.xlu0 %3172  ;;  %v3228_v36 = vpop.permute.xlu1 %3227 }
 0x9ad   : > { %v3177_v20 = vsel %vm2577_vm1, %v3176_v29, %v3173_v5 }
 0x9ae   : > { %v3182_v32 = vrot.slane %v3177_v20, 6 }
 0x9b0   : > { %v3195_v30 = vpop.permute.xlu0 %3194  ;;  %v3276_v51 = vpop.permute.xlu1 %3275  ;;  %v3185_v39 = vsel %vm2618_vm3, %v3184_v7, %v3182_v32 }
 0x9b1   : > { %3187 = vrot.lane.b32.xlu1 %v3185_v39, %s4384_s27  ;;  %v3200_v2 = vsel %vm2573_vm14, %v3192_v17, %v3195_v30  ;;  %v3280_v62 = vsel %vm2577_vm1, %v3279_v54, %v3276_v51 }
 0x9b2   : > { %v3297_v15 = vrot.slane %v3280_v62, 7 }
 0x9b4   : > { %v3225_v63 = vpop.permute.xlu0 %3224  ;;  %v3328_v27 = vpop.permute.xlu1 %3327 }
 0x9b5   : > { %v3231_v38 = vsel %vm2575_vm0, %v3230_v44, %v3225_v63 }
 0x9b6   : > { %v3232_v37 = vsel %vm2577_vm1, %v3231_v38, %v3228_v36 }
 0x9b7   : > { %v3237_v60 = vrot.slane %v3232_v37, 6 }
 0x9b8   : > { %v3282_v6 = vpop.permute.xlu0 %3281  ;;  %v3340_v25 = vpop.permute.xlu1 %3339 }
 0x9b9   : > { %v3293_v12 = vsel %vm2573_vm14, %v3282_v6, %v6409_v11 }
 0x9bc   : > { %v3322_v55 = vpop.permute.xlu0 %3321  ;;  %v6437_v43 = vpop.permute.xlu1 %3379 }
 0x9bd   : > { %v3333_v3 = vsel %vm2573_vm14, %v3322_v55, %v3325_v0 }
 0x9be   : > { %v3334_v40 = vsel %vm2575_vm0, %v3333_v3, %v3328_v27 }
 0x9c0   : > { %v3198_v42 = vpop.permute.xlu0 %3197  ;;  %v3291_v24 = vpop.permute.xlu1 %3290 }
 0x9c1   : > { %v3201_v61 = vsel %vm2575_vm0, %v3200_v2, %v3198_v42 }
 0x9c2   : > { %v3202_v16 = vsel %vm2577_vm1, %v3201_v61, %v6701_v56 }
 0x9c3   : > { %v3239_v18 = vsel %vm2616_vm2, %v3202_v16, %v3234_v1 }
 0x9c4   : > { %v3252_v58 = vpop.permute.xlu0 %3251  ;;  %v3331_v31 = vpop.permute.xlu1 %3330  ;;  %v3240_v19 = vsel %vm2618_vm3, %v3239_v18, %v3237_v60 }
 0x9c5   : > { %3242 = vrot.lane.b32.xlu0 %v3240_v19, %s4385_s12  ;;  %v3262_v45 = vsel %vm2573_vm14, %v6041_v13, %v3252_v58  ;;  %v3335_v6 = vsel %vm2577_vm1, %v3334_v40, %v3331_v31 }
 0x9c6   : > { %v3352_v55 = vrot.slane %v3335_v6, 7 }
 0x9c8   : > { %v3288_v8 = vpop.permute.xlu0 %3287  ;;  %v6450_v22 = vpop.permute.xlu1 %3382 }
 0x9c9   : > { %v3294_v21 = vsel %vm2575_vm0, %v3293_v12, %v3288_v8 }
 0x9ca   : > { %v3295_v59 = vsel %vm2577_vm1, %v3294_v21, %v3291_v24 }
 0x9cb   : > { %v3300_v20 = vrot.slane %v3295_v59, 6 }
 0x9cc   : > { %v3337_v17 = vpop.permute.xlu0 %3336  ;;  %v3395_v28 = vpop.permute.xlu1 %3394 }
 0x9cd   : > { %v3348_v63 = vsel %vm2573_vm14, %v3337_v17, %v3340_v25 }
 0x9d0   : > { %v3377_v35 = vpop.permute.xlu0 %3376  ;;  %v3435_v10 = vpop.permute.xlu1 %3434 }
 0x9d1   : > { %v3388_v1 = vsel %vm2573_vm14, %v3377_v35, %v6437_v43 }
 0x9d2   : > { %v3389_v56 = vsel %vm2575_vm0, %v3388_v1, %v6450_v22 }
 0x9d4   : > { %v3256_v57 = vpop.permute.xlu0 %3255  ;;  %v3313_v53 = vpop.permute.xlu1 %3312 }
 0x9d5   : > { %v3263_v29 = vsel %vm2575_vm0, %v3262_v45, %v3256_v57 }
 0x9d8   : > { %v3310_v34 = vpop.permute.xlu0 %3309  ;;  %v3365_v52 = vpop.permute.xlu1 %3364 }
 0x9d9   : > { %v3318_v26 = vsel %vm2573_vm14, %v3310_v34, %v5997_v48 }
 0x9da   : > { %v3319_v14 = vsel %vm2575_vm0, %v3318_v26, %v3313_v53 }
 0x9dc   : > { %v3343_v4 = vpop.permute.xlu0 %3342  ;;  %v3386_v23 = vpop.permute.xlu1 %3385 }
 0x9dd   : > { %v3349_v44 = vsel %vm2575_vm0, %v3348_v63, %v3343_v4  ;;  %v3390_v31 = vsel %vm2577_vm1, %v3389_v56, %v3386_v23 }
 0x9de   : > { %v3407_v17 = vrot.slane %v3390_v31, 7 }
 0x9e0   : > { %v3392_v47 = vpop.permute.xlu0 %3391  ;;  %v3438_v9 = vpop.permute.xlu1 %3437 }
 0x9e1   : > { %v3403_v61 = vsel %vm2573_vm14, %v3392_v47, %v3395_v28 }
 0x9e4   : > { %v3432_v0 = vpop.permute.xlu0 %3431  ;;  %v6455_v46 = vpop.permute.xlu1 %3449 }
 0x9e5   : > { %v3443_v16 = vsel %vm2573_vm14, %v3432_v0, %v3435_v10 }
 0x9e6   : > { %v3444_v8 = vsel %vm2575_vm0, %v3443_v16, %v3438_v9 }
 0x9e8   : > { %v3260_v5 = vpop.permute.xlu0 %3259  ;;  %v3401_v36 = vpop.permute.xlu1 %3400 }
 0x9e9   : > { %v3264_v11 = vsel %vm2577_vm1, %v3263_v29, %v3260_v5 }
 0x9ea   : > { %v3302_v50 = vsel %vm2616_vm2, %v3264_v11, %v3297_v15 }
 0x9eb   : > { %v3303_v32 = vsel %vm2618_vm3, %v3302_v50, %v3300_v20 }
 0x9ec   : > { %v3346_v7 = vpop.permute.xlu0 %3345  ;;  %3305 = vrot.lane.b32.xlu1 %v3303_v32, %s4386_s15  ;;  %v3423_v54 = vpop.permute.xlu1 %3422 }
 0x9ed   : > { %v3350_v38 = vsel %vm2577_vm1, %v3349_v44, %v3346_v7 }
 0x9ee   : > { %v3355_v25 = vrot.slane %v3350_v38, 6 }
 0x9f0   : > { %v3368_v30 = vpop.permute.xlu0 %3367  ;;  %v3453_v51 = vpop.permute.xlu1 %3452 }
 0x9f1   : > { %v3373_v19 = vsel %vm2573_vm14, %v3365_v52, %v3368_v30 }
 0x9f2   : > { %v3374_v10 = vsel %vm2575_vm0, %v3373_v19, %v6023_v33 }
 0x9f4   : > { %v3398_v39 = vpop.permute.xlu0 %3397  ;;  %v3426_v13 = vpop.permute.xlu1 %3425 }
 0x9f5   : > { %v3404_v60 = vsel %vm2575_vm0, %v3403_v61, %v3398_v39 }
 0x9f6   : > { %v3405_v43 = vsel %vm2577_vm1, %v3404_v60, %v3401_v36 }
 0x9f7   : > { %v3410_v53 = vrot.slane %v3405_v43, 6 }
 0x9f8   : > { %v3447_v27 = vpop.permute.xlu0 %3446  ;;  %v2674_v49 = vpop.permute.xlu1 %2673 }
 0x9f9   : > { %2677 = vst.msk [vmem:[#allocation3] sm:$0x7] %vm2676_vm5, %v2674_v49  ;;  %v3458_v34 = vsel %vm2573_vm14, %v3447_v27, %v6455_v46 }
 0x9fa   : > { %v3459_v33 = vsel %vm2575_vm0, %v3458_v34, %v3453_v51 }
 0x9fc   : > { %v3316_v3 = vpop.permute.xlu0 %3315  ;;  %v2730_v37 = vpop.permute.xlu1 %2729 }
 0x9fd   : > { %v3320_v2 = vsel %vm2577_vm1, %v3319_v14, %v3316_v3  ;;  %2733 = vst.msk [vmem:[#allocation3] sm:$0x7] %vm2732_vm6, %v2730_v37 }
 0x9fe   : > { %v3357_v40 = vsel %vm2616_vm2, %v3320_v2, %v3352_v55 }
 0x9ff   : > { %v3358_v48 = vsel %vm2618_vm3, %v3357_v40, %v3355_v25 }
 0xa00   : > { %v3420_v42 = vpop.permute.xlu0 %3419  ;;  %3360 = vrot.lane.b32.xlu0 %v3358_v48, %s4360_s14  ;;  %v2786_v24 = vpop.permute.xlu1 %2785 }
 0xa01   : > { %2789 = vst.msk [vmem:[#allocation3] sm:$0x7] %vm2788_vm7, %v2786_v24  ;;  %v3428_v28 = vsel %vm2573_vm14, %v3420_v42, %v3423_v54 }
 0xa02   : > { %v3429_v23 = vsel %vm2575_vm0, %v3428_v28, %v3426_v13 }
 0xa03   : > { %v3430_v46 = vsel %vm2577_vm1, %v3429_v23, %v6059_v41 }
 0xa04   : > { %v3441_v18 = vpop.permute.xlu0 %3440  ;;  %v2850_v58 = vpop.permute.xlu1 %2849 }
 0xa05   : > { %2853 = vst.msk [vmem:[#allocation3] sm:$0x7] %vm2852_vm8, %v2850_v58  ;;  %v3445_v22 = vsel %vm2577_vm1, %v3444_v8, %v3441_v18 }
 0xa06   : > { %v3462_v47 = vrot.slane %v3445_v22, 7 }
 0xa08   : > { %v3371_v35 = vpop.permute.xlu0 %3370  ;;  %v2906_v57 = vpop.permute.xlu1 %2905  ;;  %v3467_v59 = vsel %vm2616_vm2, %v3430_v46, %v3462_v47 }
 0xa09   : > { %v3375_v52 = vsel %vm2577_vm1, %v3374_v10, %v3371_v35  ;;  %2909 = vst.msk [vmem:[#allocation3] sm:$0x7] %vm2908_vm9, %v2906_v57 }
 0xa0a   : > { %v3412_v4 = vsel %vm2616_vm2, %v3375_v52, %v3407_v17 }
 0xa0b   : > { %v3413_v9 = vsel %vm2618_vm3, %v3412_v4, %v3410_v53 }
 0xa0c   : > { %v3456_v12 = vpop.permute.xlu0 %3455  ;;  %3415 = vrot.lane.b32.xlu1 %v3413_v9, %s4356_s25  ;;  %v2962_v21 = vpop.permute.xlu1 %2961 }
 0xa0d   : > { %v3460_v0 = vsel %vm2577_vm1, %v3459_v33, %v3456_v12  ;;  %2965 = vst.msk [vmem:[#allocation3] sm:$0x7] %vm2964_vm10, %v2962_v21 }
 0xa0e   : > { %v3465_v62 = vrot.slane %v3460_v0, 6 }
 0xa10   : > { %v3133_v45 = vpop.permute.xlu0 %3132  ;;  %v3018_v15 = vpop.permute.xlu1 %3017  ;;  %v3468_v29 = vsel %vm2618_vm3, %v3467_v59, %v3465_v62 }
 0xa11   : > { %3135 = vst.msk [vmem:[#allocation3 + $0x4] sm:$0x7] %vm2676_vm5, %v3133_v45  ;;  %3470 = vrot.lane.b32.xlu0 %v3468_v29, %s4365_s26 }
 0xa12   : > { %3021 = vst.msk [vmem:[#allocation3] sm:$0x7] %vm3020_vm11, %v3018_v15 }
 0xa23   : > { %v3188_v5 = vpop.permute.xlu1 %3187 }
 0xa24   : > { %3190 = vst.msk [vmem:[#allocation3 + $0x4] sm:$0x7] %vm2732_vm6, %v3188_v5 }
 0xa37   : > { %v3243_v36 = vpop.permute.xlu0 %3242 }
 0xa38   : > { %3245 = vst.msk [vmem:[#allocation3 + $0x4] sm:$0x7] %vm2788_vm7, %v3243_v36 }
 0xa5e   : > { %v3306_v41 = vpop.permute.xlu1 %3305 }
 0xa5f   : > { %3308 = vst.msk [vmem:[#allocation3 + $0x4] sm:$0x7] %vm2852_vm8, %v3306_v41 }
 0xa72   : > { %v3361_v20 = vpop.permute.xlu0 %3360 }
 0xa73   : > { %3363 = vst.msk [vmem:[#allocation3 + $0x4] sm:$0x7] %vm2908_vm9, %v3361_v20 }
 0xa7e   : > { %v3416_v11 = vpop.permute.xlu1 %3415 }
 0xa7f   : > { %3418 = vst.msk [vmem:[#allocation3 + $0x4] sm:$0x7] %vm2964_vm10, %v3416_v11 }
 0xa80   : > { %3477 = sbr.rel (%p3960_p2) target bundleno = 3428 (0xd64), region = 68 }
 0xa83   : > { %v3471_v50 = vpop.permute.xlu0 %3470 }
 0xa84   : > { %3473 = vst.msk [vmem:[#allocation3 + $0x4] sm:$0x7] %vm3020_vm11, %v3471_v50 }
 0xa85   : > { %vm3482_vm12 = vcmask 1042432   ;;  %v3557_v2 = vld [vmem:[#allocation5 + $0xf8] sm:$0xff]  ;;  %v3556_v42 = vld [vmem:[#allocation5 + $0xf0] sm:$0xff]  ;;  %v3555_v60 = vld [vmem:[#allocation5 + $0xe8] sm:$0xff] }
 0xa86   : > { %v3541_v40 = vld [vmem:[#allocation5 + $0x78] sm:$0xff]  ;;  %4057 = vmatprep.subr.mxu0 %v3557_v2  ;;  %v3540_v1 = vld [vmem:[#allocation5 + $0x70] sm:$0xff]  ;;  %v3539_v16 = vld [vmem:[#allocation5 + $0x68] sm:$0xff] }
 0xa87   : > { %v3672_v48 = vld [vmem:[#allocation5 + $0x1f8] sm:$0xff]  ;;  %4058 = vmatpush3.msra.mxu0 %v3541_v40  ;;  %v3671_v61 = vld [vmem:[#allocation5 + $0x1f0] sm:$0xff]  ;;  %v3670_v18 = vld [vmem:[#allocation5 + $0x1e8] sm:$0xff] }
 0xa88   : > { %4092 = vmatprep.subr.mxu1 %v3672_v48  ;;  %v3656_v24 = vld [vmem:[#allocation5 + $0x178] sm:$0xff]  ;;  %v3655_v56 = vld [vmem:[#allocation5 + $0x170] sm:$0xff]  ;;  %4059 = vmatprep.subr.mxu0 %v3556_v42  ;;  %v3554_v58 = vld [vmem:[#allocation5 + $0xe0] sm:$0xff] }
 0xa89   : > { %4093 = vmatpush3.msra.mxu1 %v3656_v24  ;;  %4060 = vmatpush3.msra.mxu0 %v3540_v1  ;;  %v3654_v31 = vld [vmem:[#allocation5 + $0x168] sm:$0xff]  ;;  %v3669_v19 = vld [vmem:[#allocation5 + $0x1e0] sm:$0xff]  ;;  %v3553_v17 = vld [vmem:[#allocation5 + $0xd8] sm:$0xff] }
 0xa8a   : > { %4094 = vmatprep.subr.mxu1 %v3671_v61  ;;  %4061 = vmatprep.subr.mxu0 %v3555_v60  ;;  %v3538_v43 = vld [vmem:[#allocation5 + $0x60] sm:$0xff]  ;;  %v3668_v28 = vld [vmem:[#allocation5 + $0x1d8] sm:$0xff]  ;;  %v3552_v10 = vld [vmem:[#allocation5 + $0xd0] sm:$0xff] }
 0xa8b   : > { %v3478_v32 = vld [vmem:[#allocation3] sm:$0x77]  ;;  %4095 = vmatpush3.msra.mxu1 %v3655_v56  ;;  %v3653_v8 = vld [vmem:[#allocation5 + $0x160] sm:$0xff]  ;;  %4062 = vmatpush3.msra.mxu0 %v3539_v16  ;;  %v3551_v52 = vld [vmem:[#allocation5 + $0xc8] sm:$0xff] }
 0xa8c   : > { %v3480_v7 = vcombine.high %v3478_v32, %v3478_v32  ;;  %v3483_v54 = vsel %vm3482_vm12, %v3478_v32, 0.0  ;;  %4096 = vmatprep.subr.mxu1 %v3670_v18  ;;  %4063 = vmatprep.subr.mxu0 %v3554_v58  ;;  %v3537_v22 = vld [vmem:[#allocation5 + $0x58] sm:$0xff]  ;;  %v3667_v57 = vld [vmem:[#allocation5 + $0x1d0] sm:$0xff]  ;;  %v3666_v4 = vld [vmem:[#allocation5 + $0x1c8] sm:$0xff] }
 0xa8d   : > { %4097 = vmatpush3.msra.mxu1 %v3654_v31  ;;  %v3652_v35 = vld [vmem:[#allocation5 + $0x158] sm:$0xff]  ;;  %4064 = vmatpush3.msra.mxu0 %v3538_v43  ;;  %v3536_v53 = vld [vmem:[#allocation5 + $0x50] sm:$0xff]  ;;  %v3535_v23 = vld [vmem:[#allocation5 + $0x48] sm:$0xff] }
 0xa8e   : > { %v3484_v30 = vsel %vm3482_vm12, %v3480_v7, 0.0  ;;  %4098 = vmatprep.subr.mxu1 %v3669_v19  ;;  %4065 = vmatprep.subr.mxu0 %v3553_v17  ;;  %v3651_v34 = vld [vmem:[#allocation5 + $0x150] sm:$0xff]  ;;  %v3650_v47 = vld [vmem:[#allocation5 + $0x148] sm:$0xff]  ;;  %v3550_v9 = vld [vmem:[#allocation5 + $0xc0] sm:$0xff] }
 0xa8f   : > { %v3485_v51 = vadd.f32 %v3484_v30, %v3483_v54  ;;  %4099 = vmatpush3.msra.mxu1 %v3653_v8  ;;  %4066 = vmatpush3.msra.mxu0 %v3537_v22  ;;  %v3665_v12 = vld [vmem:[#allocation5 + $0x1c0] sm:$0xff]  ;;  %v3549_v0 = vld [vmem:[#allocation5 + $0xb8] sm:$0xff]  ;;  %v3548_v45 = vld [vmem:[#allocation5 + $0xb0] sm:$0xff] }
 0xa90   : > { %4100 = vmatprep.subr.mxu1 %v3668_v28  ;;  %4067 = vmatprep.subr.mxu0 %v3552_v10  ;;  %v3534_v33 = vld [vmem:[#allocation5 + $0x40] sm:$0xff]  ;;  %v3664_v46 = vld [vmem:[#allocation5 + $0x1b8] sm:$0xff]  ;;  %v3663_v15 = vld [vmem:[#allocation5 + $0x1b0] sm:$0xff] }
 0xa91   : > { %3486 = vadd.xlane.f32.xlu0 %v3485_v51  ;;  %4101 = vmatpush3.msra.mxu1 %v3652_v35  ;;  %v3649_v21 = vld [vmem:[#allocation5 + $0x140] sm:$0xff]  ;;  %v3533_v62 = vld [vmem:[#allocation5 + $0x38] sm:$0xff]  ;;  %v3532_v29 = vld [vmem:[#allocation5 + $0x30] sm:$0xff] }
 0xa92   : > { %4102 = vmatprep.subr.mxu1 %v3667_v57  ;;  %4068 = vmatpush3.msra.mxu0 %v3536_v53  ;;  %v3648_v59 = vld [vmem:[#allocation5 + $0x138] sm:$0xff]  ;;  %v3647_v5 = vld [vmem:[#allocation5 + $0x130] sm:$0xff]  ;;  %v3547_v36 = vld [vmem:[#allocation5 + $0xa8] sm:$0xff] }
 0xa93   : > { %4103 = vmatpush3.msra.mxu1 %v3651_v34  ;;  %4069 = vmatprep.subr.mxu0 %v3551_v52  ;;  %v3662_v41 = vld [vmem:[#allocation5 + $0x1a8] sm:$0xff]  ;;  %v3530_v30 = vld [vmem:[#allocation5 + $0x20] sm:$0xff]  ;;  %v3786_v56 = vld [vmem:[#allocation5 + $0x2f8] sm:$0xff] }
 0xa94   : > { %4104 = vmatprep.subr.mxu1 %v3666_v4  ;;  %4070 = vmatpush3.msra.mxu0 %v3535_v23  ;;  %v3531_v20 = vld [vmem:[#allocation5 + $0x28] sm:$0xff]  ;;  %v3661_v51 = vld [vmem:[#allocation5 + $0x1a0] sm:$0xff]  ;;  %v3770_v23 = vld [vmem:[#allocation5 + $0x278] sm:$0xff] }
 0xa95   : > { %4105 = vmatpush3.msra.mxu1 %v3650_v47  ;;  %4071 = vmatprep.subr.mxu0 %v3550_v9  ;;  %v3646_v7 = vld [vmem:[#allocation5 + $0x128] sm:$0xff]  ;;  %v3542_v48 = vld [vmem:[#allocation5 + $0x80] sm:$0xff]  ;;  %v3785_v47 = vld [vmem:[#allocation5 + $0x2f0] sm:$0xff] }
 0xa96   : > { %4106 = vmatprep.subr.mxu1 %v3665_v12  ;;  %4072 = vmatpush3.msra.mxu0 %v3534_v33  ;;  %v3527_v2 = vld [vmem:[#allocation5 + $0x8] sm:$0xff]  ;;  %v3526_v24 = vld [vmem:[#allocation5] sm:$0xff]  ;;  %v3769_v12 = vld [vmem:[#allocation5 + $0x270] sm:$0xff] }
 0xa97   : > { %4107 = vmatpush3.msra.mxu1 %v3649_v21  ;;  %4073 = vmatprep.subr.mxu0 %v3549_v0  ;;  %v3658_v40 = vld [vmem:[#allocation5 + $0x188] sm:$0xff]  ;;  %v3657_v1 = vld [vmem:[#allocation5 + $0x180] sm:$0xff] }
 0xa98   : > { %4108 = vmatprep.subr.mxu1 %v3664_v46  ;;  %4074 = vmatpush3.msra.mxu0 %v3533_v62  ;;  %v3642_v42 = vld [vmem:[#allocation5 + $0x108] sm:$0xff]  ;;  %v3641_v60 = vld [vmem:[#allocation5 + $0x100] sm:$0xff]  ;;  %v3782_v62 = vld [vmem:[#allocation5 + $0x2d8] sm:$0xff] }
 0xa99   : > { %4109 = vmatpush3.msra.mxu1 %v3648_v59  ;;  %4075 = vmatprep.subr.mxu0 %v3548_v45  ;;  %v3521_v31 = vld [vmem:[%s6567_s5] sm:$0x77]  ;;  %v3766_v59 = vld [vmem:[#allocation5 + $0x258] sm:$0xff]  ;;  %v3781_v45 = vld [vmem:[#allocation5 + $0x2d0] sm:$0xff] }
 0xa9a   : > { %4110 = vmatprep.subr.mxu1 %v3663_v15  ;;  %4076 = vmatpush3.msra.mxu0 %v3532_v29  ;;  %v3523_v43 = vld [vmem:[%s6568_s6] sm:$0x77]  ;;  %v3765_v15 = vld [vmem:[#allocation5 + $0x250] sm:$0xff] }
 0xa9b   : > { %4111 = vmatpush3.msra.mxu1 %v3647_v5  ;;  %4077 = vmatprep.subr.mxu0 %v3547_v36  ;;  %v6702_v17 = vld [vmem:[#allocation8_spill] sm:$0xff]  ;;  %v3784_v33 = vld [vmem:[#allocation5 + $0x2e8] sm:$0xff] }
 0xa9c   : > { %4112 = vmatprep.subr.mxu1 %v3662_v41  ;;  %4078 = vmatpush3.msra.mxu0 %v3531_v20  ;;  %v3565_v28 = vsub.s32 4, %v6702_v17  ;;  %v3679_v22 = vsub.s32 5, %v6702_v17  ;;  %v3793_v10 = vsub.s32 6, %v6702_v17  ;;  %v6703_v34 = vsub.s32 0, %v6702_v17  ;;  %v3768_v21 = vld [vmem:[#allocation5 + $0x268] sm:$0xff]  ;;  %v3783_v0 = vld [vmem:[#allocation5 + $0x2e0] sm:$0xff] }
 0xa9d   : > { %4113 = vmatpush3.msra.mxu1 %v3646_v7  ;;  %v6704_v52 = vsub.s32 1, %v6702_v17  ;;  %v3767_v46 = vld [vmem:[#allocation5 + $0x260] sm:$0xff]  ;;  %v3780_v29 = vld [vmem:[#allocation5 + $0x2c8] sm:$0xff]  ;;  %v3778_v20 = vld [vmem:[#allocation5 + $0x2b8] sm:$0xff] }
 0xa9e   : > { %4114 = vmatprep.subr.mxu1 %v3661_v51  ;;  %v3764_v5 = vld [vmem:[#allocation5 + $0x248] sm:$0xff]  ;;  %v3779_v36 = vld [vmem:[#allocation5 + $0x2c0] sm:$0xff] }
 0xa9f   : > { %v3763_v41 = vld [vmem:[#allocation5 + $0x240] sm:$0xff]  ;;  %v3776_v7 = vld [vmem:[#allocation5 + $0x2a8] sm:$0xff] }
 0xaa0   : > { %v3759_v51 = vld [vmem:[#allocation5 + $0x220] sm:$0xff] }
 0xb1a   : > { %v3487_v39 = vpop.xlane.xlu0 %3486 }
 0xb1b   : > { %v3488_v13 = vrot.slane %v3487_v39, 4 }
 0xb1d   : > { %v3489_v63 = vadd.f32 %v3488_v13, %v3487_v39  ;;  %v3545_v39 = vld [vmem:[#allocation5 + $0x98] sm:$0xff]  ;;  %v3645_v13 = vld [vmem:[#allocation5 + $0x120] sm:$0xff] }
 0xb1e   : > { %4115 = vmatpush3.msra.mxu1 %v3645_v13  ;;  %v3758_v13 = vld [vmem:[#allocation5 + $0x218] sm:$0xff] }
 0xb1f   : > { %v3490_v27 = vrot.slane %v3489_v63, 2 }
 0xb21   : > { %v3491_v49 = vadd.f32 %v3490_v27, %v3489_v63  ;;  %v3529_v27 = vld [vmem:[#allocation5 + $0x18] sm:$0xff] }
 0xb23   : > { %v3492_v6 = vrot.slane %v3491_v49, 1 }
 0xb25   : > { %v3493_v26 = vadd.f32 %v3492_v6, %v3491_v49  ;;  %v3660_v49 = vld [vmem:[#allocation5 + $0x198] sm:$0xff]  ;;  %v3544_v6 = vld [vmem:[#allocation5 + $0x90] sm:$0xff] }
 0xb26   : > { %4116 = vmatprep.subr.mxu1 %v3660_v49  ;;  %v3772_v49 = vld [vmem:[#allocation5 + $0x288] sm:$0xff] }
 0xb27   : > { %4200 = vpush %v3493_v26  ;;  %v3644_v26 = vld [vmem:[#allocation5 + $0x118] sm:$0xff] }
 0xb28   : > { %4117 = vmatpush3.msra.mxu1 %v3644_v26  ;;  %v3771_v26 = vld [vmem:[#allocation5 + $0x280] sm:$0xff] }
 0xb58   : > { %s4201_s25 = spop %4200 }
 0xb59   : > { %s3495_s10 = smul.f32 0.0013020834, %s4201_s25 }
 0xb5b   : > { %v3496_v44 = vstv %s3495_s10 }
 0xb5c   : > { %v6523_v38 = vsub.f32 %v3478_v32, %v3496_v44  ;;  %v3546_v32 = vld [vmem:[#allocation5 + $0xa0] sm:$0xff] }
 0xb5d   : > { %4079 = vmatprep.subr.mxu0 %v3546_v32  ;;  %v3761_v32 = vld [vmem:[#allocation5 + $0x230] sm:$0xff] }
 0xb5e   : > { %v3498_v55 = vmul.f32 %v6523_v38, %v6523_v38  ;;  %4080 = vmatpush3.msra.mxu0 %v3530_v30  ;;  %v3775_v30 = vld [vmem:[#allocation5 + $0x2a0] sm:$0xff] }
 0xb5f   : > { %4081 = vmatprep.subr.mxu0 %v3545_v39  ;;  %v3774_v39 = vld [vmem:[#allocation5 + $0x298] sm:$0xff] }
 0xb60   : > { %v3500_v3 = vcombine.high %v3498_v55, %v3498_v55  ;;  %v3502_v14 = vsel %vm3482_vm12, %v3498_v55, 0.0  ;;  %4082 = vmatpush3.msra.mxu0 %v3529_v27  ;;  %v3528_v55 = vld [vmem:[#allocation5 + $0x10] sm:$0xff] }
 0xb61   : > { %4083 = vmatprep.subr.mxu0 %v3544_v6  ;;  %v3757_v27 = vld [vmem:[#allocation5 + $0x210] sm:$0xff]  ;;  %v3756_v6 = vld [vmem:[#allocation5 + $0x208] sm:$0xff] }
 0xb62   : > { %v3503_v37 = vsel %vm3482_vm12, %v3500_v3, 0.0  ;;  %v3659_v3 = vld [vmem:[#allocation5 + $0x190] sm:$0xff]  ;;  %4084 = vmatpush3.msra.mxu0 %v3528_v55  ;;  %v6705_v55 = vsub.s32 2, %v6702_v17 }
 0xb63   : > { %v3504_v25 = vadd.f32 %v3503_v37, %v3502_v14  ;;  %4118 = vmatprep.subr.mxu1 %v3659_v3  ;;  %v3543_v14 = vld [vmem:[#allocation5 + $0x88] sm:$0xff]  ;;  %v3643_v37 = vld [vmem:[#allocation5 + $0x110] sm:$0xff] }
 0xb64   : > { %4085 = vmatprep.subr.mxu0 %v3543_v14  ;;  %4119 = vmatpush3.msra.mxu1 %v3643_v37 }
 0xb65   : > { %3505 = vadd.xlane.f32.xlu0 %v3504_v25  ;;  %4086 = vmatpush3.msra.mxu0 %v3527_v2 }
 0xb66   : > { %4120 = vmatprep.subr.mxu1 %v3658_v40  ;;  %4087 = vmatprep.subr.mxu0 %v3542_v48  ;;  %v3525_v40 = vld [vmem:[%s6570_s8] sm:$0x1] }
 0xb67   : > { %4121 = vmatpush3.msra.mxu1 %v3642_v42  ;;  %4088 = vmatpush3.msra.mxu0 %v3526_v24 }
 0xb68   : > { %4122 = vmatprep.subr.mxu1 %v3657_v1  ;;  %4127 = vmatprep.subr.mxu0 %v3786_v56 }
 0xb69   : > { %4123 = vmatpush3.msra.mxu1 %v3641_v60 }
 0xbee   : > { %v3506_v11 = vpop.xlane.xlu0 %3505 }
 0xbef   : > { %v3507_v50 = vrot.slane %v3506_v11, 4 }
 0xbf1   : > { %v3508_v54 = vadd.f32 %v3507_v50, %v3506_v11  ;;  %v3762_v11 = vld [vmem:[#allocation5 + $0x238] sm:$0xff]  ;;  %v3777_v50 = vld [vmem:[#allocation5 + $0x2b0] sm:$0xff] }
 0xbf3   : > { %v3509_v63 = vrot.slane %v3508_v54, 2 }
 0xbf5   : > { %v3510_v44 = vadd.f32 %v3509_v63, %v3508_v54  ;;  %v3760_v54 = vld [vmem:[#allocation5 + $0x228] sm:$0xff]  ;;  %v3773_v63 = vld [vmem:[#allocation5 + $0x290] sm:$0xff] }
 0xbf7   : > { %v3511_v25 = vrot.slane %v3510_v44, 1 }
 0xbf9   : > { %v3512_v61 = vadd.f32 %v3511_v25, %v3510_v44  ;;  %v3755_v44 = vld [vmem:[#allocation5 + $0x200] sm:$0xff] }
 0xbfb   : > { %4202 = vpush %v3512_v61 }
 0xc2c   : > { %s4203_s14 = spop %4202 }
 0xc2d   : > { %s3514_s26 = smul.f32 0.0013020834, %s4203_s14 }
 0xc2f   : > { %s3515_s22 = sadd.f32 1e-05, %s3514_s26 }
 0xc31   : > { %v3516_v16 = vstv %s3515_s22 }
 0xc32   : > { %4292 = vrsqrt.f32 %v3516_v16 }
 0xc3f   : > { %v4293_v18 = vpop.eup %4292 }
 0xc40   : > { %4204 = vpush %v4293_v18 }
 0xc71   : > { %s4205_s19 = spop %4204 }
 0xc72   : > { %v3519_v58 = vstv %s4205_s19 }
 0xc73   : > { %v3520_v19 = vmul.f32 %v3519_v58, %v6523_v38 }
 0xc75   : > { %v3522_v8 = vmul.f32 %v3521_v31, %v3520_v19 }
 0xc77   : > { %v6538_v35 = vadd.f32 %v3523_v43, %v3522_v8 }
 0xc79   : > { %v3566_v57 = vrot.slane %v6538_v35, %v3565_v28  ;;  %v3680_v53 = vrot.slane %v6538_v35, %v3679_v22  ;;  %v3562_v38 = vrot.slane %v6538_v35, %v6703_v34  ;;  %v3676_v4 = vrot.slane %v6538_v35, %v6704_v52 }
 0xc7a   : > { %v3794_v9 = vrot.slane %v6538_v35, %v3793_v10  ;;  %v3790_v3 = vrot.slane %v6538_v35, %v6705_v55 }
 0xc7b   : > { %3633 = vmatprep.mubr.f32.mxu0 %v3566_v57  ;;  %3747 = vmatprep.mubr.f32.mxu1 %v3680_v53 }
 0xc7c   : > { %3634 = vmatmul.mubr.f32.vlgmr.msra.gmra.mxu0 %v3562_v38  ;;  %3748 = vmatmul.mubr.f32.vlgmr.msra.gmra.mxu1 %v3676_v4 }
 0xc7d   : > { %4128 = vmatpush3.msra.mxu0 %v3770_v23  ;;  %3861 = vmatprep.mubr.f32.mxu0 %v3794_v9 }
 0xc7e   : > { %4129 = vmatprep.subr.mxu0 %v3785_v47 }
 0xc7f   : > { %4130 = vmatpush3.msra.mxu0 %v3769_v12 }
 0xc80   : > { %4131 = vmatprep.subr.mxu0 %v3784_v33 }
 0xc81   : > { %4132 = vmatpush3.msra.mxu0 %v3768_v21 }
 0xc82   : > { %4133 = vmatprep.subr.mxu0 %v3783_v0 }
 0xc83   : > { %4134 = vmatpush3.msra.mxu0 %v3767_v46 }
 0xc84   : > { %4135 = vmatprep.subr.mxu0 %v3782_v62 }
 0xc85   : > { %4136 = vmatpush3.msra.mxu0 %v3766_v59 }
 0xc86   : > { %4137 = vmatprep.subr.mxu0 %v3781_v45 }
 0xc87   : > { %4138 = vmatpush3.msra.mxu0 %v3765_v15 }
 0xc88   : > { %4139 = vmatprep.subr.mxu0 %v3780_v29 }
 0xc89   : > { %4140 = vmatpush3.msra.mxu0 %v3764_v5 }
 0xc8a   : > { %4141 = vmatprep.subr.mxu0 %v3779_v36 }
 0xc8b   : > { %4142 = vmatpush3.msra.mxu0 %v3763_v41 }
 0xc8c   : > { %4143 = vmatprep.subr.mxu0 %v3778_v20 }
 0xc8d   : > { %4144 = vmatpush3.msra.mxu0 %v3762_v11 }
 0xc8e   : > { %4145 = vmatprep.subr.mxu0 %v3777_v50 }
 0xc8f   : > { %4146 = vmatpush3.msra.mxu0 %v3761_v32 }
 0xc90   : > { %4147 = vmatprep.subr.mxu0 %v3776_v7 }
 0xc91   : > { %4148 = vmatpush3.msra.mxu0 %v3760_v54 }
 0xc92   : > { %4149 = vmatprep.subr.mxu0 %v3775_v30 }
 0xc93   : > { %4150 = vmatpush3.msra.mxu0 %v3759_v51 }
 0xc94   : > { %4151 = vmatprep.subr.mxu0 %v3774_v39 }
 0xc95   : > { %4152 = vmatpush3.msra.mxu0 %v3758_v13 }
 0xc96   : > { %4153 = vmatprep.subr.mxu0 %v3773_v63 }
 0xc97   : > { %4154 = vmatpush3.msra.mxu0 %v3757_v27 }
 0xc98   : > { %4155 = vmatprep.subr.mxu0 %v3772_v49 }
 0xc99   : > { %4156 = vmatpush3.msra.mxu0 %v3756_v6 }
 0xc9a   : > { %4157 = vmatprep.subr.mxu0 %v3771_v26 }
 0xc9b   : > { %4158 = vmatpush3.msra.mxu0 %v3755_v44 }
 0xc9c   : > { %3862 = vmatmul.mubr.f32.vlgmr.msra.gmra.mxu0 %v3790_v3 }
 0xd3c   : > { %v4089_v14 = vpop.f32.mrf.mxu0  ;;  %v4124_v25 = vpop.f32.mrf.mxu1 }
 0xd3e   : > { %v4090_v37 = vpop.f32.mrf.mxu0  ;;  %v4125_v48 = vpop.f32.mrf.mxu1 }
 0xd3f   : > { %v4091_v2 = vadd.f32 %v4090_v37, %v4089_v14  ;;  %v4126_v1 = vadd.f32 %v4125_v48, %v4124_v25 }
 0xd41   : > { %v3639_v42 = vadd.f32 %v4091_v2, %v3525_v40 }
 0xd43   : > { %v3753_v60 = vadd.f32 %v4126_v1, %v3639_v42 }
 0xd5c   : > { %v4159_v24 = vpop.f32.mrf.mxu0 }
 0xd5e   : > { %v4160_v61 = vpop.f32.mrf.mxu0 }
 0xd5f   : > { %v4161_v56 = vadd.f32 %v4160_v61, %v4159_v24 }
 0xd61   : > { %v3867_v16 = vadd.f32 %v4161_v56, %v3753_v60 }
 0xd63   : > { %3868 = vst [vmem:[%s6571_s9] sm:$0x1] %v3867_v16 }
 0xd64 PF: > { %s20_s30 = sadd.s32 1, %s4330_s30  }
 0xd65   : > { %p17_p3 = scmp.ge.s32.totalorder %s20_s30, 4  }
 0xd67   :  { %19 = sbr.rel (!%p17_p3) target bundleno = 1 (0x1), region = 155 }
 0xd6c   :  { %3880 = vsyncpa [#allocation6], 1 }
 0xd6d   :  { %3882 = vsyncpa [#allocation6 + $0x1], 1 }

</bundles_post_ra>
